<compile_context>
chip_gen: v7x
topology: tpu7x:2x2x1
jax: 0.10.0
libtpu: 0.0.40
codegen_flags: <defaults>
</compile_context>

<pallas_src>
import numpy as np

import jax
import jax.numpy as jnp
from jax.experimental import pallas as pl
from jax.experimental.pallas import tpu as pltpu

EPS = 1e-5  # nn.LayerNorm default eps


def _layernorm(x, w, b):
    x = x.astype(jnp.float32)
    mu = jnp.mean(x, axis=-1, keepdims=True)
    var = jnp.mean((x - mu) ** 2, axis=-1, keepdims=True)
    return (x - mu) * jax.lax.rsqrt(var + EPS) * w + b


def _make_kernel(heads, dim_head, compute_dtype):
    inner = heads * dim_head

    def kernel(x_ref, lat_ref,
               nm_w, nm_b, nl_w, nl_b,     # norm_media / norm_latents params (f32, (1, D))
               wqkv, wkv, wo,              # fused projections (compute_dtype)
               out_ref):
        blk, n_x, d = x_ref.shape
        _, n_lat, _ = lat_ref.shape

        # ---- LayerNorms (f32) -------------------------------------------------
        xm = _layernorm(x_ref[...], nm_w[...], nm_b[...])        # (blk, N, D)
        latn = _layernorm(lat_ref[...], nl_w[...], nl_b[...])    # (blk, L, D)

        # Fold the block-batch into the MXU M dimension; cast LHS to bf16 once.
        xm2 = xm.reshape(blk * n_x, d).astype(compute_dtype)
        latn2 = latn.reshape(blk * n_lat, d).astype(compute_dtype)

        # ---- Fused projections: one matmul per slab ----------------------------
        # latents -> [q | k_l | v_l], x -> [k_x | v_x]; cast results to bf16 once.
        qkv_l = jnp.dot(latn2, wqkv[...],
                        preferred_element_type=jnp.float32).astype(compute_dtype)
        kv_x = jnp.dot(xm2, wkv[...],
                       preferred_element_type=jnp.float32).astype(compute_dtype)

        # Splits at multiples of `inner` lanes (a multiple of 128 for the module
        # defaults) are full-vreg boundaries.
        q = qkv_l[:, 0 * inner:1 * inner].reshape(blk, n_lat, inner)
        k_l = qkv_l[:, 1 * inner:2 * inner].reshape(blk, n_lat, inner)
        v_l = qkv_l[:, 2 * inner:3 * inner].reshape(blk, n_lat, inner)
        k_x = kv_x[:, 0 * inner:1 * inner].reshape(blk, n_x, inner)
        v_x = kv_x[:, 1 * inner:2 * inner].reshape(blk, n_x, inner)

        # ---- Attention: joint softmax over [x tokens ; latent tokens] ----------
        # Batched over the block-batch via dot_general batch dims; only the short
        # head loop is unrolled.  The kv concat is never materialized.
        o_heads = []
        for h in range(heads):
            s = h * dim_head
            qh = q[:, :, s:s + dim_head]       # (blk, L, dh)  bf16
            kxh = k_x[:, :, s:s + dim_head]    # (blk, N, dh)
            klh = k_l[:, :, s:s + dim_head]    # (blk, L, dh)

            sim_x = jnp.einsum('bid,bjd->bij', qh, kxh,
                               preferred_element_type=jnp.float32)   # (blk, L, N)
            sim_l = jnp.einsum('bid,bjd->bij', qh, klh,
                               preferred_element_type=jnp.float32)   # (blk, L, L)

            m = jnp.maximum(jnp.max(sim_x, axis=-1, keepdims=True),
                            jnp.max(sim_l, axis=-1, keepdims=True))
            p_x = jnp.exp(sim_x - m)
            p_l = jnp.exp(sim_l - m)
            denom = (jnp.sum(p_x, axis=-1, keepdims=True)
                     + jnp.sum(p_l, axis=-1, keepdims=True))
            inv = pl.reciprocal(denom, approx=True)                   # EUP slot

            oh = (jnp.einsum('bij,bjd->bid', (p_x * inv).astype(compute_dtype),
                             v_x[:, :, s:s + dim_head],
                             preferred_element_type=jnp.float32)
                  + jnp.einsum('bij,bjd->bid', (p_l * inv).astype(compute_dtype),
                               v_l[:, :, s:s + dim_head],
                               preferred_element_type=jnp.float32))   # (blk, L, dh)
            o_heads.append(oh)

        # ---- Output projection: one (blk*L, inner) x (inner, D) matmul ---------
        o_all = jnp.concatenate(o_heads, axis=-1)                     # (blk, L, inner)
        z = jnp.dot(o_all.reshape(blk * n_lat, inner).astype(compute_dtype),
                    wo[...], preferred_element_type=jnp.float32)      # (blk*L, D)
        out_ref[...] = z.reshape(blk, n_lat, d).astype(out_ref.dtype)

    return kernel


def _block_footprint_bytes(blk, n_x, n_lat, d, inner, io_bytes):
    """Conservative per-grid-step VMEM estimate for block-batch `blk`."""
    io = 2 * blk * (n_x + 2 * n_lat) * d * io_bytes                 # 2x-buffered x/lat/out blocks
    ln = blk * (n_x + n_lat) * d * (4 + 2)                          # f32 LN result + bf16 copy
    proj = (blk * n_lat * 3 * inner + blk * n_x * 2 * inner) * (4 + 2)  # f32 transient + bf16 slabs
    scores = 4 * blk * n_lat * (n_x + n_lat) * 4                    # sim/p for both score blocks
    outp = blk * n_lat * inner * 4 + blk * n_lat * d * 4            # o_all + z
    return io + ln + proj + scores + outp


def _pick_block(bt, n_x, n_lat, d, inner, *, io_bytes=4,
                vmem_budget_bytes=24 << 20):
    """Largest power-of-two block-batch that fits the VMEM budget; prefers a
    grid of >= 2 steps so both v7x TensorCores get work."""
    blk = 1
    while (blk * 2 <= bt
           and _block_footprint_bytes(blk * 2, n_x, n_lat, d, inner,
                                      io_bytes) <= vmem_budget_bytes):
        blk *= 2
    while blk > 1 and -(-bt // blk) < 2:    # keep >= 2 grid steps when possible
        blk //= 2
    return blk


def perceiver_attention(x, latents, params, *, heads=8, dim_head=64,
                        matmul_dtype=jnp.bfloat16, io_dtype=jnp.float32,
                        block_bt=None, vmem_budget_bytes=24 << 20,
                        vmem_limit_bytes=None, single_buffer_weights=True):
    """x: (B, T, N, D), latents: (B, T, L, D) -> (B, T, L, D).

    io_dtype=jnp.bfloat16 halves streamed bytes (useful on v5e); LayerNorm is
    always computed in f32 inside the kernel.  vmem_budget_bytes bounds the
    block-batch size (use ~12 MiB on v5e's 16 MiB scoped default).
    """
    b, t, n, d = x.shape
    _, _, n_lat, _ = latents.shape
    inner = heads * dim_head
    bt = b * t

    # ---- Host-side weight prep (fold q scale, fuse projections, cast) ---------
    scale = dim_head ** (-0.5)
    wq = params['to_q'] * scale
    wk = params['to_kv'][:, :inner]
    wv = params['to_kv'][:, inner:]
    wqkv = jnp.concatenate([wq, wk, wv], axis=1).astype(matmul_dtype)   # (D, 3*inner)
    wkv = jnp.concatenate([wk, wv], axis=1).astype(matmul_dtype)        # (D, 2*inner)
    wo = params['to_out'].astype(matmul_dtype)                          # (inner, D)
    nm_w = params['norm_media_w'].reshape(1, d).astype(jnp.float32)
    nm_b = params['norm_media_b'].reshape(1, d).astype(jnp.float32)
    nl_w = params['norm_latents_w'].reshape(1, d).astype(jnp.float32)
    nl_b = params['norm_latents_b'].reshape(1, d).astype(jnp.float32)

    io_bytes = np.dtype(io_dtype).itemsize
    blk = (_pick_block(bt, n, n_lat, d, inner, io_bytes=io_bytes,
                       vmem_budget_bytes=vmem_budget_bytes)
           if block_bt is None else block_bt)
    num_blocks = -(-bt // blk)
    blk = -(-bt // num_blocks)          # refine: same grid length, minimal padding
    num_blocks = -(-bt // blk)
    bt_pad = num_blocks * blk

    # Pad bt up to a multiple of blk (padded rows are finite garbage, sliced off).
    x_f = x.reshape(bt, n, d).astype(io_dtype)
    lat_f = latents.reshape(bt, n_lat, d).astype(io_dtype)
    if bt_pad != bt:
        pad = bt_pad - bt
        x_f = jnp.pad(x_f, ((0, pad), (0, 0), (0, 0)))
        lat_f = jnp.pad(lat_f, ((0, pad), (0, 0), (0, 0)))

    weights = [nm_w, nm_b, nl_w, nl_b, wqkv, wkv, wo]
    kernel = _make_kernel(heads, dim_head, matmul_dtype)

    def run(use_single_buffer):
        def const_spec(a):
            nd = a.ndim
            kwargs = {}
            if use_single_buffer:
                # Grid-invariant weights: no need to double-buffer them.
                kwargs['pipeline_mode'] = pl.Buffered(1)
            return pl.BlockSpec(a.shape, lambda i, nd=nd: (0,) * nd, **kwargs)

        in_specs = ([pl.BlockSpec((blk, n, d), lambda i: (i, 0, 0)),
                     pl.BlockSpec((blk, n_lat, d), lambda i: (i, 0, 0))]
                    + [const_spec(a) for a in weights])
        out_spec = pl.BlockSpec((blk, n_lat, d), lambda i: (i, 0, 0))

        cp_kwargs = dict(dimension_semantics=("parallel",))
        if vmem_limit_bytes is not None:
            cp_kwargs['vmem_limit_bytes'] = vmem_limit_bytes

        return pl.pallas_call(
            kernel,
            out_shape=jax.ShapeDtypeStruct((bt_pad, n_lat, d), jnp.float32),
            grid_spec=pltpu.PrefetchScalarGridSpec(
                num_scalar_prefetch=0,
                grid=(num_blocks,),
                in_specs=in_specs,
                out_specs=out_spec,
            ),
            compiler_params=pltpu.CompilerParams(**cp_kwargs),
        )(x_f, lat_f, *weights)

    if single_buffer_weights:
        try:
            out = run(True)
        except Exception:   # pl.Buffered(1) not supported -> default buffering
            out = run(False)
    else:
        out = run(False)

    return out[:bt].reshape(b, t, n_lat, d)


def perceiver_attention_ref(x, latents, params, *, heads=8, dim_head=64):
    """Pure-JAX f32 reference matching the PyTorch forward exactly."""
    inner = heads * dim_head
    scale = dim_head ** (-0.5)

    xm = _layernorm(x, params['norm_media_w'], params['norm_media_b'])
    latn = _layernorm(latents, params['norm_latents_w'], params['norm_latents_b'])

    q = latn @ params['to_q']                                 # (B, T, L, inner)
    kv_in = jnp.concatenate([xm, latn], axis=-2)              # (B, T, N+L, D)
    kv = kv_in @ params['to_kv']
    k, v = kv[..., :inner], kv[..., inner:]

    B, T = x.shape[:2]

    def split(a):  # (B, T, n, inner) -> (B, heads, T, n, dh)
        n_tok = a.shape[2]
        return a.reshape(B, T, n_tok, heads, dim_head).transpose(0, 3, 1, 2, 4)

    qh, kh, vh = split(q) * scale, split(k), split(v)
    sim = jnp.einsum('bhtid,bhtjd->bhtij', qh, kh)
    sim = sim - jnp.max(sim, axis=-1, keepdims=True)
    attn = jax.nn.softmax(sim, axis=-1)
    o = jnp.einsum('bhtij,bhtjd->bhtid', attn, vh)
    o = o.transpose(0, 2, 3, 1, 4).reshape(B, T, -1, inner)
    return o @ params['to_out']


def init_params(key, dim, heads=8, dim_head=64):
    inner = heads * dim_head
    k1, k2, k3 = jax.random.split(key, 3)

    def w(k, shape, s=0.02):
        return (s * jax.random.normal(k, shape)).astype(jnp.float32)

    return {
        'norm_media_w': jnp.ones((dim,), jnp.float32),
        'norm_media_b': jnp.zeros((dim,), jnp.float32),
        'norm_latents_w': jnp.ones((dim,), jnp.float32),
        'norm_latents_b': jnp.zeros((dim,), jnp.float32),
        'to_q': w(k1, (dim, inner)),        # stored (in, out)
        'to_kv': w(k2, (dim, 2 * inner)),
        'to_out': w(k3, (inner, dim)),
    }


if __name__ == "__main__":
    key = jax.random.PRNGKey(0)
    kp, kx, kl = jax.random.split(key, 3)

    B, T, N, L, D = 4, 1, 8, 16, 128       # batch, time, media tokens, latents, dim
    HEADS, DIM_HEAD = 8, 64                # module defaults

    params = init_params(kp, D, heads=HEADS, dim_head=DIM_HEAD)
    x = jax.random.normal(kx, (B, T, N, D), dtype=jnp.float32)
    latents = jax.random.normal(kl, (B, T, L, D), dtype=jnp.float32)

    out = perceiver_attention(x, latents, params, heads=HEADS, dim_head=DIM_HEAD)
    out = jax.block_until_ready(out)

    assert out.shape == (B, T, L, D), out.shape
    assert bool(jnp.all(jnp.isfinite(out)))

    ref = perceiver_attention_ref(x, latents, params, heads=HEADS, dim_head=DIM_HEAD)
    max_err = float(jnp.max(jnp.abs(out - ref)))
    assert max_err < 1e-2, f"max abs error {max_err}"

    print("KERNEL_OK")
</pallas_src>

<mosaic_0001>
module attributes {stable_mosaic.version = 11 : i64} {
  func.func @kernel(%arg0: i32, %arg1: memref<2x8x128xf32, #tpu.memory_space<vmem>>, %arg2: memref<2x16x128xf32, #tpu.memory_space<vmem>>, %arg3: memref<1x128xf32, #tpu.memory_space<vmem>>, %arg4: memref<1x128xf32, #tpu.memory_space<vmem>>, %arg5: memref<1x128xf32, #tpu.memory_space<vmem>>, %arg6: memref<1x128xf32, #tpu.memory_space<vmem>>, %arg7: memref<128x1536xbf16, #tpu.memory_space<vmem>>, %arg8: memref<128x1024xbf16, #tpu.memory_space<vmem>>, %arg9: memref<512x128xbf16, #tpu.memory_space<vmem>>, %arg10: memref<2x16x128xf32, #tpu.memory_space<vmem>>) attributes {dimension_semantics = [#tpu.dimension_semantics<parallel>], iteration_bounds = array<i64: 2>, scalar_prefetch = 0 : i64, scratch_operands = 0 : i64, tpu.core_type = #tpu.core_type<tc>, window_params = [{transform_indices = @transform_0, window_bounds = array<i64: 2, 8, 128>}, {transform_indices = @transform_1, window_bounds = array<i64: 2, 16, 128>}, {pipeline_mode = #tpu.pipeline_mode<synchronous>, transform_indices = @transform_2, window_bounds = array<i64: 1, 128>}, {pipeline_mode = #tpu.pipeline_mode<synchronous>, transform_indices = @transform_3, window_bounds = array<i64: 1, 128>}, {pipeline_mode = #tpu.pipeline_mode<synchronous>, transform_indices = @transform_4, window_bounds = array<i64: 1, 128>}, {pipeline_mode = #tpu.pipeline_mode<synchronous>, transform_indices = @transform_5, window_bounds = array<i64: 1, 128>}, {pipeline_mode = #tpu.pipeline_mode<synchronous>, transform_indices = @transform_6, window_bounds = array<i64: 128, 1536>}, {pipeline_mode = #tpu.pipeline_mode<synchronous>, transform_indices = @transform_7, window_bounds = array<i64: 128, 1024>}, {pipeline_mode = #tpu.pipeline_mode<synchronous>, transform_indices = @transform_8, window_bounds = array<i64: 512, 128>}, {transform_indices = @transform_9, window_bounds = array<i64: 2, 16, 128>}]} {
    %c0 = arith.constant 0 : index
    %c0_0 = arith.constant 0 : index
    %c0_1 = arith.constant 0 : index
    %0 = vector.load %arg1[%c0, %c0_0, %c0_1] : memref<2x8x128xf32, #tpu.memory_space<vmem>>, vector<2x8x128xf32>
    %c0_2 = arith.constant 0 : index
    %c0_3 = arith.constant 0 : index
    %1 = vector.load %arg3[%c0_2, %c0_3] : memref<1x128xf32, #tpu.memory_space<vmem>>, vector<1x128xf32>
    %c0_4 = arith.constant 0 : index
    %c0_5 = arith.constant 0 : index
    %2 = vector.load %arg4[%c0_4, %c0_5] : memref<1x128xf32, #tpu.memory_space<vmem>>, vector<1x128xf32>
    %cst = arith.constant dense<0.000000e+00> : vector<2x8xf32>
    %3 = vector.multi_reduction <add>, %0, %cst [2] : vector<2x8x128xf32> to vector<2x8xf32>
    %4 = vector.shape_cast %3 : vector<2x8xf32> to vector<2x8x1xf32>
    %cst_6 = arith.constant 1.280000e+02 : f32
    %5 = vector.broadcast %cst_6 : f32 to vector<2x8x1xf32>
    %6 = arith.divf %4, %5 : vector<2x8x1xf32>
    %7 = vector.broadcast %6 : vector<2x8x1xf32> to vector<2x8x128xf32>
    %8 = arith.subf %0, %7 : vector<2x8x128xf32>
    %9 = arith.mulf %8, %8 : vector<2x8x128xf32>
    %cst_7 = arith.constant dense<0.000000e+00> : vector<2x8xf32>
    %10 = vector.multi_reduction <add>, %9, %cst_7 [2] : vector<2x8x128xf32> to vector<2x8xf32>
    %11 = vector.shape_cast %10 : vector<2x8xf32> to vector<2x8x1xf32>
    %cst_8 = arith.constant 1.280000e+02 : f32
    %12 = vector.broadcast %cst_8 : f32 to vector<2x8x1xf32>
    %13 = arith.divf %11, %12 : vector<2x8x1xf32>
    %14 = vector.broadcast %6 : vector<2x8x1xf32> to vector<2x8x128xf32>
    %15 = arith.subf %0, %14 : vector<2x8x128xf32>
    %cst_9 = arith.constant 9.99999974E-6 : f32
    %16 = vector.broadcast %cst_9 : f32 to vector<2x8x1xf32>
    %17 = arith.addf %13, %16 : vector<2x8x1xf32>
    %18 = math.rsqrt %17 : vector<2x8x1xf32>
    %19 = vector.broadcast %18 : vector<2x8x1xf32> to vector<2x8x128xf32>
    %20 = arith.mulf %15, %19 : vector<2x8x128xf32>
    %21 = vector.shape_cast %1 : vector<1x128xf32> to vector<1x1x128xf32>
    %22 = vector.broadcast %21 : vector<1x1x128xf32> to vector<2x8x128xf32>
    %23 = arith.mulf %20, %22 : vector<2x8x128xf32>
    %24 = vector.shape_cast %2 : vector<1x128xf32> to vector<1x1x128xf32>
    %25 = vector.broadcast %24 : vector<1x1x128xf32> to vector<2x8x128xf32>
    %26 = arith.addf %23, %25 : vector<2x8x128xf32>
    %c0_10 = arith.constant 0 : index
    %c0_11 = arith.constant 0 : index
    %c0_12 = arith.constant 0 : index
    %27 = vector.load %arg2[%c0_10, %c0_11, %c0_12] : memref<2x16x128xf32, #tpu.memory_space<vmem>>, vector<2x16x128xf32>
    %c0_13 = arith.constant 0 : index
    %c0_14 = arith.constant 0 : index
    %28 = vector.load %arg5[%c0_13, %c0_14] : memref<1x128xf32, #tpu.memory_space<vmem>>, vector<1x128xf32>
    %c0_15 = arith.constant 0 : index
    %c0_16 = arith.constant 0 : index
    %29 = vector.load %arg6[%c0_15, %c0_16] : memref<1x128xf32, #tpu.memory_space<vmem>>, vector<1x128xf32>
    %cst_17 = arith.constant dense<0.000000e+00> : vector<2x16xf32>
    %30 = vector.multi_reduction <add>, %27, %cst_17 [2] : vector<2x16x128xf32> to vector<2x16xf32>
    %31 = vector.shape_cast %30 : vector<2x16xf32> to vector<2x16x1xf32>
    %cst_18 = arith.constant 1.280000e+02 : f32
    %32 = vector.broadcast %cst_18 : f32 to vector<2x16x1xf32>
    %33 = arith.divf %31, %32 : vector<2x16x1xf32>
    %34 = vector.broadcast %33 : vector<2x16x1xf32> to vector<2x16x128xf32>
    %35 = arith.subf %27, %34 : vector<2x16x128xf32>
    %36 = arith.mulf %35, %35 : vector<2x16x128xf32>
    %cst_19 = arith.constant dense<0.000000e+00> : vector<2x16xf32>
    %37 = vector.multi_reduction <add>, %36, %cst_19 [2] : vector<2x16x128xf32> to vector<2x16xf32>
    %38 = vector.shape_cast %37 : vector<2x16xf32> to vector<2x16x1xf32>
    %cst_20 = arith.constant 1.280000e+02 : f32
    %39 = vector.broadcast %cst_20 : f32 to vector<2x16x1xf32>
    %40 = arith.divf %38, %39 : vector<2x16x1xf32>
    %41 = vector.broadcast %33 : vector<2x16x1xf32> to vector<2x16x128xf32>
    %42 = arith.subf %27, %41 : vector<2x16x128xf32>
    %cst_21 = arith.constant 9.99999974E-6 : f32
    %43 = vector.broadcast %cst_21 : f32 to vector<2x16x1xf32>
    %44 = arith.addf %40, %43 : vector<2x16x1xf32>
    %45 = math.rsqrt %44 : vector<2x16x1xf32>
    %46 = vector.broadcast %45 : vector<2x16x1xf32> to vector<2x16x128xf32>
    %47 = arith.mulf %42, %46 : vector<2x16x128xf32>
    %48 = vector.shape_cast %28 : vector<1x128xf32> to vector<1x1x128xf32>
    %49 = vector.broadcast %48 : vector<1x1x128xf32> to vector<2x16x128xf32>
    %50 = arith.mulf %47, %49 : vector<2x16x128xf32>
    %51 = vector.shape_cast %29 : vector<1x128xf32> to vector<1x1x128xf32>
    %52 = vector.broadcast %51 : vector<1x1x128xf32> to vector<2x16x128xf32>
    %53 = arith.addf %50, %52 : vector<2x16x128xf32>
    %54 = vector.shape_cast %26 : vector<2x8x128xf32> to vector<16x128xf32>
    %55 = arith.truncf %54 : vector<16x128xf32> to vector<16x128xbf16>
    %56 = vector.shape_cast %53 : vector<2x16x128xf32> to vector<32x128xf32>
    %57 = arith.truncf %56 : vector<32x128xf32> to vector<32x128xbf16>
    %c0_22 = arith.constant 0 : index
    %c0_23 = arith.constant 0 : index
    %58 = vector.load %arg7[%c0_22, %c0_23] : memref<128x1536xbf16, #tpu.memory_space<vmem>>, vector<128x1536xbf16>
    %cst_24 = arith.constant dense<0.000000e+00> : vector<32x1536xf32>
    %59 = tpu.matmul %57, %58, %cst_24 {dimension_numbers = #tpu.dot_dimension_numbers<[1], [0], [0], [1], [0, 0, 1, 1], [], []>} : vector<32x128xbf16>, vector<128x1536xbf16>, vector<32x1536xf32> -> vector<32x1536xf32>
    %60 = arith.truncf %59 : vector<32x1536xf32> to vector<32x1536xbf16>
    %c0_25 = arith.constant 0 : index
    %c0_26 = arith.constant 0 : index
    %61 = vector.load %arg8[%c0_25, %c0_26] : memref<128x1024xbf16, #tpu.memory_space<vmem>>, vector<128x1024xbf16>
    %cst_27 = arith.constant dense<0.000000e+00> : vector<16x1024xf32>
    %62 = tpu.matmul %55, %61, %cst_27 {dimension_numbers = #tpu.dot_dimension_numbers<[1], [0], [0], [1], [0, 0, 1, 1], [], []>} : vector<16x128xbf16>, vector<128x1024xbf16>, vector<16x1024xf32> -> vector<16x1024xf32>
    %63 = arith.truncf %62 : vector<16x1024xf32> to vector<16x1024xbf16>
    %64 = vector.extract_strided_slice %60 {offsets = [0, 0], sizes = [32, 512], strides = [1, 1]} : vector<32x1536xbf16> to vector<32x512xbf16>
    %65 = vector.shape_cast %64 : vector<32x512xbf16> to vector<2x16x512xbf16>
    %66 = vector.extract_strided_slice %60 {offsets = [0, 512], sizes = [32, 512], strides = [1, 1]} : vector<32x1536xbf16> to vector<32x512xbf16>
    %67 = vector.shape_cast %66 : vector<32x512xbf16> to vector<2x16x512xbf16>
    %68 = vector.extract_strided_slice %60 {offsets = [0, 1024], sizes = [32, 512], strides = [1, 1]} : vector<32x1536xbf16> to vector<32x512xbf16>
    %69 = vector.shape_cast %68 : vector<32x512xbf16> to vector<2x16x512xbf16>
    %70 = vector.extract_strided_slice %63 {offsets = [0, 0], sizes = [16, 512], strides = [1, 1]} : vector<16x1024xbf16> to vector<16x512xbf16>
    %71 = vector.shape_cast %70 : vector<16x512xbf16> to vector<2x8x512xbf16>
    %72 = vector.extract_strided_slice %63 {offsets = [0, 512], sizes = [16, 512], strides = [1, 1]} : vector<16x1024xbf16> to vector<16x512xbf16>
    %73 = vector.shape_cast %72 : vector<16x512xbf16> to vector<2x8x512xbf16>
    %74 = vector.extract_strided_slice %65 {offsets = [0, 0, 0], sizes = [2, 16, 64], strides = [1, 1, 1]} : vector<2x16x512xbf16> to vector<2x16x64xbf16>
    %75 = vector.extract_strided_slice %71 {offsets = [0, 0, 0], sizes = [2, 8, 64], strides = [1, 1, 1]} : vector<2x8x512xbf16> to vector<2x8x64xbf16>
    %76 = vector.extract_strided_slice %67 {offsets = [0, 0, 0], sizes = [2, 16, 64], strides = [1, 1, 1]} : vector<2x16x512xbf16> to vector<2x16x64xbf16>
    "tpu.trace_start"() <{level = 10 : i32, message = "bid,bjd->bij"}> : () -> ()
    %cst_28 = arith.constant dense<0.000000e+00> : vector<2x16x8xf32>
    %77 = tpu.matmul %74, %75, %cst_28 {dimension_numbers = #tpu.dot_dimension_numbers<[2], [2], [1], [1], [0, 0, 0, 1, 1, 1], [0], [0]>} : vector<2x16x64xbf16>, vector<2x8x64xbf16>, vector<2x16x8xf32> -> vector<2x16x8xf32>
    %cst_29 = arith.constant dense<0.000000e+00> : vector<2x16x16xf32>
    %78 = tpu.matmul %74, %76, %cst_29 {dimension_numbers = #tpu.dot_dimension_numbers<[2], [2], [1], [1], [0, 0, 0, 1, 1, 1], [0], [0]>} : vector<2x16x64xbf16>, vector<2x16x64xbf16>, vector<2x16x16xf32> -> vector<2x16x16xf32>
    "tpu.trace_stop"() : () -> ()
    %cst_30 = arith.constant dense<0xFF800000> : vector<2x16xf32>
    %79 = vector.multi_reduction <maximumf>, %77, %cst_30 [2] : vector<2x16x8xf32> to vector<2x16xf32>
    %80 = vector.shape_cast %79 : vector<2x16xf32> to vector<2x16x1xf32>
    %cst_31 = arith.constant dense<0xFF800000> : vector<2x16xf32>
    %81 = vector.multi_reduction <maximumf>, %78, %cst_31 [2] : vector<2x16x16xf32> to vector<2x16xf32>
    %82 = vector.shape_cast %81 : vector<2x16xf32> to vector<2x16x1xf32>
    %83 = arith.maximumf %80, %82 : vector<2x16x1xf32>
    %84 = vector.broadcast %83 : vector<2x16x1xf32> to vector<2x16x8xf32>
    %85 = arith.subf %77, %84 : vector<2x16x8xf32>
    %86 = math.exp %85 : vector<2x16x8xf32>
    %87 = vector.broadcast %83 : vector<2x16x1xf32> to vector<2x16x16xf32>
    %88 = arith.subf %78, %87 : vector<2x16x16xf32>
    %89 = math.exp %88 : vector<2x16x16xf32>
    %cst_32 = arith.constant dense<0.000000e+00> : vector<2x16xf32>
    %90 = vector.multi_reduction <add>, %86, %cst_32 [2] : vector<2x16x8xf32> to vector<2x16xf32>
    %91 = vector.shape_cast %90 : vector<2x16xf32> to vector<2x16x1xf32>
    %cst_33 = arith.constant dense<0.000000e+00> : vector<2x16xf32>
    %92 = vector.multi_reduction <add>, %89, %cst_33 [2] : vector<2x16x16xf32> to vector<2x16xf32>
    %93 = vector.shape_cast %92 : vector<2x16xf32> to vector<2x16x1xf32>
    %94 = arith.addf %91, %93 : vector<2x16x1xf32>
    %95 = tpu.reciprocal %94 {approx = true} : vector<2x16x1xf32> -> vector<2x16x1xf32>
    %96 = vector.broadcast %95 : vector<2x16x1xf32> to vector<2x16x8xf32>
    %97 = arith.mulf %86, %96 : vector<2x16x8xf32>
    %98 = arith.truncf %97 : vector<2x16x8xf32> to vector<2x16x8xbf16>
    %99 = vector.extract_strided_slice %73 {offsets = [0, 0, 0], sizes = [2, 8, 64], strides = [1, 1, 1]} : vector<2x8x512xbf16> to vector<2x8x64xbf16>
    "tpu.trace_start"() <{level = 10 : i32, message = "bij,bjd->bid"}> : () -> ()
    %cst_34 = arith.constant dense<0.000000e+00> : vector<2x16x64xf32>
    %100 = tpu.matmul %98, %99, %cst_34 {dimension_numbers = #tpu.dot_dimension_numbers<[2], [1], [1], [2], [0, 0, 0, 1, 1, 2], [0], [0]>} : vector<2x16x8xbf16>, vector<2x8x64xbf16>, vector<2x16x64xf32> -> vector<2x16x64xf32>
    "tpu.trace_stop"() : () -> ()
    %101 = vector.broadcast %95 : vector<2x16x1xf32> to vector<2x16x16xf32>
    %102 = arith.mulf %89, %101 : vector<2x16x16xf32>
    %103 = arith.truncf %102 : vector<2x16x16xf32> to vector<2x16x16xbf16>
    %104 = vector.extract_strided_slice %69 {offsets = [0, 0, 0], sizes = [2, 16, 64], strides = [1, 1, 1]} : vector<2x16x512xbf16> to vector<2x16x64xbf16>
    "tpu.trace_start"() <{level = 10 : i32, message = "bij,bjd->bid"}> : () -> ()
    %cst_35 = arith.constant dense<0.000000e+00> : vector<2x16x64xf32>
    %105 = tpu.matmul %103, %104, %cst_35 {dimension_numbers = #tpu.dot_dimension_numbers<[2], [1], [1], [2], [0, 0, 0, 1, 1, 2], [0], [0]>} : vector<2x16x16xbf16>, vector<2x16x64xbf16>, vector<2x16x64xf32> -> vector<2x16x64xf32>
    "tpu.trace_stop"() : () -> ()
    %106 = arith.addf %100, %105 : vector<2x16x64xf32>
    %107 = vector.extract_strided_slice %65 {offsets = [0, 0, 64], sizes = [2, 16, 64], strides = [1, 1, 1]} : vector<2x16x512xbf16> to vector<2x16x64xbf16>
    %108 = vector.extract_strided_slice %71 {offsets = [0, 0, 64], sizes = [2, 8, 64], strides = [1, 1, 1]} : vector<2x8x512xbf16> to vector<2x8x64xbf16>
    %109 = vector.extract_strided_slice %67 {offsets = [0, 0, 64], sizes = [2, 16, 64], strides = [1, 1, 1]} : vector<2x16x512xbf16> to vector<2x16x64xbf16>
    "tpu.trace_start"() <{level = 10 : i32, message = "bid,bjd->bij"}> : () -> ()
    %cst_36 = arith.constant dense<0.000000e+00> : vector<2x16x8xf32>
    %110 = tpu.matmul %107, %108, %cst_36 {dimension_numbers = #tpu.dot_dimension_numbers<[2], [2], [1], [1], [0, 0, 0, 1, 1, 1], [0], [0]>} : vector<2x16x64xbf16>, vector<2x8x64xbf16>, vector<2x16x8xf32> -> vector<2x16x8xf32>
    %cst_37 = arith.constant dense<0.000000e+00> : vector<2x16x16xf32>
    %111 = tpu.matmul %107, %109, %cst_37 {dimension_numbers = #tpu.dot_dimension_numbers<[2], [2], [1], [1], [0, 0, 0, 1, 1, 1], [0], [0]>} : vector<2x16x64xbf16>, vector<2x16x64xbf16>, vector<2x16x16xf32> -> vector<2x16x16xf32>
    "tpu.trace_stop"() : () -> ()
    %cst_38 = arith.constant dense<0xFF800000> : vector<2x16xf32>
    %112 = vector.multi_reduction <maximumf>, %110, %cst_38 [2] : vector<2x16x8xf32> to vector<2x16xf32>
    %113 = vector.shape_cast %112 : vector<2x16xf32> to vector<2x16x1xf32>
    %cst_39 = arith.constant dense<0xFF800000> : vector<2x16xf32>
    %114 = vector.multi_reduction <maximumf>, %111, %cst_39 [2] : vector<2x16x16xf32> to vector<2x16xf32>
    %115 = vector.shape_cast %114 : vector<2x16xf32> to vector<2x16x1xf32>
    %116 = arith.maximumf %113, %115 : vector<2x16x1xf32>
    %117 = vector.broadcast %116 : vector<2x16x1xf32> to vector<2x16x8xf32>
    %118 = arith.subf %110, %117 : vector<2x16x8xf32>
    %119 = math.exp %118 : vector<2x16x8xf32>
    %120 = vector.broadcast %116 : vector<2x16x1xf32> to vector<2x16x16xf32>
    %121 = arith.subf %111, %120 : vector<2x16x16xf32>
    %122 = math.exp %121 : vector<2x16x16xf32>
    %cst_40 = arith.constant dense<0.000000e+00> : vector<2x16xf32>
    %123 = vector.multi_reduction <add>, %119, %cst_40 [2] : vector<2x16x8xf32> to vector<2x16xf32>
    %124 = vector.shape_cast %123 : vector<2x16xf32> to vector<2x16x1xf32>
    %cst_41 = arith.constant dense<0.000000e+00> : vector<2x16xf32>
    %125 = vector.multi_reduction <add>, %122, %cst_41 [2] : vector<2x16x16xf32> to vector<2x16xf32>
    %126 = vector.shape_cast %125 : vector<2x16xf32> to vector<2x16x1xf32>
    %127 = arith.addf %124, %126 : vector<2x16x1xf32>
    %128 = tpu.reciprocal %127 {approx = true} : vector<2x16x1xf32> -> vector<2x16x1xf32>
    %129 = vector.broadcast %128 : vector<2x16x1xf32> to vector<2x16x8xf32>
    %130 = arith.mulf %119, %129 : vector<2x16x8xf32>
    %131 = arith.truncf %130 : vector<2x16x8xf32> to vector<2x16x8xbf16>
    %132 = vector.extract_strided_slice %73 {offsets = [0, 0, 64], sizes = [2, 8, 64], strides = [1, 1, 1]} : vector<2x8x512xbf16> to vector<2x8x64xbf16>
    "tpu.trace_start"() <{level = 10 : i32, message = "bij,bjd->bid"}> : () -> ()
    %cst_42 = arith.constant dense<0.000000e+00> : vector<2x16x64xf32>
    %133 = tpu.matmul %131, %132, %cst_42 {dimension_numbers = #tpu.dot_dimension_numbers<[2], [1], [1], [2], [0, 0, 0, 1, 1, 2], [0], [0]>} : vector<2x16x8xbf16>, vector<2x8x64xbf16>, vector<2x16x64xf32> -> vector<2x16x64xf32>
    "tpu.trace_stop"() : () -> ()
    %134 = vector.broadcast %128 : vector<2x16x1xf32> to vector<2x16x16xf32>
    %135 = arith.mulf %122, %134 : vector<2x16x16xf32>
    %136 = arith.truncf %135 : vector<2x16x16xf32> to vector<2x16x16xbf16>
    %137 = vector.extract_strided_slice %69 {offsets = [0, 0, 64], sizes = [2, 16, 64], strides = [1, 1, 1]} : vector<2x16x512xbf16> to vector<2x16x64xbf16>
    "tpu.trace_start"() <{level = 10 : i32, message = "bij,bjd->bid"}> : () -> ()
    %cst_43 = arith.constant dense<0.000000e+00> : vector<2x16x64xf32>
    %138 = tpu.matmul %136, %137, %cst_43 {dimension_numbers = #tpu.dot_dimension_numbers<[2], [1], [1], [2], [0, 0, 0, 1, 1, 2], [0], [0]>} : vector<2x16x16xbf16>, vector<2x16x64xbf16>, vector<2x16x64xf32> -> vector<2x16x64xf32>
    "tpu.trace_stop"() : () -> ()
    %139 = arith.addf %133, %138 : vector<2x16x64xf32>
    %140 = vector.extract_strided_slice %65 {offsets = [0, 0, 128], sizes = [2, 16, 64], strides = [1, 1, 1]} : vector<2x16x512xbf16> to vector<2x16x64xbf16>
    %141 = vector.extract_strided_slice %71 {offsets = [0, 0, 128], sizes = [2, 8, 64], strides = [1, 1, 1]} : vector<2x8x512xbf16> to vector<2x8x64xbf16>
    %142 = vector.extract_strided_slice %67 {offsets = [0, 0, 128], sizes = [2, 16, 64], strides = [1, 1, 1]} : vector<2x16x512xbf16> to vector<2x16x64xbf16>
    "tpu.trace_start"() <{level = 10 : i32, message = "bid,bjd->bij"}> : () -> ()
    %cst_44 = arith.constant dense<0.000000e+00> : vector<2x16x8xf32>
    %143 = tpu.matmul %140, %141, %cst_44 {dimension_numbers = #tpu.dot_dimension_numbers<[2], [2], [1], [1], [0, 0, 0, 1, 1, 1], [0], [0]>} : vector<2x16x64xbf16>, vector<2x8x64xbf16>, vector<2x16x8xf32> -> vector<2x16x8xf32>
    %cst_45 = arith.constant dense<0.000000e+00> : vector<2x16x16xf32>
    %144 = tpu.matmul %140, %142, %cst_45 {dimension_numbers = #tpu.dot_dimension_numbers<[2], [2], [1], [1], [0, 0, 0, 1, 1, 1], [0], [0]>} : vector<2x16x64xbf16>, vector<2x16x64xbf16>, vector<2x16x16xf32> -> vector<2x16x16xf32>
    "tpu.trace_stop"() : () -> ()
    %cst_46 = arith.constant dense<0xFF800000> : vector<2x16xf32>
    %145 = vector.multi_reduction <maximumf>, %143, %cst_46 [2] : vector<2x16x8xf32> to vector<2x16xf32>
    %146 = vector.shape_cast %145 : vector<2x16xf32> to vector<2x16x1xf32>
    %cst_47 = arith.constant dense<0xFF800000> : vector<2x16xf32>
    %147 = vector.multi_reduction <maximumf>, %144, %cst_47 [2] : vector<2x16x16xf32> to vector<2x16xf32>
    %148 = vector.shape_cast %147 : vector<2x16xf32> to vector<2x16x1xf32>
    %149 = arith.maximumf %146, %148 : vector<2x16x1xf32>
    %150 = vector.broadcast %149 : vector<2x16x1xf32> to vector<2x16x8xf32>
    %151 = arith.subf %143, %150 : vector<2x16x8xf32>
    %152 = math.exp %151 : vector<2x16x8xf32>
    %153 = vector.broadcast %149 : vector<2x16x1xf32> to vector<2x16x16xf32>
    %154 = arith.subf %144, %153 : vector<2x16x16xf32>
    %155 = math.exp %154 : vector<2x16x16xf32>
    %cst_48 = arith.constant dense<0.000000e+00> : vector<2x16xf32>
    %156 = vector.multi_reduction <add>, %152, %cst_48 [2] : vector<2x16x8xf32> to vector<2x16xf32>
    %157 = vector.shape_cast %156 : vector<2x16xf32> to vector<2x16x1xf32>
    %cst_49 = arith.constant dense<0.000000e+00> : vector<2x16xf32>
    %158 = vector.multi_reduction <add>, %155, %cst_49 [2] : vector<2x16x16xf32> to vector<2x16xf32>
    %159 = vector.shape_cast %158 : vector<2x16xf32> to vector<2x16x1xf32>
    %160 = arith.addf %157, %159 : vector<2x16x1xf32>
    %161 = tpu.reciprocal %160 {approx = true} : vector<2x16x1xf32> -> vector<2x16x1xf32>
    %162 = vector.broadcast %161 : vector<2x16x1xf32> to vector<2x16x8xf32>
    %163 = arith.mulf %152, %162 : vector<2x16x8xf32>
    %164 = arith.truncf %163 : vector<2x16x8xf32> to vector<2x16x8xbf16>
    %165 = vector.extract_strided_slice %73 {offsets = [0, 0, 128], sizes = [2, 8, 64], strides = [1, 1, 1]} : vector<2x8x512xbf16> to vector<2x8x64xbf16>
    "tpu.trace_start"() <{level = 10 : i32, message = "bij,bjd->bid"}> : () -> ()
    %cst_50 = arith.constant dense<0.000000e+00> : vector<2x16x64xf32>
    %166 = tpu.matmul %164, %165, %cst_50 {dimension_numbers = #tpu.dot_dimension_numbers<[2], [1], [1], [2], [0, 0, 0, 1, 1, 2], [0], [0]>} : vector<2x16x8xbf16>, vector<2x8x64xbf16>, vector<2x16x64xf32> -> vector<2x16x64xf32>
    "tpu.trace_stop"() : () -> ()
    %167 = vector.broadcast %161 : vector<2x16x1xf32> to vector<2x16x16xf32>
    %168 = arith.mulf %155, %167 : vector<2x16x16xf32>
    %169 = arith.truncf %168 : vector<2x16x16xf32> to vector<2x16x16xbf16>
    %170 = vector.extract_strided_slice %69 {offsets = [0, 0, 128], sizes = [2, 16, 64], strides = [1, 1, 1]} : vector<2x16x512xbf16> to vector<2x16x64xbf16>
    "tpu.trace_start"() <{level = 10 : i32, message = "bij,bjd->bid"}> : () -> ()
    %cst_51 = arith.constant dense<0.000000e+00> : vector<2x16x64xf32>
    %171 = tpu.matmul %169, %170, %cst_51 {dimension_numbers = #tpu.dot_dimension_numbers<[2], [1], [1], [2], [0, 0, 0, 1, 1, 2], [0], [0]>} : vector<2x16x16xbf16>, vector<2x16x64xbf16>, vector<2x16x64xf32> -> vector<2x16x64xf32>
    "tpu.trace_stop"() : () -> ()
    %172 = arith.addf %166, %171 : vector<2x16x64xf32>
    %173 = vector.extract_strided_slice %65 {offsets = [0, 0, 192], sizes = [2, 16, 64], strides = [1, 1, 1]} : vector<2x16x512xbf16> to vector<2x16x64xbf16>
    %174 = vector.extract_strided_slice %71 {offsets = [0, 0, 192], sizes = [2, 8, 64], strides = [1, 1, 1]} : vector<2x8x512xbf16> to vector<2x8x64xbf16>
    %175 = vector.extract_strided_slice %67 {offsets = [0, 0, 192], sizes = [2, 16, 64], strides = [1, 1, 1]} : vector<2x16x512xbf16> to vector<2x16x64xbf16>
    "tpu.trace_start"() <{level = 10 : i32, message = "bid,bjd->bij"}> : () -> ()
    %cst_52 = arith.constant dense<0.000000e+00> : vector<2x16x8xf32>
    %176 = tpu.matmul %173, %174, %cst_52 {dimension_numbers = #tpu.dot_dimension_numbers<[2], [2], [1], [1], [0, 0, 0, 1, 1, 1], [0], [0]>} : vector<2x16x64xbf16>, vector<2x8x64xbf16>, vector<2x16x8xf32> -> vector<2x16x8xf32>
    %cst_53 = arith.constant dense<0.000000e+00> : vector<2x16x16xf32>
    %177 = tpu.matmul %173, %175, %cst_53 {dimension_numbers = #tpu.dot_dimension_numbers<[2], [2], [1], [1], [0, 0, 0, 1, 1, 1], [0], [0]>} : vector<2x16x64xbf16>, vector<2x16x64xbf16>, vector<2x16x16xf32> -> vector<2x16x16xf32>
    "tpu.trace_stop"() : () -> ()
    %cst_54 = arith.constant dense<0xFF800000> : vector<2x16xf32>
    %178 = vector.multi_reduction <maximumf>, %176, %cst_54 [2] : vector<2x16x8xf32> to vector<2x16xf32>
    %179 = vector.shape_cast %178 : vector<2x16xf32> to vector<2x16x1xf32>
    %cst_55 = arith.constant dense<0xFF800000> : vector<2x16xf32>
    %180 = vector.multi_reduction <maximumf>, %177, %cst_55 [2] : vector<2x16x16xf32> to vector<2x16xf32>
    %181 = vector.shape_cast %180 : vector<2x16xf32> to vector<2x16x1xf32>
    %182 = arith.maximumf %179, %181 : vector<2x16x1xf32>
    %183 = vector.broadcast %182 : vector<2x16x1xf32> to vector<2x16x8xf32>
    %184 = arith.subf %176, %183 : vector<2x16x8xf32>
    %185 = math.exp %184 : vector<2x16x8xf32>
    %186 = vector.broadcast %182 : vector<2x16x1xf32> to vector<2x16x16xf32>
    %187 = arith.subf %177, %186 : vector<2x16x16xf32>
    %188 = math.exp %187 : vector<2x16x16xf32>
    %cst_56 = arith.constant dense<0.000000e+00> : vector<2x16xf32>
    %189 = vector.multi_reduction <add>, %185, %cst_56 [2] : vector<2x16x8xf32> to vector<2x16xf32>
    %190 = vector.shape_cast %189 : vector<2x16xf32> to vector<2x16x1xf32>
    %cst_57 = arith.constant dense<0.000000e+00> : vector<2x16xf32>
    %191 = vector.multi_reduction <add>, %188, %cst_57 [2] : vector<2x16x16xf32> to vector<2x16xf32>
    %192 = vector.shape_cast %191 : vector<2x16xf32> to vector<2x16x1xf32>
    %193 = arith.addf %190, %192 : vector<2x16x1xf32>
    %194 = tpu.reciprocal %193 {approx = true} : vector<2x16x1xf32> -> vector<2x16x1xf32>
    %195 = vector.broadcast %194 : vector<2x16x1xf32> to vector<2x16x8xf32>
    %196 = arith.mulf %185, %195 : vector<2x16x8xf32>
    %197 = arith.truncf %196 : vector<2x16x8xf32> to vector<2x16x8xbf16>
    %198 = vector.extract_strided_slice %73 {offsets = [0, 0, 192], sizes = [2, 8, 64], strides = [1, 1, 1]} : vector<2x8x512xbf16> to vector<2x8x64xbf16>
    "tpu.trace_start"() <{level = 10 : i32, message = "bij,bjd->bid"}> : () -> ()
    %cst_58 = arith.constant dense<0.000000e+00> : vector<2x16x64xf32>
    %199 = tpu.matmul %197, %198, %cst_58 {dimension_numbers = #tpu.dot_dimension_numbers<[2], [1], [1], [2], [0, 0, 0, 1, 1, 2], [0], [0]>} : vector<2x16x8xbf16>, vector<2x8x64xbf16>, vector<2x16x64xf32> -> vector<2x16x64xf32>
    "tpu.trace_stop"() : () -> ()
    %200 = vector.broadcast %194 : vector<2x16x1xf32> to vector<2x16x16xf32>
    %201 = arith.mulf %188, %200 : vector<2x16x16xf32>
    %202 = arith.truncf %201 : vector<2x16x16xf32> to vector<2x16x16xbf16>
    %203 = vector.extract_strided_slice %69 {offsets = [0, 0, 192], sizes = [2, 16, 64], strides = [1, 1, 1]} : vector<2x16x512xbf16> to vector<2x16x64xbf16>
    "tpu.trace_start"() <{level = 10 : i32, message = "bij,bjd->bid"}> : () -> ()
    %cst_59 = arith.constant dense<0.000000e+00> : vector<2x16x64xf32>
    %204 = tpu.matmul %202, %203, %cst_59 {dimension_numbers = #tpu.dot_dimension_numbers<[2], [1], [1], [2], [0, 0, 0, 1, 1, 2], [0], [0]>} : vector<2x16x16xbf16>, vector<2x16x64xbf16>, vector<2x16x64xf32> -> vector<2x16x64xf32>
    "tpu.trace_stop"() : () -> ()
    %205 = arith.addf %199, %204 : vector<2x16x64xf32>
    %206 = vector.extract_strided_slice %65 {offsets = [0, 0, 256], sizes = [2, 16, 64], strides = [1, 1, 1]} : vector<2x16x512xbf16> to vector<2x16x64xbf16>
    %207 = vector.extract_strided_slice %71 {offsets = [0, 0, 256], sizes = [2, 8, 64], strides = [1, 1, 1]} : vector<2x8x512xbf16> to vector<2x8x64xbf16>
    %208 = vector.extract_strided_slice %67 {offsets = [0, 0, 256], sizes = [2, 16, 64], strides = [1, 1, 1]} : vector<2x16x512xbf16> to vector<2x16x64xbf16>
    "tpu.trace_start"() <{level = 10 : i32, message = "bid,bjd->bij"}> : () -> ()
    %cst_60 = arith.constant dense<0.000000e+00> : vector<2x16x8xf32>
    %209 = tpu.matmul %206, %207, %cst_60 {dimension_numbers = #tpu.dot_dimension_numbers<[2], [2], [1], [1], [0, 0, 0, 1, 1, 1], [0], [0]>} : vector<2x16x64xbf16>, vector<2x8x64xbf16>, vector<2x16x8xf32> -> vector<2x16x8xf32>
    %cst_61 = arith.constant dense<0.000000e+00> : vector<2x16x16xf32>
    %210 = tpu.matmul %206, %208, %cst_61 {dimension_numbers = #tpu.dot_dimension_numbers<[2], [2], [1], [1], [0, 0, 0, 1, 1, 1], [0], [0]>} : vector<2x16x64xbf16>, vector<2x16x64xbf16>, vector<2x16x16xf32> -> vector<2x16x16xf32>
    "tpu.trace_stop"() : () -> ()
    %cst_62 = arith.constant dense<0xFF800000> : vector<2x16xf32>
    %211 = vector.multi_reduction <maximumf>, %209, %cst_62 [2] : vector<2x16x8xf32> to vector<2x16xf32>
    %212 = vector.shape_cast %211 : vector<2x16xf32> to vector<2x16x1xf32>
    %cst_63 = arith.constant dense<0xFF800000> : vector<2x16xf32>
    %213 = vector.multi_reduction <maximumf>, %210, %cst_63 [2] : vector<2x16x16xf32> to vector<2x16xf32>
    %214 = vector.shape_cast %213 : vector<2x16xf32> to vector<2x16x1xf32>
    %215 = arith.maximumf %212, %214 : vector<2x16x1xf32>
    %216 = vector.broadcast %215 : vector<2x16x1xf32> to vector<2x16x8xf32>
    %217 = arith.subf %209, %216 : vector<2x16x8xf32>
    %218 = math.exp %217 : vector<2x16x8xf32>
    %219 = vector.broadcast %215 : vector<2x16x1xf32> to vector<2x16x16xf32>
    %220 = arith.subf %210, %219 : vector<2x16x16xf32>
    %221 = math.exp %220 : vector<2x16x16xf32>
    %cst_64 = arith.constant dense<0.000000e+00> : vector<2x16xf32>
    %222 = vector.multi_reduction <add>, %218, %cst_64 [2] : vector<2x16x8xf32> to vector<2x16xf32>
    %223 = vector.shape_cast %222 : vector<2x16xf32> to vector<2x16x1xf32>
    %cst_65 = arith.constant dense<0.000000e+00> : vector<2x16xf32>
    %224 = vector.multi_reduction <add>, %221, %cst_65 [2] : vector<2x16x16xf32> to vector<2x16xf32>
    %225 = vector.shape_cast %224 : vector<2x16xf32> to vector<2x16x1xf32>
    %226 = arith.addf %223, %225 : vector<2x16x1xf32>
    %227 = tpu.reciprocal %226 {approx = true} : vector<2x16x1xf32> -> vector<2x16x1xf32>
    %228 = vector.broadcast %227 : vector<2x16x1xf32> to vector<2x16x8xf32>
    %229 = arith.mulf %218, %228 : vector<2x16x8xf32>
    %230 = arith.truncf %229 : vector<2x16x8xf32> to vector<2x16x8xbf16>
    %231 = vector.extract_strided_slice %73 {offsets = [0, 0, 256], sizes = [2, 8, 64], strides = [1, 1, 1]} : vector<2x8x512xbf16> to vector<2x8x64xbf16>
    "tpu.trace_start"() <{level = 10 : i32, message = "bij,bjd->bid"}> : () -> ()
    %cst_66 = arith.constant dense<0.000000e+00> : vector<2x16x64xf32>
    %232 = tpu.matmul %230, %231, %cst_66 {dimension_numbers = #tpu.dot_dimension_numbers<[2], [1], [1], [2], [0, 0, 0, 1, 1, 2], [0], [0]>} : vector<2x16x8xbf16>, vector<2x8x64xbf16>, vector<2x16x64xf32> -> vector<2x16x64xf32>
    "tpu.trace_stop"() : () -> ()
    %233 = vector.broadcast %227 : vector<2x16x1xf32> to vector<2x16x16xf32>
    %234 = arith.mulf %221, %233 : vector<2x16x16xf32>
    %235 = arith.truncf %234 : vector<2x16x16xf32> to vector<2x16x16xbf16>
    %236 = vector.extract_strided_slice %69 {offsets = [0, 0, 256], sizes = [2, 16, 64], strides = [1, 1, 1]} : vector<2x16x512xbf16> to vector<2x16x64xbf16>
    "tpu.trace_start"() <{level = 10 : i32, message = "bij,bjd->bid"}> : () -> ()
    %cst_67 = arith.constant dense<0.000000e+00> : vector<2x16x64xf32>
    %237 = tpu.matmul %235, %236, %cst_67 {dimension_numbers = #tpu.dot_dimension_numbers<[2], [1], [1], [2], [0, 0, 0, 1, 1, 2], [0], [0]>} : vector<2x16x16xbf16>, vector<2x16x64xbf16>, vector<2x16x64xf32> -> vector<2x16x64xf32>
    "tpu.trace_stop"() : () -> ()
    %238 = arith.addf %232, %237 : vector<2x16x64xf32>
    %239 = vector.extract_strided_slice %65 {offsets = [0, 0, 320], sizes = [2, 16, 64], strides = [1, 1, 1]} : vector<2x16x512xbf16> to vector<2x16x64xbf16>
    %240 = vector.extract_strided_slice %71 {offsets = [0, 0, 320], sizes = [2, 8, 64], strides = [1, 1, 1]} : vector<2x8x512xbf16> to vector<2x8x64xbf16>
    %241 = vector.extract_strided_slice %67 {offsets = [0, 0, 320], sizes = [2, 16, 64], strides = [1, 1, 1]} : vector<2x16x512xbf16> to vector<2x16x64xbf16>
    "tpu.trace_start"() <{level = 10 : i32, message = "bid,bjd->bij"}> : () -> ()
    %cst_68 = arith.constant dense<0.000000e+00> : vector<2x16x8xf32>
    %242 = tpu.matmul %239, %240, %cst_68 {dimension_numbers = #tpu.dot_dimension_numbers<[2], [2], [1], [1], [0, 0, 0, 1, 1, 1], [0], [0]>} : vector<2x16x64xbf16>, vector<2x8x64xbf16>, vector<2x16x8xf32> -> vector<2x16x8xf32>
    %cst_69 = arith.constant dense<0.000000e+00> : vector<2x16x16xf32>
    %243 = tpu.matmul %239, %241, %cst_69 {dimension_numbers = #tpu.dot_dimension_numbers<[2], [2], [1], [1], [0, 0, 0, 1, 1, 1], [0], [0]>} : vector<2x16x64xbf16>, vector<2x16x64xbf16>, vector<2x16x16xf32> -> vector<2x16x16xf32>
    "tpu.trace_stop"() : () -> ()
    %cst_70 = arith.constant dense<0xFF800000> : vector<2x16xf32>
    %244 = vector.multi_reduction <maximumf>, %242, %cst_70 [2] : vector<2x16x8xf32> to vector<2x16xf32>
    %245 = vector.shape_cast %244 : vector<2x16xf32> to vector<2x16x1xf32>
    %cst_71 = arith.constant dense<0xFF800000> : vector<2x16xf32>
    %246 = vector.multi_reduction <maximumf>, %243, %cst_71 [2] : vector<2x16x16xf32> to vector<2x16xf32>
    %247 = vector.shape_cast %246 : vector<2x16xf32> to vector<2x16x1xf32>
    %248 = arith.maximumf %245, %247 : vector<2x16x1xf32>
    %249 = vector.broadcast %248 : vector<2x16x1xf32> to vector<2x16x8xf32>
    %250 = arith.subf %242, %249 : vector<2x16x8xf32>
    %251 = math.exp %250 : vector<2x16x8xf32>
    %252 = vector.broadcast %248 : vector<2x16x1xf32> to vector<2x16x16xf32>
    %253 = arith.subf %243, %252 : vector<2x16x16xf32>
    %254 = math.exp %253 : vector<2x16x16xf32>
    %cst_72 = arith.constant dense<0.000000e+00> : vector<2x16xf32>
    %255 = vector.multi_reduction <add>, %251, %cst_72 [2] : vector<2x16x8xf32> to vector<2x16xf32>
    %256 = vector.shape_cast %255 : vector<2x16xf32> to vector<2x16x1xf32>
    %cst_73 = arith.constant dense<0.000000e+00> : vector<2x16xf32>
    %257 = vector.multi_reduction <add>, %254, %cst_73 [2] : vector<2x16x16xf32> to vector<2x16xf32>
    %258 = vector.shape_cast %257 : vector<2x16xf32> to vector<2x16x1xf32>
    %259 = arith.addf %256, %258 : vector<2x16x1xf32>
    %260 = tpu.reciprocal %259 {approx = true} : vector<2x16x1xf32> -> vector<2x16x1xf32>
    %261 = vector.broadcast %260 : vector<2x16x1xf32> to vector<2x16x8xf32>
    %262 = arith.mulf %251, %261 : vector<2x16x8xf32>
    %263 = arith.truncf %262 : vector<2x16x8xf32> to vector<2x16x8xbf16>
    %264 = vector.extract_strided_slice %73 {offsets = [0, 0, 320], sizes = [2, 8, 64], strides = [1, 1, 1]} : vector<2x8x512xbf16> to vector<2x8x64xbf16>
    "tpu.trace_start"() <{level = 10 : i32, message = "bij,bjd->bid"}> : () -> ()
    %cst_74 = arith.constant dense<0.000000e+00> : vector<2x16x64xf32>
    %265 = tpu.matmul %263, %264, %cst_74 {dimension_numbers = #tpu.dot_dimension_numbers<[2], [1], [1], [2], [0, 0, 0, 1, 1, 2], [0], [0]>} : vector<2x16x8xbf16>, vector<2x8x64xbf16>, vector<2x16x64xf32> -> vector<2x16x64xf32>
    "tpu.trace_stop"() : () -> ()
    %266 = vector.broadcast %260 : vector<2x16x1xf32> to vector<2x16x16xf32>
    %267 = arith.mulf %254, %266 : vector<2x16x16xf32>
    %268 = arith.truncf %267 : vector<2x16x16xf32> to vector<2x16x16xbf16>
    %269 = vector.extract_strided_slice %69 {offsets = [0, 0, 320], sizes = [2, 16, 64], strides = [1, 1, 1]} : vector<2x16x512xbf16> to vector<2x16x64xbf16>
    "tpu.trace_start"() <{level = 10 : i32, message = "bij,bjd->bid"}> : () -> ()
    %cst_75 = arith.constant dense<0.000000e+00> : vector<2x16x64xf32>
    %270 = tpu.matmul %268, %269, %cst_75 {dimension_numbers = #tpu.dot_dimension_numbers<[2], [1], [1], [2], [0, 0, 0, 1, 1, 2], [0], [0]>} : vector<2x16x16xbf16>, vector<2x16x64xbf16>, vector<2x16x64xf32> -> vector<2x16x64xf32>
    "tpu.trace_stop"() : () -> ()
    %271 = arith.addf %265, %270 : vector<2x16x64xf32>
    %272 = vector.extract_strided_slice %65 {offsets = [0, 0, 384], sizes = [2, 16, 64], strides = [1, 1, 1]} : vector<2x16x512xbf16> to vector<2x16x64xbf16>
    %273 = vector.extract_strided_slice %71 {offsets = [0, 0, 384], sizes = [2, 8, 64], strides = [1, 1, 1]} : vector<2x8x512xbf16> to vector<2x8x64xbf16>
    %274 = vector.extract_strided_slice %67 {offsets = [0, 0, 384], sizes = [2, 16, 64], strides = [1, 1, 1]} : vector<2x16x512xbf16> to vector<2x16x64xbf16>
    "tpu.trace_start"() <{level = 10 : i32, message = "bid,bjd->bij"}> : () -> ()
    %cst_76 = arith.constant dense<0.000000e+00> : vector<2x16x8xf32>
    %275 = tpu.matmul %272, %273, %cst_76 {dimension_numbers = #tpu.dot_dimension_numbers<[2], [2], [1], [1], [0, 0, 0, 1, 1, 1], [0], [0]>} : vector<2x16x64xbf16>, vector<2x8x64xbf16>, vector<2x16x8xf32> -> vector<2x16x8xf32>
    %cst_77 = arith.constant dense<0.000000e+00> : vector<2x16x16xf32>
    %276 = tpu.matmul %272, %274, %cst_77 {dimension_numbers = #tpu.dot_dimension_numbers<[2], [2], [1], [1], [0, 0, 0, 1, 1, 1], [0], [0]>} : vector<2x16x64xbf16>, vector<2x16x64xbf16>, vector<2x16x16xf32> -> vector<2x16x16xf32>
    "tpu.trace_stop"() : () -> ()
    %cst_78 = arith.constant dense<0xFF800000> : vector<2x16xf32>
    %277 = vector.multi_reduction <maximumf>, %275, %cst_78 [2] : vector<2x16x8xf32> to vector<2x16xf32>
    %278 = vector.shape_cast %277 : vector<2x16xf32> to vector<2x16x1xf32>
    %cst_79 = arith.constant dense<0xFF800000> : vector<2x16xf32>
    %279 = vector.multi_reduction <maximumf>, %276, %cst_79 [2] : vector<2x16x16xf32> to vector<2x16xf32>
    %280 = vector.shape_cast %279 : vector<2x16xf32> to vector<2x16x1xf32>
    %281 = arith.maximumf %278, %280 : vector<2x16x1xf32>
    %282 = vector.broadcast %281 : vector<2x16x1xf32> to vector<2x16x8xf32>
    %283 = arith.subf %275, %282 : vector<2x16x8xf32>
    %284 = math.exp %283 : vector<2x16x8xf32>
    %285 = vector.broadcast %281 : vector<2x16x1xf32> to vector<2x16x16xf32>
    %286 = arith.subf %276, %285 : vector<2x16x16xf32>
    %287 = math.exp %286 : vector<2x16x16xf32>
    %cst_80 = arith.constant dense<0.000000e+00> : vector<2x16xf32>
    %288 = vector.multi_reduction <add>, %284, %cst_80 [2] : vector<2x16x8xf32> to vector<2x16xf32>
    %289 = vector.shape_cast %288 : vector<2x16xf32> to vector<2x16x1xf32>
    %cst_81 = arith.constant dense<0.000000e+00> : vector<2x16xf32>
    %290 = vector.multi_reduction <add>, %287, %cst_81 [2] : vector<2x16x16xf32> to vector<2x16xf32>
    %291 = vector.shape_cast %290 : vector<2x16xf32> to vector<2x16x1xf32>
    %292 = arith.addf %289, %291 : vector<2x16x1xf32>
    %293 = tpu.reciprocal %292 {approx = true} : vector<2x16x1xf32> -> vector<2x16x1xf32>
    %294 = vector.broadcast %293 : vector<2x16x1xf32> to vector<2x16x8xf32>
    %295 = arith.mulf %284, %294 : vector<2x16x8xf32>
    %296 = arith.truncf %295 : vector<2x16x8xf32> to vector<2x16x8xbf16>
    %297 = vector.extract_strided_slice %73 {offsets = [0, 0, 384], sizes = [2, 8, 64], strides = [1, 1, 1]} : vector<2x8x512xbf16> to vector<2x8x64xbf16>
    "tpu.trace_start"() <{level = 10 : i32, message = "bij,bjd->bid"}> : () -> ()
    %cst_82 = arith.constant dense<0.000000e+00> : vector<2x16x64xf32>
    %298 = tpu.matmul %296, %297, %cst_82 {dimension_numbers = #tpu.dot_dimension_numbers<[2], [1], [1], [2], [0, 0, 0, 1, 1, 2], [0], [0]>} : vector<2x16x8xbf16>, vector<2x8x64xbf16>, vector<2x16x64xf32> -> vector<2x16x64xf32>
    "tpu.trace_stop"() : () -> ()
    %299 = vector.broadcast %293 : vector<2x16x1xf32> to vector<2x16x16xf32>
    %300 = arith.mulf %287, %299 : vector<2x16x16xf32>
    %301 = arith.truncf %300 : vector<2x16x16xf32> to vector<2x16x16xbf16>
    %302 = vector.extract_strided_slice %69 {offsets = [0, 0, 384], sizes = [2, 16, 64], strides = [1, 1, 1]} : vector<2x16x512xbf16> to vector<2x16x64xbf16>
    "tpu.trace_start"() <{level = 10 : i32, message = "bij,bjd->bid"}> : () -> ()
    %cst_83 = arith.constant dense<0.000000e+00> : vector<2x16x64xf32>
    %303 = tpu.matmul %301, %302, %cst_83 {dimension_numbers = #tpu.dot_dimension_numbers<[2], [1], [1], [2], [0, 0, 0, 1, 1, 2], [0], [0]>} : vector<2x16x16xbf16>, vector<2x16x64xbf16>, vector<2x16x64xf32> -> vector<2x16x64xf32>
    "tpu.trace_stop"() : () -> ()
    %304 = arith.addf %298, %303 : vector<2x16x64xf32>
    %305 = vector.extract_strided_slice %65 {offsets = [0, 0, 448], sizes = [2, 16, 64], strides = [1, 1, 1]} : vector<2x16x512xbf16> to vector<2x16x64xbf16>
    %306 = vector.extract_strided_slice %71 {offsets = [0, 0, 448], sizes = [2, 8, 64], strides = [1, 1, 1]} : vector<2x8x512xbf16> to vector<2x8x64xbf16>
    %307 = vector.extract_strided_slice %67 {offsets = [0, 0, 448], sizes = [2, 16, 64], strides = [1, 1, 1]} : vector<2x16x512xbf16> to vector<2x16x64xbf16>
    "tpu.trace_start"() <{level = 10 : i32, message = "bid,bjd->bij"}> : () -> ()
    %cst_84 = arith.constant dense<0.000000e+00> : vector<2x16x8xf32>
    %308 = tpu.matmul %305, %306, %cst_84 {dimension_numbers = #tpu.dot_dimension_numbers<[2], [2], [1], [1], [0, 0, 0, 1, 1, 1], [0], [0]>} : vector<2x16x64xbf16>, vector<2x8x64xbf16>, vector<2x16x8xf32> -> vector<2x16x8xf32>
    %cst_85 = arith.constant dense<0.000000e+00> : vector<2x16x16xf32>
    %309 = tpu.matmul %305, %307, %cst_85 {dimension_numbers = #tpu.dot_dimension_numbers<[2], [2], [1], [1], [0, 0, 0, 1, 1, 1], [0], [0]>} : vector<2x16x64xbf16>, vector<2x16x64xbf16>, vector<2x16x16xf32> -> vector<2x16x16xf32>
    "tpu.trace_stop"() : () -> ()
    %cst_86 = arith.constant dense<0xFF800000> : vector<2x16xf32>
    %310 = vector.multi_reduction <maximumf>, %308, %cst_86 [2] : vector<2x16x8xf32> to vector<2x16xf32>
    %311 = vector.shape_cast %310 : vector<2x16xf32> to vector<2x16x1xf32>
    %cst_87 = arith.constant dense<0xFF800000> : vector<2x16xf32>
    %312 = vector.multi_reduction <maximumf>, %309, %cst_87 [2] : vector<2x16x16xf32> to vector<2x16xf32>
    %313 = vector.shape_cast %312 : vector<2x16xf32> to vector<2x16x1xf32>
    %314 = arith.maximumf %311, %313 : vector<2x16x1xf32>
    %315 = vector.broadcast %314 : vector<2x16x1xf32> to vector<2x16x8xf32>
    %316 = arith.subf %308, %315 : vector<2x16x8xf32>
    %317 = math.exp %316 : vector<2x16x8xf32>
    %318 = vector.broadcast %314 : vector<2x16x1xf32> to vector<2x16x16xf32>
    %319 = arith.subf %309, %318 : vector<2x16x16xf32>
    %320 = math.exp %319 : vector<2x16x16xf32>
    %cst_88 = arith.constant dense<0.000000e+00> : vector<2x16xf32>
    %321 = vector.multi_reduction <add>, %317, %cst_88 [2] : vector<2x16x8xf32> to vector<2x16xf32>
    %322 = vector.shape_cast %321 : vector<2x16xf32> to vector<2x16x1xf32>
    %cst_89 = arith.constant dense<0.000000e+00> : vector<2x16xf32>
    %323 = vector.multi_reduction <add>, %320, %cst_89 [2] : vector<2x16x16xf32> to vector<2x16xf32>
    %324 = vector.shape_cast %323 : vector<2x16xf32> to vector<2x16x1xf32>
    %325 = arith.addf %322, %324 : vector<2x16x1xf32>
    %326 = tpu.reciprocal %325 {approx = true} : vector<2x16x1xf32> -> vector<2x16x1xf32>
    %327 = vector.broadcast %326 : vector<2x16x1xf32> to vector<2x16x8xf32>
    %328 = arith.mulf %317, %327 : vector<2x16x8xf32>
    %329 = arith.truncf %328 : vector<2x16x8xf32> to vector<2x16x8xbf16>
    %330 = vector.extract_strided_slice %73 {offsets = [0, 0, 448], sizes = [2, 8, 64], strides = [1, 1, 1]} : vector<2x8x512xbf16> to vector<2x8x64xbf16>
    "tpu.trace_start"() <{level = 10 : i32, message = "bij,bjd->bid"}> : () -> ()
    %cst_90 = arith.constant dense<0.000000e+00> : vector<2x16x64xf32>
    %331 = tpu.matmul %329, %330, %cst_90 {dimension_numbers = #tpu.dot_dimension_numbers<[2], [1], [1], [2], [0, 0, 0, 1, 1, 2], [0], [0]>} : vector<2x16x8xbf16>, vector<2x8x64xbf16>, vector<2x16x64xf32> -> vector<2x16x64xf32>
    "tpu.trace_stop"() : () -> ()
    %332 = vector.broadcast %326 : vector<2x16x1xf32> to vector<2x16x16xf32>
    %333 = arith.mulf %320, %332 : vector<2x16x16xf32>
    %334 = arith.truncf %333 : vector<2x16x16xf32> to vector<2x16x16xbf16>
    %335 = vector.extract_strided_slice %69 {offsets = [0, 0, 448], sizes = [2, 16, 64], strides = [1, 1, 1]} : vector<2x16x512xbf16> to vector<2x16x64xbf16>
    "tpu.trace_start"() <{level = 10 : i32, message = "bij,bjd->bid"}> : () -> ()
    %cst_91 = arith.constant dense<0.000000e+00> : vector<2x16x64xf32>
    %336 = tpu.matmul %334, %335, %cst_91 {dimension_numbers = #tpu.dot_dimension_numbers<[2], [1], [1], [2], [0, 0, 0, 1, 1, 2], [0], [0]>} : vector<2x16x16xbf16>, vector<2x16x64xbf16>, vector<2x16x64xf32> -> vector<2x16x64xf32>
    "tpu.trace_stop"() : () -> ()
    %337 = arith.addf %331, %336 : vector<2x16x64xf32>
    %338 = tpu.concatenate %106, %139, %172, %205, %238, %271, %304, %337 in 2 : vector<2x16x64xf32>, vector<2x16x64xf32>, vector<2x16x64xf32>, vector<2x16x64xf32>, vector<2x16x64xf32>, vector<2x16x64xf32>, vector<2x16x64xf32>, vector<2x16x64xf32> -> vector<2x16x512xf32>
    %339 = vector.shape_cast %338 : vector<2x16x512xf32> to vector<32x512xf32>
    %340 = arith.truncf %339 : vector<32x512xf32> to vector<32x512xbf16>
    %c0_92 = arith.constant 0 : index
    %c0_93 = arith.constant 0 : index
    %341 = vector.load %arg9[%c0_92, %c0_93] : memref<512x128xbf16, #tpu.memory_space<vmem>>, vector<512x128xbf16>
    %cst_94 = arith.constant dense<0.000000e+00> : vector<32x128xf32>
    %342 = tpu.matmul %340, %341, %cst_94 {dimension_numbers = #tpu.dot_dimension_numbers<[1], [0], [0], [1], [0, 0, 1, 1], [], []>} : vector<32x512xbf16>, vector<512x128xbf16>, vector<32x128xf32> -> vector<32x128xf32>
    %343 = vector.shape_cast %342 : vector<32x128xf32> to vector<2x16x128xf32>
    %c0_95 = arith.constant 0 : index
    %c0_96 = arith.constant 0 : index
    %c0_97 = arith.constant 0 : index
    %344 = vector.load %arg10[%c0_95, %c0_96, %c0_97] : memref<2x16x128xf32, #tpu.memory_space<vmem>>, vector<2x16x128xf32>
    tpu.vector_store %arg10[%c0_95, %c0_96, %c0_97], %343 {strides = array<i32>} : memref<2x16x128xf32, #tpu.memory_space<vmem>>, vector<2x16x128xf32>,
    return
  }
  func.func @transform_0(%arg0: i32) -> (i32, i32, i32) {
    %c0_i32 = arith.constant 0 : i32
    %c0_i32_0 = arith.constant 0 : i32
    %c0_i32_1 = arith.constant 0 : i32
    return %arg0, %c0_i32, %c0_i32_0 : i32, i32, i32
  }
  func.func @transform_1(%arg0: i32) -> (i32, i32, i32) {
    %c0_i32 = arith.constant 0 : i32
    %c0_i32_0 = arith.constant 0 : i32
    %c0_i32_1 = arith.constant 0 : i32
    return %arg0, %c0_i32, %c0_i32_0 : i32, i32, i32
  }
  func.func @transform_2(%arg0: i32) -> (i32, i32) {
    %c0_i32 = arith.constant 0 : i32
    %c0_i32_0 = arith.constant 0 : i32
    %c0_i32_1 = arith.constant 0 : i32
    return %c0_i32, %c0_i32_0 : i32, i32
  }
  func.func @transform_3(%arg0: i32) -> (i32, i32) {
    %c0_i32 = arith.constant 0 : i32
    %c0_i32_0 = arith.constant 0 : i32
    %c0_i32_1 = arith.constant 0 : i32
    return %c0_i32, %c0_i32_0 : i32, i32
  }
  func.func @transform_4(%arg0: i32) -> (i32, i32) {
    %c0_i32 = arith.constant 0 : i32
    %c0_i32_0 = arith.constant 0 : i32
    %c0_i32_1 = arith.constant 0 : i32
    return %c0_i32, %c0_i32_0 : i32, i32
  }
  func.func @transform_5(%arg0: i32) -> (i32, i32) {
    %c0_i32 = arith.constant 0 : i32
    %c0_i32_0 = arith.constant 0 : i32
    %c0_i32_1 = arith.constant 0 : i32
    return %c0_i32, %c0_i32_0 : i32, i32
  }
  func.func @transform_6(%arg0: i32) -> (i32, i32) {
    %c0_i32 = arith.constant 0 : i32
    %c0_i32_0 = arith.constant 0 : i32
    %c0_i32_1 = arith.constant 0 : i32
    return %c0_i32, %c0_i32_0 : i32, i32
  }
  func.func @transform_7(%arg0: i32) -> (i32, i32) {
    %c0_i32 = arith.constant 0 : i32
    %c0_i32_0 = arith.constant 0 : i32
    %c0_i32_1 = arith.constant 0 : i32
    return %c0_i32, %c0_i32_0 : i32, i32
  }
  func.func @transform_8(%arg0: i32) -> (i32, i32) {
    %c0_i32 = arith.constant 0 : i32
    %c0_i32_0 = arith.constant 0 : i32
    %c0_i32_1 = arith.constant 0 : i32
    return %c0_i32, %c0_i32_0 : i32, i32
  }
  func.func @transform_9(%arg0: i32) -> (i32, i32, i32) {
    %c0_i32 = arith.constant 0 : i32
    %c0_i32_0 = arith.constant 0 : i32
    %c0_i32_1 = arith.constant 0 : i32
    return %arg0, %c0_i32, %c0_i32_0 : i32, i32, i32
  }
}

module attributes {stable_mosaic.version = 11 : i64} {
  func.func @kernel(%arg0: i32, %arg1: memref<2x8x128xf32, #tpu.memory_space<vmem>>, %arg2: memref<2x16x128xf32, #tpu.memory_space<vmem>>, %arg3: memref<1x128xf32, #tpu.memory_space<vmem>>, %arg4: memref<1x128xf32, #tpu.memory_space<vmem>>, %arg5: memref<1x128xf32, #tpu.memory_space<vmem>>, %arg6: memref<1x128xf32, #tpu.memory_space<vmem>>, %arg7: memref<128x1536xbf16, #tpu.memory_space<vmem>>, %arg8: memref<128x1024xbf16, #tpu.memory_space<vmem>>, %arg9: memref<512x128xbf16, #tpu.memory_space<vmem>>, %arg10: memref<2x16x128xf32, #tpu.memory_space<vmem>>) attributes {dimension_semantics = [#tpu.dimension_semantics<parallel>], iteration_bounds = array<i64: 2>, scalar_prefetch = 0 : i64, scratch_operands = 0 : i64, tpu.core_type = #tpu.core_type<tc>, window_params = [{transform_indices = @transform_0, window_bounds = array<i64: 2, 8, 128>}, {transform_indices = @transform_1, window_bounds = array<i64: 2, 16, 128>}, {pipeline_mode = #tpu.pipeline_mode<synchronous>, transform_indices = @transform_2, window_bounds = array<i64: 1, 128>}, {pipeline_mode = #tpu.pipeline_mode<synchronous>, transform_indices = @transform_3, window_bounds = array<i64: 1, 128>}, {pipeline_mode = #tpu.pipeline_mode<synchronous>, transform_indices = @transform_4, window_bounds = array<i64: 1, 128>}, {pipeline_mode = #tpu.pipeline_mode<synchronous>, transform_indices = @transform_5, window_bounds = array<i64: 1, 128>}, {pipeline_mode = #tpu.pipeline_mode<synchronous>, transform_indices = @transform_6, window_bounds = array<i64: 128, 1536>}, {pipeline_mode = #tpu.pipeline_mode<synchronous>, transform_indices = @transform_7, window_bounds = array<i64: 128, 1024>}, {pipeline_mode = #tpu.pipeline_mode<synchronous>, transform_indices = @transform_8, window_bounds = array<i64: 512, 128>}, {transform_indices = @transform_9, window_bounds = array<i64: 2, 16, 128>}]} {
    %c0 = arith.constant 0 : index
    %c0_0 = arith.constant 0 : index
    %c0_1 = arith.constant 0 : index
    %0 = vector.load %arg1[%c0, %c0_0, %c0_1] : memref<2x8x128xf32, #tpu.memory_space<vmem>>, vector<2x8x128xf32>
    %c0_2 = arith.constant 0 : index
    %c0_3 = arith.constant 0 : index
    %1 = vector.load %arg3[%c0_2, %c0_3] : memref<1x128xf32, #tpu.memory_space<vmem>>, vector<1x128xf32>
    %c0_4 = arith.constant 0 : index
    %c0_5 = arith.constant 0 : index
    %2 = vector.load %arg4[%c0_4, %c0_5] : memref<1x128xf32, #tpu.memory_space<vmem>>, vector<1x128xf32>
    %cst = arith.constant dense<0.000000e+00> : vector<2x8xf32>
    %3 = vector.multi_reduction <add>, %0, %cst [2] : vector<2x8x128xf32> to vector<2x8xf32>
    %4 = vector.shape_cast %3 : vector<2x8xf32> to vector<2x8x1xf32>
    %cst_6 = arith.constant 1.280000e+02 : f32
    %5 = vector.broadcast %cst_6 : f32 to vector<2x8x1xf32>
    %6 = arith.divf %4, %5 : vector<2x8x1xf32>
    %7 = vector.broadcast %6 : vector<2x8x1xf32> to vector<2x8x128xf32>
    %8 = arith.subf %0, %7 : vector<2x8x128xf32>
    %9 = arith.mulf %8, %8 : vector<2x8x128xf32>
    %cst_7 = arith.constant dense<0.000000e+00> : vector<2x8xf32>
    %10 = vector.multi_reduction <add>, %9, %cst_7 [2] : vector<2x8x128xf32> to vector<2x8xf32>
    %11 = vector.shape_cast %10 : vector<2x8xf32> to vector<2x8x1xf32>
    %cst_8 = arith.constant 1.280000e+02 : f32
    %12 = vector.broadcast %cst_8 : f32 to vector<2x8x1xf32>
    %13 = arith.divf %11, %12 : vector<2x8x1xf32>
    %14 = vector.broadcast %6 : vector<2x8x1xf32> to vector<2x8x128xf32>
    %15 = arith.subf %0, %14 : vector<2x8x128xf32>
    %cst_9 = arith.constant 9.99999974E-6 : f32
    %16 = vector.broadcast %cst_9 : f32 to vector<2x8x1xf32>
    %17 = arith.addf %13, %16 : vector<2x8x1xf32>
    %18 = math.rsqrt %17 : vector<2x8x1xf32>
    %19 = vector.broadcast %18 : vector<2x8x1xf32> to vector<2x8x128xf32>
    %20 = arith.mulf %15, %19 : vector<2x8x128xf32>
    %21 = vector.shape_cast %1 : vector<1x128xf32> to vector<1x1x128xf32>
    %22 = vector.broadcast %21 : vector<1x1x128xf32> to vector<2x8x128xf32>
    %23 = arith.mulf %20, %22 : vector<2x8x128xf32>
    %24 = vector.shape_cast %2 : vector<1x128xf32> to vector<1x1x128xf32>
    %25 = vector.broadcast %24 : vector<1x1x128xf32> to vector<2x8x128xf32>
    %26 = arith.addf %23, %25 : vector<2x8x128xf32>
    %c0_10 = arith.constant 0 : index
    %c0_11 = arith.constant 0 : index
    %c0_12 = arith.constant 0 : index
    %27 = vector.load %arg2[%c0_10, %c0_11, %c0_12] : memref<2x16x128xf32, #tpu.memory_space<vmem>>, vector<2x16x128xf32>
    %c0_13 = arith.constant 0 : index
    %c0_14 = arith.constant 0 : index
    %28 = vector.load %arg5[%c0_13, %c0_14] : memref<1x128xf32, #tpu.memory_space<vmem>>, vector<1x128xf32>
    %c0_15 = arith.constant 0 : index
    %c0_16 = arith.constant 0 : index
    %29 = vector.load %arg6[%c0_15, %c0_16] : memref<1x128xf32, #tpu.memory_space<vmem>>, vector<1x128xf32>
    %cst_17 = arith.constant dense<0.000000e+00> : vector<2x16xf32>
    %30 = vector.multi_reduction <add>, %27, %cst_17 [2] : vector<2x16x128xf32> to vector<2x16xf32>
    %31 = vector.shape_cast %30 : vector<2x16xf32> to vector<2x16x1xf32>
    %cst_18 = arith.constant 1.280000e+02 : f32
    %32 = vector.broadcast %cst_18 : f32 to vector<2x16x1xf32>
    %33 = arith.divf %31, %32 : vector<2x16x1xf32>
    %34 = vector.broadcast %33 : vector<2x16x1xf32> to vector<2x16x128xf32>
    %35 = arith.subf %27, %34 : vector<2x16x128xf32>
    %36 = arith.mulf %35, %35 : vector<2x16x128xf32>
    %cst_19 = arith.constant dense<0.000000e+00> : vector<2x16xf32>
    %37 = vector.multi_reduction <add>, %36, %cst_19 [2] : vector<2x16x128xf32> to vector<2x16xf32>
    %38 = vector.shape_cast %37 : vector<2x16xf32> to vector<2x16x1xf32>
    %cst_20 = arith.constant 1.280000e+02 : f32
    %39 = vector.broadcast %cst_20 : f32 to vector<2x16x1xf32>
    %40 = arith.divf %38, %39 : vector<2x16x1xf32>
    %41 = vector.broadcast %33 : vector<2x16x1xf32> to vector<2x16x128xf32>
    %42 = arith.subf %27, %41 : vector<2x16x128xf32>
    %cst_21 = arith.constant 9.99999974E-6 : f32
    %43 = vector.broadcast %cst_21 : f32 to vector<2x16x1xf32>
    %44 = arith.addf %40, %43 : vector<2x16x1xf32>
    %45 = math.rsqrt %44 : vector<2x16x1xf32>
    %46 = vector.broadcast %45 : vector<2x16x1xf32> to vector<2x16x128xf32>
    %47 = arith.mulf %42, %46 : vector<2x16x128xf32>
    %48 = vector.shape_cast %28 : vector<1x128xf32> to vector<1x1x128xf32>
    %49 = vector.broadcast %48 : vector<1x1x128xf32> to vector<2x16x128xf32>
    %50 = arith.mulf %47, %49 : vector<2x16x128xf32>
    %51 = vector.shape_cast %29 : vector<1x128xf32> to vector<1x1x128xf32>
    %52 = vector.broadcast %51 : vector<1x1x128xf32> to vector<2x16x128xf32>
    %53 = arith.addf %50, %52 : vector<2x16x128xf32>
    %54 = vector.shape_cast %26 : vector<2x8x128xf32> to vector<16x128xf32>
    %55 = arith.truncf %54 : vector<16x128xf32> to vector<16x128xbf16>
    %56 = vector.shape_cast %53 : vector<2x16x128xf32> to vector<32x128xf32>
    %57 = arith.truncf %56 : vector<32x128xf32> to vector<32x128xbf16>
    %c0_22 = arith.constant 0 : index
    %c0_23 = arith.constant 0 : index
    %58 = vector.load %arg7[%c0_22, %c0_23] : memref<128x1536xbf16, #tpu.memory_space<vmem>>, vector<128x1536xbf16>
    %cst_24 = arith.constant dense<0.000000e+00> : vector<32x1536xf32>
    %59 = tpu.matmul %57, %58, %cst_24 {dimension_numbers = #tpu.dot_dimension_numbers<[1], [0], [0], [1], [0, 0, 1, 1], [], []>} : vector<32x128xbf16>, vector<128x1536xbf16>, vector<32x1536xf32> -> vector<32x1536xf32>
    %60 = arith.truncf %59 : vector<32x1536xf32> to vector<32x1536xbf16>
    %c0_25 = arith.constant 0 : index
    %c0_26 = arith.constant 0 : index
    %61 = vector.load %arg8[%c0_25, %c0_26] : memref<128x1024xbf16, #tpu.memory_space<vmem>>, vector<128x1024xbf16>
    %cst_27 = arith.constant dense<0.000000e+00> : vector<16x1024xf32>
    %62 = tpu.matmul %55, %61, %cst_27 {dimension_numbers = #tpu.dot_dimension_numbers<[1], [0], [0], [1], [0, 0, 1, 1], [], []>} : vector<16x128xbf16>, vector<128x1024xbf16>, vector<16x1024xf32> -> vector<16x1024xf32>
    %63 = arith.truncf %62 : vector<16x1024xf32> to vector<16x1024xbf16>
    %64 = vector.extract_strided_slice %60 {offsets = [0, 0], sizes = [32, 512], strides = [1, 1]} : vector<32x1536xbf16> to vector<32x512xbf16>
    %65 = vector.shape_cast %64 : vector<32x512xbf16> to vector<2x16x512xbf16>
    %66 = vector.extract_strided_slice %60 {offsets = [0, 512], sizes = [32, 512], strides = [1, 1]} : vector<32x1536xbf16> to vector<32x512xbf16>
    %67 = vector.shape_cast %66 : vector<32x512xbf16> to vector<2x16x512xbf16>
    %68 = vector.extract_strided_slice %60 {offsets = [0, 1024], sizes = [32, 512], strides = [1, 1]} : vector<32x1536xbf16> to vector<32x512xbf16>
    %69 = vector.shape_cast %68 : vector<32x512xbf16> to vector<2x16x512xbf16>
    %70 = vector.extract_strided_slice %63 {offsets = [0, 0], sizes = [16, 512], strides = [1, 1]} : vector<16x1024xbf16> to vector<16x512xbf16>
    %71 = vector.shape_cast %70 : vector<16x512xbf16> to vector<2x8x512xbf16>
    %72 = vector.extract_strided_slice %63 {offsets = [0, 512], sizes = [16, 512], strides = [1, 1]} : vector<16x1024xbf16> to vector<16x512xbf16>
    %73 = vector.shape_cast %72 : vector<16x512xbf16> to vector<2x8x512xbf16>
    %74 = vector.extract_strided_slice %65 {offsets = [0, 0, 0], sizes = [2, 16, 64], strides = [1, 1, 1]} : vector<2x16x512xbf16> to vector<2x16x64xbf16>
    %75 = vector.extract_strided_slice %71 {offsets = [0, 0, 0], sizes = [2, 8, 64], strides = [1, 1, 1]} : vector<2x8x512xbf16> to vector<2x8x64xbf16>
    %76 = vector.extract_strided_slice %67 {offsets = [0, 0, 0], sizes = [2, 16, 64], strides = [1, 1, 1]} : vector<2x16x512xbf16> to vector<2x16x64xbf16>
    "tpu.trace_start"() <{level = 10 : i32, message = "bid,bjd->bij"}> : () -> ()
    %cst_28 = arith.constant dense<0.000000e+00> : vector<2x16x8xf32>
    %77 = tpu.matmul %74, %75, %cst_28 {dimension_numbers = #tpu.dot_dimension_numbers<[2], [2], [1], [1], [0, 0, 0, 1, 1, 1], [0], [0]>} : vector<2x16x64xbf16>, vector<2x8x64xbf16>, vector<2x16x8xf32> -> vector<2x16x8xf32>
    %cst_29 = arith.constant dense<0.000000e+00> : vector<2x16x16xf32>
    %78 = tpu.matmul %74, %76, %cst_29 {dimension_numbers = #tpu.dot_dimension_numbers<[2], [2], [1], [1], [0, 0, 0, 1, 1, 1], [0], [0]>} : vector<2x16x64xbf16>, vector<2x16x64xbf16>, vector<2x16x16xf32> -> vector<2x16x16xf32>
    "tpu.trace_stop"() : () -> ()
    %cst_30 = arith.constant dense<0xFF800000> : vector<2x16xf32>
    %79 = vector.multi_reduction <maximumf>, %77, %cst_30 [2] : vector<2x16x8xf32> to vector<2x16xf32>
    %80 = vector.shape_cast %79 : vector<2x16xf32> to vector<2x16x1xf32>
    %cst_31 = arith.constant dense<0xFF800000> : vector<2x16xf32>
    %81 = vector.multi_reduction <maximumf>, %78, %cst_31 [2] : vector<2x16x16xf32> to vector<2x16xf32>
    %82 = vector.shape_cast %81 : vector<2x16xf32> to vector<2x16x1xf32>
    %83 = arith.maximumf %80, %82 : vector<2x16x1xf32>
    %84 = vector.broadcast %83 : vector<2x16x1xf32> to vector<2x16x8xf32>
    %85 = arith.subf %77, %84 : vector<2x16x8xf32>
    %86 = math.exp %85 : vector<2x16x8xf32>
    %87 = vector.broadcast %83 : vector<2x16x1xf32> to vector<2x16x16xf32>
    %88 = arith.subf %78, %87 : vector<2x16x16xf32>
    %89 = math.exp %88 : vector<2x16x16xf32>
    %cst_32 = arith.constant dense<0.000000e+00> : vector<2x16xf32>
    %90 = vector.multi_reduction <add>, %86, %cst_32 [2] : vector<2x16x8xf32> to vector<2x16xf32>
    %91 = vector.shape_cast %90 : vector<2x16xf32> to vector<2x16x1xf32>
    %cst_33 = arith.constant dense<0.000000e+00> : vector<2x16xf32>
    %92 = vector.multi_reduction <add>, %89, %cst_33 [2] : vector<2x16x16xf32> to vector<2x16xf32>
    %93 = vector.shape_cast %92 : vector<2x16xf32> to vector<2x16x1xf32>
    %94 = arith.addf %91, %93 : vector<2x16x1xf32>
    %95 = tpu.reciprocal %94 {approx = true} : vector<2x16x1xf32> -> vector<2x16x1xf32>
    %96 = vector.broadcast %95 : vector<2x16x1xf32> to vector<2x16x8xf32>
    %97 = arith.mulf %86, %96 : vector<2x16x8xf32>
    %98 = arith.truncf %97 : vector<2x16x8xf32> to vector<2x16x8xbf16>
    %99 = vector.extract_strided_slice %73 {offsets = [0, 0, 0], sizes = [2, 8, 64], strides = [1, 1, 1]} : vector<2x8x512xbf16> to vector<2x8x64xbf16>
    "tpu.trace_start"() <{level = 10 : i32, message = "bij,bjd->bid"}> : () -> ()
    %cst_34 = arith.constant dense<0.000000e+00> : vector<2x16x64xf32>
    %100 = tpu.matmul %98, %99, %cst_34 {dimension_numbers = #tpu.dot_dimension_numbers<[2], [1], [1], [2], [0, 0, 0, 1, 1, 2], [0], [0]>} : vector<2x16x8xbf16>, vector<2x8x64xbf16>, vector<2x16x64xf32> -> vector<2x16x64xf32>
    "tpu.trace_stop"() : () -> ()
    %101 = vector.broadcast %95 : vector<2x16x1xf32> to vector<2x16x16xf32>
    %102 = arith.mulf %89, %101 : vector<2x16x16xf32>
    %103 = arith.truncf %102 : vector<2x16x16xf32> to vector<2x16x16xbf16>
    %104 = vector.extract_strided_slice %69 {offsets = [0, 0, 0], sizes = [2, 16, 64], strides = [1, 1, 1]} : vector<2x16x512xbf16> to vector<2x16x64xbf16>
    "tpu.trace_start"() <{level = 10 : i32, message = "bij,bjd->bid"}> : () -> ()
    %cst_35 = arith.constant dense<0.000000e+00> : vector<2x16x64xf32>
    %105 = tpu.matmul %103, %104, %cst_35 {dimension_numbers = #tpu.dot_dimension_numbers<[2], [1], [1], [2], [0, 0, 0, 1, 1, 2], [0], [0]>} : vector<2x16x16xbf16>, vector<2x16x64xbf16>, vector<2x16x64xf32> -> vector<2x16x64xf32>
    "tpu.trace_stop"() : () -> ()
    %106 = arith.addf %100, %105 : vector<2x16x64xf32>
    %107 = vector.extract_strided_slice %65 {offsets = [0, 0, 64], sizes = [2, 16, 64], strides = [1, 1, 1]} : vector<2x16x512xbf16> to vector<2x16x64xbf16>
    %108 = vector.extract_strided_slice %71 {offsets = [0, 0, 64], sizes = [2, 8, 64], strides = [1, 1, 1]} : vector<2x8x512xbf16> to vector<2x8x64xbf16>
    %109 = vector.extract_strided_slice %67 {offsets = [0, 0, 64], sizes = [2, 16, 64], strides = [1, 1, 1]} : vector<2x16x512xbf16> to vector<2x16x64xbf16>
    "tpu.trace_start"() <{level = 10 : i32, message = "bid,bjd->bij"}> : () -> ()
    %cst_36 = arith.constant dense<0.000000e+00> : vector<2x16x8xf32>
    %110 = tpu.matmul %107, %108, %cst_36 {dimension_numbers = #tpu.dot_dimension_numbers<[2], [2], [1], [1], [0, 0, 0, 1, 1, 1], [0], [0]>} : vector<2x16x64xbf16>, vector<2x8x64xbf16>, vector<2x16x8xf32> -> vector<2x16x8xf32>
    %cst_37 = arith.constant dense<0.000000e+00> : vector<2x16x16xf32>
    %111 = tpu.matmul %107, %109, %cst_37 {dimension_numbers = #tpu.dot_dimension_numbers<[2], [2], [1], [1], [0, 0, 0, 1, 1, 1], [0], [0]>} : vector<2x16x64xbf16>, vector<2x16x64xbf16>, vector<2x16x16xf32> -> vector<2x16x16xf32>
    "tpu.trace_stop"() : () -> ()
    %cst_38 = arith.constant dense<0xFF800000> : vector<2x16xf32>
    %112 = vector.multi_reduction <maximumf>, %110, %cst_38 [2] : vector<2x16x8xf32> to vector<2x16xf32>
    %113 = vector.shape_cast %112 : vector<2x16xf32> to vector<2x16x1xf32>
    %cst_39 = arith.constant dense<0xFF800000> : vector<2x16xf32>
    %114 = vector.multi_reduction <maximumf>, %111, %cst_39 [2] : vector<2x16x16xf32> to vector<2x16xf32>
    %115 = vector.shape_cast %114 : vector<2x16xf32> to vector<2x16x1xf32>
    %116 = arith.maximumf %113, %115 : vector<2x16x1xf32>
    %117 = vector.broadcast %116 : vector<2x16x1xf32> to vector<2x16x8xf32>
    %118 = arith.subf %110, %117 : vector<2x16x8xf32>
    %119 = math.exp %118 : vector<2x16x8xf32>
    %120 = vector.broadcast %116 : vector<2x16x1xf32> to vector<2x16x16xf32>
    %121 = arith.subf %111, %120 : vector<2x16x16xf32>
    %122 = math.exp %121 : vector<2x16x16xf32>
    %cst_40 = arith.constant dense<0.000000e+00> : vector<2x16xf32>
    %123 = vector.multi_reduction <add>, %119, %cst_40 [2] : vector<2x16x8xf32> to vector<2x16xf32>
    %124 = vector.shape_cast %123 : vector<2x16xf32> to vector<2x16x1xf32>
    %cst_41 = arith.constant dense<0.000000e+00> : vector<2x16xf32>
    %125 = vector.multi_reduction <add>, %122, %cst_41 [2] : vector<2x16x16xf32> to vector<2x16xf32>
    %126 = vector.shape_cast %125 : vector<2x16xf32> to vector<2x16x1xf32>
    %127 = arith.addf %124, %126 : vector<2x16x1xf32>
    %128 = tpu.reciprocal %127 {approx = true} : vector<2x16x1xf32> -> vector<2x16x1xf32>
    %129 = vector.broadcast %128 : vector<2x16x1xf32> to vector<2x16x8xf32>
    %130 = arith.mulf %119, %129 : vector<2x16x8xf32>
    %131 = arith.truncf %130 : vector<2x16x8xf32> to vector<2x16x8xbf16>
    %132 = vector.extract_strided_slice %73 {offsets = [0, 0, 64], sizes = [2, 8, 64], strides = [1, 1, 1]} : vector<2x8x512xbf16> to vector<2x8x64xbf16>
    "tpu.trace_start"() <{level = 10 : i32, message = "bij,bjd->bid"}> : () -> ()
    %cst_42 = arith.constant dense<0.000000e+00> : vector<2x16x64xf32>
    %133 = tpu.matmul %131, %132, %cst_42 {dimension_numbers = #tpu.dot_dimension_numbers<[2], [1], [1], [2], [0, 0, 0, 1, 1, 2], [0], [0]>} : vector<2x16x8xbf16>, vector<2x8x64xbf16>, vector<2x16x64xf32> -> vector<2x16x64xf32>
    "tpu.trace_stop"() : () -> ()
    %134 = vector.broadcast %128 : vector<2x16x1xf32> to vector<2x16x16xf32>
    %135 = arith.mulf %122, %134 : vector<2x16x16xf32>
    %136 = arith.truncf %135 : vector<2x16x16xf32> to vector<2x16x16xbf16>
    %137 = vector.extract_strided_slice %69 {offsets = [0, 0, 64], sizes = [2, 16, 64], strides = [1, 1, 1]} : vector<2x16x512xbf16> to vector<2x16x64xbf16>
    "tpu.trace_start"() <{level = 10 : i32, message = "bij,bjd->bid"}> : () -> ()
    %cst_43 = arith.constant dense<0.000000e+00> : vector<2x16x64xf32>
    %138 = tpu.matmul %136, %137, %cst_43 {dimension_numbers = #tpu.dot_dimension_numbers<[2], [1], [1], [2], [0, 0, 0, 1, 1, 2], [0], [0]>} : vector<2x16x16xbf16>, vector<2x16x64xbf16>, vector<2x16x64xf32> -> vector<2x16x64xf32>
    "tpu.trace_stop"() : () -> ()
    %139 = arith.addf %133, %138 : vector<2x16x64xf32>
    %140 = vector.extract_strided_slice %65 {offsets = [0, 0, 128], sizes = [2, 16, 64], strides = [1, 1, 1]} : vector<2x16x512xbf16> to vector<2x16x64xbf16>
    %141 = vector.extract_strided_slice %71 {offsets = [0, 0, 128], sizes = [2, 8, 64], strides = [1, 1, 1]} : vector<2x8x512xbf16> to vector<2x8x64xbf16>
    %142 = vector.extract_strided_slice %67 {offsets = [0, 0, 128], sizes = [2, 16, 64], strides = [1, 1, 1]} : vector<2x16x512xbf16> to vector<2x16x64xbf16>
    "tpu.trace_start"() <{level = 10 : i32, message = "bid,bjd->bij"}> : () -> ()
    %cst_44 = arith.constant dense<0.000000e+00> : vector<2x16x8xf32>
    %143 = tpu.matmul %140, %141, %cst_44 {dimension_numbers = #tpu.dot_dimension_numbers<[2], [2], [1], [1], [0, 0, 0, 1, 1, 1], [0], [0]>} : vector<2x16x64xbf16>, vector<2x8x64xbf16>, vector<2x16x8xf32> -> vector<2x16x8xf32>
    %cst_45 = arith.constant dense<0.000000e+00> : vector<2x16x16xf32>
    %144 = tpu.matmul %140, %142, %cst_45 {dimension_numbers = #tpu.dot_dimension_numbers<[2], [2], [1], [1], [0, 0, 0, 1, 1, 1], [0], [0]>} : vector<2x16x64xbf16>, vector<2x16x64xbf16>, vector<2x16x16xf32> -> vector<2x16x16xf32>
    "tpu.trace_stop"() : () -> ()
    %cst_46 = arith.constant dense<0xFF800000> : vector<2x16xf32>
    %145 = vector.multi_reduction <maximumf>, %143, %cst_46 [2] : vector<2x16x8xf32> to vector<2x16xf32>
    %146 = vector.shape_cast %145 : vector<2x16xf32> to vector<2x16x1xf32>
    %cst_47 = arith.constant dense<0xFF800000> : vector<2x16xf32>
    %147 = vector.multi_reduction <maximumf>, %144, %cst_47 [2] : vector<2x16x16xf32> to vector<2x16xf32>
    %148 = vector.shape_cast %147 : vector<2x16xf32> to vector<2x16x1xf32>
    %149 = arith.maximumf %146, %148 : vector<2x16x1xf32>
    %150 = vector.broadcast %149 : vector<2x16x1xf32> to vector<2x16x8xf32>
    %151 = arith.subf %143, %150 : vector<2x16x8xf32>
    %152 = math.exp %151 : vector<2x16x8xf32>
    %153 = vector.broadcast %149 : vector<2x16x1xf32> to vector<2x16x16xf32>
    %154 = arith.subf %144, %153 : vector<2x16x16xf32>
    %155 = math.exp %154 : vector<2x16x16xf32>
    %cst_48 = arith.constant dense<0.000000e+00> : vector<2x16xf32>
    %156 = vector.multi_reduction <add>, %152, %cst_48 [2] : vector<2x16x8xf32> to vector<2x16xf32>
    %157 = vector.shape_cast %156 : vector<2x16xf32> to vector<2x16x1xf32>
    %cst_49 = arith.constant dense<0.000000e+00> : vector<2x16xf32>
    %158 = vector.multi_reduction <add>, %155, %cst_49 [2] : vector<2x16x16xf32> to vector<2x16xf32>
    %159 = vector.shape_cast %158 : vector<2x16xf32> to vector<2x16x1xf32>
    %160 = arith.addf %157, %159 : vector<2x16x1xf32>
    %161 = tpu.reciprocal %160 {approx = true} : vector<2x16x1xf32> -> vector<2x16x1xf32>
    %162 = vector.broadcast %161 : vector<2x16x1xf32> to vector<2x16x8xf32>
    %163 = arith.mulf %152, %162 : vector<2x16x8xf32>
    %164 = arith.truncf %163 : vector<2x16x8xf32> to vector<2x16x8xbf16>
    %165 = vector.extract_strided_slice %73 {offsets = [0, 0, 128], sizes = [2, 8, 64], strides = [1, 1, 1]} : vector<2x8x512xbf16> to vector<2x8x64xbf16>
    "tpu.trace_start"() <{level = 10 : i32, message = "bij,bjd->bid"}> : () -> ()
    %cst_50 = arith.constant dense<0.000000e+00> : vector<2x16x64xf32>
    %166 = tpu.matmul %164, %165, %cst_50 {dimension_numbers = #tpu.dot_dimension_numbers<[2], [1], [1], [2], [0, 0, 0, 1, 1, 2], [0], [0]>} : vector<2x16x8xbf16>, vector<2x8x64xbf16>, vector<2x16x64xf32> -> vector<2x16x64xf32>
    "tpu.trace_stop"() : () -> ()
    %167 = vector.broadcast %161 : vector<2x16x1xf32> to vector<2x16x16xf32>
    %168 = arith.mulf %155, %167 : vector<2x16x16xf32>
    %169 = arith.truncf %168 : vector<2x16x16xf32> to vector<2x16x16xbf16>
    %170 = vector.extract_strided_slice %69 {offsets = [0, 0, 128], sizes = [2, 16, 64], strides = [1, 1, 1]} : vector<2x16x512xbf16> to vector<2x16x64xbf16>
    "tpu.trace_start"() <{level = 10 : i32, message = "bij,bjd->bid"}> : () -> ()
    %cst_51 = arith.constant dense<0.000000e+00> : vector<2x16x64xf32>
    %171 = tpu.matmul %169, %170, %cst_51 {dimension_numbers = #tpu.dot_dimension_numbers<[2], [1], [1], [2], [0, 0, 0, 1, 1, 2], [0], [0]>} : vector<2x16x16xbf16>, vector<2x16x64xbf16>, vector<2x16x64xf32> -> vector<2x16x64xf32>
    "tpu.trace_stop"() : () -> ()
    %172 = arith.addf %166, %171 : vector<2x16x64xf32>
    %173 = vector.extract_strided_slice %65 {offsets = [0, 0, 192], sizes = [2, 16, 64], strides = [1, 1, 1]} : vector<2x16x512xbf16> to vector<2x16x64xbf16>
    %174 = vector.extract_strided_slice %71 {offsets = [0, 0, 192], sizes = [2, 8, 64], strides = [1, 1, 1]} : vector<2x8x512xbf16> to vector<2x8x64xbf16>
    %175 = vector.extract_strided_slice %67 {offsets = [0, 0, 192], sizes = [2, 16, 64], strides = [1, 1, 1]} : vector<2x16x512xbf16> to vector<2x16x64xbf16>
    "tpu.trace_start"() <{level = 10 : i32, message = "bid,bjd->bij"}> : () -> ()
    %cst_52 = arith.constant dense<0.000000e+00> : vector<2x16x8xf32>
    %176 = tpu.matmul %173, %174, %cst_52 {dimension_numbers = #tpu.dot_dimension_numbers<[2], [2], [1], [1], [0, 0, 0, 1, 1, 1], [0], [0]>} : vector<2x16x64xbf16>, vector<2x8x64xbf16>, vector<2x16x8xf32> -> vector<2x16x8xf32>
    %cst_53 = arith.constant dense<0.000000e+00> : vector<2x16x16xf32>
    %177 = tpu.matmul %173, %175, %cst_53 {dimension_numbers = #tpu.dot_dimension_numbers<[2], [2], [1], [1], [0, 0, 0, 1, 1, 1], [0], [0]>} : vector<2x16x64xbf16>, vector<2x16x64xbf16>, vector<2x16x16xf32> -> vector<2x16x16xf32>
    "tpu.trace_stop"() : () -> ()
    %cst_54 = arith.constant dense<0xFF800000> : vector<2x16xf32>
    %178 = vector.multi_reduction <maximumf>, %176, %cst_54 [2] : vector<2x16x8xf32> to vector<2x16xf32>
    %179 = vector.shape_cast %178 : vector<2x16xf32> to vector<2x16x1xf32>
    %cst_55 = arith.constant dense<0xFF800000> : vector<2x16xf32>
    %180 = vector.multi_reduction <maximumf>, %177, %cst_55 [2] : vector<2x16x16xf32> to vector<2x16xf32>
    %181 = vector.shape_cast %180 : vector<2x16xf32> to vector<2x16x1xf32>
    %182 = arith.maximumf %179, %181 : vector<2x16x1xf32>
    %183 = vector.broadcast %182 : vector<2x16x1xf32> to vector<2x16x8xf32>
    %184 = arith.subf %176, %183 : vector<2x16x8xf32>
    %185 = math.exp %184 : vector<2x16x8xf32>
    %186 = vector.broadcast %182 : vector<2x16x1xf32> to vector<2x16x16xf32>
    %187 = arith.subf %177, %186 : vector<2x16x16xf32>
    %188 = math.exp %187 : vector<2x16x16xf32>
    %cst_56 = arith.constant dense<0.000000e+00> : vector<2x16xf32>
    %189 = vector.multi_reduction <add>, %185, %cst_56 [2] : vector<2x16x8xf32> to vector<2x16xf32>
    %190 = vector.shape_cast %189 : vector<2x16xf32> to vector<2x16x1xf32>
    %cst_57 = arith.constant dense<0.000000e+00> : vector<2x16xf32>
    %191 = vector.multi_reduction <add>, %188, %cst_57 [2] : vector<2x16x16xf32> to vector<2x16xf32>
    %192 = vector.shape_cast %191 : vector<2x16xf32> to vector<2x16x1xf32>
    %193 = arith.addf %190, %192 : vector<2x16x1xf32>
    %194 = tpu.reciprocal %193 {approx = true} : vector<2x16x1xf32> -> vector<2x16x1xf32>
    %195 = vector.broadcast %194 : vector<2x16x1xf32> to vector<2x16x8xf32>
    %196 = arith.mulf %185, %195 : vector<2x16x8xf32>
    %197 = arith.truncf %196 : vector<2x16x8xf32> to vector<2x16x8xbf16>
    %198 = vector.extract_strided_slice %73 {offsets = [0, 0, 192], sizes = [2, 8, 64], strides = [1, 1, 1]} : vector<2x8x512xbf16> to vector<2x8x64xbf16>
    "tpu.trace_start"() <{level = 10 : i32, message = "bij,bjd->bid"}> : () -> ()
    %cst_58 = arith.constant dense<0.000000e+00> : vector<2x16x64xf32>
    %199 = tpu.matmul %197, %198, %cst_58 {dimension_numbers = #tpu.dot_dimension_numbers<[2], [1], [1], [2], [0, 0, 0, 1, 1, 2], [0], [0]>} : vector<2x16x8xbf16>, vector<2x8x64xbf16>, vector<2x16x64xf32> -> vector<2x16x64xf32>
    "tpu.trace_stop"() : () -> ()
    %200 = vector.broadcast %194 : vector<2x16x1xf32> to vector<2x16x16xf32>
    %201 = arith.mulf %188, %200 : vector<2x16x16xf32>
    %202 = arith.truncf %201 : vector<2x16x16xf32> to vector<2x16x16xbf16>
    %203 = vector.extract_strided_slice %69 {offsets = [0, 0, 192], sizes = [2, 16, 64], strides = [1, 1, 1]} : vector<2x16x512xbf16> to vector<2x16x64xbf16>
    "tpu.trace_start"() <{level = 10 : i32, message = "bij,bjd->bid"}> : () -> ()
    %cst_59 = arith.constant dense<0.000000e+00> : vector<2x16x64xf32>
    %204 = tpu.matmul %202, %203, %cst_59 {dimension_numbers = #tpu.dot_dimension_numbers<[2], [1], [1], [2], [0, 0, 0, 1, 1, 2], [0], [0]>} : vector<2x16x16xbf16>, vector<2x16x64xbf16>, vector<2x16x64xf32> -> vector<2x16x64xf32>
    "tpu.trace_stop"() : () -> ()
    %205 = arith.addf %199, %204 : vector<2x16x64xf32>
    %206 = vector.extract_strided_slice %65 {offsets = [0, 0, 256], sizes = [2, 16, 64], strides = [1, 1, 1]} : vector<2x16x512xbf16> to vector<2x16x64xbf16>
    %207 = vector.extract_strided_slice %71 {offsets = [0, 0, 256], sizes = [2, 8, 64], strides = [1, 1, 1]} : vector<2x8x512xbf16> to vector<2x8x64xbf16>
    %208 = vector.extract_strided_slice %67 {offsets = [0, 0, 256], sizes = [2, 16, 64], strides = [1, 1, 1]} : vector<2x16x512xbf16> to vector<2x16x64xbf16>
    "tpu.trace_start"() <{level = 10 : i32, message = "bid,bjd->bij"}> : () -> ()
    %cst_60 = arith.constant dense<0.000000e+00> : vector<2x16x8xf32>
    %209 = tpu.matmul %206, %207, %cst_60 {dimension_numbers = #tpu.dot_dimension_numbers<[2], [2], [1], [1], [0, 0, 0, 1, 1, 1], [0], [0]>} : vector<2x16x64xbf16>, vector<2x8x64xbf16>, vector<2x16x8xf32> -> vector<2x16x8xf32>
    %cst_61 = arith.constant dense<0.000000e+00> : vector<2x16x16xf32>
    %210 = tpu.matmul %206, %208, %cst_61 {dimension_numbers = #tpu.dot_dimension_numbers<[2], [2], [1], [1], [0, 0, 0, 1, 1, 1], [0], [0]>} : vector<2x16x64xbf16>, vector<2x16x64xbf16>, vector<2x16x16xf32> -> vector<2x16x16xf32>
    "tpu.trace_stop"() : () -> ()
    %cst_62 = arith.constant dense<0xFF800000> : vector<2x16xf32>
    %211 = vector.multi_reduction <maximumf>, %209, %cst_62 [2] : vector<2x16x8xf32> to vector<2x16xf32>
    %212 = vector.shape_cast %211 : vector<2x16xf32> to vector<2x16x1xf32>
    %cst_63 = arith.constant dense<0xFF800000> : vector<2x16xf32>
    %213 = vector.multi_reduction <maximumf>, %210, %cst_63 [2] : vector<2x16x16xf32> to vector<2x16xf32>
    %214 = vector.shape_cast %213 : vector<2x16xf32> to vector<2x16x1xf32>
    %215 = arith.maximumf %212, %214 : vector<2x16x1xf32>
    %216 = vector.broadcast %215 : vector<2x16x1xf32> to vector<2x16x8xf32>
    %217 = arith.subf %209, %216 : vector<2x16x8xf32>
    %218 = math.exp %217 : vector<2x16x8xf32>
    %219 = vector.broadcast %215 : vector<2x16x1xf32> to vector<2x16x16xf32>
    %220 = arith.subf %210, %219 : vector<2x16x16xf32>
    %221 = math.exp %220 : vector<2x16x16xf32>
    %cst_64 = arith.constant dense<0.000000e+00> : vector<2x16xf32>
    %222 = vector.multi_reduction <add>, %218, %cst_64 [2] : vector<2x16x8xf32> to vector<2x16xf32>
    %223 = vector.shape_cast %222 : vector<2x16xf32> to vector<2x16x1xf32>
    %cst_65 = arith.constant dense<0.000000e+00> : vector<2x16xf32>
    %224 = vector.multi_reduction <add>, %221, %cst_65 [2] : vector<2x16x16xf32> to vector<2x16xf32>
    %225 = vector.shape_cast %224 : vector<2x16xf32> to vector<2x16x1xf32>
    %226 = arith.addf %223, %225 : vector<2x16x1xf32>
    %227 = tpu.reciprocal %226 {approx = true} : vector<2x16x1xf32> -> vector<2x16x1xf32>
    %228 = vector.broadcast %227 : vector<2x16x1xf32> to vector<2x16x8xf32>
    %229 = arith.mulf %218, %228 : vector<2x16x8xf32>
    %230 = arith.truncf %229 : vector<2x16x8xf32> to vector<2x16x8xbf16>
    %231 = vector.extract_strided_slice %73 {offsets = [0, 0, 256], sizes = [2, 8, 64], strides = [1, 1, 1]} : vector<2x8x512xbf16> to vector<2x8x64xbf16>
    "tpu.trace_start"() <{level = 10 : i32, message = "bij,bjd->bid"}> : () -> ()
    %cst_66 = arith.constant dense<0.000000e+00> : vector<2x16x64xf32>
    %232 = tpu.matmul %230, %231, %cst_66 {dimension_numbers = #tpu.dot_dimension_numbers<[2], [1], [1], [2], [0, 0, 0, 1, 1, 2], [0], [0]>} : vector<2x16x8xbf16>, vector<2x8x64xbf16>, vector<2x16x64xf32> -> vector<2x16x64xf32>
    "tpu.trace_stop"() : () -> ()
    %233 = vector.broadcast %227 : vector<2x16x1xf32> to vector<2x16x16xf32>
    %234 = arith.mulf %221, %233 : vector<2x16x16xf32>
    %235 = arith.truncf %234 : vector<2x16x16xf32> to vector<2x16x16xbf16>
    %236 = vector.extract_strided_slice %69 {offsets = [0, 0, 256], sizes = [2, 16, 64], strides = [1, 1, 1]} : vector<2x16x512xbf16> to vector<2x16x64xbf16>
    "tpu.trace_start"() <{level = 10 : i32, message = "bij,bjd->bid"}> : () -> ()
    %cst_67 = arith.constant dense<0.000000e+00> : vector<2x16x64xf32>
    %237 = tpu.matmul %235, %236, %cst_67 {dimension_numbers = #tpu.dot_dimension_numbers<[2], [1], [1], [2], [0, 0, 0, 1, 1, 2], [0], [0]>} : vector<2x16x16xbf16>, vector<2x16x64xbf16>, vector<2x16x64xf32> -> vector<2x16x64xf32>
    "tpu.trace_stop"() : () -> ()
    %238 = arith.addf %232, %237 : vector<2x16x64xf32>
    %239 = vector.extract_strided_slice %65 {offsets = [0, 0, 320], sizes = [2, 16, 64], strides = [1, 1, 1]} : vector<2x16x512xbf16> to vector<2x16x64xbf16>
    %240 = vector.extract_strided_slice %71 {offsets = [0, 0, 320], sizes = [2, 8, 64], strides = [1, 1, 1]} : vector<2x8x512xbf16> to vector<2x8x64xbf16>
    %241 = vector.extract_strided_slice %67 {offsets = [0, 0, 320], sizes = [2, 16, 64], strides = [1, 1, 1]} : vector<2x16x512xbf16> to vector<2x16x64xbf16>
    "tpu.trace_start"() <{level = 10 : i32, message = "bid,bjd->bij"}> : () -> ()
    %cst_68 = arith.constant dense<0.000000e+00> : vector<2x16x8xf32>
    %242 = tpu.matmul %239, %240, %cst_68 {dimension_numbers = #tpu.dot_dimension_numbers<[2], [2], [1], [1], [0, 0, 0, 1, 1, 1], [0], [0]>} : vector<2x16x64xbf16>, vector<2x8x64xbf16>, vector<2x16x8xf32> -> vector<2x16x8xf32>
    %cst_69 = arith.constant dense<0.000000e+00> : vector<2x16x16xf32>
    %243 = tpu.matmul %239, %241, %cst_69 {dimension_numbers = #tpu.dot_dimension_numbers<[2], [2], [1], [1], [0, 0, 0, 1, 1, 1], [0], [0]>} : vector<2x16x64xbf16>, vector<2x16x64xbf16>, vector<2x16x16xf32> -> vector<2x16x16xf32>
    "tpu.trace_stop"() : () -> ()
    %cst_70 = arith.constant dense<0xFF800000> : vector<2x16xf32>
    %244 = vector.multi_reduction <maximumf>, %242, %cst_70 [2] : vector<2x16x8xf32> to vector<2x16xf32>
    %245 = vector.shape_cast %244 : vector<2x16xf32> to vector<2x16x1xf32>
    %cst_71 = arith.constant dense<0xFF800000> : vector<2x16xf32>
    %246 = vector.multi_reduction <maximumf>, %243, %cst_71 [2] : vector<2x16x16xf32> to vector<2x16xf32>
    %247 = vector.shape_cast %246 : vector<2x16xf32> to vector<2x16x1xf32>
    %248 = arith.maximumf %245, %247 : vector<2x16x1xf32>
    %249 = vector.broadcast %248 : vector<2x16x1xf32> to vector<2x16x8xf32>
    %250 = arith.subf %242, %249 : vector<2x16x8xf32>
    %251 = math.exp %250 : vector<2x16x8xf32>
    %252 = vector.broadcast %248 : vector<2x16x1xf32> to vector<2x16x16xf32>
    %253 = arith.subf %243, %252 : vector<2x16x16xf32>
    %254 = math.exp %253 : vector<2x16x16xf32>
    %cst_72 = arith.constant dense<0.000000e+00> : vector<2x16xf32>
    %255 = vector.multi_reduction <add>, %251, %cst_72 [2] : vector<2x16x8xf32> to vector<2x16xf32>
    %256 = vector.shape_cast %255 : vector<2x16xf32> to vector<2x16x1xf32>
    %cst_73 = arith.constant dense<0.000000e+00> : vector<2x16xf32>
    %257 = vector.multi_reduction <add>, %254, %cst_73 [2] : vector<2x16x16xf32> to vector<2x16xf32>
    %258 = vector.shape_cast %257 : vector<2x16xf32> to vector<2x16x1xf32>
    %259 = arith.addf %256, %258 : vector<2x16x1xf32>
    %260 = tpu.reciprocal %259 {approx = true} : vector<2x16x1xf32> -> vector<2x16x1xf32>
    %261 = vector.broadcast %260 : vector<2x16x1xf32> to vector<2x16x8xf32>
    %262 = arith.mulf %251, %261 : vector<2x16x8xf32>
    %263 = arith.truncf %262 : vector<2x16x8xf32> to vector<2x16x8xbf16>
    %264 = vector.extract_strided_slice %73 {offsets = [0, 0, 320], sizes = [2, 8, 64], strides = [1, 1, 1]} : vector<2x8x512xbf16> to vector<2x8x64xbf16>
    "tpu.trace_start"() <{level = 10 : i32, message = "bij,bjd->bid"}> : () -> ()
    %cst_74 = arith.constant dense<0.000000e+00> : vector<2x16x64xf32>
    %265 = tpu.matmul %263, %264, %cst_74 {dimension_numbers = #tpu.dot_dimension_numbers<[2], [1], [1], [2], [0, 0, 0, 1, 1, 2], [0], [0]>} : vector<2x16x8xbf16>, vector<2x8x64xbf16>, vector<2x16x64xf32> -> vector<2x16x64xf32>
    "tpu.trace_stop"() : () -> ()
    %266 = vector.broadcast %260 : vector<2x16x1xf32> to vector<2x16x16xf32>
    %267 = arith.mulf %254, %266 : vector<2x16x16xf32>
    %268 = arith.truncf %267 : vector<2x16x16xf32> to vector<2x16x16xbf16>
    %269 = vector.extract_strided_slice %69 {offsets = [0, 0, 320], sizes = [2, 16, 64], strides = [1, 1, 1]} : vector<2x16x512xbf16> to vector<2x16x64xbf16>
    "tpu.trace_start"() <{level = 10 : i32, message = "bij,bjd->bid"}> : () -> ()
    %cst_75 = arith.constant dense<0.000000e+00> : vector<2x16x64xf32>
    %270 = tpu.matmul %268, %269, %cst_75 {dimension_numbers = #tpu.dot_dimension_numbers<[2], [1], [1], [2], [0, 0, 0, 1, 1, 2], [0], [0]>} : vector<2x16x16xbf16>, vector<2x16x64xbf16>, vector<2x16x64xf32> -> vector<2x16x64xf32>
    "tpu.trace_stop"() : () -> ()
    %271 = arith.addf %265, %270 : vector<2x16x64xf32>
    %272 = vector.extract_strided_slice %65 {offsets = [0, 0, 384], sizes = [2, 16, 64], strides = [1, 1, 1]} : vector<2x16x512xbf16> to vector<2x16x64xbf16>
    %273 = vector.extract_strided_slice %71 {offsets = [0, 0, 384], sizes = [2, 8, 64], strides = [1, 1, 1]} : vector<2x8x512xbf16> to vector<2x8x64xbf16>
    %274 = vector.extract_strided_slice %67 {offsets = [0, 0, 384], sizes = [2, 16, 64], strides = [1, 1, 1]} : vector<2x16x512xbf16> to vector<2x16x64xbf16>
    "tpu.trace_start"() <{level = 10 : i32, message = "bid,bjd->bij"}> : () -> ()
    %cst_76 = arith.constant dense<0.000000e+00> : vector<2x16x8xf32>
    %275 = tpu.matmul %272, %273, %cst_76 {dimension_numbers = #tpu.dot_dimension_numbers<[2], [2], [1], [1], [0, 0, 0, 1, 1, 1], [0], [0]>} : vector<2x16x64xbf16>, vector<2x8x64xbf16>, vector<2x16x8xf32> -> vector<2x16x8xf32>
    %cst_77 = arith.constant dense<0.000000e+00> : vector<2x16x16xf32>
    %276 = tpu.matmul %272, %274, %cst_77 {dimension_numbers = #tpu.dot_dimension_numbers<[2], [2], [1], [1], [0, 0, 0, 1, 1, 1], [0], [0]>} : vector<2x16x64xbf16>, vector<2x16x64xbf16>, vector<2x16x16xf32> -> vector<2x16x16xf32>
    "tpu.trace_stop"() : () -> ()
    %cst_78 = arith.constant dense<0xFF800000> : vector<2x16xf32>
    %277 = vector.multi_reduction <maximumf>, %275, %cst_78 [2] : vector<2x16x8xf32> to vector<2x16xf32>
    %278 = vector.shape_cast %277 : vector<2x16xf32> to vector<2x16x1xf32>
    %cst_79 = arith.constant dense<0xFF800000> : vector<2x16xf32>
    %279 = vector.multi_reduction <maximumf>, %276, %cst_79 [2] : vector<2x16x16xf32> to vector<2x16xf32>
    %280 = vector.shape_cast %279 : vector<2x16xf32> to vector<2x16x1xf32>
    %281 = arith.maximumf %278, %280 : vector<2x16x1xf32>
    %282 = vector.broadcast %281 : vector<2x16x1xf32> to vector<2x16x8xf32>
    %283 = arith.subf %275, %282 : vector<2x16x8xf32>
    %284 = math.exp %283 : vector<2x16x8xf32>
    %285 = vector.broadcast %281 : vector<2x16x1xf32> to vector<2x16x16xf32>
    %286 = arith.subf %276, %285 : vector<2x16x16xf32>
    %287 = math.exp %286 : vector<2x16x16xf32>
    %cst_80 = arith.constant dense<0.000000e+00> : vector<2x16xf32>
    %288 = vector.multi_reduction <add>, %284, %cst_80 [2] : vector<2x16x8xf32> to vector<2x16xf32>
    %289 = vector.shape_cast %288 : vector<2x16xf32> to vector<2x16x1xf32>
    %cst_81 = arith.constant dense<0.000000e+00> : vector<2x16xf32>
    %290 = vector.multi_reduction <add>, %287, %cst_81 [2] : vector<2x16x16xf32> to vector<2x16xf32>
    %291 = vector.shape_cast %290 : vector<2x16xf32> to vector<2x16x1xf32>
    %292 = arith.addf %289, %291 : vector<2x16x1xf32>
    %293 = tpu.reciprocal %292 {approx = true} : vector<2x16x1xf32> -> vector<2x16x1xf32>
    %294 = vector.broadcast %293 : vector<2x16x1xf32> to vector<2x16x8xf32>
    %295 = arith.mulf %284, %294 : vector<2x16x8xf32>
    %296 = arith.truncf %295 : vector<2x16x8xf32> to vector<2x16x8xbf16>
    %297 = vector.extract_strided_slice %73 {offsets = [0, 0, 384], sizes = [2, 8, 64], strides = [1, 1, 1]} : vector<2x8x512xbf16> to vector<2x8x64xbf16>
    "tpu.trace_start"() <{level = 10 : i32, message = "bij,bjd->bid"}> : () -> ()
    %cst_82 = arith.constant dense<0.000000e+00> : vector<2x16x64xf32>
    %298 = tpu.matmul %296, %297, %cst_82 {dimension_numbers = #tpu.dot_dimension_numbers<[2], [1], [1], [2], [0, 0, 0, 1, 1, 2], [0], [0]>} : vector<2x16x8xbf16>, vector<2x8x64xbf16>, vector<2x16x64xf32> -> vector<2x16x64xf32>
    "tpu.trace_stop"() : () -> ()
    %299 = vector.broadcast %293 : vector<2x16x1xf32> to vector<2x16x16xf32>
    %300 = arith.mulf %287, %299 : vector<2x16x16xf32>
    %301 = arith.truncf %300 : vector<2x16x16xf32> to vector<2x16x16xbf16>
    %302 = vector.extract_strided_slice %69 {offsets = [0, 0, 384], sizes = [2, 16, 64], strides = [1, 1, 1]} : vector<2x16x512xbf16> to vector<2x16x64xbf16>
    "tpu.trace_start"() <{level = 10 : i32, message = "bij,bjd->bid"}> : () -> ()
    %cst_83 = arith.constant dense<0.000000e+00> : vector<2x16x64xf32>
    %303 = tpu.matmul %301, %302, %cst_83 {dimension_numbers = #tpu.dot_dimension_numbers<[2], [1], [1], [2], [0, 0, 0, 1, 1, 2], [0], [0]>} : vector<2x16x16xbf16>, vector<2x16x64xbf16>, vector<2x16x64xf32> -> vector<2x16x64xf32>
    "tpu.trace_stop"() : () -> ()
    %304 = arith.addf %298, %303 : vector<2x16x64xf32>
    %305 = vector.extract_strided_slice %65 {offsets = [0, 0, 448], sizes = [2, 16, 64], strides = [1, 1, 1]} : vector<2x16x512xbf16> to vector<2x16x64xbf16>
    %306 = vector.extract_strided_slice %71 {offsets = [0, 0, 448], sizes = [2, 8, 64], strides = [1, 1, 1]} : vector<2x8x512xbf16> to vector<2x8x64xbf16>
    %307 = vector.extract_strided_slice %67 {offsets = [0, 0, 448], sizes = [2, 16, 64], strides = [1, 1, 1]} : vector<2x16x512xbf16> to vector<2x16x64xbf16>
    "tpu.trace_start"() <{level = 10 : i32, message = "bid,bjd->bij"}> : () -> ()
    %cst_84 = arith.constant dense<0.000000e+00> : vector<2x16x8xf32>
    %308 = tpu.matmul %305, %306, %cst_84 {dimension_numbers = #tpu.dot_dimension_numbers<[2], [2], [1], [1], [0, 0, 0, 1, 1, 1], [0], [0]>} : vector<2x16x64xbf16>, vector<2x8x64xbf16>, vector<2x16x8xf32> -> vector<2x16x8xf32>
    %cst_85 = arith.constant dense<0.000000e+00> : vector<2x16x16xf32>
    %309 = tpu.matmul %305, %307, %cst_85 {dimension_numbers = #tpu.dot_dimension_numbers<[2], [2], [1], [1], [0, 0, 0, 1, 1, 1], [0], [0]>} : vector<2x16x64xbf16>, vector<2x16x64xbf16>, vector<2x16x16xf32> -> vector<2x16x16xf32>
    "tpu.trace_stop"() : () -> ()
    %cst_86 = arith.constant dense<0xFF800000> : vector<2x16xf32>
    %310 = vector.multi_reduction <maximumf>, %308, %cst_86 [2] : vector<2x16x8xf32> to vector<2x16xf32>
    %311 = vector.shape_cast %310 : vector<2x16xf32> to vector<2x16x1xf32>
    %cst_87 = arith.constant dense<0xFF800000> : vector<2x16xf32>
    %312 = vector.multi_reduction <maximumf>, %309, %cst_87 [2] : vector<2x16x16xf32> to vector<2x16xf32>
    %313 = vector.shape_cast %312 : vector<2x16xf32> to vector<2x16x1xf32>
    %314 = arith.maximumf %311, %313 : vector<2x16x1xf32>
    %315 = vector.broadcast %314 : vector<2x16x1xf32> to vector<2x16x8xf32>
    %316 = arith.subf %308, %315 : vector<2x16x8xf32>
    %317 = math.exp %316 : vector<2x16x8xf32>
    %318 = vector.broadcast %314 : vector<2x16x1xf32> to vector<2x16x16xf32>
    %319 = arith.subf %309, %318 : vector<2x16x16xf32>
    %320 = math.exp %319 : vector<2x16x16xf32>
    %cst_88 = arith.constant dense<0.000000e+00> : vector<2x16xf32>
    %321 = vector.multi_reduction <add>, %317, %cst_88 [2] : vector<2x16x8xf32> to vector<2x16xf32>
    %322 = vector.shape_cast %321 : vector<2x16xf32> to vector<2x16x1xf32>
    %cst_89 = arith.constant dense<0.000000e+00> : vector<2x16xf32>
    %323 = vector.multi_reduction <add>, %320, %cst_89 [2] : vector<2x16x16xf32> to vector<2x16xf32>
    %324 = vector.shape_cast %323 : vector<2x16xf32> to vector<2x16x1xf32>
    %325 = arith.addf %322, %324 : vector<2x16x1xf32>
    %326 = tpu.reciprocal %325 {approx = true} : vector<2x16x1xf32> -> vector<2x16x1xf32>
    %327 = vector.broadcast %326 : vector<2x16x1xf32> to vector<2x16x8xf32>
    %328 = arith.mulf %317, %327 : vector<2x16x8xf32>
    %329 = arith.truncf %328 : vector<2x16x8xf32> to vector<2x16x8xbf16>
    %330 = vector.extract_strided_slice %73 {offsets = [0, 0, 448], sizes = [2, 8, 64], strides = [1, 1, 1]} : vector<2x8x512xbf16> to vector<2x8x64xbf16>
    "tpu.trace_start"() <{level = 10 : i32, message = "bij,bjd->bid"}> : () -> ()
    %cst_90 = arith.constant dense<0.000000e+00> : vector<2x16x64xf32>
    %331 = tpu.matmul %329, %330, %cst_90 {dimension_numbers = #tpu.dot_dimension_numbers<[2], [1], [1], [2], [0, 0, 0, 1, 1, 2], [0], [0]>} : vector<2x16x8xbf16>, vector<2x8x64xbf16>, vector<2x16x64xf32> -> vector<2x16x64xf32>
    "tpu.trace_stop"() : () -> ()
    %332 = vector.broadcast %326 : vector<2x16x1xf32> to vector<2x16x16xf32>
    %333 = arith.mulf %320, %332 : vector<2x16x16xf32>
    %334 = arith.truncf %333 : vector<2x16x16xf32> to vector<2x16x16xbf16>
    %335 = vector.extract_strided_slice %69 {offsets = [0, 0, 448], sizes = [2, 16, 64], strides = [1, 1, 1]} : vector<2x16x512xbf16> to vector<2x16x64xbf16>
    "tpu.trace_start"() <{level = 10 : i32, message = "bij,bjd->bid"}> : () -> ()
    %cst_91 = arith.constant dense<0.000000e+00> : vector<2x16x64xf32>
    %336 = tpu.matmul %334, %335, %cst_91 {dimension_numbers = #tpu.dot_dimension_numbers<[2], [1], [1], [2], [0, 0, 0, 1, 1, 2], [0], [0]>} : vector<2x16x16xbf16>, vector<2x16x64xbf16>, vector<2x16x64xf32> -> vector<2x16x64xf32>
    "tpu.trace_stop"() : () -> ()
    %337 = arith.addf %331, %336 : vector<2x16x64xf32>
    %338 = tpu.concatenate %106, %139, %172, %205, %238, %271, %304, %337 in 2 : vector<2x16x64xf32>, vector<2x16x64xf32>, vector<2x16x64xf32>, vector<2x16x64xf32>, vector<2x16x64xf32>, vector<2x16x64xf32>, vector<2x16x64xf32>, vector<2x16x64xf32> -> vector<2x16x512xf32>
    %339 = vector.shape_cast %338 : vector<2x16x512xf32> to vector<32x512xf32>
    %340 = arith.truncf %339 : vector<32x512xf32> to vector<32x512xbf16>
    %c0_92 = arith.constant 0 : index
    %c0_93 = arith.constant 0 : index
    %341 = vector.load %arg9[%c0_92, %c0_93] : memref<512x128xbf16, #tpu.memory_space<vmem>>, vector<512x128xbf16>
    %cst_94 = arith.constant dense<0.000000e+00> : vector<32x128xf32>
    %342 = tpu.matmul %340, %341, %cst_94 {dimension_numbers = #tpu.dot_dimension_numbers<[1], [0], [0], [1], [0, 0, 1, 1], [], []>} : vector<32x512xbf16>, vector<512x128xbf16>, vector<32x128xf32> -> vector<32x128xf32>
    %343 = vector.shape_cast %342 : vector<32x128xf32> to vector<2x16x128xf32>
    %c0_95 = arith.constant 0 : index
    %c0_96 = arith.constant 0 : index
    %c0_97 = arith.constant 0 : index
    %344 = vector.load %arg10[%c0_95, %c0_96, %c0_97] : memref<2x16x128xf32, #tpu.memory_space<vmem>>, vector<2x16x128xf32>
    tpu.vector_store %arg10[%c0_95, %c0_96, %c0_97], %343 {strides = array<i32>} : memref<2x16x128xf32, #tpu.memory_space<vmem>>, vector<2x16x128xf32>,
    return
  }
  func.func @transform_0(%arg0: i32) -> (i32, i32, i32) {
    %c0_i32 = arith.constant 0 : i32
    %c0_i32_0 = arith.constant 0 : i32
    %c0_i32_1 = arith.constant 0 : i32
    return %arg0, %c0_i32, %c0_i32_0 : i32, i32, i32
  }
  func.func @transform_1(%arg0: i32) -> (i32, i32, i32) {
    %c0_i32 = arith.constant 0 : i32
    %c0_i32_0 = arith.constant 0 : i32
    %c0_i32_1 = arith.constant 0 : i32
    return %arg0, %c0_i32, %c0_i32_0 : i32, i32, i32
  }
  func.func @transform_2(%arg0: i32) -> (i32, i32) {
    %c0_i32 = arith.constant 0 : i32
    %c0_i32_0 = arith.constant 0 : i32
    %c0_i32_1 = arith.constant 0 : i32
    return %c0_i32, %c0_i32_0 : i32, i32
  }
  func.func @transform_3(%arg0: i32) -> (i32, i32) {
    %c0_i32 = arith.constant 0 : i32
    %c0_i32_0 = arith.constant 0 : i32
    %c0_i32_1 = arith.constant 0 : i32
    return %c0_i32, %c0_i32_0 : i32, i32
  }
  func.func @transform_4(%arg0: i32) -> (i32, i32) {
    %c0_i32 = arith.constant 0 : i32
    %c0_i32_0 = arith.constant 0 : i32
    %c0_i32_1 = arith.constant 0 : i32
    return %c0_i32, %c0_i32_0 : i32, i32
  }
  func.func @transform_5(%arg0: i32) -> (i32, i32) {
    %c0_i32 = arith.constant 0 : i32
    %c0_i32_0 = arith.constant 0 : i32
    %c0_i32_1 = arith.constant 0 : i32
    return %c0_i32, %c0_i32_0 : i32, i32
  }
  func.func @transform_6(%arg0: i32) -> (i32, i32) {
    %c0_i32 = arith.constant 0 : i32
    %c0_i32_0 = arith.constant 0 : i32
    %c0_i32_1 = arith.constant 0 : i32
    return %c0_i32, %c0_i32_0 : i32, i32
  }
  func.func @transform_7(%arg0: i32) -> (i32, i32) {
    %c0_i32 = arith.constant 0 : i32
    %c0_i32_0 = arith.constant 0 : i32
    %c0_i32_1 = arith.constant 0 : i32
    return %c0_i32, %c0_i32_0 : i32, i32
  }
  func.func @transform_8(%arg0: i32) -> (i32, i32) {
    %c0_i32 = arith.constant 0 : i32
    %c0_i32_0 = arith.constant 0 : i32
    %c0_i32_1 = arith.constant 0 : i32
    return %c0_i32, %c0_i32_0 : i32, i32
  }
  func.func @transform_9(%arg0: i32) -> (i32, i32, i32) {
    %c0_i32 = arith.constant 0 : i32
    %c0_i32_0 = arith.constant 0 : i32
    %c0_i32_1 = arith.constant 0 : i32
    return %arg0, %c0_i32, %c0_i32_0 : i32, i32, i32
  }
}

</mosaic_0001>

<bundles_post_ra>
// kernel: tpu_custom_call.1
= control target key start
LH: loop header
LB: loop body
LE: loop exit
PB: predicated region body
PF: predicated region fallthrough
CT: control target
= control target key end

     0   :  { %s9619_s0 = inlined_call_operand.hbm [shape: f32[4,8,128], index: 0, kind: input, shape index: {}]   ;;  %s9620_s1 = inlined_call_operand.hbm [shape: f32[4,16,128], index: 1, kind: input, shape index: {}]   ;;  %s9621_s2 = inlined_call_operand.vmem [shape: f32[1,128], index: 2, kind: input, shape index: {}]   ;;  %s9622_s3 = inlined_call_operand.vmem [shape: f32[1,128], index: 3, kind: input, shape index: {}]   ;;  %s9623_s4 = inlined_call_operand.vmem [shape: f32[1,128], index: 4, kind: input, shape index: {}]   ;;  %s9624_s5 = inlined_call_operand.vmem [shape: f32[1,128], index: 5, kind: input, shape index: {}]   ;;  %s9625_s6 = inlined_call_operand.hbm [shape: bf16[128,1536], index: 6, kind: input, shape index: {}]   ;;  %s9626_s7 = inlined_call_operand.hbm [shape: bf16[128,1024], index: 7, kind: input, shape index: {}]   ;;  %s9627_s8 = inlined_call_operand.hbm [shape: bf16[512,128], index: 8, kind: input, shape index: {}]   ;;  %s9628_s9 = inlined_call_operand.hbm [shape: f32[4,16,128], index: 9, kind: output, shape index: {}]  }
   0x1   :  { %9639 = sst [smem:[#allocation23_spill]] %s9619_s0 }
   0x2   :  { %9640 = sst [smem:[#allocation24_spill]] %s9625_s6 }
   0x3   :  { %9641 = sst [smem:[#allocation25_spill]] %s9626_s7 }
   0x4   :  { %9642 = sst [smem:[#allocation26_spill]] %s9627_s8 }
   0x5   :  { %14 = vsyncpa [#allocation3], 0 }
   0x6   :  { %16 = vsyncpa [#allocation3 + $0x1], 0 }
   0x7   :  { %17 = vsyncpa [#allocation6], 0 }
   0x8   :  { %19 = vsyncpa [#allocation6 + $0x1], 0 }
   0x9   :  { %20 = vsyncpa [#allocation9], 0 }
   0xa   :  { %21 = vsyncpa [#allocation4], 0 }
   0xb   :  { %23 = vsyncpa [#allocation4 + $0x1], 0  ;;  %s8239_s30 = smov 0   ;;  %s8241_s10 = smov 0  }
   0xc   :  { %s8243_s11 = smov 0   ;;  %s8245_s12 = smov 0  }
   0xd LB: > { %9643 = sst [smem:[#allocation17_spill]] %s8155_s30  ;;  %s8260_s13 = sadd.s32 4294967295, %s8167_s12   ;;  %s8167_s12 = sphi %s8245_s12, %s9681_s12   ;;  %s8163_s11 = sphi %s8243_s11, %s9680_s11   ;;  %s8159_s10 = sphi %s8241_s10, %s9679_s10   ;;  %s8155_s30 = sphi %s8239_s30, %s9678_s30  }
   0xe   : > { %s6474_s14 = sadd.s32 4294967294, %s8167_s12   ;;  %p49_p0 = scmp.ne.s32.totalorder %s8159_s10, %s8155_s30 }
   0xf   : > { %p9629_p1 = scmp.eq.s32.totalorder %s8260_s13, 0  ;;  %p252_p3 = scmp.eq.s32.totalorder %s6474_s14, 1 }
  0x10   : > { %p6475_p5 = scmp.ge.s32.totalorder %s8167_s12, 1  ;;  %p259_p7 = scmp.lt.s32.totalorder %s8167_s12, 3 }
  0x11   : > { %p8269_p4 = por %p9629_p1, %p49_p0  ;;  %p8274_p6 = por %p252_p3, %p49_p0 }
  0x12   : > { %p8279_p8 = pnand %p6475_p5, %p259_p7  ;;  %s8169_s18 = smov [#allocation7]  }
  0x13   : > { %s9644_s15 = scalar_select %p8269_p4, 1, 0 }
  0x14   : > { %s9645_s16 = scalar_select %p8274_p6, 1, 0 }
  0x15   : > { %s9647_s17 = scalar_select %p8279_p8, 1, 0 }
  0x16   : > { %9646 = sst [smem:[#allocation18_spill]] %s9645_s16  ;;  %s283_s19 = sshll.u32 %s8169_s18, 4  ;;  %s8283_s19 = int_to_ptr.vmem [resolvable:$true] %s283_s19 }
  0x17   : > { %p7447_p9 = pneg %p8279_p8  ;;  %s8170_s21 = smov [#allocation8]  }
  0x18   : > { %s296_s22 = sshll.u32 %s8170_s21, 4  ;;  %s9649_s6 = sld [smem:[#allocation24_spill]]  ;;  %s8294_s22 = int_to_ptr.vmem [resolvable:$true] %s296_s22 }
  0x19   : > { %p8290_p11 = pnand %p7447_p9, %p9629_p1 }
  0x1b   : > { %p8304_p13 = pneg %p8290_p11 }
  0x1e   : > { %s7945_s25 = scalar_lea.hbm %s9649_s6, 12288 }
  0x1f   : > { %p7946_p12 = scmp.ne.s32.totalorder %s9649_s6, %s7945_s25  ;;  %p7952_p5 = scmp.lt.u32.totalorder %s7945_s25, %s9649_s6 }
  0x21   : > { %p7948_p0 = pnand %p8304_p13, %p7946_p12 }
  0x23   : > { %p7949_p3 = pneg %p7948_p0 }
  0x25   : > { %p7954_p7 = pnand %p7952_p5, %p7949_p3 }
  0x27   : > { %7957 = shalt.err (!%p7954_p7)
}
  0x28   : > { %s7958_s18 = scalar_lea.vmem %s8283_s19, 12288  ;;  %p7966_p2 = scmp.lt.s32.totalorder %s8283_s19, %s8283_s19 }
  0x29   : > { %p7959_p9 = scmp.ne.s32.totalorder %s8283_s19, %s7958_s18  ;;  %p7967_p6 = scmp.lt.s32.totalorder %s7958_s18, %s7958_s18 }
  0x2b   : > { %p7961_p10 = pnand %p7959_p9, %p8304_p13  ;;  %p7968_p12 = por %p7967_p6, %p7966_p2 }
  0x2d   : > { %p7962_p1 = pneg %p7961_p10 }
  0x2f   : > { %p7969_p0 = pnand %p7968_p12, %p7962_p1 }
  0x31   : > { %7972 = shalt.err (!%p7969_p0)
}
  0x32   : > { %s8171_s21 = smov 768   ;;  %s8172_s23 = smov 48  }
  0x33   : > { %7450 = dma.hbm_to_vmem [thread:$0]  (!%p8290_p11), %s9649_s6, 12288, %s8283_s19, [#allocation6], %s8171_s21, %s8171_s21, %s8172_s23  }
  0x34   : > { %s9651_s7 = sld [smem:[#allocation25_spill]] }
  0x3a   : > { %s7973_s29 = scalar_lea.hbm %s9651_s7, 8192 }
  0x3b   : > { %p7974_p2 = scmp.ne.s32.totalorder %s9651_s7, %s7973_s29  ;;  %p7980_p10 = scmp.lt.u32.totalorder %s7973_s29, %s9651_s7 }
  0x3d   : > { %p7976_p1 = pnand %p7974_p2, %p8304_p13 }
  0x3f   : > { %p7977_p6 = pneg %p7976_p1 }
  0x41   : > { %p7982_p3 = pnand %p7980_p10, %p7977_p6 }
  0x43   : > { %7985 = shalt.err (!%p7982_p3)
}
  0x44   : > { %s7986_s19 = scalar_lea.vmem %s8294_s22, 8192  ;;  %p7994_p12 = scmp.lt.s32.totalorder %s8294_s22, %s8294_s22 }
  0x45   : > { %p7987_p5 = scmp.ne.s32.totalorder %s8294_s22, %s7986_s19  ;;  %p7995_p0 = scmp.lt.s32.totalorder %s7986_s19, %s7986_s19 }
  0x47   : > { %p7989_p7 = pnand %p7987_p5, %p8304_p13  ;;  %p7996_p2 = por %p7995_p0, %p7994_p12 }
  0x49   : > { %p7990_p9 = pneg %p7989_p7 }
  0x4b   : > { %p7997_p1 = pnand %p7996_p2, %p7990_p9 }
  0x4d   : > { %8000 = shalt.err (!%p7997_p1)
}
  0x4e   : > { %s8173_s16 = smov 512   ;;  %s8174_s30 = smov 32  }
  0x4f   : > { %7453 = dma.hbm_to_vmem [thread:$0]  (!%p8290_p11), %s9651_s7, 8192, %s8294_s22, [#allocation9], %s8173_s16, %s8173_s16, %s8174_s30  }
  0x50   : > { %s8175_s24 = smov [#allocation10]   ;;  %s9652_s8 = sld [smem:[#allocation26_spill]] }
  0x51   : > { %s309_s25 = sshll.u32 %s8175_s24, 4  ;;  %s310_s25 = int_to_ptr.vmem [resolvable:$true] %s309_s25 }
  0x56   : > { %s8001_s29 = scalar_lea.hbm %s9652_s8, 4096 }
  0x57   : > { %p8002_p6 = scmp.ne.s32.totalorder %s9652_s8, %s8001_s29  ;;  %p8008_p5 = scmp.lt.u32.totalorder %s8001_s29, %s9652_s8 }
  0x59   : > { %p8004_p10 = pnand %p8002_p6, %p8304_p13 }
  0x5b   : > { %p8005_p3 = pneg %p8004_p10 }
  0x5d   : > { %p8010_p7 = pnand %p8008_p5, %p8005_p3 }
  0x5f   : > { %8013 = shalt.err (!%p8010_p7)
}
  0x60   : > { %s8014_s22 = scalar_lea.vmem %s310_s25, 4096  ;;  %p8022_p2 = scmp.lt.s32.totalorder %s310_s25, %s310_s25 }
  0x61   : > { %p8015_p9 = scmp.ne.s32.totalorder %s310_s25, %s8014_s22  ;;  %p8023_p1 = scmp.lt.s32.totalorder %s8014_s22, %s8014_s22 }
  0x63   : > { %p8017_p12 = pnand %p8015_p9, %p8304_p13  ;;  %p8024_p4 = por %p8023_p1, %p8022_p2 }
  0x65   : > { %p8018_p0 = pneg %p8017_p12 }
  0x67   : > { %p8025_p8 = pnand %p8024_p4, %p8018_p0 }
  0x69   : > { %8028 = shalt.err (!%p8025_p8)
}
  0x6a   : > { %s8176_s16 = smov 64   ;;  %s8177_s6 = smov 4  }
  0x6b   : > { %7456 = dma.hbm_to_vmem [thread:$0]  (!%p8290_p11), %s9652_s8, 4096, %s310_s25, [#allocation9], %s8176_s16, %s8176_s16, %s8177_s6  }
  0x6c   : > { %s8367_s21 = sadd.s32 1, %s8167_s12   ;;  %s36_s24 = sadd.s32 1, %s8163_s11 }
  0x6d   : > { %s33_s23 = ssub.s32 %s8167_s12, %s8367_s21  ;;  %p43_p8 = scmp.ne.s32.totalorder %s8163_s11, %s8159_s10 }
  0x6e   : > { %p34_p4 = scmp.eq.s32.totalorder %s33_s23, 0  ;;  %p44_p13 = scmp.eq.s32.totalorder %s8167_s12, 0 }
  0x6f   : > { %p7471_p6 = scmp.lt.s32.totalorder %s8167_s12, 2  ;;  %p9654_p3 = scmp.eq.s32.totalorder %s8260_s13, 1 }
  0x70   : > { %s8377_s26 = scalar_select %p34_p4, %s8163_s11, %s36_s24  }
  0x71   : > { %p45_p10 = por %p44_p13, %p43_p8  ;;  %p8381_p5 = por %p9654_p3, %p43_p8 }
  0x72   : > { %9653 = sst [smem:[#allocation19_spill]] %s8377_s26  ;;  %s8386_s20 = sand.u32 1, %s8163_s11  }
  0x73   : > { %s6776_s25 = sshll.u32 %s8167_s12, 8  ;;  %s6480_s29 = sshll.u32 %s8386_s20, 4 }
  0x74   : > { %s9656_s0 = sld [smem:[#allocation23_spill]]  ;;  %s327_s22 = scalar_lea.vmem [#allocation2], %s6480_s29 }
  0x75   : > { %s334_s16 = sshll.u32 %s327_s22, 4  ;;  %p8395_p11 = pnand %p7471_p6, %p45_p10  ;;  %s8399_s16 = int_to_ptr.vmem [resolvable:$true] %s334_s16 }
  0x76   : > { %s324_s28 = scalar_lea.sflag [#allocation3], %s8386_s20 }
  0x77   : > { %p8031_p9 = pneg %p8395_p11 }
  0x7a   : > { %s8393_s19 = scalar_lea.hbm %s9656_s0, %s6776_s25  ;;  %s8034_s25 = scalar_lea.hbm %s9656_s0, 512 }
  0x7b   : > { %s8029_s30 = scalar_lea.hbm %s8393_s19, 256  ;;  %p8035_p2 = scmp.lt.u32.totalorder %s8393_s19, %s9656_s0 }
  0x7c   : > { %p8030_p7 = scmp.ne.s32.totalorder %s8393_s19, %s8029_s30  ;;  %p8036_p1 = scmp.lt.u32.totalorder %s8034_s25, %s8029_s30 }
  0x7d   : > { %p8038_p8 = scmp.lt.u32.totalorder %s8029_s30, %s8393_s19 }
  0x7e   : > { %p8032_p12 = pnand %p8031_p9, %p8030_p7  ;;  %p8037_p4 = por %p8036_p1, %p8035_p2 }
  0x80   : > { %p8033_p0 = pneg %p8032_p12  ;;  %p8039_p13 = por %p8038_p8, %p8037_p4 }
  0x82   : > { %p8040_p6 = pnand %p8039_p13, %p8033_p0 }
  0x84   : > { %8043 = shalt.err (!%p8040_p6)
}
  0x85   : > { %s8044_s18 = scalar_lea.vmem %s8399_s16, 256  ;;  %s8178_s22 = smov [#allocation2]  }
  0x86   : > { %p8045_p10 = scmp.ne.s32.totalorder %s8399_s16, %s8044_s18  ;;  %s8049_s23 = sshll.u32 %s8178_s22, 4  ;;  %s8050_s23 = int_to_ptr.vmem [resolvable:$false] %s8049_s23 }
  0x87   : > { %s8051_s24 = scalar_lea.vmem %s8050_s23, 512  ;;  %p8052_p12 = scmp.lt.s32.totalorder %s8399_s16, %s8050_s23 }
  0x88   : > { %p8047_p3 = pnand %p8045_p10, %p8031_p9  ;;  %p8053_p2 = scmp.lt.s32.totalorder %s8051_s24, %s8044_s18 }
  0x8a   : > { %p8048_p7 = pneg %p8047_p3  ;;  %p8054_p1 = por %p8053_p2, %p8052_p12 }
  0x8c   : > { %p8055_p4 = pnand %p8054_p1, %p8048_p7 }
  0x8e   : > { %8058 = shalt.err (!%p8055_p4)
}
  0x8f   : > { %s8179_s30 = smov 128   ;;  %s8180_s25 = smov 8  }
  0x90   : > { %7460 = dma.hbm_to_vmem [thread:$0]  (!%p8395_p11), %s8393_s19, 256, %s8399_s16, %s324_s28, %s8179_s30, %s8179_s30, %s8180_s25  }
  0x91   : > { %s344_s29 = sand.u32 1, %s8167_s12   ;;  %s6483_s14 = sshll.u32 %s8386_s20, 5 }
  0x92   : > { %s6778_s18 = sshll.u32 %s8167_s12, 9  ;;  %s348_s22 = scalar_lea.vmem [#allocation5], %s6483_s14 }
  0x93   : > { %s356_s23 = sshll.u32 %s348_s22, 4  ;;  %s8438_s7 = scalar_lea.hbm %s9620_s1, %s6778_s18  ;;  %s8440_s23 = int_to_ptr.vmem [resolvable:$true] %s356_s23 }
  0x94   : > { %s8442_s8 = scalar_lea.sflag [#allocation6], %s344_s29  ;;  %s8059_s26 = scalar_lea.hbm %s8438_s7, 512 }
  0x95   : > { %p8060_p0 = scmp.ne.s32.totalorder %s8438_s7, %s8059_s26  ;;  %s8064_s0 = scalar_lea.hbm %s9620_s1, 1024 }
  0x96   : > { %p8065_p6 = scmp.lt.u32.totalorder %s8438_s7, %s9620_s1  ;;  %p8066_p10 = scmp.lt.u32.totalorder %s8064_s0, %s8059_s26 }
  0x97   : > { %p8062_p8 = pnand %p8060_p0, %p8031_p9  ;;  %p8068_p7 = scmp.lt.u32.totalorder %s8059_s26, %s8438_s7 }
  0x98   : > { %p8067_p3 = por %p8066_p10, %p8065_p6 }
  0x99   : > { %p8063_p13 = pneg %p8062_p8 }
  0x9a   : > { %p8069_p12 = por %p8068_p7, %p8067_p3 }
  0x9c   : > { %p8070_p2 = pnand %p8069_p12, %p8063_p13 }
  0x9e   : > { %8073 = shalt.err (!%p8070_p2)
}
  0x9f   : > { %s8074_s29 = scalar_lea.vmem %s8440_s23, 512  ;;  %s8181_s14 = smov [#allocation5]  }
  0xa0   : > { %p8075_p1 = scmp.ne.s32.totalorder %s8440_s23, %s8074_s29  ;;  %s8079_s18 = sshll.u32 %s8181_s14, 4  ;;  %s8080_s18 = int_to_ptr.vmem [resolvable:$false] %s8079_s18 }
  0xa1   : > { %s8081_s22 = scalar_lea.vmem %s8080_s18, 1024  ;;  %p8082_p8 = scmp.lt.s32.totalorder %s8440_s23, %s8080_s18 }
  0xa2   : > { %p8077_p4 = pnand %p8075_p1, %p8031_p9  ;;  %p8083_p6 = scmp.lt.s32.totalorder %s8081_s22, %s8074_s29 }
  0xa4   : > { %p8078_p0 = pneg %p8077_p4  ;;  %p8084_p10 = por %p8083_p6, %p8082_p8 }
  0xa6   : > { %p8085_p3 = pnand %p8084_p10, %p8078_p0 }
  0xa8   : > { %8088 = shalt.err (!%p8085_p3)
}
  0xa9   : > { %7463 = dma.hbm_to_vmem [thread:$0]  (!%p8395_p11), %s8438_s7, 512, %s8440_s23, %s8442_s8, %s8179_s30, %s8179_s30, %s8180_s25  }
  0xaa   : > { %p9658_p9 = scmp.ne.s32.totalorder %s9647_s17, 0 }
  0xac   : > { %368 = sbr.rel (%p9658_p9) target bundleno = 6153 (0x1809), region = 56 }
  0xb3   : > { %s8474_s26 = sand.u32 1, %s8159_s10   ;;  %p9659_p13 = scmp.ne.s32.totalorder %s9644_s15, 0 }
  0xb4   : > { %s6488_s24 = sshll.u32 %s8474_s26, 4  ;;  %s371_s20 = scalar_lea.sflag [#allocation3], %s8474_s26 }
  0xb5   : > { %s8478_s19 = scalar_lea.vmem [#allocation2], %s6488_s24 }
  0xb6   : > { %8134 = dma.done.wait (%p9659_p13), %s371_s20, 256  }
  0xb7   : > { %8136 = vsyncadd (%p9659_p13), %s371_s20, 4294967040  ;;  %s379_s7 = sand.u32 1, %s8260_s13   ;;  %s6489_s8 = sshll.u32 %s8474_s26, 5 }
  0xb8   : > { %s380_s17 = scalar_lea.sflag [#allocation6], %s379_s7  ;;  %s383_s6 = scalar_lea.vmem [#allocation5], %s6489_s8 }
  0xb9   : > { %8138 = dma.done.wait (%p9659_p13), %s380_s17, 512  }
  0xba   : > { %8140 = vsyncadd (%p9659_p13), %s380_s17, 4294966784  ;;  %p9660_p11 = scmp.eq.s32.totalorder %s8260_s13, 0 }
  0xbc   : > { %8142 = dma.done.wait (%p9660_p11), [#allocation6], 12288   ;;  %p9661_p7 = pmov %p9660_p11 }
  0xbe   : > { %8144 = vsyncadd (%p9661_p7), [#allocation6], 4294955008  ;;  %p9662_p12 = pmov %p9661_p7 }
  0xbf   : > { %p9663_p2 = pmov %p9661_p7 }
  0xc0   : > { %8146 = dma.done.wait (%p9662_p12), [#allocation9], 12288  }
  0xc1   : > { %8148 = vsyncadd (%p9663_p2), [#allocation9], 4294955008  ;;  %v482_v0 = vld [vmem:[%s383_s6] sm:$0xff]  ;;  %v483_v1 = vld [vmem:[%s383_s6 + $0x8] sm:$0xff]  ;;  %v8182_v56 = vmov 0   ;;  %vm8184_vm0 = vmmov 0  }
  0xc2   : > { %v484_v2 = vld [vmem:[%s383_s6 + $0x10] sm:$0xff]  ;;  %488 = vadd.xlane.f32.xlu0 %v482_v0  ;;  %v485_v3 = vld [vmem:[%s383_s6 + $0x18] sm:$0xff]  ;;  %1163 = vmatprep.mubr.bf16.mxu0 %v8182_v56  ;;  %vm2069_vm1 = vcmask 523264   ;;  %vm2252_vm2 = vcmask 64512   ;;  %vm2265_vm3 = vcmask 130048   ;;  %s8185_s14 = smov 64  }
  0xc3   : > { %492 = vadd.xlane.f32.xlu1 %v484_v2  ;;  %v7565_v4 = vld [vmem:[#allocation7 + $0x4] ss:$48 sps:$4 sm:$0xff]   ;;  %v7567_v5 = vld [vmem:[#allocation7 + $0xc] ss:$48 sps:$4 sm:$0xff]   ;;  %v7569_v6 = vld [vmem:[#allocation7] ss:$48 sps:$4 sm:$0xff]   ;;  %1216 = vmatprep.mubr.bf16.mxu1 %v8182_v56 }
  0xc4   : > { %v7570_v7 = vld [vmem:[#allocation7 + $0x8] ss:$48 sps:$4 sm:$0xff]   ;;  %v7571_v8 = vld [vmem:[#allocation7 + $0x64] ss:$48 sps:$4 sm:$0xff]   ;;  %v7573_v9 = vld [vmem:[#allocation7 + $0x6c] ss:$48 sps:$4 sm:$0xff]   ;;  %1131 = vmatprep.subr.bf16.mxu0 %v7565_v4  ;;  %1184 = vmatprep.subr.bf16.mxu1 %v7567_v5 }
  0xc5   : > { %v7575_v10 = vld [vmem:[#allocation7 + $0x60] ss:$48 sps:$4 sm:$0xff]   ;;  %1132 = vmatpush1.bf16.msra.mxu0 %v7569_v6  ;;  %1185 = vmatpush1.bf16.msra.mxu1 %v7570_v7  ;;  %v7576_v11 = vld [vmem:[#allocation7 + $0x68] ss:$48 sps:$4 sm:$0xff]   ;;  %v7577_v30 = vld [vmem:[#allocation7 + $0xc4] ss:$48 sps:$4 sm:$0xff]  }
  0xc6   : > { %490 = vadd.xlane.f32.xlu0 %v483_v1  ;;  %1133 = vmatprep.subr.bf16.mxu0 %v7571_v8  ;;  %v8509_v24 = vld [vmem:[%s8478_s19] sm:$0xff]  ;;  %v8519_v28 = vld [vmem:[%s8478_s19 + $0x8] sm:$0xff]  ;;  %vm2441_vm4 = vcmask 1043456   ;;  %s434_s18 = scalar_lea.vmem [#allocation11], %s6489_s8  ;;  %s6796_s24 = sshll.u32 %s8260_s13, 9 }
  0xc7   : > { %494 = vadd.xlane.f32.xlu1 %v485_v3  ;;  %1186 = vmatprep.subr.bf16.mxu1 %v7573_v9  ;;  %v7579_v31 = vld [vmem:[#allocation7 + $0xcc] ss:$48 sps:$4 sm:$0xff]   ;;  %v7581_v32 = vld [vmem:[#allocation7 + $0xc0] ss:$48 sps:$4 sm:$0xff]   ;;  %v7582_v33 = vld [vmem:[#allocation7 + $0xc8] ss:$48 sps:$4 sm:$0xff]   ;;  %s9575_s7 = scalar_lea.hbm %s9628_s9, %s6796_s24 }
  0xc8   : > { %v7583_v34 = vld [vmem:[#allocation7 + $0x124] ss:$48 sps:$4 sm:$0xff]   ;;  %v7585_v35 = vld [vmem:[#allocation7 + $0x12c] ss:$48 sps:$4 sm:$0xff]   ;;  %v7587_v36 = vld [vmem:[#allocation7 + $0x120] ss:$48 sps:$4 sm:$0xff]  }
  0xc9   : > { %1134 = vmatpush1.bf16.msra.mxu0 %v7575_v10  ;;  %1187 = vmatpush1.bf16.msra.mxu1 %v7576_v11  ;;  %v7588_v37 = vld [vmem:[#allocation7 + $0x128] ss:$48 sps:$4 sm:$0xff]   ;;  %v7589_v38 = vld [vmem:[#allocation7 + $0x184] ss:$48 sps:$4 sm:$0xff]   ;;  %v7591_v39 = vld [vmem:[#allocation7 + $0x18c] ss:$48 sps:$4 sm:$0xff]  }
  0xca   : > { %1135 = vmatprep.subr.bf16.mxu0 %v7577_v30  ;;  %1188 = vmatprep.subr.bf16.mxu1 %v7579_v31  ;;  %v7593_v40 = vld [vmem:[#allocation7 + $0x180] ss:$48 sps:$4 sm:$0xff]   ;;  %v7594_v41 = vld [vmem:[#allocation7 + $0x188] ss:$48 sps:$4 sm:$0xff]   ;;  %v7595_v42 = vld [vmem:[#allocation7 + $0x1e4] ss:$48 sps:$4 sm:$0xff]  }
  0xcb   : > { %v7597_v43 = vld [vmem:[#allocation7 + $0x1ec] ss:$48 sps:$4 sm:$0xff]   ;;  %v7599_v44 = vld [vmem:[#allocation7 + $0x1e0] ss:$48 sps:$4 sm:$0xff]   ;;  %v7600_v45 = vld [vmem:[#allocation7 + $0x1e8] ss:$48 sps:$4 sm:$0xff]  }
  0xcc   : > { %v7601_v46 = vld [vmem:[#allocation7 + $0x244] ss:$48 sps:$4 sm:$0xff]   ;;  %v7603_v47 = vld [vmem:[#allocation7 + $0x24c] ss:$48 sps:$4 sm:$0xff]   ;;  %v7605_v48 = vld [vmem:[#allocation7 + $0x240] ss:$48 sps:$4 sm:$0xff]  }
  0xcd   : > { %1136 = vmatpush1.bf16.msra.mxu0 %v7581_v32  ;;  %1189 = vmatpush1.bf16.msra.mxu1 %v7582_v33  ;;  %v7606_v49 = vld [vmem:[#allocation7 + $0x248] ss:$48 sps:$4 sm:$0xff]   ;;  %v7607_v50 = vld [vmem:[#allocation7 + $0x2a4] ss:$48 sps:$4 sm:$0xff]   ;;  %v7609_v51 = vld [vmem:[#allocation7 + $0x2ac] ss:$48 sps:$4 sm:$0xff]  }
  0xce   : > { %1137 = vmatprep.subr.bf16.mxu0 %v7583_v34  ;;  %1190 = vmatprep.subr.bf16.mxu1 %v7585_v35  ;;  %v7611_v52 = vld [vmem:[#allocation7 + $0x2a0] ss:$48 sps:$4 sm:$0xff]   ;;  %v7612_v53 = vld [vmem:[#allocation7 + $0x2a8] ss:$48 sps:$4 sm:$0xff]   ;;  %v7615_v54 = vld [vmem:[#allocation7 + $0x14] ss:$48 sps:$4 sm:$0xff]  }
  0xcf   : > { %v7618_v55 = vld [vmem:[#allocation7 + $0x1c] ss:$48 sps:$4 sm:$0xff]   ;;  %v7621_v31 = vld [vmem:[#allocation7 + $0x74] ss:$48 sps:$4 sm:$0xff]   ;;  %v7619_v35 = vld [vmem:[#allocation7 + $0x70] ss:$48 sps:$4 sm:$0xff]  }
  0xd0   : > { %v7624_v32 = vld [vmem:[#allocation7 + $0x7c] ss:$48 sps:$4 sm:$0xff]   ;;  %s6350_s22 = sshll.u32 %s434_s18, 4  ;;  %s6336_s8 = scalar_lea.sflag [#allocation4], %s8474_s26  ;;  %s9570_s22 = int_to_ptr.vmem [resolvable:$true] %s6350_s22 }
  0xd1   : > { %1138 = vmatpush1.bf16.msra.mxu0 %v7587_v36  ;;  %1191 = vmatpush1.bf16.msra.mxu1 %v7588_v37  ;;  %v7622_v36 = vld [vmem:[#allocation7 + $0x78] ss:$48 sps:$4 sm:$0xff]   ;;  %s8089_s17 = scalar_lea.vmem %s9570_s22, 512  ;;  %s8186_s13 = smov [#allocation11]  }
  0xd2   : > { %1139 = vmatprep.subr.bf16.mxu0 %v7589_v38  ;;  %1192 = vmatprep.subr.bf16.mxu1 %v7591_v39  ;;  %v7630_v38 = vld [vmem:[#allocation7 + $0xdc] ss:$48 sps:$4 sm:$0xff]   ;;  %p8090_p1 = scmp.ne.s32.totalorder %s9570_s22, %s8089_s17  ;;  %s8093_s6 = sshll.u32 %s8186_s13, 4  ;;  %s8094_s6 = int_to_ptr.vmem [resolvable:$false] %s8093_s6 }
  0xd3   : > { %s8095_s15 = scalar_lea.vmem %s8094_s6, 1024  ;;  %p8096_p8 = scmp.lt.s32.totalorder %s9570_s22, %s8094_s6 }
  0xd4   : > { %p8091_p4 = pnand %p8090_p1, %p8381_p5  ;;  %p8097_p6 = scmp.lt.s32.totalorder %s8095_s15, %s8089_s17 }
  0xd5   : > { %1140 = vmatpush1.bf16.msra.mxu0 %v7593_v40  ;;  %1193 = vmatpush1.bf16.msra.mxu1 %v7594_v41  ;;  %v7628_v41 = vld [vmem:[#allocation7 + $0xd8] ss:$48 sps:$4 sm:$0xff]  }
  0xd6   : > { %1141 = vmatprep.subr.bf16.mxu0 %v7595_v42  ;;  %1194 = vmatprep.subr.bf16.mxu1 %v7597_v43  ;;  %v7633_v43 = vld [vmem:[#allocation7 + $0x134] ss:$48 sps:$4 sm:$0xff]   ;;  %p8092_p0 = pneg %p8091_p4  ;;  %p8098_p10 = por %p8097_p6, %p8096_p8 }
  0xd8   : > { %p8099_p3 = pnand %p8098_p10, %p8092_p0 }
  0xd9   : > { %1142 = vmatpush1.bf16.msra.mxu0 %v7599_v44  ;;  %1195 = vmatpush1.bf16.msra.mxu1 %v7600_v45  ;;  %v7636_v44 = vld [vmem:[#allocation7 + $0x13c] ss:$48 sps:$4 sm:$0xff]   ;;  %v7631_v45 = vld [vmem:[#allocation7 + $0x130] ss:$48 sps:$4 sm:$0xff]  }
  0xda   : > { %1143 = vmatprep.subr.bf16.mxu0 %v7601_v46  ;;  %1196 = vmatprep.subr.bf16.mxu1 %v7603_v47  ;;  %v7634_v46 = vld [vmem:[#allocation7 + $0x138] ss:$48 sps:$4 sm:$0xff]   ;;  %v7639_v47 = vld [vmem:[#allocation7 + $0x194] ss:$48 sps:$4 sm:$0xff]  }
  0xdd   : > { %1144 = vmatpush1.bf16.msra.mxu0 %v7605_v48  ;;  %1197 = vmatpush1.bf16.msra.mxu1 %v7606_v49  ;;  %v7642_v48 = vld [vmem:[#allocation7 + $0x19c] ss:$48 sps:$4 sm:$0xff]   ;;  %v7637_v49 = vld [vmem:[#allocation7 + $0x190] ss:$48 sps:$4 sm:$0xff]  }
  0xde   : > { %1145 = vmatprep.subr.bf16.mxu0 %v7607_v50  ;;  %1198 = vmatprep.subr.bf16.mxu1 %v7609_v51  ;;  %v7640_v50 = vld [vmem:[#allocation7 + $0x198] ss:$48 sps:$4 sm:$0xff]   ;;  %v7645_v51 = vld [vmem:[#allocation7 + $0x1f4] ss:$48 sps:$4 sm:$0xff]  }
  0xe1   : > { %1146 = vmatpush1.bf16.msra.mxu0 %v7611_v52  ;;  %1199 = vmatpush1.bf16.msra.mxu1 %v7612_v53  ;;  %v7648_v52 = vld [vmem:[#allocation7 + $0x1fc] ss:$48 sps:$4 sm:$0xff]   ;;  %v7643_v53 = vld [vmem:[#allocation7 + $0x1f0] ss:$48 sps:$4 sm:$0xff]  }
  0xe2   : > { %1237 = vmatprep.subr.bf16.mxu0 %v7615_v54  ;;  %1290 = vmatprep.subr.bf16.mxu1 %v7618_v55  ;;  %v7646_v54 = vld [vmem:[#allocation7 + $0x1f8] ss:$48 sps:$4 sm:$0xff]   ;;  %v7651_v55 = vld [vmem:[#allocation7 + $0x254] ss:$48 sps:$4 sm:$0xff]  }
 0x14f   : > { %v489_v12 = vpop.xlane.xlu0 %488 }
 0x150   : > { %v493_v13 = vpop.xlane.xlu1 %492  ;;  %v496_v14 = vmul.f32 0.0078125, %v489_v12 }
 0x151   : > { %v498_v16 = vmul.f32 0.0078125, %v493_v13 }
 0x152   : > { %v8500_v15 = vsub.f32 %v482_v0, %v496_v14 }
 0x153   : > { %v491_v17 = vpop.xlane.xlu0 %490  ;;  %v8506_v23 = vsub.f32 %v484_v2, %v498_v16  ;;  %v6496_v16 = vld [vmem:[%s9623_s4] ss:$0 sm:$0xff] }
 0x154   : > { %v495_v18 = vpop.xlane.xlu1 %494  ;;  %v497_v19 = vmul.f32 0.0078125, %v491_v17  ;;  %v504_v20 = vmul.f32 %v8500_v15, %v8500_v15 }
 0x155   : > { %v499_v22 = vmul.f32 0.0078125, %v495_v18  ;;  %v506_v26 = vmul.f32 %v8506_v23, %v8506_v23 }
 0x156   : > { %508 = vadd.xlane.f32.xlu0 %v504_v20  ;;  %v8504_v21 = vsub.f32 %v483_v1, %v497_v19  ;;  %v6497_v20 = vld [vmem:[%s9624_s5] ss:$0 sm:$0xff] }
 0x157   : > { %v8516_v27 = vsub.f32 %v485_v3, %v499_v22 }
 0x158   : > { %v505_v25 = vmul.f32 %v8504_v21, %v8504_v21 }
 0x159   : > { %v507_v29 = vmul.f32 %v8516_v27, %v8516_v27 }
 0x15a   : > { %510 = vadd.xlane.f32.xlu1 %v505_v25  ;;  %443 = vadd.xlane.f32.xlu0 %v8509_v24 }
 0x15e   : > { %445 = vadd.xlane.f32.xlu1 %v8519_v28  ;;  %512 = vadd.xlane.f32.xlu0 %v506_v26 }
 0x162   : > { %514 = vadd.xlane.f32.xlu1 %v507_v29  ;;  %v7616_v29 = vld [vmem:[#allocation7 + $0x18] ss:$48 sps:$4 sm:$0xff]  }
 0x1e3   : > { %v509_v57 = vpop.xlane.xlu0 %508 }
 0x1e4   : > { %v516_v58 = vmul.f32 0.0078125, %v509_v57  ;;  %v7654_v57 = vld [vmem:[#allocation7 + $0x25c] ss:$48 sps:$4 sm:$0xff]  }
 0x1e6   : > { %v520_v59 = vadd.f32 1e-05, %v516_v58  ;;  %v7649_v58 = vld [vmem:[#allocation7 + $0x250] ss:$48 sps:$4 sm:$0xff]  }
 0x1e7   : > { %v511_v60 = vpop.xlane.xlu1 %510  ;;  %v444_v61 = vpop.xlane.xlu0 %443 }
 0x1e8   : > { %7741 = vrsqrt.f32 %v520_v59  ;;  %v517_v62 = vmul.f32 0.0078125, %v511_v60  ;;  %v448_v63 = vmul.f32 0.0078125, %v444_v61  ;;  %v7652_v59 = vld [vmem:[#allocation7 + $0x258] ss:$48 sps:$4 sm:$0xff]   ;;  %v7657_v60 = vld [vmem:[#allocation7 + $0x2b4] ss:$48 sps:$4 sm:$0xff]  }
 0x1e9   : > { %v7660_v61 = vld [vmem:[#allocation7 + $0x2bc] ss:$48 sps:$4 sm:$0xff]  }
 0x1ea   : > { %v521_v0 = vadd.f32 1e-05, %v517_v62  ;;  %v8527_v1 = vsub.f32 %v8509_v24, %v448_v63  ;;  %v7655_v62 = vld [vmem:[#allocation7 + $0x2b0] ss:$48 sps:$4 sm:$0xff]   ;;  %v7658_v63 = vld [vmem:[#allocation7 + $0x2b8] ss:$48 sps:$4 sm:$0xff]  }
 0x1eb   : > { %v446_v2 = vpop.xlane.xlu1 %445  ;;  %v513_v3 = vpop.xlane.xlu0 %512 }
 0x1ec   : > { %7743 = vrsqrt.f32 %v521_v0  ;;  %v449_v4 = vmul.f32 0.0078125, %v446_v2  ;;  %v518_v5 = vmul.f32 0.0078125, %v513_v3  ;;  %v452_v6 = vmul.f32 %v8527_v1, %v8527_v1  ;;  %v7663_v0 = vld [vmem:[#allocation7 + $0x24] ss:$48 sps:$4 sm:$0xff]   ;;  %v7666_v2 = vld [vmem:[#allocation7 + $0x2c] ss:$48 sps:$4 sm:$0xff]  }
 0x1ed   : > { %v7661_v3 = vld [vmem:[#allocation7 + $0x20] ss:$48 sps:$4 sm:$0xff]  }
 0x1ee   : > { %v522_v7 = vadd.f32 1e-05, %v518_v5  ;;  %454 = vadd.xlane.f32.xlu0 %v452_v6  ;;  %v8532_v8 = vsub.f32 %v8519_v28, %v449_v4  ;;  %v7664_v4 = vld [vmem:[#allocation7 + $0x28] ss:$48 sps:$4 sm:$0xff]   ;;  %v7669_v5 = vld [vmem:[#allocation7 + $0x84] ss:$48 sps:$4 sm:$0xff]  }
 0x1ef   : > { %v515_v9 = vpop.xlane.xlu1 %514  ;;  %v7672_v6 = vld [vmem:[#allocation7 + $0x8c] ss:$48 sps:$4 sm:$0xff]  }
 0x1f0   : > { %7745 = vrsqrt.f32 %v522_v7  ;;  %v519_v10 = vmul.f32 0.0078125, %v515_v9  ;;  %v453_v11 = vmul.f32 %v8532_v8, %v8532_v8  ;;  %v7667_v7 = vld [vmem:[#allocation7 + $0x80] ss:$48 sps:$4 sm:$0xff]   ;;  %v7670_v9 = vld [vmem:[#allocation7 + $0x88] ss:$48 sps:$4 sm:$0xff]  }
 0x1f2   : > { %v7742_v12 = vpop.eup %7741  ;;  %v523_v13 = vadd.f32 1e-05, %v519_v10  ;;  %456 = vadd.xlane.f32.xlu1 %v453_v11  ;;  %v7675_v10 = vld [vmem:[#allocation7 + $0xe4] ss:$48 sps:$4 sm:$0xff]   ;;  %v7678_v11 = vld [vmem:[#allocation7 + $0xec] ss:$48 sps:$4 sm:$0xff]  }
 0x1f3   : > { %v528_v14 = vmul.f32 %v7742_v12, %v8500_v15  ;;  %v7613_v15 = vld [vmem:[#allocation7 + $0x10] ss:$48 sps:$4 sm:$0xff]  }
 0x1f4   : > { %7747 = vrsqrt.f32 %v523_v13  ;;  %v7673_v12 = vld [vmem:[#allocation7 + $0xe0] ss:$48 sps:$4 sm:$0xff]   ;;  %v7676_v13 = vld [vmem:[#allocation7 + $0xe8] ss:$48 sps:$4 sm:$0xff]  }
 0x1f5   : > { %v538_v18 = vmul.f32 %v6496_v16, %v528_v14  ;;  %v7681_v14 = vld [vmem:[#allocation7 + $0x144] ss:$48 sps:$4 sm:$0xff]  }
 0x1f6   : > { %v7744_v17 = vpop.eup %7743 }
 0x1f7   : > { %v529_v19 = vmul.f32 %v7744_v17, %v8504_v21  ;;  %v548_v25 = vadd.f32 %v6497_v20, %v538_v18  ;;  %v7679_v17 = vld [vmem:[#allocation7 + $0x140] ss:$48 sps:$4 sm:$0xff]   ;;  %v7682_v18 = vld [vmem:[#allocation7 + $0x148] ss:$48 sps:$4 sm:$0xff]  }
 0x1f9   : > { %v539_v22 = vmul.f32 %v6496_v16, %v529_v19  ;;  %v7687_v19 = vld [vmem:[#allocation7 + $0x1a4] ss:$48 sps:$4 sm:$0xff]  }
 0x1fa   : > { %v7746_v24 = vpop.eup %7745 }
 0x1fb   : > { %v549_v26 = vadd.f32 %v6497_v20, %v539_v22  ;;  %v530_v28 = vmul.f32 %v7746_v24, %v8506_v23  ;;  %v7627_v23 = vld [vmem:[#allocation7 + $0xd4] ss:$48 sps:$4 sm:$0xff]   ;;  %v7685_v22 = vld [vmem:[#allocation7 + $0x1a0] ss:$48 sps:$4 sm:$0xff]   ;;  %v7688_v24 = vld [vmem:[#allocation7 + $0x1a8] ss:$48 sps:$4 sm:$0xff]  }
 0x1fd   : > { %v8545_v30 = vpack.c.bf16 %v549_v26, %v548_v25  ;;  %v540_v34 = vmul.f32 %v6496_v16, %v530_v28  ;;  %v7693_v25 = vld [vmem:[#allocation7 + $0x204] ss:$48 sps:$4 sm:$0xff]   ;;  %v7696_v26 = vld [vmem:[#allocation7 + $0x20c] ss:$48 sps:$4 sm:$0xff]   ;;  %v7691_v28 = vld [vmem:[#allocation7 + $0x200] ss:$48 sps:$4 sm:$0xff]  }
 0x1fe   : > { %v7748_v33 = vpop.eup %7747 }
 0x1ff   : > { %v531_v21 = vmul.f32 %v7748_v33, %v8516_v27  ;;  %1164 = vmatmul.mubr.bf16.vlgmr.msra.gmra.mrb[0].mxu0 %v8545_v30  ;;  %1217 = vmatmul.mubr.bf16.vlgmr.msra.gmra.mrb[0].mxu1 %v8545_v30  ;;  %v550_v39 = vadd.f32 %v6497_v20, %v540_v34  ;;  %v7625_v27 = vld [vmem:[#allocation7 + $0xd0] ss:$48 sps:$4 sm:$0xff]   ;;  %v7700_v33 = vld [vmem:[#allocation7 + $0x268] ss:$48 sps:$4 sm:$0xff]   ;;  %v7705_v34 = vld [vmem:[#allocation7 + $0x2c4] ss:$48 sps:$4 sm:$0xff]  }
 0x200   : > { %1238 = vmatpush1.bf16.msra.mxu0 %v7613_v15  ;;  %1291 = vmatpush1.bf16.msra.mxu1 %v7616_v29  ;;  %v7694_v15 = vld [vmem:[#allocation7 + $0x208] ss:$48 sps:$4 sm:$0xff]   ;;  %v7699_v29 = vld [vmem:[#allocation7 + $0x264] ss:$48 sps:$4 sm:$0xff]  }
 0x201   : > { %v541_v37 = vmul.f32 %v6496_v16, %v531_v21  ;;  %1239 = vmatprep.subr.bf16.mxu0 %v7621_v31  ;;  %1292 = vmatprep.subr.bf16.mxu1 %v7624_v32  ;;  %v7684_v16 = vld [vmem:[#allocation7 + $0x14c] ss:$48 sps:$4 sm:$0xff]   ;;  %v7697_v32 = vld [vmem:[#allocation7 + $0x260] ss:$48 sps:$4 sm:$0xff]  }
 0x202   : > { %1173 = vmatprep.mubr.bf16.mxu0 %v8182_v56  ;;  %1226 = vmatprep.mubr.bf16.mxu1 %v8182_v56  ;;  %v7702_v31 = vld [vmem:[#allocation7 + $0x26c] ss:$48 sps:$4 sm:$0xff]  }
 0x203   : > { %v551_v40 = vadd.f32 %v6497_v20, %v541_v37  ;;  %v7690_v20 = vld [vmem:[#allocation7 + $0x1ac] ss:$48 sps:$4 sm:$0xff]  }
 0x204   : > { %1240 = vmatpush1.bf16.msra.mxu0 %v7619_v35  ;;  %1293 = vmatpush1.bf16.msra.mxu1 %v7622_v36  ;;  %v7708_v21 = vld [vmem:[#allocation7 + $0x2cc] ss:$48 sps:$4 sm:$0xff]   ;;  %v1473_v35 = vld [vmem:[#allocation8] sm:$0xff] }
 0x205   : > { %1241 = vmatprep.subr.bf16.mxu0 %v7627_v23  ;;  %1294 = vmatprep.subr.bf16.mxu1 %v7630_v38  ;;  %v8552_v42 = vpack.c.bf16 %v551_v40, %v550_v39  ;;  %v1477_v36 = vld [vmem:[#allocation8 + $0x20] sm:$0xff]  ;;  %v1474_v37 = vld [vmem:[#allocation8 + $0x8] sm:$0xff] }
 0x206   : > { %v1478_v23 = vld [vmem:[#allocation8 + $0x28] sm:$0xff]  ;;  %v7703_v38 = vld [vmem:[#allocation7 + $0x2c0] ss:$48 sps:$4 sm:$0xff]   ;;  %v6595_v40 = vcombine.high %v1473_v35, %v1477_v36 }
 0x207   : > { %1174 = vmatmul.mubr.bf16.gmra.mrb[4].mxu0 %v8552_v42  ;;  %1227 = vmatmul.mubr.bf16.gmra.mrb[4].mxu1 %v8552_v42  ;;  %v7706_v39 = vld [vmem:[#allocation7 + $0x2c8] ss:$48 sps:$4 sm:$0xff]  }
 0x208   : > { %1242 = vmatpush1.bf16.msra.mxu0 %v7625_v27  ;;  %1295 = vmatpush1.bf16.msra.mxu1 %v7628_v41  ;;  %v6597_v27 = vcombine.high %v1474_v37, %v1478_v23  ;;  %v1481_v41 = vld [vmem:[#allocation8 + $0x40] sm:$0xff] }
 0x209   : > { %1243 = vmatprep.subr.bf16.mxu0 %v7633_v43  ;;  %1296 = vmatprep.subr.bf16.mxu1 %v7636_v44  ;;  %v1485_v43 = vld [vmem:[#allocation8 + $0x60] sm:$0xff]  ;;  %v1482_v44 = vld [vmem:[#allocation8 + $0x48] sm:$0xff] }
 0x20a   : > { %1269 = vmatprep.mubr.bf16.mxu0 %v8182_v56  ;;  %1322 = vmatprep.mubr.bf16.mxu1 %v8182_v56 }
 0x20c   : > { %1244 = vmatpush1.bf16.msra.mxu0 %v7631_v45  ;;  %1297 = vmatpush1.bf16.msra.mxu1 %v7634_v46  ;;  %v1486_v45 = vld [vmem:[#allocation8 + $0x68] sm:$0xff]  ;;  %v6594_v46 = vcombine.low %v1473_v35, %v1477_v36 }
 0x20d   : > { %1245 = vmatprep.subr.bf16.mxu0 %v7639_v47  ;;  %1298 = vmatprep.subr.bf16.mxu1 %v7642_v48  ;;  %v6596_v47 = vcombine.low %v1474_v37, %v1478_v23  ;;  %v6603_v48 = vcombine.high %v1481_v41, %v1485_v43  ;;  %v1475_v23 = vld [vmem:[#allocation8 + $0x10] sm:$0xff] }
 0x210   : > { %1246 = vmatpush1.bf16.msra.mxu0 %v7637_v49  ;;  %1299 = vmatpush1.bf16.msra.mxu1 %v7640_v50  ;;  %v6605_v49 = vcombine.high %v1482_v44, %v1486_v45  ;;  %v1489_v50 = vld [vmem:[#allocation8 + $0x80] sm:$0xff] }
 0x211   : > { %1247 = vmatprep.subr.bf16.mxu0 %v7645_v51  ;;  %1300 = vmatprep.subr.bf16.mxu1 %v7648_v52  ;;  %v1493_v51 = vld [vmem:[#allocation8 + $0xa0] sm:$0xff]  ;;  %v1490_v52 = vld [vmem:[#allocation8 + $0x88] sm:$0xff] }
 0x214   : > { %1248 = vmatpush1.bf16.msra.mxu0 %v7643_v53  ;;  %1301 = vmatpush1.bf16.msra.mxu1 %v7646_v54  ;;  %v1494_v53 = vld [vmem:[#allocation8 + $0xa8] sm:$0xff]  ;;  %v6602_v54 = vcombine.low %v1481_v41, %v1485_v43 }
 0x215   : > { %1249 = vmatprep.subr.bf16.mxu0 %v7651_v55  ;;  %1302 = vmatprep.subr.bf16.mxu1 %v7654_v57  ;;  %v6604_v55 = vcombine.low %v1482_v44, %v1486_v45  ;;  %v6611_v57 = vcombine.high %v1489_v50, %v1493_v51 }
 0x218   : > { %1250 = vmatpush1.bf16.msra.mxu0 %v7649_v58  ;;  %1303 = vmatpush1.bf16.msra.mxu1 %v7652_v59  ;;  %v6613_v58 = vcombine.high %v1490_v52, %v1494_v53  ;;  %v1497_v59 = vld [vmem:[#allocation8 + $0xc0] sm:$0xff] }
 0x219   : > { %1251 = vmatprep.subr.bf16.mxu0 %v7657_v60  ;;  %1304 = vmatprep.subr.bf16.mxu1 %v7660_v61  ;;  %v1501_v60 = vld [vmem:[#allocation8 + $0xe0] sm:$0xff]  ;;  %v1498_v61 = vld [vmem:[#allocation8 + $0xc8] sm:$0xff] }
 0x21c   : > { %1252 = vmatpush1.bf16.msra.mxu0 %v7655_v62  ;;  %1305 = vmatpush1.bf16.msra.mxu1 %v7658_v63  ;;  %v1502_v62 = vld [vmem:[#allocation8 + $0xe8] sm:$0xff]  ;;  %v6612_v63 = vcombine.low %v1490_v52, %v1494_v53  ;;  %v6494_v53 = vld [vmem:[%s9621_s2] ss:$0 sm:$0xff] }
 0x21d   : > { %1343 = vmatprep.subr.bf16.mxu0 %v7663_v0  ;;  %1396 = vmatprep.subr.bf16.mxu1 %v7666_v2  ;;  %v6619_v0 = vcombine.high %v1497_v59, %v1501_v60  ;;  %v6621_v2 = vcombine.high %v1498_v61, %v1502_v62 }
 0x21f   : > { %1270 = vmatmul.mubr.bf16.vlgmr.msra.gmra.mrb[8].mxu0 %v8545_v30  ;;  %1323 = vmatmul.mubr.bf16.vlgmr.msra.gmra.mrb[8].mxu1 %v8545_v30 }
 0x220   : > { %1344 = vmatpush1.bf16.msra.mxu0 %v7661_v3  ;;  %1397 = vmatpush1.bf16.msra.mxu1 %v7664_v4  ;;  %v1505_v3 = vld [vmem:[#allocation8 + $0x100] sm:$0xff] }
 0x221   : > { %1345 = vmatprep.subr.bf16.mxu0 %v7669_v5  ;;  %1398 = vmatprep.subr.bf16.mxu1 %v7672_v6  ;;  %v1509_v4 = vld [vmem:[#allocation8 + $0x120] sm:$0xff]  ;;  %v1506_v5 = vld [vmem:[#allocation8 + $0x108] sm:$0xff] }
 0x222   : > { %1279 = vmatprep.mubr.bf16.mxu0 %v8182_v56  ;;  %1332 = vmatprep.mubr.bf16.mxu1 %v8182_v56  ;;  %v1510_v6 = vld [vmem:[#allocation8 + $0x128] sm:$0xff] }
 0x224   : > { %1346 = vmatpush1.bf16.msra.mxu0 %v7667_v7  ;;  %1399 = vmatpush1.bf16.msra.mxu1 %v7670_v9  ;;  %v6618_v7 = vcombine.low %v1497_v59, %v1501_v60  ;;  %v6620_v9 = vcombine.low %v1498_v61, %v1502_v62  ;;  %v1483_v60 = vld [vmem:[#allocation8 + $0x50] sm:$0xff]  ;;  %v1484_v62 = vld [vmem:[#allocation8 + $0x58] sm:$0xff] }
 0x225   : > { %1347 = vmatprep.subr.bf16.mxu0 %v7675_v10  ;;  %1400 = vmatprep.subr.bf16.mxu1 %v7678_v11  ;;  %v6627_v10 = vcombine.high %v1505_v3, %v1509_v4  ;;  %v6629_v11 = vcombine.high %v1506_v5, %v1510_v6  ;;  %v1487_v61 = vld [vmem:[#allocation8 + $0x70] sm:$0xff] }
 0x227   : > { %1280 = vmatmul.mubr.bf16.gmra.mrb[12].mxu0 %v8552_v42  ;;  %1333 = vmatmul.mubr.bf16.gmra.mrb[12].mxu1 %v8552_v42 }
 0x228   : > { %1348 = vmatpush1.bf16.msra.mxu0 %v7673_v12  ;;  %1401 = vmatpush1.bf16.msra.mxu1 %v7676_v13  ;;  %v1513_v12 = vld [vmem:[#allocation8 + $0x140] sm:$0xff] }
 0x229   : > { %1349 = vmatprep.subr.bf16.mxu0 %v7681_v14  ;;  %1402 = vmatprep.subr.bf16.mxu1 %v7684_v16  ;;  %v1517_v13 = vld [vmem:[#allocation8 + $0x160] sm:$0xff]  ;;  %v1514_v14 = vld [vmem:[#allocation8 + $0x148] sm:$0xff] }
 0x22a   : > { %1375 = vmatprep.mubr.bf16.mxu0 %v8182_v56  ;;  %1428 = vmatprep.mubr.bf16.mxu1 %v8182_v56  ;;  %v1518_v16 = vld [vmem:[#allocation8 + $0x168] sm:$0xff] }
 0x22c   : > { %1350 = vmatpush1.bf16.msra.mxu0 %v7679_v17  ;;  %1403 = vmatpush1.bf16.msra.mxu1 %v7682_v18  ;;  %v6628_v17 = vcombine.low %v1506_v5, %v1510_v6  ;;  %v6635_v18 = vcombine.high %v1513_v12, %v1517_v13  ;;  %v1491_v6 = vld [vmem:[#allocation8 + $0x90] sm:$0xff] }
 0x22d   : > { %1351 = vmatprep.subr.bf16.mxu0 %v7687_v19  ;;  %1404 = vmatprep.subr.bf16.mxu1 %v7690_v20  ;;  %v6637_v19 = vcombine.high %v1514_v14, %v1518_v16  ;;  %v1521_v20 = vld [vmem:[#allocation8 + $0x180] sm:$0xff] }
 0x230   : > { %1352 = vmatpush1.bf16.msra.mxu0 %v7685_v22  ;;  %1405 = vmatpush1.bf16.msra.mxu1 %v7688_v24  ;;  %v1525_v22 = vld [vmem:[#allocation8 + $0x1a0] sm:$0xff]  ;;  %v1522_v24 = vld [vmem:[#allocation8 + $0x188] sm:$0xff] }
 0x231   : > { %1353 = vmatprep.subr.bf16.mxu0 %v7693_v25  ;;  %1406 = vmatprep.subr.bf16.mxu1 %v7696_v26  ;;  %v1526_v25 = vld [vmem:[#allocation8 + $0x1a8] sm:$0xff]  ;;  %v6634_v26 = vcombine.low %v1513_v12, %v1517_v13 }
 0x232   : > { %v6644_v35 = vcombine.low %v1522_v24, %v1526_v25 }
 0x234   : > { %1354 = vmatpush1.bf16.msra.mxu0 %v7691_v28  ;;  %1407 = vmatpush1.bf16.msra.mxu1 %v7694_v15  ;;  %v6636_v28 = vcombine.low %v1514_v14, %v1518_v16  ;;  %v6643_v15 = vcombine.high %v1521_v20, %v1525_v22  ;;  %v1499_v14 = vld [vmem:[#allocation8 + $0xd0] sm:$0xff] }
 0x235   : > { %1355 = vmatprep.subr.bf16.mxu0 %v7699_v29  ;;  %1408 = vmatprep.subr.bf16.mxu1 %v7702_v31  ;;  %v6645_v29 = vcombine.high %v1522_v24, %v1526_v25  ;;  %v1529_v31 = vld [vmem:[#allocation8 + $0x1c0] sm:$0xff]  ;;  %v1503_v16 = vld [vmem:[#allocation8 + $0xf0] sm:$0xff] }
 0x236   : > { %v1507_v24 = vld [vmem:[#allocation8 + $0x110] sm:$0xff] }
 0x237   : > { %v1511_v25 = vld [vmem:[#allocation8 + $0x130] sm:$0xff] }
 0x238   : > { %1356 = vmatpush1.bf16.msra.mxu0 %v7697_v32  ;;  %1409 = vmatpush1.bf16.msra.mxu1 %v7700_v33  ;;  %v1533_v32 = vld [vmem:[#allocation8 + $0x1e0] sm:$0xff]  ;;  %v1530_v33 = vld [vmem:[#allocation8 + $0x1c8] sm:$0xff] }
 0x239   : > { %1357 = vmatprep.subr.bf16.mxu0 %v7705_v34  ;;  %1410 = vmatprep.subr.bf16.mxu1 %v7708_v21  ;;  %v1534_v34 = vld [vmem:[#allocation8 + $0x1e8] sm:$0xff]  ;;  %v6642_v21 = vcombine.low %v1521_v20, %v1525_v22  ;;  %v6651_v36 = vcombine.high %v1529_v31, %v1533_v32  ;;  %v6623_v20 = vcombine.high %v1499_v14, %v1503_v16 }
 0x23a   : > { %v6653_v37 = vcombine.high %v1530_v33, %v1534_v34  ;;  %v6652_v41 = vcombine.low %v1530_v33, %v1534_v34  ;;  %v1519_v33 = vld [vmem:[#allocation8 + $0x170] sm:$0xff]  ;;  %v1516_v34 = vld [vmem:[#allocation8 + $0x158] sm:$0xff] }
 0x23c   : > { %1358 = vmatpush1.bf16.msra.mxu0 %v7703_v38  ;;  %1411 = vmatpush1.bf16.msra.mxu1 %v7706_v39  ;;  %v1479_v38 = vld [vmem:[#allocation8 + $0x30] sm:$0xff]  ;;  %v1476_v39 = vld [vmem:[#allocation8 + $0x18] sm:$0xff] }
 0x23d   : > { %1857 = vmatprep.subr.bf16.mxu0 %v6595_v40  ;;  %1900 = vmatprep.subr.bf16.mxu1 %v6597_v27  ;;  %v1480_v40 = vld [vmem:[#allocation8 + $0x38] sm:$0xff]  ;;  %v6650_v27 = vcombine.low %v1529_v31, %v1533_v32  ;;  %v6599_v43 = vcombine.high %v1475_v23, %v1479_v38  ;;  %v6631_v31 = vcombine.high %v1507_v24, %v1511_v25  ;;  %v1515_v32 = vld [vmem:[#allocation8 + $0x150] sm:$0xff] }
 0x23e   : > { %v6601_v44 = vcombine.high %v1476_v39, %v1480_v40 }
 0x23f   : > { %1376 = vmatmul.mubr.bf16.vlgmr.msra.gmra.mrb[16].mxu0 %v8545_v30  ;;  %1429 = vmatmul.mubr.bf16.vlgmr.msra.gmra.mrb[16].mxu1 %v8545_v30  ;;  %v6610_v30 = vcombine.low %v1489_v50, %v1493_v51 }
 0x240   : > { %1385 = vmatprep.mubr.bf16.mxu0 %v8182_v56  ;;  %1438 = vmatprep.mubr.bf16.mxu1 %v8182_v56 }
 0x241   : > { %1858 = vmatpush1.bf16.msra.mxu0 %v6594_v46  ;;  %1901 = vmatpush1.bf16.msra.mxu1 %v6596_v47 }
 0x242   : > { %1859 = vmatprep.subr.bf16.mxu0 %v6603_v48  ;;  %1902 = vmatprep.subr.bf16.mxu1 %v6605_v49 }
 0x245   : > { %1860 = vmatpush1.bf16.msra.mxu0 %v6602_v54  ;;  %1903 = vmatpush1.bf16.msra.mxu1 %v6604_v55 }
 0x246   : > { %1861 = vmatprep.subr.bf16.mxu0 %v6611_v57  ;;  %1904 = vmatprep.subr.bf16.mxu1 %v6613_v58  ;;  %v6495_v58 = vld [vmem:[%s9622_s3] ss:$0 sm:$0xff] }
 0x247   : > { %1386 = vmatmul.mubr.bf16.gmra.mrb[20].mxu0 %v8552_v42  ;;  %1439 = vmatmul.mubr.bf16.gmra.mrb[20].mxu1 %v8552_v42  ;;  %v6626_v42 = vcombine.low %v1505_v3, %v1509_v4  ;;  %v6607_v4 = vcombine.high %v1483_v60, %v1487_v61 }
 0x248   : > { %1889 = vmatprep.mubr.bf16.mxu0 %v8182_v56  ;;  %1932 = vmatprep.mubr.bf16.mxu1 %v8182_v56 }
 0x249   : > { %1862 = vmatpush1.bf16.msra.mxu0 %v6610_v30  ;;  %1905 = vmatpush1.bf16.msra.mxu1 %v6612_v63  ;;  %v1488_v30 = vld [vmem:[#allocation8 + $0x78] sm:$0xff] }
 0x24a   : > { %1863 = vmatprep.subr.bf16.mxu0 %v6619_v0  ;;  %1906 = vmatprep.subr.bf16.mxu1 %v6621_v2  ;;  %v6600_v2 = vcombine.low %v1476_v39, %v1480_v40  ;;  %v6609_v5 = vcombine.high %v1484_v62, %v1488_v30  ;;  %v1527_v39 = vld [vmem:[#allocation8 + $0x1b0] sm:$0xff]  ;;  %v1524_v40 = vld [vmem:[#allocation8 + $0x198] sm:$0xff] }
 0x24d   : > { %1864 = vmatpush1.bf16.msra.mxu0 %v6618_v7  ;;  %1907 = vmatpush1.bf16.msra.mxu1 %v6620_v9  ;;  %v1495_v7 = vld [vmem:[#allocation8 + $0xb0] sm:$0xff]  ;;  %v1496_v9 = vld [vmem:[#allocation8 + $0xb8] sm:$0xff] }
 0x24e   : > { %1865 = vmatprep.subr.bf16.mxu0 %v6627_v10  ;;  %1908 = vmatprep.subr.bf16.mxu1 %v6629_v11  ;;  %v6606_v10 = vcombine.low %v1483_v60, %v1487_v61  ;;  %v6608_v11 = vcombine.low %v1484_v62, %v1488_v30  ;;  %v6615_v12 = vcombine.high %v1491_v6, %v1495_v7 }
 0x251   : > { %1866 = vmatpush1.bf16.msra.mxu0 %v6626_v42  ;;  %1909 = vmatpush1.bf16.msra.mxu1 %v6628_v17  ;;  %v1500_v42 = vld [vmem:[#allocation8 + $0xd8] sm:$0xff] }
 0x252   : > { %1867 = vmatprep.subr.bf16.mxu0 %v6635_v18  ;;  %1910 = vmatprep.subr.bf16.mxu1 %v6637_v19  ;;  %v1504_v17 = vld [vmem:[#allocation8 + $0xf8] sm:$0xff]  ;;  %v6614_v18 = vcombine.low %v1491_v6, %v1495_v7 }
 0x253   : > { %v6625_v22 = vcombine.high %v1500_v42, %v1504_v17 }
 0x255   : > { %1868 = vmatpush1.bf16.msra.mxu0 %v6634_v26  ;;  %1911 = vmatpush1.bf16.msra.mxu1 %v6636_v28  ;;  %v1508_v26 = vld [vmem:[#allocation8 + $0x118] sm:$0xff] }
 0x256   : > { %1869 = vmatprep.subr.bf16.mxu0 %v6643_v15  ;;  %1912 = vmatprep.subr.bf16.mxu1 %v6645_v29  ;;  %v1512_v28 = vld [vmem:[#allocation8 + $0x138] sm:$0xff]  ;;  %v6622_v15 = vcombine.low %v1499_v14, %v1503_v16  ;;  %v6624_v29 = vcombine.low %v1500_v42, %v1504_v17  ;;  %v9634_v42 = vmov 0.0  }
 0x259   : > { %1870 = vmatpush1.bf16.msra.mxu0 %v6642_v21  ;;  %1913 = vmatpush1.bf16.msra.mxu1 %v6644_v35  ;;  %v1520_v21 = vld [vmem:[#allocation8 + $0x178] sm:$0xff]  ;;  %v6630_v35 = vcombine.low %v1507_v24, %v1511_v25 }
 0x25a   : > { %1871 = vmatprep.subr.bf16.mxu0 %v6651_v36  ;;  %1914 = vmatprep.subr.bf16.mxu1 %v6653_v37  ;;  %v6632_v36 = vcombine.low %v1508_v26, %v1512_v28  ;;  %v6639_v37 = vcombine.high %v1515_v32, %v1519_v33 }
 0x25d   : > { %1872 = vmatpush1.bf16.msra.mxu0 %v6650_v27  ;;  %1915 = vmatpush1.bf16.msra.mxu1 %v6652_v41  ;;  %v1528_v27 = vld [vmem:[#allocation8 + $0x1b8] sm:$0xff]  ;;  %v6638_v41 = vcombine.low %v1515_v32, %v1519_v33 }
 0x25e   : > { %1943 = vmatprep.subr.bf16.mxu0 %v6599_v43  ;;  %1986 = vmatprep.subr.bf16.mxu1 %v6601_v44  ;;  %v6640_v43 = vcombine.low %v1516_v34, %v1520_v21 }
 0x27b   : > { %v455_v45 = vpop.xlane.xlu0 %454 }
 0x27c   : > { %v458_v46 = vmul.f32 0.0078125, %v455_v45  ;;  %v6649_v45 = vcombine.high %v1524_v40, %v1528_v27 }
 0x27e   : > { %v460_v47 = vadd.f32 1e-05, %v458_v46  ;;  %v1531_v46 = vld [vmem:[#allocation8 + $0x1d0] sm:$0xff] }
 0x27f   : > { %v457_v48 = vpop.xlane.xlu1 %456 }
 0x280   : > { %7749 = vrsqrt.f32 %v460_v47  ;;  %v459_v49 = vmul.f32 0.0078125, %v457_v48  ;;  %v1535_v47 = vld [vmem:[#allocation8 + $0x1f0] sm:$0xff]  ;;  %v1532_v48 = vld [vmem:[#allocation8 + $0x1d8] sm:$0xff] }
 0x282   : > { %v461_v50 = vadd.f32 1e-05, %v459_v49  ;;  %v1536_v49 = vld [vmem:[#allocation8 + $0x1f8] sm:$0xff] }
 0x284   : > { %7751 = vrsqrt.f32 %v461_v50 }
 0x28a   : > { %v7750_v51 = vpop.eup %7749 }
 0x28b   : > { %v464_v52 = vmul.f32 %v7750_v51, %v8527_v1  ;;  %v6598_v1 = vcombine.low %v1475_v23, %v1479_v38  ;;  %v6641_v23 = vcombine.high %v1516_v34, %v1520_v21  ;;  %v1523_v38 = vld [vmem:[#allocation8 + $0x190] sm:$0xff]  ;;  %v6648_v51 = vcombine.low %v1524_v40, %v1528_v27 }
 0x28c   : > { %v6647_v44 = vcombine.high %v1523_v38, %v1527_v39  ;;  %v6646_v50 = vcombine.low %v1523_v38, %v1527_v39 }
 0x28d   : > { %v472_v55 = vmul.f32 %v6494_v53, %v464_v52  ;;  %v6655_v52 = vcombine.high %v1531_v46, %v1535_v47 }
 0x28e   : > { %v7752_v54 = vpop.eup %7751 }
 0x28f   : > { %v465_v57 = vmul.f32 %v7752_v54, %v8532_v8  ;;  %v480_v63 = vadd.f32 %v6495_v58, %v472_v55  ;;  %v1492_v8 = vld [vmem:[#allocation8 + $0x98] sm:$0xff]  ;;  %v6654_v54 = vcombine.low %v1531_v46, %v1535_v47  ;;  %v6656_v55 = vcombine.low %v1532_v48, %v1536_v49 }
 0x290   : > { %v6617_v13 = vcombine.high %v1492_v8, %v1496_v9  ;;  %v6616_v19 = vcombine.low %v1492_v8, %v1496_v9 }
 0x291   : > { %v473_v59 = vmul.f32 %v6494_v53, %v465_v57  ;;  %v6657_v53 = vcombine.high %v1532_v48, %v1536_v49 }
 0x293   : > { %v481_v0 = vadd.f32 %v6495_v58, %v473_v59 }
 0x295   : > { %v8582_v3 = vpack.c.bf16 %v481_v0, %v480_v63 }
 0x297   : > { %1890 = vmatmul.mubr.bf16.vlgmr.msra.gmra.mrb[24].mxu0 %v8582_v3  ;;  %1933 = vmatmul.mubr.bf16.vlgmr.msra.gmra.mrb[24].mxu1 %v8582_v3 }
 0x298   : > { %1944 = vmatpush1.bf16.msra.mxu0 %v6598_v1  ;;  %1987 = vmatpush1.bf16.msra.mxu1 %v6600_v2 }
 0x299   : > { %1945 = vmatprep.subr.bf16.mxu0 %v6607_v4  ;;  %1988 = vmatprep.subr.bf16.mxu1 %v6609_v5 }
 0x29a   : > { %1975 = vmatprep.mubr.bf16.mxu0 %v8182_v56  ;;  %2018 = vmatprep.mubr.bf16.mxu1 %v8182_v56  ;;  %v6633_v56 = vcombine.high %v1508_v26, %v1512_v28 }
 0x29c   : > { %1946 = vmatpush1.bf16.msra.mxu0 %v6606_v10  ;;  %1989 = vmatpush1.bf16.msra.mxu1 %v6608_v11 }
 0x29d   : > { %1947 = vmatprep.subr.bf16.mxu0 %v6615_v12  ;;  %1990 = vmatprep.subr.bf16.mxu1 %v6617_v13 }
 0x2a0   : > { %1948 = vmatpush1.bf16.msra.mxu0 %v6614_v18  ;;  %1991 = vmatpush1.bf16.msra.mxu1 %v6616_v19 }
 0x2a1   : > { %1949 = vmatprep.subr.bf16.mxu0 %v6623_v20  ;;  %1992 = vmatprep.subr.bf16.mxu1 %v6625_v22 }
 0x2a4   : > { %1950 = vmatpush1.bf16.msra.mxu0 %v6622_v15  ;;  %1993 = vmatpush1.bf16.msra.mxu1 %v6624_v29 }
 0x2a5   : > { %1951 = vmatprep.subr.bf16.mxu0 %v6631_v31  ;;  %1994 = vmatprep.subr.bf16.mxu1 %v6633_v56 }
 0x2a8   : > { %1952 = vmatpush1.bf16.msra.mxu0 %v6630_v35  ;;  %1995 = vmatpush1.bf16.msra.mxu1 %v6632_v36 }
 0x2a9   : > { %1953 = vmatprep.subr.bf16.mxu0 %v6639_v37  ;;  %1996 = vmatprep.subr.bf16.mxu1 %v6641_v23 }
 0x2ac   : > { %1954 = vmatpush1.bf16.msra.mxu0 %v6638_v41  ;;  %1997 = vmatpush1.bf16.msra.mxu1 %v6640_v43 }
 0x2ad   : > { %1955 = vmatprep.subr.bf16.mxu0 %v6647_v44  ;;  %1998 = vmatprep.subr.bf16.mxu1 %v6649_v45 }
 0x2b0   : > { %1956 = vmatpush1.bf16.msra.mxu0 %v6646_v50  ;;  %1999 = vmatpush1.bf16.msra.mxu1 %v6648_v51 }
 0x2b1   : > { %1957 = vmatprep.subr.bf16.mxu0 %v6655_v52  ;;  %2000 = vmatprep.subr.bf16.mxu1 %v6657_v53 }
 0x2b4   : > { %1958 = vmatpush1.bf16.msra.mxu0 %v6654_v54  ;;  %2001 = vmatpush1.bf16.msra.mxu1 %v6656_v55 }
 0x2b5   : > { %6981 = vmatprep.subr.bf16.mxu0 %v9634_v42  ;;  %6987 = vmatprep.subr.bf16.mxu1 %v9634_v42 }
 0x2b7   : > { %1976 = vmatmul.mubr.bf16.vlgmr.msra.gmra.mrb[28].mxu0 %v8582_v3  ;;  %2019 = vmatmul.mubr.bf16.vlgmr.msra.gmra.mrb[28].mxu1 %v8582_v3 }
 0x2b8   : > { %6983 = vmatprep.mubr.msk.bf16.mxu0 %vm8184_vm0, %v9634_v42  ;;  %6989 = vmatprep.mubr.msk.bf16.mxu1 %vm8184_vm0, %v9634_v42 }
 0x2d2   : > { %v1165_v57 = vpop.f32.mrb[0].mxu0  ;;  %v1218_v58 = vpop.f32.mrb[0].mxu1 }
 0x2d3   : > { %v1167_v59 = vpop.f32.mrb[1].mxu0  ;;  %v1220_v60 = vpop.f32.mrb[1].mxu1 }
 0x2d4   : > { %v1169_v61 = vpop.f32.mrb[2].mxu0  ;;  %v1222_v62 = vpop.f32.mrb[2].mxu1 }
 0x2d5   : > { %v8590_v30 = vpack.c.bf16 %v1169_v61, %v1165_v57  ;;  %v8592_v63 = vpack.c.bf16 %v1222_v62, %v1218_v58  ;;  %v1171_v0 = vpop.f32.mrb[3].mxu0  ;;  %v1224_v1 = vpop.f32.mrb[3].mxu1 }
 0x2d6   : > { %v8594_v2 = vpack.c.bf16 %v1171_v0, %v1167_v59  ;;  %v8596_v4 = vpack.c.bf16 %v1224_v1, %v1220_v60 }
 0x2da   : > { %v1175_v5 = vpop.f32.mrb[4].mxu0  ;;  %v1228_v6 = vpop.f32.mrb[4].mxu1 }
 0x2db   : > { %v1177_v7 = vpop.f32.mrb[5].mxu0  ;;  %v1230_v3 = vpop.f32.mrb[5].mxu1 }
 0x2dc   : > { %v1179_v8 = vpop.f32.mrb[6].mxu0  ;;  %v1232_v9 = vpop.f32.mrb[6].mxu1 }
 0x2dd   : > { %v8598_v10 = vpack.c.bf16 %v1179_v8, %v1175_v5  ;;  %v8600_v11 = vpack.c.bf16 %v1232_v9, %v1228_v6  ;;  %v1181_v12 = vpop.f32.mrb[7].mxu0  ;;  %v1234_v13 = vpop.f32.mrb[7].mxu1 }
 0x2de   : > { %v8602_v14 = vpack.c.bf16 %v1181_v12, %v1177_v7  ;;  %v8604_v16 = vpack.c.bf16 %v1234_v13, %v1230_v3 }
 0x2e0   : > { %9664 = vst [vmem:[#allocation20_spill] sm:$0xff] %v8604_v16 }
 0x2f2   : > { %v1271_v17 = vpop.f32.mrb[8].mxu0  ;;  %v1324_v18 = vpop.f32.mrb[8].mxu1 }
 0x2f3   : > { %v1273_v19 = vpop.f32.mrb[9].mxu0  ;;  %v1326_v20 = vpop.f32.mrb[9].mxu1 }
 0x2f4   : > { %v1275_v22 = vpop.f32.mrb[10].mxu0  ;;  %v1328_v24 = vpop.f32.mrb[10].mxu1 }
 0x2f5   : > { %v8612_v25 = vpack.c.bf16 %v1275_v22, %v1271_v17  ;;  %v8614_v26 = vpack.c.bf16 %v1328_v24, %v1324_v18  ;;  %v1277_v28 = vpop.f32.mrb[11].mxu0  ;;  %v1330_v15 = vpop.f32.mrb[11].mxu1 }
 0x2f6   : > { %v8616_v29 = vpack.c.bf16 %v1277_v28, %v1273_v19  ;;  %v8618_v31 = vpack.c.bf16 %v1330_v15, %v1326_v20 }
 0x2f7   : > { %v2165_v15 = vsel %vm2069_vm1, %v8612_v25, 0 }
 0x2fa   : > { %v1281_v56 = vpop.f32.mrb[12].mxu0  ;;  %v1334_v32 = vpop.f32.mrb[12].mxu1 }
 0x2fb   : > { %v1283_v33 = vpop.f32.mrb[13].mxu0  ;;  %v1336_v34 = vpop.f32.mrb[13].mxu1 }
 0x2fc   : > { %v1285_v21 = vpop.f32.mrb[14].mxu0  ;;  %v1338_v35 = vpop.f32.mrb[14].mxu1 }
 0x2fd   : > { %v8620_v36 = vpack.c.bf16 %v1285_v21, %v1281_v56  ;;  %v8622_v37 = vpack.c.bf16 %v1338_v35, %v1334_v32  ;;  %v1287_v23 = vpop.f32.mrb[15].mxu0  ;;  %v1340_v38 = vpop.f32.mrb[15].mxu1 }
 0x2fe   : > { %v8624_v39 = vpack.c.bf16 %v1287_v23, %v1283_v33  ;;  %v8626_v40 = vpack.c.bf16 %v1340_v38, %v1336_v34 }
 0x2ff   : > { %v2209_v56 = vsel %vm2069_vm1, %v8620_v36, 0 }
 0x300   : > { %9665 = vst [vmem:[#allocation21_spill] sm:$0xff] %v8626_v40 }
 0x312   : > { %v1377_v27 = vpop.f32.mrb[16].mxu0  ;;  %v1430_v41 = vpop.f32.mrb[16].mxu1 }
 0x313   : > { %v1379_v43 = vpop.f32.mrb[17].mxu0  ;;  %v1432_v44 = vpop.f32.mrb[17].mxu1 }
 0x314   : > { %v1381_v45 = vpop.f32.mrb[18].mxu0  ;;  %v1434_v46 = vpop.f32.mrb[18].mxu1 }
 0x315   : > { %v8628_v47 = vpack.c.bf16 %v1381_v45, %v1377_v27  ;;  %v8630_v48 = vpack.c.bf16 %v1434_v46, %v1430_v41  ;;  %v1383_v49 = vpop.f32.mrb[19].mxu0  ;;  %v1436_v50 = vpop.f32.mrb[19].mxu1 }
 0x316   : > { %v8632_v51 = vpack.c.bf16 %v1383_v49, %v1379_v43  ;;  %v8634_v52 = vpack.c.bf16 %v1436_v50, %v1432_v44 }
 0x31a   : > { %v1387_v53 = vpop.f32.mrb[20].mxu0  ;;  %v1440_v54 = vpop.f32.mrb[20].mxu1 }
 0x31b   : > { %v1389_v55 = vpop.f32.mrb[21].mxu0  ;;  %v1442_v57 = vpop.f32.mrb[21].mxu1 }
 0x31c   : > { %v1391_v58 = vpop.f32.mrb[22].mxu0  ;;  %v1444_v59 = vpop.f32.mrb[22].mxu1 }
 0x31d   : > { %v8636_v60 = vpack.c.bf16 %v1391_v58, %v1387_v53  ;;  %v8638_v61 = vpack.c.bf16 %v1444_v59, %v1440_v54  ;;  %v1393_v62 = vpop.f32.mrb[23].mxu0  ;;  %v1446_v0 = vpop.f32.mrb[23].mxu1 }
 0x31e   : > { %v8640_v1 = vpack.c.bf16 %v1393_v62, %v1389_v55  ;;  %v8642_v5 = vpack.c.bf16 %v1446_v0, %v1442_v57 }
 0x320   : > { %9666 = vst [vmem:[#allocation22_spill] sm:$0xff] %v8642_v5 }
 0x36a   : > { %v8644_v6 = vpop.f32.mrb[24].mxu0  ;;  %v8646_v7 = vpop.f32.mrb[24].mxu1 }
 0x36b   : > { %v1893_v3 = vpop.f32.mrb[25].mxu0  ;;  %v1936_v8 = vpop.f32.mrb[25].mxu1 }
 0x36c   : > { %v8649_v9 = vpack.c.bf16 %v1893_v3, %v8644_v6  ;;  %v8652_v12 = vpack.c.bf16 %v1936_v8, %v8646_v7  ;;  %v8654_v13 = vpop.f32.mrb[26].mxu0  ;;  %v8656_v17 = vpop.f32.mrb[26].mxu1 }
 0x36d   : > { %v1897_v18 = vpop.f32.mrb[27].mxu0  ;;  %v1940_v19 = vpop.f32.mrb[27].mxu1 }
 0x36e   : > { %v8659_v20 = vpack.c.bf16 %v1897_v18, %v8654_v13  ;;  %v8662_v22 = vpack.c.bf16 %v1940_v19, %v8656_v17  ;;  %v2074_v24 = vsel %vm2069_vm1, %v8649_v9, 0 }
 0x36f   : > { %6982 = vmatpush3.bf16.xpose.msra.mxu0 %v2074_v24 }
 0x370   : > { %v2121_v28 = vsel %vm2069_vm1, %v8659_v20, 0  ;;  %6993 = vmatprep.subr.bf16.mxu0 %v9634_v42 }
 0x371   : > { %6988 = vmatpush3.bf16.xpose.msra.mxu1 %v2121_v28 }
 0x372   : > { %6999 = vmatprep.subr.bf16.mxu1 %v9634_v42 }
 0x376   : > { %6984 = vmatmul.mubr.msk.bf16.vlgmr.msra.gmra.mrb[32].mxu0 %vm2069_vm1, %v8590_v30 }
 0x377   : > { %6994 = vmatpush3.bf16.xpose.msra.mxu0 %v2165_v15  ;;  %6995 = vmatprep.mubr.msk.bf16.mxu0 %vm8184_vm0, %v9634_v42 }
 0x378   : > { %6990 = vmatmul.mubr.msk.bf16.vlgmr.msra.gmra.mrb[32].mxu1 %vm2069_vm1, %v8598_v10  ;;  %7005 = vmatprep.subr.bf16.mxu0 %v9634_v42 }
 0x379   : > { %7000 = vmatpush3.bf16.xpose.msra.mxu1 %v2209_v56  ;;  %7001 = vmatprep.mubr.msk.bf16.mxu1 %vm8184_vm0, %v9634_v42 }
 0x37a   : > { %7011 = vmatprep.subr.bf16.mxu1 %v9634_v42 }
 0x37e   : > { %6996 = vmatmul.mubr.msk.bf16.vlgmr.msra.gmra.mrb[36].mxu0 %vm2069_vm1, %v8590_v30 }
 0x37f   : > { %7006 = vmatpush3.bf16.msra.mxu0 %v8628_v47  ;;  %7007 = vmatprep.mubr.msk.bf16.mxu0 %vm8184_vm0, %v9634_v42 }
 0x380   : > { %7002 = vmatmul.mubr.msk.bf16.vlgmr.msra.gmra.mrb[36].mxu1 %vm2069_vm1, %v8598_v10  ;;  %7017 = vmatprep.subr.bf16.mxu0 %v9634_v42 }
 0x381   : > { %7012 = vmatpush3.bf16.msra.mxu1 %v8636_v60  ;;  %7013 = vmatprep.mubr.msk.bf16.mxu1 %vm8184_vm0, %v9634_v42 }
 0x382   : > { %7023 = vmatprep.subr.bf16.mxu1 %v9634_v42 }
 0x38a   : > { %v8696_v32 = vpop.f32.mrb[28].mxu0  ;;  %v8698_v33 = vpop.f32.mrb[28].mxu1 }
 0x38b   : > { %v1979_v34 = vpop.f32.mrb[29].mxu0  ;;  %v2022_v21 = vpop.f32.mrb[29].mxu1 }
 0x38c   : > { %v8701_v35 = vpack.c.bf16 %v1979_v34, %v8696_v32  ;;  %v8704_v23 = vpack.c.bf16 %v2022_v21, %v8698_v33  ;;  %v8706_v38 = vpop.f32.mrb[30].mxu0  ;;  %v8708_v27 = vpop.f32.mrb[30].mxu1 }
 0x38d   : > { %v1983_v41 = vpop.f32.mrb[31].mxu0  ;;  %v2026_v43 = vpop.f32.mrb[31].mxu1 }
 0x38e   : > { %v8711_v44 = vpack.c.bf16 %v1983_v41, %v8706_v38  ;;  %v8714_v45 = vpack.c.bf16 %v2026_v43, %v8708_v27 }
 0x449   : > { %v2110_v46 = vpop.f32.mrb[32].mxu0 }
 0x44a   : > { %v6985_v49 = vpop.f32.mrb[33].mxu0  ;;  %v2253_v53 = vsel %vm2252_vm2, %v2110_v46, -inf }
 0x44b   : > { %v2157_v50 = vpop.f32.mrb[32].mxu1  ;;  %2254 = vmax.xlane.f32.xlu0 %v2253_v53  ;;  %v2113_v54 = vpop.f32.mrb[34].mxu0 }
 0x44c   : > { %v6991_v55 = vpop.f32.mrb[33].mxu1  ;;  %v6986_v57 = vpop.f32.mrb[35].mxu0  ;;  %v2256_v59 = vsel %vm2252_vm2, %v2113_v54, -inf  ;;  %v2259_v21 = vsel %vm2252_vm2, %v2157_v50, -inf }
 0x44d   : > { %v2160_v58 = vpop.f32.mrb[34].mxu1  ;;  %2257 = vmax.xlane.f32.xlu1 %v2256_v59 }
 0x44e   : > { %v6992_v62 = vpop.f32.mrb[35].mxu1  ;;  %v2262_v41 = vsel %vm2252_vm2, %v2160_v58, -inf }
 0x451   : > { %v2201_v0 = vpop.f32.mrb[36].mxu0 }
 0x452   : > { %v6997_v3 = vpop.f32.mrb[37].mxu0  ;;  %v2266_v18 = vsel %vm2265_vm3, %v2201_v0, -inf }
 0x453   : > { %v2245_v8 = vpop.f32.mrb[36].mxu1  ;;  %2267 = vmax.xlane.f32.xlu0 %v2266_v18  ;;  %v2204_v19 = vpop.f32.mrb[38].mxu0 }
 0x454   : > { %v7003_v24 = vpop.f32.mrb[37].mxu1  ;;  %v6998_v28 = vpop.f32.mrb[39].mxu0  ;;  %v2269_v56 = vsel %vm2265_vm3, %v2204_v19, -inf  ;;  %v2272_v43 = vsel %vm2265_vm3, %v2245_v8, -inf }
 0x455   : > { %v2248_v15 = vpop.f32.mrb[38].mxu1  ;;  %2270 = vmax.xlane.f32.xlu1 %v2269_v56 }
 0x456   : > { %v7004_v34 = vpop.f32.mrb[39].mxu1  ;;  %v2275_v49 = vsel %vm2265_vm3, %v2248_v15, -inf }
 0x457   : > { %2260 = vmax.xlane.f32.xlu0 %v2259_v21 }
 0x459   : > { %2263 = vmax.xlane.f32.xlu1 %v2262_v41 }
 0x45b   : > { %2273 = vmax.xlane.f32.xlu0 %v2272_v43 }
 0x45d   : > { %2276 = vmax.xlane.f32.xlu1 %v2275_v49 }
 0x4d8   : > { %v2255_v53 = vpop.xlane.xlu0 %2254 }
 0x4da   : > { %v2258_v55 = vpop.xlane.xlu1 %2257 }
 0x4e0   : > { %v2268_v57 = vpop.xlane.xlu0 %2267 }
 0x4e1   : > { %v2278_v59 = vmax.f32 %v2255_v53, %v2268_v57 }
 0x4e2   : > { %v2271_v62 = vpop.xlane.xlu1 %2270 }
 0x4e3   : > { %v2282_v3 = vsub.f32 %v2110_v46, %v2278_v59  ;;  %v2294_v18 = vsub.f32 %v2201_v0, %v2278_v59  ;;  %v2279_v24 = vmax.f32 %v2258_v55, %v2271_v62 }
 0x4e4   : > { %v2261_v28 = vpop.xlane.xlu0 %2260 }
 0x4e5   : > { %v2286_v56 = vmul.f32 1.442695, %v2282_v3  ;;  %v2298_v34 = vmul.f32 1.442695, %v2294_v18  ;;  %v2283_v21 = vsub.f32 %v2113_v54, %v2279_v24  ;;  %v2295_v42 = vsub.f32 %v2204_v19, %v2279_v24 }
 0x4e6   : > { %v2264_v41 = vpop.xlane.xlu1 %2263 }
 0x4e7   : > { %7753 = vpow2.f32 %v2286_v56  ;;  %v2288_v5 = vmul.f32 1.442695, %v2283_v21  ;;  %v2300_v43 = vmul.f32 1.442695, %v2295_v42 }
 0x4e8   : > { %7755 = vpow2.f32 %v2298_v34  ;;  %v2274_v16 = vpop.xlane.xlu0 %2273 }
 0x4e9   : > { %7757 = vpow2.f32 %v2288_v5  ;;  %v2280_v49 = vmax.f32 %v2261_v28, %v2274_v16 }
 0x4ea   : > { %v2277_v40 = vpop.xlane.xlu1 %2276  ;;  %7759 = vpow2.f32 %v2300_v43  ;;  %v6787_v43 = vpack.c.bf16 %v8644_v6, %v8644_v6 }
 0x4eb   : > { %v2284_v53 = vsub.f32 %v2157_v50, %v2280_v49  ;;  %v2296_v57 = vsub.f32 %v2245_v8, %v2280_v49  ;;  %v2281_v46 = vmax.f32 %v2264_v41, %v2277_v40  ;;  %v6788_v49 = vpack.c.bf16 %v8654_v13, %v8654_v13 }
 0x4ed   : > { %v2290_v0 = vmul.f32 1.442695, %v2284_v53  ;;  %v2302_v55 = vmul.f32 1.442695, %v2296_v57  ;;  %v2285_v59 = vsub.f32 %v2160_v58, %v2281_v46  ;;  %v2297_v62 = vsub.f32 %v2248_v15, %v2281_v46 }
 0x4ef   : > { %7761 = vpow2.f32 %v2290_v0  ;;  %v2292_v54 = vmul.f32 1.442695, %v2285_v59  ;;  %v2304_v19 = vmul.f32 1.442695, %v2297_v62 }
 0x4f0   : > { %7763 = vpow2.f32 %v2302_v55 }
 0x4f1   : > { %v8724_v3 = vpop.eup %7753  ;;  %7765 = vpow2.f32 %v2292_v54 }
 0x4f2   : > { %v7756_v42 = vpop.eup %7755  ;;  %v2306_v16 = vsel %vm2252_vm2, %v8724_v3, 0.0  ;;  %7767 = vpow2.f32 %v2304_v19 }
 0x4f3   : > { %v8728_v5 = vpop.eup %7757  ;;  %2307 = vadd.xlane.f32.xlu0 %v2306_v16  ;;  %v2318_v58 = vsel %vm2265_vm3, %v7756_v42, 0.0 }
 0x4f4   : > { %v2309_v40 = vsel %vm2252_vm2, %v8728_v5, 0.0  ;;  %v7760_v50 = vpop.eup %7759 }
 0x4f5   : > { %2310 = vadd.xlane.f32.xlu1 %v2309_v40  ;;  %v2321_v8 = vsel %vm2265_vm3, %v7760_v50, 0.0 }
 0x4f7   : > { %2319 = vadd.xlane.f32.xlu0 %v2318_v58  ;;  %v2443_v58 = vsel %vm2441_vm4, %v8701_v35, 0 }
 0x4f9   : > { %v8734_v15 = vpop.eup %7761  ;;  %2322 = vadd.xlane.f32.xlu1 %v2321_v8 }
 0x4fa   : > { %v7764_v18 = vpop.eup %7763  ;;  %v2312_v24 = vsel %vm2252_vm2, %v8734_v15, 0.0 }
 0x4fb   : > { %v8738_v28 = vpop.eup %7765  ;;  %2313 = vadd.xlane.f32.xlu0 %v2312_v24  ;;  %v2324_v21 = vsel %vm2265_vm3, %v7764_v18, 0.0  ;;  %v9667_v24 = vmov 0.0  }
 0x4fc   : > { %v2315_v56 = vsel %vm2252_vm2, %v8738_v28, 0.0  ;;  %v7768_v34 = vpop.eup %7767 }
 0x4fd   : > { %2316 = vadd.xlane.f32.xlu1 %v2315_v56  ;;  %v2327_v41 = vsel %vm2265_vm3, %v7768_v34, 0.0 }
 0x4ff   : > { %2325 = vadd.xlane.f32.xlu0 %v2324_v21 }
 0x501   : > { %2328 = vadd.xlane.f32.xlu1 %v2327_v41 }
 0x512   : > { %2534 = vrot.lane.b32.xlu1 %v8590_v30, %s8185_s14 }
 0x515   : > { %2537 = vrot.lane.b32.xlu0 %v6787_v43, %s8185_s14 }
 0x516   : > { %2590 = vrot.lane.b32.xlu1 %v6788_v49, %s8185_s14 }
 0x519   : > { %2587 = vrot.lane.b32.xlu0 %v8598_v10, %s8185_s14 }
 0x51a   : > { %2640 = vrot.lane.b32.xlu1 %v8612_v25, %s8185_s14 }
 0x51e   : > { %2687 = vrot.lane.b32.xlu1 %v8620_v36, %s8185_s14 }
 0x580   : > { %v2308_v30 = vpop.xlane.xlu0 %2307 }
 0x582   : > { %v2311_v53 = vpop.xlane.xlu1 %2310 }
 0x584   : > { %v2320_v57 = vpop.xlane.xlu0 %2319 }
 0x585   : > { %v2330_v6 = vadd.f32 %v2320_v57, %v2308_v30  ;;  %v2490_v30 = vsel %vm2441_vm4, %v8711_v44, 0 }
 0x586   : > { %v2323_v46 = vpop.xlane.xlu1 %2322 }
 0x587   : > { %7769 = vrcp.f32 %v2330_v6  ;;  %v2331_v13 = vadd.f32 %v2323_v46, %v2311_v53 }
 0x588   : > { %v2314_v0 = vpop.xlane.xlu0 %2313 }
 0x589   : > { %7771 = vrcp.f32 %v2331_v13 }
 0x58a   : > { %v2317_v55 = vpop.xlane.xlu1 %2316 }
 0x58c   : > { %v2326_v59 = vpop.xlane.xlu0 %2325 }
 0x58d   : > { %v2332_v62 = vadd.f32 %v2326_v59, %v2314_v0 }
 0x58e   : > { %v2329_v54 = vpop.xlane.xlu1 %2328 }
 0x58f   : > { %7773 = vrcp.f32 %v2332_v62  ;;  %v2333_v10 = vadd.f32 %v2329_v54, %v2317_v55 }
 0x590   : > { %v2538_v53 = vpop.permute.xlu0 %2537 }
 0x591   : > { %v7770_v19 = vpop.eup %7769  ;;  %7775 = vrcp.f32 %v2333_v10 }
 0x592   : > { %v2344_v16 = vmul.f32 %v7770_v19, %v7756_v42  ;;  %v2535_v43 = vpop.permute.xlu1 %2534  ;;  %v2338_v49 = vmul.f32 %v7770_v19, %v8724_v3 }
 0x593   : > { %v7772_v25 = vpop.eup %7771 }
 0x594   : > { %v2345_v36 = vmul.f32 %v7772_v25, %v7760_v50  ;;  %v2339_v42 = vmul.f32 %v7772_v25, %v8728_v5 }
 0x596   : > { %v2348_v40 = vpack.c.bf16 %v2345_v36, %v2344_v16  ;;  %v2342_v57 = vpack.c.bf16 %v2339_v42, %v2338_v49 }
 0x598   : > { %7008 = vmatmul.mubr.msk.bf16.vlgmr.msra.gmra.mrb[40].mxu0 %vm2265_vm3, %v2348_v40 }
 0x599   : > { %v7774_v8 = vpop.eup %7773  ;;  %7018 = vmatpush3.bf16.msra.mxu0 %v2443_v58  ;;  %7019 = vmatprep.mubr.msk.bf16.mxu0 %vm8184_vm0, %v9667_v24 }
 0x59a   : > { %7029 = vmatprep.subr.bf16.mxu0 %v9667_v24  ;;  %v2346_v21 = vmul.f32 %v7774_v8, %v7764_v18  ;;  %v2591_v18 = vpop.permute.xlu1 %2590  ;;  %v2340_v5 = vmul.f32 %v7774_v8, %v8734_v15 }
 0x59b   : > { %v7776_v56 = vpop.eup %7775  ;;  %v2596_v13 = vsel %vm2069_vm1, %v2591_v18, 0 }
 0x59c   : > { %v2347_v41 = vmul.f32 %v7776_v56, %v7768_v34  ;;  %v2543_v34 = vsel %vm2069_vm1, %v2538_v53, 0  ;;  %v2341_v3 = vmul.f32 %v7776_v56, %v8738_v28  ;;  %v2588_v28 = vpop.permute.xlu0 %2587 }
 0x59e   : > { %v2349_v50 = vpack.c.bf16 %v2347_v41, %v2346_v21  ;;  %v2641_v6 = vpop.permute.xlu1 %2640  ;;  %v2343_v46 = vpack.c.bf16 %v2341_v3, %v2340_v5 }
 0x59f   : > { %v2643_v0 = vsel %vm2069_vm1, %v2641_v6, 0 }
 0x5a0   : > { %7014 = vmatmul.mubr.msk.bf16.vlgmr.msra.gmra.mrb[40].mxu1 %vm2265_vm3, %v2349_v50 }
 0x5a1   : > { %7024 = vmatpush3.bf16.msra.mxu1 %v2490_v30  ;;  %7025 = vmatprep.mubr.msk.bf16.mxu1 %vm8184_vm0, %v9667_v24 }
 0x5a2   : > { %7035 = vmatprep.subr.bf16.mxu1 %v9667_v24  ;;  %v2688_v15 = vpop.permute.xlu1 %2687 }
 0x5a3   : > { %v2690_v55 = vsel %vm2069_vm1, %v2688_v15, 0 }
 0x5a4   : > { %7020 = vmatmul.mubr.msk.bf16.vlgmr.msra.gmra.mrb[40].mxu0 %vm2252_vm2, %v2342_v57 }
 0x5a5   : > { %7030 = vmatpush3.bf16.xpose.msra.mxu0 %v2543_v34  ;;  %7031 = vmatprep.mubr.msk.bf16.mxu0 %vm8184_vm0, %v9667_v24 }
 0x5a6   : > { %7041 = vmatprep.subr.bf16.mxu0 %v9667_v24 }
 0x5ac   : > { %7026 = vmatmul.mubr.msk.bf16.vlgmr.msra.gmra.mrb[40].mxu1 %vm2252_vm2, %v2343_v46  ;;  %7032 = vmatmul.mubr.msk.bf16.vlgmr.msra.gmra.mrb[44].mxu0 %vm2069_vm1, %v2535_v43 }
 0x5ad   : > { %7036 = vmatpush3.bf16.xpose.msra.mxu1 %v2596_v13  ;;  %7042 = vmatpush3.bf16.xpose.msra.mxu0 %v2643_v0 }
 0x5ae   : > { %7037 = vmatprep.mubr.msk.bf16.mxu1 %vm8184_vm0, %v9667_v24  ;;  %7043 = vmatprep.mubr.msk.bf16.mxu0 %vm8184_vm0, %v9667_v24 }
 0x5af   : > { %7047 = vmatprep.subr.bf16.mxu1 %v9667_v24  ;;  %7053 = vmatprep.subr.bf16.mxu0 %v9667_v24 }
 0x5b4   : > { %7038 = vmatmul.mubr.msk.bf16.vlgmr.msra.gmra.mrb[44].mxu1 %vm2069_vm1, %v2588_v28  ;;  %7044 = vmatmul.mubr.msk.bf16.vlgmr.msra.gmra.mrb[48].mxu0 %vm2069_vm1, %v2535_v43 }
 0x5b5   : > { %7048 = vmatpush3.bf16.xpose.msra.mxu1 %v2690_v55  ;;  %7049 = vmatprep.mubr.msk.bf16.mxu1 %vm8184_vm0, %v9667_v24 }
 0x5b6   : > { %7059 = vmatprep.subr.bf16.mxu1 %v9667_v24  ;;  %7055 = vmatprep.mubr.msk.bf16.mxu0 %vm8184_vm0, %v9667_v24 }
 0x5bc   : > { %7050 = vmatmul.mubr.msk.bf16.vlgmr.msra.gmra.mrb[48].mxu1 %vm2069_vm1, %v2588_v28 }
 0x5bd   : > { %7061 = vmatprep.mubr.msk.bf16.mxu1 %vm8184_vm0, %v9667_v24 }
 0x677   : > { %v8800_v59 = vpop.f32.mrb[40].mxu0 }
 0x678   : > { %v7021_v62 = vpop.f32.mrb[41].mxu0 }
 0x679   : > { %v8802_v54 = vpop.f32.mrb[42].mxu0 }
 0x67a   : > { %v7022_v10 = vpop.f32.mrb[43].mxu0 }
 0x67f   : > { %v8804_v19 = vpop.f32.mrb[40].mxu1  ;;  %v2579_v25 = vpop.f32.mrb[44].mxu0 }
 0x680   : > { %v7027_v16 = vpop.f32.mrb[41].mxu1  ;;  %v7033_v36 = vpop.f32.mrb[45].mxu0  ;;  %v2733_v40 = vsel %vm2252_vm2, %v2579_v25, -inf }
 0x681   : > { %2734 = vmax.xlane.f32.xlu0 %v2733_v40  ;;  %v8807_v58 = vpop.f32.mrb[42].mxu1  ;;  %v2582_v8 = vpop.f32.mrb[46].mxu0 }
 0x682   : > { %v7028_v56 = vpop.f32.mrb[43].mxu1  ;;  %v7034_v21 = vpop.f32.mrb[47].mxu0  ;;  %v2736_v41 = vsel %vm2252_vm2, %v2582_v8, -inf }
 0x683   : > { %2737 = vmax.xlane.f32.xlu1 %v2736_v41 }
 0x687   : > { %v2632_v43 = vpop.f32.mrb[44].mxu1  ;;  %v2679_v42 = vpop.f32.mrb[48].mxu0 }
 0x688   : > { %v7039_v50 = vpop.f32.mrb[45].mxu1  ;;  %v7045_v49 = vpop.f32.mrb[49].mxu0  ;;  %v2745_v30 = vsel %vm2265_vm3, %v2679_v42, -inf  ;;  %v2739_v13 = vsel %vm2252_vm2, %v2632_v43, -inf }
 0x689   : > { %2746 = vmax.xlane.f32.xlu0 %v2745_v30  ;;  %v8811_v53 = vpop.f32.mrb[46].mxu1  ;;  %v2682_v57 = vpop.f32.mrb[50].mxu0 }
 0x68a   : > { %v7040_v18 = vpop.f32.mrb[47].mxu1  ;;  %v7046_v34 = vpop.f32.mrb[51].mxu0  ;;  %v2742_v3 = vsel %vm2252_vm2, %v8811_v53, -inf  ;;  %v2748_v5 = vsel %vm2265_vm3, %v2682_v57, -inf }
 0x68b   : > { %2743 = vmax.xlane.f32.xlu1 %v2742_v3 }
 0x68d   : > { %2749 = vmax.xlane.f32.xlu0 %v2748_v5 }
 0x68f   : > { %v2726_v6 = vpop.f32.mrb[48].mxu1 }
 0x690   : > { %v7051_v46 = vpop.f32.mrb[49].mxu1  ;;  %v2751_v55 = vsel %vm2265_vm3, %v2726_v6, -inf }
 0x691   : > { %2740 = vmax.xlane.f32.xlu0 %v2739_v13  ;;  %v2729_v0 = vpop.f32.mrb[50].mxu1 }
 0x692   : > { %v7052_v15 = vpop.f32.mrb[51].mxu1  ;;  %v2754_v28 = vsel %vm2265_vm3, %v2729_v0, -inf }
 0x693   : > { %2755 = vmax.xlane.f32.xlu1 %v2754_v28 }
 0x695   : > { %2752 = vmax.xlane.f32.xlu0 %v2751_v55 }
 0x70e   : > { %v2735_v62 = vpop.xlane.xlu0 %2734 }
 0x710   : > { %v2738_v56 = vpop.xlane.xlu1 %2737 }
 0x716   : > { %v2747_v10 = vpop.xlane.xlu0 %2746 }
 0x717   : > { %v2757_v16 = vmax.f32 %v2735_v62, %v2747_v10 }
 0x719   : > { %v2761_v36 = vsub.f32 %v2579_v25, %v2757_v16  ;;  %v2773_v40 = vsub.f32 %v2679_v42, %v2757_v16 }
 0x71a   : > { %v2750_v21 = vpop.xlane.xlu0 %2749 }
 0x71b   : > { %v2765_v41 = vmul.f32 1.442695, %v2761_v36  ;;  %v2777_v50 = vmul.f32 1.442695, %v2773_v40  ;;  %v2758_v49 = vmax.f32 %v2738_v56, %v2750_v21 }
 0x71d   : > { %7777 = vpow2.f32 %v2765_v41  ;;  %v2762_v30 = vsub.f32 %v2582_v8, %v2758_v49  ;;  %v2774_v18 = vsub.f32 %v2682_v57, %v2758_v49  ;;  %v6789_v41 = vpack.c.bf16 %v8696_v32, %v8696_v32 }
 0x71e   : > { %v2741_v34 = vpop.xlane.xlu0 %2740  ;;  %7779 = vpow2.f32 %v2777_v50  ;;  %v2744_v50 = vpop.xlane.xlu1 %2743 }
 0x71f   : > { %v2767_v3 = vmul.f32 1.442695, %v2762_v30  ;;  %v2779_v5 = vmul.f32 1.442695, %v2774_v18 }
 0x721   : > { %7781 = vpow2.f32 %v2767_v3 }
 0x722   : > { %v2753_v46 = vpop.xlane.xlu0 %2752  ;;  %7783 = vpow2.f32 %v2779_v5  ;;  %v2756_v49 = vpop.xlane.xlu1 %2755 }
 0x723   : > { %v2759_v13 = vmax.f32 %v2741_v34, %v2753_v46  ;;  %v2760_v30 = vmax.f32 %v2744_v50, %v2756_v49 }
 0x725   : > { %v2763_v15 = vsub.f32 %v2632_v43, %v2759_v13  ;;  %v2775_v28 = vsub.f32 %v2726_v6, %v2759_v13  ;;  %v2764_v18 = vsub.f32 %v8811_v53, %v2760_v30  ;;  %v2776_v3 = vsub.f32 %v2729_v0, %v2760_v30 }
 0x727   : > { %v8819_v25 = vpop.eup %7777  ;;  %v2769_v42 = vmul.f32 1.442695, %v2763_v15  ;;  %v2781_v55 = vmul.f32 1.442695, %v2775_v28  ;;  %v2771_v34 = vmul.f32 1.442695, %v2764_v18 }
 0x728   : > { %v2785_v62 = vsel %vm2252_vm2, %v8819_v25, 0.0  ;;  %v7780_v10 = vpop.eup %7779  ;;  %v2783_v5 = vmul.f32 1.442695, %v2776_v3 }
 0x729   : > { %7785 = vpow2.f32 %v2769_v42  ;;  %2786 = vadd.xlane.f32.xlu0 %v2785_v62  ;;  %v2797_v57 = vsel %vm2265_vm3, %v7780_v10, 0.0 }
 0x72a   : > { %7787 = vpow2.f32 %v2781_v55 }
 0x72b   : > { %v8823_v8 = vpop.eup %7781  ;;  %7789 = vpow2.f32 %v2771_v34  ;;  %v3025_v34 = vrot.slane %v8649_v9, 4 }
 0x72c   : > { %v2788_v16 = vsel %vm2252_vm2, %v8823_v8, 0.0  ;;  %v7784_v43 = vpop.eup %7783  ;;  %7791 = vpow2.f32 %v2783_v5  ;;  %v3122_v5 = vsel %vm2069_vm1, %v8616_v29, 0 }
 0x72d   : > { %2798 = vadd.xlane.f32.xlu0 %v2797_v57  ;;  %2789 = vadd.xlane.f32.xlu1 %v2788_v16  ;;  %v2800_v6 = vsel %vm2265_vm3, %v7784_v43, 0.0  ;;  %v3030_v3 = vsel %vm2069_vm1, %v3025_v34, 0 }
 0x731   : > { %2801 = vadd.xlane.f32.xlu1 %v2800_v6 }
 0x733   : > { %v8829_v36 = vpop.eup %7785 }
 0x734   : > { %v2791_v40 = vsel %vm2252_vm2, %v8829_v36, 0.0  ;;  %v8833_v56 = vpop.eup %7787 }
 0x735   : > { %2792 = vadd.xlane.f32.xlu0 %v2791_v40  ;;  %v2803_v21 = vsel %vm2265_vm3, %v8833_v56, 0.0  ;;  %v8845_v46 = vpop.eup %7789 }
 0x736   : > { %v2794_v32 = vsel %vm2252_vm2, %v8845_v46, 0.0  ;;  %v7792_v13 = vpop.eup %7791 }
 0x739   : > { %2804 = vadd.xlane.f32.xlu0 %v2803_v21 }
 0x742   : > { %2926 = vrot.lane.b32.xlu1 %v6789_v41, %s8185_s14 }
 0x746   : > { %2878 = vrot.lane.b32.xlu1 %v8636_v60, %s8185_s14  ;;  %v2806_v60 = vsel %vm2265_vm3, %v7792_v13, 0.0 }
 0x74f   : > { %2830 = vrot.lane.b32.xlu0 %v8628_v47, %s8185_s14  ;;  %v6790_v47 = vpack.c.bf16 %v8706_v38, %v8706_v38 }
 0x76a   : > { %2795 = vadd.xlane.f32.xlu1 %v2794_v32 }
 0x76e   : > { %2807 = vadd.xlane.f32.xlu1 %v2806_v60 }
 0x77f   : > { %2976 = vrot.lane.b32.xlu1 %v6790_v47, %s8185_s14 }
 0x7b6   : > { %v2787_v53 = vpop.xlane.xlu0 %2786 }
 0x7ba   : > { %v2799_v0 = vpop.xlane.xlu0 %2798  ;;  %v2790_v15 = vpop.xlane.xlu1 %2789 }
 0x7bb   : > { %v2809_v28 = vadd.f32 %v2799_v0, %v2787_v53 }
 0x7bd   : > { %7793 = vrcp.f32 %v2809_v28 }
 0x7be   : > { %v2802_v42 = vpop.xlane.xlu1 %2801 }
 0x7bf   : > { %v2810_v55 = vadd.f32 %v2802_v42, %v2790_v15 }
 0x7c1   : > { %7795 = vrcp.f32 %v2810_v55 }
 0x7c2   : > { %v2793_v62 = vpop.xlane.xlu0 %2792  ;;  %v2927_v57 = vpop.permute.xlu1 %2926 }
 0x7c3   : > { %v2932_v30 = vsel %vm2441_vm4, %v2927_v57, 0  ;;  %v3073_v57 = vrot.slane %v8659_v20, 4 }
 0x7c6   : > { %v2805_v16 = vpop.xlane.xlu0 %2804  ;;  %v2879_v6 = vpop.permute.xlu1 %2878 }
 0x7c7   : > { %7060 = vmatpush3.bf16.msra.mxu1 %v2879_v6  ;;  %v7794_v40 = vpop.eup %7793  ;;  %v3166_v6 = vsel %vm2069_vm1, %v8624_v39, 0 }
 0x7c8   : > { %7071 = vmatprep.subr.bf16.mxu1 %v9667_v24  ;;  %v2823_v41 = vmul.f32 %v7794_v40, %v7780_v10  ;;  %v2817_v10 = vmul.f32 %v7794_v40, %v8819_v25 }
 0x7ca   : > { %v2831_v21 = vpop.permute.xlu0 %2830 }
 0x7cb   : > { %v7796_v38 = vpop.eup %7795  ;;  %7054 = vmatpush3.bf16.msra.mxu0 %v2831_v21 }
 0x7cc   : > { %v2824_v50 = vmul.f32 %v7796_v38, %v7784_v43  ;;  %7065 = vmatprep.subr.bf16.mxu0 %v9667_v24  ;;  %v2818_v18 = vmul.f32 %v7796_v38, %v8823_v8  ;;  %v2811_v8 = vadd.f32 %v2805_v16, %v2793_v62 }
 0x7ce   : > { %v2827_v49 = vpack.c.bf16 %v2824_v50, %v2823_v41  ;;  %v2821_v43 = vpack.c.bf16 %v2818_v18, %v2817_v10  ;;  %7797 = vrcp.f32 %v2811_v8 }
 0x7d0   : > { %7056 = vmatmul.mubr.msk.bf16.vlgmr.msra.gmra.mrb[52].mxu0 %vm2265_vm3, %v2827_v49 }
 0x7d1   : > { %7066 = vmatpush3.bf16.msra.mxu0 %v2932_v30  ;;  %7067 = vmatprep.mubr.msk.bf16.mxu0 %vm8184_vm0, %v9667_v24 }
 0x7d2   : > { %7077 = vmatprep.subr.bf16.mxu0 %v9667_v24 }
 0x7d8   : > { %v7798_v47 = vpop.eup %7797 }
 0x7d9   : > { %v2825_v0 = vmul.f32 %v7798_v47, %v8833_v56  ;;  %v2819_v16 = vmul.f32 %v7798_v47, %v8829_v36 }
 0x7dc   : > { %7068 = vmatmul.mubr.msk.bf16.vlgmr.msra.gmra.mrb[52].mxu0 %vm2252_vm2, %v2821_v43 }
 0x7dd   : > { %7078 = vmatpush3.bf16.xpose.msra.mxu0 %v3030_v3  ;;  %7079 = vmatprep.mubr.msk.bf16.mxu0 %vm8184_vm0, %v9667_v24 }
 0x7de   : > { %7089 = vmatprep.subr.bf16.mxu0 %v9667_v24 }
 0x7e4   : > { %7080 = vmatmul.mubr.msk.bf16.vlgmr.msra.gmra.mrb[56].mxu0 %vm2069_vm1, %v8594_v2 }
 0x7e5   : > { %7090 = vmatpush3.bf16.xpose.msra.mxu0 %v3122_v5  ;;  %7091 = vmatprep.mubr.msk.bf16.mxu0 %vm8184_vm0, %v9667_v24 }
 0x7e6   : > { %7101 = vmatprep.subr.bf16.mxu0 %v9667_v24 }
 0x7ec   : > { %7092 = vmatmul.mubr.msk.bf16.vlgmr.msra.gmra.mrb[60].mxu0 %vm2069_vm1, %v8594_v2 }
 0x7ed   : > { %7102 = vmatpush3.bf16.msra.mxu0 %v8632_v51  ;;  %7103 = vmatprep.mubr.msk.bf16.mxu0 %vm8184_vm0, %v9667_v24 }
 0x7ee   : > { %7113 = vmatprep.subr.bf16.mxu0 %v9667_v24 }
 0x7f7   : > { %v2796_v25 = vpop.xlane.xlu1 %2795 }
 0x7fb   : > { %v2808_v32 = vpop.xlane.xlu1 %2807 }
 0x7fc   : > { %v2812_v60 = vadd.f32 %v2808_v32, %v2796_v25 }
 0x7fe   : > { %7799 = vrcp.f32 %v2812_v60 }
 0x7ff   : > { %v2977_v28 = vpop.permute.xlu1 %2976 }
 0x800   : > { %v2982_v55 = vsel %vm2441_vm4, %v2977_v28, 0 }
 0x808   : > { %v7800_v53 = vpop.eup %7799 }
 0x809   : > { %v2826_v15 = vmul.f32 %v7800_v53, %v7792_v13  ;;  %v2820_v62 = vmul.f32 %v7800_v53, %v8845_v46  ;;  %v3078_v13 = vsel %vm2069_vm1, %v3073_v57, 0 }
 0x80b   : > { %v2828_v42 = vpack.c.bf16 %v2826_v15, %v2825_v0  ;;  %v2822_v56 = vpack.c.bf16 %v2820_v62, %v2819_v16 }
 0x80d   : > { %7062 = vmatmul.mubr.msk.bf16.vlgmr.msra.gmra.mrb[52].mxu1 %vm2265_vm3, %v2828_v42 }
 0x80e   : > { %7072 = vmatpush3.bf16.msra.mxu1 %v2982_v55  ;;  %7073 = vmatprep.mubr.msk.bf16.mxu1 %vm8184_vm0, %v9667_v24 }
 0x80f   : > { %7083 = vmatprep.subr.bf16.mxu1 %v9667_v24 }
 0x819   : > { %7074 = vmatmul.mubr.msk.bf16.vlgmr.msra.gmra.mrb[52].mxu1 %vm2252_vm2, %v2822_v56 }
 0x81a   : > { %7084 = vmatpush3.bf16.xpose.msra.mxu1 %v3078_v13  ;;  %7085 = vmatprep.mubr.msk.bf16.mxu1 %vm8184_vm0, %v9667_v24 }
 0x81b   : > { %7095 = vmatprep.subr.bf16.mxu1 %v9667_v24 }
 0x821   : > { %7086 = vmatmul.mubr.msk.bf16.vlgmr.msra.gmra.mrb[56].mxu1 %vm2069_vm1, %v8602_v14 }
 0x822   : > { %7096 = vmatpush3.bf16.xpose.msra.mxu1 %v3166_v6  ;;  %7097 = vmatprep.mubr.msk.bf16.mxu1 %vm8184_vm0, %v9667_v24 }
 0x823   : > { %7107 = vmatprep.subr.bf16.mxu1 %v9667_v24 }
 0x829   : > { %7098 = vmatmul.mubr.msk.bf16.vlgmr.msra.gmra.mrb[60].mxu1 %vm2069_vm1, %v8602_v14 }
 0x82a   : > { %7108 = vmatpush3.bf16.msra.mxu1 %v8640_v1  ;;  %7109 = vmatprep.mubr.msk.bf16.mxu1 %vm8184_vm0, %v9667_v24 }
 0x82b   : > { %7119 = vmatprep.subr.bf16.mxu1 %v9667_v24 }
 0x8af   : > { %v8908_v36 = vpop.f32.mrb[52].mxu0 }
 0x8b0   : > { %v7069_v46 = vpop.f32.mrb[53].mxu0 }
 0x8b1   : > { %v8910_v40 = vpop.f32.mrb[54].mxu0 }
 0x8b2   : > { %v7530_v21 = vpack.i.bf16 %v8910_v40, %v8908_v36  ;;  %v7070_v38 = vpop.f32.mrb[55].mxu0 }
 0x8b7   : > { %v3066_v41 = vpop.f32.mrb[56].mxu0 }
 0x8b8   : > { %v7081_v50 = vpop.f32.mrb[57].mxu0  ;;  %v3209_v49 = vsel %vm2252_vm2, %v3066_v41, -inf }
 0x8b9   : > { %3210 = vmax.xlane.f32.xlu0 %v3209_v49  ;;  %v3069_v30 = vpop.f32.mrb[58].mxu0 }
 0x8ba   : > { %v7082_v18 = vpop.f32.mrb[59].mxu0  ;;  %v3212_v34 = vsel %vm2252_vm2, %v3069_v30, -inf }
 0x8bb   : > { %3213 = vmax.xlane.f32.xlu1 %v3212_v34 }
 0x8bf   : > { %v3158_v10 = vpop.f32.mrb[60].mxu0 }
 0x8c0   : > { %v7093_v43 = vpop.f32.mrb[61].mxu0  ;;  %v3221_v3 = vsel %vm2265_vm3, %v3158_v10, -inf }
 0x8c1   : > { %3222 = vmax.xlane.f32.xlu0 %v3221_v3  ;;  %v3161_v5 = vpop.f32.mrb[62].mxu0 }
 0x8c2   : > { %v7094_v25 = vpop.f32.mrb[63].mxu0  ;;  %v3224_v8 = vsel %vm2265_vm3, %v3161_v5, -inf }
 0x8c5   : > { %3225 = vmax.xlane.f32.xlu0 %v3224_v8 }
 0x8ec   : > { %v8918_v32 = vpop.f32.mrb[52].mxu1 }
 0x8ed   : > { %v7075_v60 = vpop.f32.mrb[53].mxu1 }
 0x8ee   : > { %v8920_v47 = vpop.f32.mrb[54].mxu1 }
 0x8ef   : > { %v7555_v53 = vpack.i.bf16 %v8920_v47, %v8918_v32  ;;  %v7076_v0 = vpop.f32.mrb[55].mxu1 }
 0x8f4   : > { %v3114_v15 = vpop.f32.mrb[56].mxu1 }
 0x8f5   : > { %v7087_v28 = vpop.f32.mrb[57].mxu1  ;;  %v3215_v42 = vsel %vm2252_vm2, %v3114_v15, -inf }
 0x8f6   : > { %3216 = vmax.xlane.f32.xlu0 %v3215_v42  ;;  %v3117_v55 = vpop.f32.mrb[58].mxu1 }
 0x8f7   : > { %v7088_v62 = vpop.f32.mrb[59].mxu1  ;;  %v3218_v57 = vsel %vm2252_vm2, %v3117_v55, -inf }
 0x8f8   : > { %3219 = vmax.xlane.f32.xlu1 %v3218_v57 }
 0x8fc   : > { %v3202_v16 = vpop.f32.mrb[60].mxu1 }
 0x8fd   : > { %v7099_v56 = vpop.f32.mrb[61].mxu1  ;;  %v3227_v13 = vsel %vm2265_vm3, %v3202_v16, -inf }
 0x8fe   : > { %3228 = vmax.xlane.f32.xlu0 %v3227_v13  ;;  %v3205_v6 = vpop.f32.mrb[62].mxu1 }
 0x8ff   : > { %v7100_v46 = vpop.f32.mrb[63].mxu1  ;;  %v3230_v38 = vsel %vm2265_vm3, %v3205_v6, -inf }
 0x900   : > { %3231 = vmax.xlane.f32.xlu1 %v3230_v38 }
 0x946   : > { %v3211_v50 = vpop.xlane.xlu0 %3210 }
 0x948   : > { %v3214_v3 = vpop.xlane.xlu1 %3213 }
 0x94e   : > { %v3223_v49 = vpop.xlane.xlu0 %3222 }
 0x94f   : > { %v3233_v18 = vmax.f32 %v3211_v50, %v3223_v49 }
 0x951   : > { %v3237_v34 = vsub.f32 %v3066_v41, %v3233_v18  ;;  %v3249_v43 = vsub.f32 %v3158_v10, %v3233_v18 }
 0x952   : > { %v3226_v25 = vpop.xlane.xlu0 %3225 }
 0x953   : > { %v3241_v8 = vmul.f32 1.442695, %v3237_v34  ;;  %v3253_v60 = vmul.f32 1.442695, %v3249_v43  ;;  %v3234_v0 = vmax.f32 %v3214_v3, %v3226_v25 }
 0x955   : > { %7801 = vpow2.f32 %v3241_v8  ;;  %v3238_v28 = vsub.f32 %v3069_v30, %v3234_v0  ;;  %v3250_v42 = vsub.f32 %v3161_v5, %v3234_v0 }
 0x956   : > { %7803 = vpow2.f32 %v3253_v60 }
 0x957   : > { %v3243_v62 = vmul.f32 1.442695, %v3238_v28  ;;  %v3255_v57 = vmul.f32 1.442695, %v3250_v42 }
 0x959   : > { %7805 = vpow2.f32 %v3243_v62 }
 0x95a   : > { %7807 = vpow2.f32 %v3255_v57 }
 0x95f   : > { %v8928_v56 = vpop.eup %7801 }
 0x960   : > { %v3261_v13 = vsel %vm2252_vm2, %v8928_v56, 0.0  ;;  %v7804_v41 = vpop.eup %7803 }
 0x961   : > { %3262 = vadd.xlane.f32.xlu0 %v3261_v13  ;;  %v3273_v46 = vsel %vm2265_vm3, %v7804_v41, 0.0 }
 0x963   : > { %v8932_v10 = vpop.eup %7805 }
 0x964   : > { %v3264_v30 = vsel %vm2252_vm2, %v8932_v10, 0.0  ;;  %v7808_v5 = vpop.eup %7807 }
 0x965   : > { %3274 = vadd.xlane.f32.xlu0 %v3273_v46  ;;  %3265 = vadd.xlane.f32.xlu1 %v3264_v30  ;;  %v3276_v38 = vsel %vm2265_vm3, %v7808_v5, 0.0 }
 0x969   : > { %3277 = vadd.xlane.f32.xlu1 %v3276_v38 }
 0x983   : > { %v3217_v50 = vpop.xlane.xlu0 %3216 }
 0x985   : > { %v3220_v49 = vpop.xlane.xlu1 %3219 }
 0x98b   : > { %v3229_v18 = vpop.xlane.xlu0 %3228 }
 0x98c   : > { %v3235_v34 = vmax.f32 %v3217_v50, %v3229_v18 }
 0x98d   : > { %v3232_v43 = vpop.xlane.xlu1 %3231 }
 0x98e   : > { %v3239_v3 = vsub.f32 %v3114_v15, %v3235_v34  ;;  %v3251_v25 = vsub.f32 %v3202_v16, %v3235_v34  ;;  %v3236_v8 = vmax.f32 %v3220_v49, %v3232_v43 }
 0x990   : > { %v3245_v60 = vmul.f32 1.442695, %v3239_v3  ;;  %v3257_v0 = vmul.f32 1.442695, %v3251_v25  ;;  %v3240_v28 = vsub.f32 %v3117_v55, %v3236_v8  ;;  %v3252_v42 = vsub.f32 %v3205_v6, %v3236_v8 }
 0x992   : > { %7809 = vpow2.f32 %v3245_v60  ;;  %v3247_v62 = vmul.f32 1.442695, %v3240_v28  ;;  %v3259_v57 = vmul.f32 1.442695, %v3252_v42 }
 0x993   : > { %7811 = vpow2.f32 %v3257_v0 }
 0x994   : > { %7813 = vpow2.f32 %v3247_v62 }
 0x995   : > { %7815 = vpow2.f32 %v3259_v57 }
 0x99c   : > { %v8938_v13 = vpop.eup %7809 }
 0x99d   : > { %v7812_v46 = vpop.eup %7811  ;;  %v3267_v30 = vsel %vm2252_vm2, %v8938_v13, 0.0 }
 0x99e   : > { %v8942_v38 = vpop.eup %7813  ;;  %3268 = vadd.xlane.f32.xlu0 %v3267_v30  ;;  %v3279_v16 = vsel %vm2265_vm3, %v7812_v46, 0.0 }
 0x99f   : > { %v3270_v15 = vsel %vm2252_vm2, %v8942_v38, 0.0  ;;  %v7816_v55 = vpop.eup %7815 }
 0x9a0   : > { %3271 = vadd.xlane.f32.xlu1 %v3270_v15  ;;  %v3282_v6 = vsel %vm2265_vm3, %v7816_v55, 0.0 }
 0x9a2   : > { %3280 = vadd.xlane.f32.xlu0 %v3279_v16 }
 0x9a4   : > { %3283 = vadd.xlane.f32.xlu1 %v3282_v6 }
 0x9b5   : > { %3542 = vrot.lane.b32.xlu1 %v8659_v20, %s8185_s14 }
 0x9b8   : > { %3489 = vrot.lane.b32.xlu0 %v8649_v9, %s8185_s14 }
 0x9b9   : > { %3493 = vrot.lane.b32.xlu1 %v8594_v2, %s8185_s14  ;;  %v3393_v2 = vrot.slane %v8701_v35, 4 }
 0x9bc   : > { %3546 = vrot.lane.b32.xlu0 %v8602_v14, %s8185_s14 }
 0x9bd   : > { %3596 = vrot.lane.b32.xlu1 %v8616_v29, %s8185_s14  ;;  %v3398_v29 = vsel %vm2441_vm4, %v3393_v2, 0 }
 0x9c1   : > { %3643 = vrot.lane.b32.xlu1 %v8624_v39, %s8185_s14 }
 0x9ee   : > { %v3263_v50 = vpop.xlane.xlu0 %3262 }
 0x9f2   : > { %v3275_v49 = vpop.xlane.xlu0 %3274  ;;  %v3266_v18 = vpop.xlane.xlu1 %3265 }
 0x9f3   : > { %v3285_v34 = vadd.f32 %v3275_v49, %v3263_v50 }
 0x9f5   : > { %7817 = vrcp.f32 %v3285_v34  ;;  %v3441_v34 = vrot.slane %v8711_v44, 4 }
 0x9f6   : > { %v3278_v20 = vpop.xlane.xlu1 %3277 }
 0x9f7   : > { %v3286_v43 = vadd.f32 %v3278_v20, %v3266_v18 }
 0x9f9   : > { %7819 = vrcp.f32 %v3286_v43 }
 0x9ff   : > { %v7818_v9 = vpop.eup %7817 }
 0xa00   : > { %v3299_v25 = vmul.f32 %v7818_v9, %v7804_v41  ;;  %v3293_v60 = vmul.f32 %v7818_v9, %v8928_v56 }
 0xa03   : > { %v7820_v3 = vpop.eup %7819 }
 0xa04   : > { %v3300_v14 = vmul.f32 %v7820_v3, %v7808_v5  ;;  %v3294_v39 = vmul.f32 %v7820_v3, %v8932_v10  ;;  %v3446_v3 = vsel %vm2441_vm4, %v3441_v34, 0 }
 0xa06   : > { %v3303_v8 = vpack.c.bf16 %v3300_v14, %v3299_v25  ;;  %v3297_v0 = vpack.c.bf16 %v3294_v39, %v3293_v60 }
 0xa08   : > { %7104 = vmatmul.mubr.msk.bf16.vlgmr.msra.gmra.mrb[64].mxu0 %vm2265_vm3, %v3303_v8 }
 0xa09   : > { %7114 = vmatpush3.bf16.msra.mxu0 %v3398_v29  ;;  %7115 = vmatprep.mubr.msk.bf16.mxu0 %vm8184_vm0, %v9667_v24 }
 0xa0a   : > { %7125 = vmatprep.subr.bf16.mxu0 %v9667_v24 }
 0xa14   : > { %7116 = vmatmul.mubr.msk.bf16.vlgmr.msra.gmra.mrb[64].mxu0 %vm2252_vm2, %v3297_v0 }
 0xa15   : > { %7127 = vmatprep.mubr.msk.bf16.mxu0 %vm8184_vm0, %v9667_v24 }
 0xa2b   : > { %v3269_v41 = vpop.xlane.xlu0 %3268 }
 0xa2d   : > { %v3272_v5 = vpop.xlane.xlu1 %3271 }
 0xa2f   : > { %v3281_v28 = vpop.xlane.xlu0 %3280 }
 0xa30   : > { %v3287_v42 = vadd.f32 %v3281_v28, %v3269_v41 }
 0xa31   : > { %v3284_v62 = vpop.xlane.xlu1 %3283 }
 0xa32   : > { %7821 = vrcp.f32 %v3287_v42  ;;  %v3288_v57 = vadd.f32 %v3284_v62, %v3272_v5 }
 0xa33   : > { %v3490_v30 = vpop.permute.xlu0 %3489 }
 0xa34   : > { %7823 = vrcp.f32 %v3288_v57  ;;  %v3491_v15 = vrot.slane %v3490_v30, 4 }
 0xa35   : > { %v3543_v16 = vpop.permute.xlu1 %3542 }
 0xa36   : > { %v3499_v10 = vsel %vm2069_vm1, %v3491_v15, 0  ;;  %v3544_v2 = vrot.slane %v3543_v16, 4 }
 0xa37   : > { %7126 = vmatpush3.bf16.xpose.msra.mxu0 %v3499_v10  ;;  %v3547_v29 = vpop.permute.xlu0 %3546 }
 0xa38   : > { %7137 = vmatprep.subr.bf16.mxu0 %v9667_v24  ;;  %v3552_v14 = vsel %vm2069_vm1, %v3544_v2, 0 }
 0xa39   : > { %v3494_v56 = vpop.permute.xlu1 %3493 }
 0xa3c   : > { %v7822_v6 = vpop.eup %7821 }
 0xa3d   : > { %v3597_v50 = vpop.permute.xlu1 %3596  ;;  %v3301_v20 = vmul.f32 %v7822_v6, %v7812_v46 }
 0xa3e   : > { %v7824_v49 = vpop.eup %7823  ;;  %v3599_v18 = vsel %vm2069_vm1, %v3597_v50, 0  ;;  %7128 = vmatmul.mubr.msk.bf16.vlgmr.msra.gmra.mrb[68].mxu0 %vm2069_vm1, %v3494_v56 }
 0xa3f   : > { %v3302_v43 = vmul.f32 %v7824_v49, %v7816_v55  ;;  %7138 = vmatpush3.bf16.xpose.msra.mxu0 %v3599_v18  ;;  %7139 = vmatprep.mubr.msk.bf16.mxu0 %vm8184_vm0, %v9667_v24  ;;  %v3296_v46 = vmul.f32 %v7824_v49, %v8942_v38  ;;  %v3295_v55 = vmul.f32 %v7822_v6, %v8938_v13 }
 0xa40   : > { %7149 = vmatprep.subr.bf16.mxu0 %v9667_v24 }
 0xa41   : > { %v3304_v9 = vpack.c.bf16 %v3302_v43, %v3301_v20  ;;  %v3298_v25 = vpack.c.bf16 %v3296_v46, %v3295_v55  ;;  %v3644_v8 = vpop.permute.xlu1 %3643 }
 0xa42   : > { %v3646_v39 = vsel %vm2069_vm1, %v3644_v8, 0 }
 0xa43   : > { %7110 = vmatmul.mubr.msk.bf16.vlgmr.msra.gmra.mrb[64].mxu1 %vm2265_vm3, %v3304_v9 }
 0xa44   : > { %7120 = vmatpush3.bf16.msra.mxu1 %v3446_v3  ;;  %7121 = vmatprep.mubr.msk.bf16.mxu1 %vm8184_vm0, %v9667_v24 }
 0xa45   : > { %7131 = vmatprep.subr.bf16.mxu1 %v9667_v24 }
 0xa46   : > { %7140 = vmatmul.mubr.msk.bf16.vlgmr.msra.gmra.mrb[72].mxu0 %vm2069_vm1, %v3494_v56 }
 0xa47   : > { %7151 = vmatprep.mubr.msk.bf16.mxu0 %vm8184_vm0, %v9667_v24 }
 0xa4f   : > { %7122 = vmatmul.mubr.msk.bf16.vlgmr.msra.gmra.mrb[64].mxu1 %vm2252_vm2, %v3298_v25 }
 0xa50   : > { %7132 = vmatpush3.bf16.xpose.msra.mxu1 %v3552_v14  ;;  %7133 = vmatprep.mubr.msk.bf16.mxu1 %vm8184_vm0, %v9667_v24 }
 0xa51   : > { %7143 = vmatprep.subr.bf16.mxu1 %v9667_v24 }
 0xa57   : > { %7134 = vmatmul.mubr.msk.bf16.vlgmr.msra.gmra.mrb[68].mxu1 %vm2069_vm1, %v3547_v29 }
 0xa58   : > { %7144 = vmatpush3.bf16.xpose.msra.mxu1 %v3646_v39  ;;  %7145 = vmatprep.mubr.msk.bf16.mxu1 %vm8184_vm0, %v9667_v24 }
 0xa59   : > { %7155 = vmatprep.subr.bf16.mxu1 %v9667_v24 }
 0xa5f   : > { %7146 = vmatmul.mubr.msk.bf16.vlgmr.msra.gmra.mrb[72].mxu1 %vm2069_vm1, %v3547_v29 }
 0xa60   : > { %7157 = vmatprep.mubr.msk.bf16.mxu1 %vm8184_vm0, %v9667_v24 }
 0xae7   : > { %v9002_v13 = vpop.f32.mrb[64].mxu0 }
 0xae8   : > { %v7117_v38 = vpop.f32.mrb[65].mxu0 }
 0xae9   : > { %v9004_v60 = vpop.f32.mrb[66].mxu0 }
 0xaea   : > { %v7118_v0 = vpop.f32.mrb[67].mxu0 }
 0xb11   : > { %v3535_v41 = vpop.f32.mrb[68].mxu0 }
 0xb12   : > { %v7129_v5 = vpop.f32.mrb[69].mxu0  ;;  %v3689_v28 = vsel %vm2252_vm2, %v3535_v41, -inf }
 0xb13   : > { %3690 = vmax.xlane.f32.xlu0 %v3689_v28  ;;  %v3538_v42 = vpop.f32.mrb[70].mxu0 }
 0xb14   : > { %v7130_v62 = vpop.f32.mrb[71].mxu0  ;;  %v3692_v57 = vsel %vm2252_vm2, %v3538_v42, -inf }
 0xb15   : > { %3693 = vmax.xlane.f32.xlu1 %v3692_v57 }
 0xb19   : > { %v3635_v30 = vpop.f32.mrb[72].mxu0 }
 0xb1a   : > { %v7141_v15 = vpop.f32.mrb[73].mxu0  ;;  %v3701_v16 = vsel %vm2265_vm3, %v3635_v30, -inf }
 0xb1b   : > { %3702 = vmax.xlane.f32.xlu0 %v3701_v16  ;;  %v3638_v10 = vpop.f32.mrb[74].mxu0 }
 0xb1c   : > { %v7142_v56 = vpop.f32.mrb[75].mxu0  ;;  %v3704_v6 = vsel %vm2265_vm3, %v3638_v10, -inf }
 0xb1f   : > { %3705 = vmax.xlane.f32.xlu0 %v3704_v6 }
 0xb22   : > { %v9010_v50 = vpop.f32.mrb[64].mxu1 }
 0xb23   : > { %v7123_v49 = vpop.f32.mrb[65].mxu1 }
 0xb24   : > { %v9012_v18 = vpop.f32.mrb[66].mxu1 }
 0xb25   : > { %v7124_v34 = vpop.f32.mrb[67].mxu1 }
 0xb2a   : > { %v3588_v20 = vpop.f32.mrb[68].mxu1 }
 0xb2b   : > { %v7135_v43 = vpop.f32.mrb[69].mxu1  ;;  %v3695_v9 = vsel %vm2252_vm2, %v3588_v20, -inf }
 0xb2c   : > { %3696 = vmax.xlane.f32.xlu0 %v3695_v9  ;;  %v9015_v3 = vpop.f32.mrb[70].mxu1 }
 0xb2d   : > { %v7136_v46 = vpop.f32.mrb[71].mxu1  ;;  %v3698_v55 = vsel %vm2252_vm2, %v9015_v3, -inf }
 0xb2e   : > { %3699 = vmax.xlane.f32.xlu1 %v3698_v55 }
 0xb32   : > { %v3682_v2 = vpop.f32.mrb[72].mxu1 }
 0xb33   : > { %v7147_v25 = vpop.f32.mrb[73].mxu1  ;;  %v3707_v14 = vsel %vm2265_vm3, %v3682_v2, -inf }
 0xb34   : > { %3708 = vmax.xlane.f32.xlu0 %v3707_v14  ;;  %v3685_v8 = vpop.f32.mrb[74].mxu1 }
 0xb35   : > { %v7148_v29 = vpop.f32.mrb[75].mxu1  ;;  %v3710_v39 = vsel %vm2265_vm3, %v3685_v8, -inf }
 0xb36   : > { %3711 = vmax.xlane.f32.xlu1 %v3710_v39 }
 0xba0   : > { %v3691_v38 = vpop.xlane.xlu0 %3690 }
 0xba2   : > { %v3694_v57 = vpop.xlane.xlu1 %3693 }
 0xba8   : > { %v3703_v0 = vpop.xlane.xlu0 %3702 }
 0xba9   : > { %v3713_v5 = vmax.f32 %v3691_v38, %v3703_v0 }
 0xbab   : > { %v3717_v28 = vsub.f32 %v3535_v41, %v3713_v5  ;;  %v3729_v62 = vsub.f32 %v3635_v30, %v3713_v5 }
 0xbac   : > { %v3706_v15 = vpop.xlane.xlu0 %3705 }
 0xbad   : > { %v3721_v16 = vmul.f32 1.442695, %v3717_v28  ;;  %v3733_v56 = vmul.f32 1.442695, %v3729_v62  ;;  %v3714_v6 = vmax.f32 %v3694_v57, %v3706_v15 }
 0xbaf   : > { %7825 = vpow2.f32 %v3721_v16  ;;  %v3718_v49 = vsub.f32 %v3538_v42, %v3714_v6  ;;  %v3730_v34 = vsub.f32 %v3638_v10, %v3714_v6 }
 0xbb0   : > { %7827 = vpow2.f32 %v3733_v56 }
 0xbb1   : > { %v3723_v43 = vmul.f32 1.442695, %v3718_v49  ;;  %v3735_v9 = vmul.f32 1.442695, %v3730_v34 }
 0xbb3   : > { %7829 = vpow2.f32 %v3723_v43 }
 0xbb4   : > { %7831 = vpow2.f32 %v3735_v9 }
 0xbb9   : > { %v9021_v46 = vpop.eup %7825  ;;  %v3697_v25 = vpop.xlane.xlu0 %3696 }
 0xbba   : > { %v3741_v55 = vsel %vm2252_vm2, %v9021_v46, 0.0  ;;  %v7828_v41 = vpop.eup %7827 }
 0xbbb   : > { %3742 = vadd.xlane.f32.xlu0 %v3741_v55  ;;  %v3753_v14 = vsel %vm2265_vm3, %v7828_v41, 0.0 }
 0xbbd   : > { %v9025_v30 = vpop.eup %7829 }
 0xbbe   : > { %v3744_v42 = vsel %vm2252_vm2, %v9025_v30, 0.0  ;;  %v7832_v10 = vpop.eup %7831 }
 0xbbf   : > { %3754 = vadd.xlane.f32.xlu0 %v3753_v14  ;;  %3745 = vadd.xlane.f32.xlu1 %v3744_v42  ;;  %v3756_v38 = vsel %vm2265_vm3, %v7832_v10, 0.0 }
 0xbc1   : > { %v3709_v29 = vpop.xlane.xlu0 %3708 }
 0xbc2   : > { %v3715_v39 = vmax.f32 %v3697_v25, %v3709_v29 }
 0xbc3   : > { %3757 = vadd.xlane.f32.xlu1 %v3756_v38 }
 0xbc4   : > { %v3719_v0 = vsub.f32 %v3588_v20, %v3715_v39  ;;  %v3731_v5 = vsub.f32 %v3682_v2, %v3715_v39  ;;  %v3700_v20 = vpop.xlane.xlu1 %3699 }
 0xbc6   : > { %v3725_v28 = vmul.f32 1.442695, %v3719_v0  ;;  %v3737_v62 = vmul.f32 1.442695, %v3731_v5 }
 0xbc8   : > { %7833 = vpow2.f32 %v3725_v28  ;;  %v3712_v2 = vpop.xlane.xlu1 %3711 }
 0xbc9   : > { %7835 = vpow2.f32 %v3737_v62  ;;  %v3716_v6 = vmax.f32 %v3700_v20, %v3712_v2 }
 0xbcb   : > { %v3720_v49 = vsub.f32 %v9015_v3, %v3716_v6  ;;  %v3732_v43 = vsub.f32 %v3685_v8, %v3716_v6 }
 0xbcd   : > { %v3727_v34 = vmul.f32 1.442695, %v3720_v49  ;;  %v3739_v9 = vmul.f32 1.442695, %v3732_v43  ;;  %v4076_v43 = vsel %vm2069_vm1, %v8614_v26, 0 }
 0xbcf   : > { %7837 = vpow2.f32 %v3727_v34  ;;  %v3985_v34 = vsel %vm2069_vm1, %v8652_v12, 0 }
 0xbd0   : > { %7839 = vpow2.f32 %v3739_v9 }
 0xbd2   : > { %v9031_v57 = vpop.eup %7833 }
 0xbd3   : > { %v3747_v15 = vsel %vm2252_vm2, %v9031_v57, 0.0  ;;  %v9035_v16 = vpop.eup %7835 }
 0xbd4   : > { %3748 = vadd.xlane.f32.xlu0 %v3747_v15  ;;  %3881 = vrot.lane.b32.xlu1 %v8701_v35, %s8185_s14  ;;  %v3759_v56 = vsel %vm2265_vm3, %v9035_v16, 0.0 }
 0xbd8   : > { %3760 = vadd.xlane.f32.xlu0 %v3759_v56  ;;  %3834 = vrot.lane.b32.xlu1 %v8640_v1, %s8185_s14 }
 0xbd9   : > { %v9046_v35 = vpop.eup %7837 }
 0xbda   : > { %v3750_v55 = vsel %vm2252_vm2, %v9046_v35, 0.0  ;;  %v7840_v25 = vpop.eup %7839 }
 0xbdb   : > { %v3762_v1 = vsel %vm2265_vm3, %v7840_v25, 0.0 }
 0xbee   : > { %3786 = vrot.lane.b32.xlu0 %v8632_v51, %s8185_s14 }
 0xbfc   : > { %3751 = vadd.xlane.f32.xlu1 %v3750_v55 }
 0xc00   : > { %3763 = vadd.xlane.f32.xlu1 %v3762_v1 }
 0xc11   : > { %3931 = vrot.lane.b32.xlu1 %v8711_v44, %s8185_s14 }
 0xc48   : > { %v3743_v8 = vpop.xlane.xlu0 %3742 }
 0xc4c   : > { %v3746_v3 = vpop.xlane.xlu1 %3745  ;;  %v3755_v29 = vpop.xlane.xlu0 %3754 }
 0xc4d   : > { %v3765_v39 = vadd.f32 %v3755_v29, %v3743_v8 }
 0xc50   : > { %v3758_v14 = vpop.xlane.xlu1 %3757 }
 0xc51   : > { %v3766_v51 = vadd.f32 %v3758_v14, %v3746_v3 }
 0xc53   : > { %7841 = vrcp.f32 %v3766_v51 }
 0xc54   : > { %v3882_v42 = vpop.permute.xlu1 %3881  ;;  %7843 = vrcp.f32 %v3765_v39 }
 0xc55   : > { %v3883_v44 = vrot.slane %v3882_v42, 4 }
 0xc57   : > { %v3888_v6 = vsel %vm2441_vm4, %v3883_v44, 0 }
 0xc58   : > { %v3835_v38 = vpop.permute.xlu1 %3834 }
 0xc59   : > { %7156 = vmatpush3.bf16.msra.mxu1 %v3835_v38 }
 0xc5a   : > { %7167 = vmatprep.subr.bf16.mxu1 %v9667_v24 }
 0xc5d   : > { %v7842_v5 = vpop.eup %7841 }
 0xc5e   : > { %v7844_v62 = vpop.eup %7843  ;;  %v3780_v15 = vmul.f32 %v7842_v5, %v7832_v10  ;;  %v3774_v49 = vmul.f32 %v7842_v5, %v9025_v30 }
 0xc5f   : > { %v3779_v56 = vmul.f32 %v7844_v62, %v7828_v41  ;;  %v3773_v41 = vmul.f32 %v7844_v62, %v9021_v46 }
 0xc61   : > { %v3749_v0 = vpop.xlane.xlu0 %3748  ;;  %v3783_v2 = vpack.c.bf16 %v3780_v15, %v3779_v56  ;;  %v3777_v10 = vpack.c.bf16 %v3774_v49, %v3773_v41 }
 0xc65   : > { %v3761_v28 = vpop.xlane.xlu0 %3760 }
 0xc66   : > { %v3767_v30 = vadd.f32 %v3761_v28, %v3749_v0 }
 0xc68   : > { %7845 = vrcp.f32 %v3767_v30 }
 0xc69   : > { %v3787_v20 = vpop.permute.xlu0 %3786 }
 0xc6a   : > { %7150 = vmatpush3.bf16.msra.mxu0 %v3787_v20 }
 0xc6b   : > { %7161 = vmatprep.subr.bf16.mxu0 %v9667_v24 }
 0xc6d   : > { %7152 = vmatmul.mubr.msk.bf16.vlgmr.msra.gmra.mrb[76].mxu0 %vm2265_vm3, %v3783_v2 }
 0xc6e   : > { %7162 = vmatpush3.bf16.msra.mxu0 %v3888_v6  ;;  %7163 = vmatprep.mubr.msk.bf16.mxu0 %vm8184_vm0, %v9667_v24 }
 0xc6f   : > { %7173 = vmatprep.subr.bf16.mxu0 %v9667_v24 }
 0xc72   : > { %v7846_v1 = vpop.eup %7845 }
 0xc73   : > { %v3781_v14 = vmul.f32 %v7846_v1, %v9035_v16  ;;  %v3775_v0 = vmul.f32 %v7846_v1, %v9031_v57  ;;  %v4032_v16 = vsel %vm2069_vm1, %v8662_v22, 0 }
 0xc79   : > { %7164 = vmatmul.mubr.msk.bf16.vlgmr.msra.gmra.mrb[76].mxu0 %vm2252_vm2, %v3777_v10 }
 0xc7a   : > { %7174 = vmatpush3.bf16.xpose.msra.mxu0 %v3985_v34  ;;  %7175 = vmatprep.mubr.msk.bf16.mxu0 %vm8184_vm0, %v9667_v24 }
 0xc7b   : > { %7185 = vmatprep.subr.bf16.mxu0 %v9667_v24 }
 0xc81   : > { %7176 = vmatmul.mubr.msk.bf16.vlgmr.msra.gmra.mrb[80].mxu0 %vm2069_vm1, %v8592_v63 }
 0xc82   : > { %7186 = vmatpush3.bf16.xpose.msra.mxu0 %v4076_v43  ;;  %7187 = vmatprep.mubr.msk.bf16.mxu0 %vm8184_vm0, %v9667_v24 }
 0xc83   : > { %7197 = vmatprep.subr.bf16.mxu0 %v9667_v24 }
 0xc89   : > { %7188 = vmatmul.mubr.msk.bf16.vlgmr.msra.gmra.mrb[84].mxu0 %vm2069_vm1, %v8592_v63  ;;  %v3752_v46 = vpop.xlane.xlu1 %3751 }
 0xc8a   : > { %7198 = vmatpush3.bf16.msra.mxu0 %v8630_v48  ;;  %7199 = vmatprep.mubr.msk.bf16.mxu0 %vm8184_vm0, %v9667_v24 }
 0xc8b   : > { %7209 = vmatprep.subr.bf16.mxu0 %v9667_v24 }
 0xc8d   : > { %v3764_v9 = vpop.xlane.xlu1 %3763 }
 0xc8e   : > { %v3768_v55 = vadd.f32 %v3764_v9, %v3752_v46 }
 0xc90   : > { %7847 = vrcp.f32 %v3768_v55 }
 0xc91   : > { %v3932_v3 = vpop.permute.xlu1 %3931 }
 0xc92   : > { %v3933_v29 = vrot.slane %v3932_v3, 4 }
 0xc94   : > { %v3938_v39 = vsel %vm2441_vm4, %v3933_v29, 0 }
 0xc9a   : > { %v7848_v8 = vpop.eup %7847 }
 0xc9b   : > { %v3782_v42 = vmul.f32 %v7848_v8, %v7840_v25  ;;  %v3776_v38 = vmul.f32 %v7848_v8, %v9046_v35  ;;  %v4120_v25 = vsel %vm2069_vm1, %v8622_v37, 0 }
 0xc9d   : > { %v3784_v51 = vpack.c.bf16 %v3782_v42, %v3781_v14  ;;  %v3778_v5 = vpack.c.bf16 %v3776_v38, %v3775_v0 }
 0xc9f   : > { %7158 = vmatmul.mubr.msk.bf16.vlgmr.msra.gmra.mrb[76].mxu1 %vm2265_vm3, %v3784_v51 }
 0xca0   : > { %7168 = vmatpush3.bf16.msra.mxu1 %v3938_v39  ;;  %7169 = vmatprep.mubr.msk.bf16.mxu1 %vm8184_vm0, %v9667_v24 }
 0xca1   : > { %7179 = vmatprep.subr.bf16.mxu1 %v9667_v24 }
 0xcab   : > { %7170 = vmatmul.mubr.msk.bf16.vlgmr.msra.gmra.mrb[76].mxu1 %vm2252_vm2, %v3778_v5 }
 0xcac   : > { %7180 = vmatpush3.bf16.xpose.msra.mxu1 %v4032_v16  ;;  %7181 = vmatprep.mubr.msk.bf16.mxu1 %vm8184_vm0, %v9667_v24 }
 0xcad   : > { %7191 = vmatprep.subr.bf16.mxu1 %v9667_v24 }
 0xcb3   : > { %7182 = vmatmul.mubr.msk.bf16.vlgmr.msra.gmra.mrb[80].mxu1 %vm2069_vm1, %v8600_v11 }
 0xcb4   : > { %7192 = vmatpush3.bf16.xpose.msra.mxu1 %v4120_v25  ;;  %7193 = vmatprep.mubr.msk.bf16.mxu1 %vm8184_vm0, %v9667_v24 }
 0xcb5   : > { %7203 = vmatprep.subr.bf16.mxu1 %v9667_v24 }
 0xcbb   : > { %7194 = vmatmul.mubr.msk.bf16.vlgmr.msra.gmra.mrb[84].mxu1 %vm2069_vm1, %v8600_v11 }
 0xcbc   : > { %7204 = vmatpush3.bf16.msra.mxu1 %v8638_v61  ;;  %7205 = vmatprep.mubr.msk.bf16.mxu1 %vm8184_vm0, %v9667_v24 }
 0xcbd   : > { %7215 = vmatprep.subr.bf16.mxu1 %v9667_v24 }
 0xd4c   : > { %v9108_v57 = vpop.f32.mrb[76].mxu0 }
 0xd4d   : > { %v7165_v35 = vpop.f32.mrb[77].mxu0 }
 0xd4e   : > { %v9110_v28 = vpop.f32.mrb[78].mxu0 }
 0xd4f   : > { %v7525_v62 = vpack.i.bf16 %v9110_v28, %v9108_v57  ;;  %v7166_v15 = vpop.f32.mrb[79].mxu0 }
 0xd54   : > { %v4021_v56 = vpop.f32.mrb[80].mxu0 }
 0xd55   : > { %v7177_v44 = vpop.f32.mrb[81].mxu0  ;;  %v4163_v20 = vsel %vm2252_vm2, %v4021_v56, -inf }
 0xd56   : > { %4164 = vmax.xlane.f32.xlu0 %v4163_v20  ;;  %v4024_v2 = vpop.f32.mrb[82].mxu0 }
 0xd57   : > { %v7178_v6 = vpop.f32.mrb[83].mxu0  ;;  %v4166_v49 = vsel %vm2252_vm2, %v4024_v2, -inf }
 0xd58   : > { %4167 = vmax.xlane.f32.xlu1 %v4166_v49 }
 0xd5c   : > { %v4112_v41 = vpop.f32.mrb[84].mxu0 }
 0xd5d   : > { %v7189_v10 = vpop.f32.mrb[85].mxu0  ;;  %v4175_v34 = vsel %vm2265_vm3, %v4112_v41, -inf }
 0xd5e   : > { %4176 = vmax.xlane.f32.xlu0 %v4175_v34  ;;  %v4115_v43 = vpop.f32.mrb[86].mxu0 }
 0xd5f   : > { %v7190_v46 = vpop.f32.mrb[87].mxu0  ;;  %v4178_v30 = vsel %vm2265_vm3, %v4115_v43, -inf }
 0xd62   : > { %4179 = vmax.xlane.f32.xlu0 %v4178_v30 }
 0xd7e   : > { %v9118_v9 = vpop.f32.mrb[76].mxu1 }
 0xd7f   : > { %v7171_v55 = vpop.f32.mrb[77].mxu1 }
 0xd80   : > { %v9120_v1 = vpop.f32.mrb[78].mxu1 }
 0xd81   : > { %v7545_v3 = vpack.i.bf16 %v9120_v1, %v9118_v9  ;;  %v7172_v8 = vpop.f32.mrb[79].mxu1 }
 0xd86   : > { %v4068_v14 = vpop.f32.mrb[80].mxu1 }
 0xd87   : > { %v7183_v42 = vpop.f32.mrb[81].mxu1  ;;  %v4169_v29 = vsel %vm2252_vm2, %v4068_v14, -inf }
 0xd88   : > { %4170 = vmax.xlane.f32.xlu0 %v4169_v29  ;;  %v4071_v51 = vpop.f32.mrb[82].mxu1 }
 0xd89   : > { %v7184_v39 = vpop.f32.mrb[83].mxu1  ;;  %v4172_v38 = vsel %vm2252_vm2, %v4071_v51, -inf }
 0xd8a   : > { %4173 = vmax.xlane.f32.xlu1 %v4172_v38 }
 0xd8e   : > { %v4156_v0 = vpop.f32.mrb[84].mxu1 }
 0xd8f   : > { %v7195_v5 = vpop.f32.mrb[85].mxu1  ;;  %v4181_v16 = vsel %vm2265_vm3, %v4156_v0, -inf }
 0xd90   : > { %4182 = vmax.xlane.f32.xlu0 %v4181_v16  ;;  %v4159_v25 = vpop.f32.mrb[86].mxu1 }
 0xd91   : > { %v7196_v35 = vpop.f32.mrb[87].mxu1  ;;  %v4184_v15 = vsel %vm2265_vm3, %v4159_v25, -inf }
 0xd92   : > { %4185 = vmax.xlane.f32.xlu1 %v4184_v15 }
 0xde3   : > { %v4165_v44 = vpop.xlane.xlu0 %4164 }
 0xde5   : > { %v4168_v34 = vpop.xlane.xlu1 %4167 }
 0xdeb   : > { %v4177_v20 = vpop.xlane.xlu0 %4176 }
 0xdec   : > { %v4187_v6 = vmax.f32 %v4165_v44, %v4177_v20 }
 0xdee   : > { %v4191_v49 = vsub.f32 %v4021_v56, %v4187_v6  ;;  %v4203_v10 = vsub.f32 %v4112_v41, %v4187_v6 }
 0xdef   : > { %v4180_v46 = vpop.xlane.xlu0 %4179 }
 0xdf0   : > { %v4195_v30 = vmul.f32 1.442695, %v4191_v49  ;;  %v4207_v55 = vmul.f32 1.442695, %v4203_v10  ;;  %v4188_v8 = vmax.f32 %v4168_v34, %v4180_v46 }
 0xdf2   : > { %7849 = vpow2.f32 %v4195_v30  ;;  %v4192_v42 = vsub.f32 %v4024_v2, %v4188_v8  ;;  %v4204_v29 = vsub.f32 %v4115_v43, %v4188_v8 }
 0xdf3   : > { %7851 = vpow2.f32 %v4207_v55 }
 0xdf4   : > { %v4197_v39 = vmul.f32 1.442695, %v4192_v42  ;;  %v4209_v38 = vmul.f32 1.442695, %v4204_v29 }
 0xdf6   : > { %7853 = vpow2.f32 %v4197_v39 }
 0xdf7   : > { %7855 = vpow2.f32 %v4209_v38 }
 0xdfc   : > { %v9128_v5 = vpop.eup %7849 }
 0xdfd   : > { %v4215_v16 = vsel %vm2252_vm2, %v9128_v5, 0.0  ;;  %v7852_v56 = vpop.eup %7851 }
 0xdfe   : > { %4216 = vadd.xlane.f32.xlu0 %v4215_v16  ;;  %v4227_v35 = vsel %vm2265_vm3, %v7852_v56, 0.0 }
 0xe00   : > { %v9132_v41 = vpop.eup %7853 }
 0xe01   : > { %v4218_v2 = vsel %vm2252_vm2, %v9132_v41, 0.0  ;;  %v7856_v43 = vpop.eup %7855 }
 0xe02   : > { %4228 = vadd.xlane.f32.xlu0 %v4227_v35  ;;  %4219 = vadd.xlane.f32.xlu1 %v4218_v2  ;;  %v4230_v15 = vsel %vm2265_vm3, %v7856_v43, 0.0 }
 0xe06   : > { %4231 = vadd.xlane.f32.xlu1 %v4230_v15 }
 0xe15   : > { %v4171_v44 = vpop.xlane.xlu0 %4170 }
 0xe17   : > { %v4174_v20 = vpop.xlane.xlu1 %4173 }
 0xe1d   : > { %v4183_v6 = vpop.xlane.xlu0 %4182 }
 0xe1e   : > { %v4189_v49 = vmax.f32 %v4171_v44, %v4183_v6  ;;  %v6791_v44 = vpack.c.bf16 %v8646_v7, %v8646_v7 }
 0xe1f   : > { %v4186_v10 = vpop.xlane.xlu1 %4185 }
 0xe20   : > { %v4193_v34 = vsub.f32 %v4068_v14, %v4189_v49  ;;  %v4205_v46 = vsub.f32 %v4156_v0, %v4189_v49  ;;  %v4190_v30 = vmax.f32 %v4174_v20, %v4186_v10  ;;  %v6792_v20 = vpack.c.bf16 %v8656_v17, %v8656_v17 }
 0xe22   : > { %v4199_v55 = vmul.f32 1.442695, %v4193_v34  ;;  %v4211_v8 = vmul.f32 1.442695, %v4205_v46  ;;  %v4194_v42 = vsub.f32 %v4071_v51, %v4190_v30  ;;  %v4206_v29 = vsub.f32 %v4159_v25, %v4190_v30 }
 0xe24   : > { %7857 = vpow2.f32 %v4199_v55  ;;  %v4201_v39 = vmul.f32 1.442695, %v4194_v42  ;;  %v4213_v38 = vmul.f32 1.442695, %v4206_v29 }
 0xe25   : > { %7859 = vpow2.f32 %v4211_v8 }
 0xe26   : > { %7861 = vpow2.f32 %v4201_v39 }
 0xe27   : > { %7863 = vpow2.f32 %v4213_v38 }
 0xe2e   : > { %v9138_v16 = vpop.eup %7857 }
 0xe2f   : > { %v7860_v35 = vpop.eup %7859  ;;  %v4221_v2 = vsel %vm2252_vm2, %v9138_v16, 0.0 }
 0xe30   : > { %v9142_v15 = vpop.eup %7861  ;;  %4222 = vadd.xlane.f32.xlu0 %v4221_v2  ;;  %v4233_v0 = vsel %vm2265_vm3, %v7860_v35, 0.0 }
 0xe31   : > { %v4224_v14 = vsel %vm2252_vm2, %v9142_v15, 0.0  ;;  %v7864_v51 = vpop.eup %7863 }
 0xe32   : > { %4225 = vadd.xlane.f32.xlu1 %v4224_v14  ;;  %v4236_v25 = vsel %vm2265_vm3, %v7864_v51, 0.0 }
 0xe34   : > { %4234 = vadd.xlane.f32.xlu0 %v4233_v0 }
 0xe36   : > { %4237 = vadd.xlane.f32.xlu1 %v4236_v25 }
 0xe47   : > { %4442 = vrot.lane.b32.xlu1 %v8592_v63, %s8185_s14 }
 0xe4a   : > { %4445 = vrot.lane.b32.xlu0 %v6791_v44, %s8185_s14 }
 0xe4b   : > { %4498 = vrot.lane.b32.xlu1 %v6792_v20, %s8185_s14 }
 0xe4e   : > { %4495 = vrot.lane.b32.xlu0 %v8600_v11, %s8185_s14  ;;  %v4351_v11 = vsel %vm2441_vm4, %v8704_v23, 0 }
 0xe4f   : > { %4548 = vrot.lane.b32.xlu1 %v8614_v26, %s8185_s14 }
 0xe53   : > { %4595 = vrot.lane.b32.xlu1 %v8622_v37, %s8185_s14 }
 0xe8b   : > { %v4217_v63 = vpop.xlane.xlu0 %4216 }
 0xe8f   : > { %v4229_v6 = vpop.xlane.xlu0 %4228  ;;  %v4220_v49 = vpop.xlane.xlu1 %4219 }
 0xe90   : > { %v4239_v7 = vadd.f32 %v4229_v6, %v4217_v63 }
 0xe92   : > { %7865 = vrcp.f32 %v4239_v7 }
 0xe93   : > { %v4232_v10 = vpop.xlane.xlu1 %4231 }
 0xe94   : > { %v4240_v17 = vadd.f32 %v4232_v10, %v4220_v49  ;;  %v4398_v10 = vsel %vm2441_vm4, %v8714_v45, 0 }
 0xe96   : > { %7867 = vrcp.f32 %v4240_v17 }
 0xe9c   : > { %v7866_v34 = vpop.eup %7865 }
 0xe9d   : > { %v4253_v30 = vmul.f32 %v7866_v34, %v7852_v56  ;;  %v4247_v37 = vmul.f32 %v7866_v34, %v9128_v5 }
 0xea0   : > { %v7868_v46 = vpop.eup %7867 }
 0xea1   : > { %v4254_v55 = vmul.f32 %v7868_v46, %v7856_v43  ;;  %v4248_v26 = vmul.f32 %v7868_v46, %v9132_v41 }
 0xea3   : > { %v4257_v8 = vpack.c.bf16 %v4254_v55, %v4253_v30  ;;  %v4251_v42 = vpack.c.bf16 %v4248_v26, %v4247_v37 }
 0xea5   : > { %7200 = vmatmul.mubr.msk.bf16.vlgmr.msra.gmra.mrb[88].mxu0 %vm2265_vm3, %v4257_v8 }
 0xea6   : > { %7210 = vmatpush3.bf16.msra.mxu0 %v4351_v11  ;;  %7211 = vmatprep.mubr.msk.bf16.mxu0 %vm8184_vm0, %v9667_v24 }
 0xea7   : > { %7221 = vmatprep.subr.bf16.mxu0 %v9667_v24 }
 0xeb1   : > { %7212 = vmatmul.mubr.msk.bf16.vlgmr.msra.gmra.mrb[88].mxu0 %vm2252_vm2, %v4251_v42 }
 0xeb2   : > { %7223 = vmatprep.mubr.msk.bf16.mxu0 %vm8184_vm0, %v9667_v24 }
 0xebd   : > { %v4223_v56 = vpop.xlane.xlu0 %4222 }
 0xebf   : > { %v4226_v43 = vpop.xlane.xlu1 %4225 }
 0xec1   : > { %v4235_v29 = vpop.xlane.xlu0 %4234 }
 0xec2   : > { %v4241_v39 = vadd.f32 %v4235_v29, %v4223_v56 }
 0xec3   : > { %v4238_v38 = vpop.xlane.xlu1 %4237 }
 0xec4   : > { %7869 = vrcp.f32 %v4241_v39  ;;  %v4242_v2 = vadd.f32 %v4238_v38, %v4226_v43 }
 0xec5   : > { %v4446_v14 = vpop.permute.xlu0 %4445 }
 0xec6   : > { %7871 = vrcp.f32 %v4242_v2  ;;  %v4451_v0 = vsel %vm2069_vm1, %v4446_v14, 0 }
 0xec7   : > { %7222 = vmatpush3.bf16.xpose.msra.mxu0 %v4451_v0  ;;  %v4443_v41 = vpop.permute.xlu1 %4442 }
 0xec8   : > { %7233 = vmatprep.subr.bf16.mxu0 %v9667_v24 }
 0xec9   : > { %v4496_v30 = vpop.permute.xlu0 %4495 }
 0xecb   : > { %v4499_v5 = vpop.permute.xlu1 %4498 }
 0xecc   : > { %v4504_v34 = vsel %vm2069_vm1, %v4499_v5, 0 }
 0xece   : > { %v7870_v25 = vpop.eup %7869  ;;  %7224 = vmatmul.mubr.msk.bf16.vlgmr.msra.gmra.mrb[92].mxu0 %vm2069_vm1, %v4443_v41 }
 0xecf   : > { %v4549_v44 = vpop.permute.xlu1 %4548  ;;  %7235 = vmatprep.mubr.msk.bf16.mxu0 %vm8184_vm0, %v9667_v24  ;;  %v4255_v6 = vmul.f32 %v7870_v25, %v7860_v35 }
 0xed0   : > { %v7872_v20 = vpop.eup %7871  ;;  %v4551_v63 = vsel %vm2069_vm1, %v4549_v44, 0 }
 0xed1   : > { %v4256_v49 = vmul.f32 %v7872_v20, %v7864_v51  ;;  %7234 = vmatpush3.bf16.xpose.msra.mxu0 %v4551_v63  ;;  %v4250_v35 = vmul.f32 %v7872_v20, %v9142_v15  ;;  %v4249_v51 = vmul.f32 %v7870_v25, %v9138_v16 }
 0xed2   : > { %7245 = vmatprep.subr.bf16.mxu0 %v9667_v24 }
 0xed3   : > { %v4258_v7 = vpack.c.bf16 %v4256_v49, %v4255_v6  ;;  %v4252_v17 = vpack.c.bf16 %v4250_v35, %v4249_v51  ;;  %v4596_v46 = vpop.permute.xlu1 %4595 }
 0xed4   : > { %v4598_v55 = vsel %vm2069_vm1, %v4596_v46, 0 }
 0xed5   : > { %7206 = vmatmul.mubr.msk.bf16.vlgmr.msra.gmra.mrb[88].mxu1 %vm2265_vm3, %v4258_v7 }
 0xed6   : > { %7216 = vmatpush3.bf16.msra.mxu1 %v4398_v10  ;;  %7217 = vmatprep.mubr.msk.bf16.mxu1 %vm8184_vm0, %v9667_v24 }
 0xed7   : > { %7227 = vmatprep.subr.bf16.mxu1 %v9667_v24 }
 0xed8   : > { %7236 = vmatmul.mubr.msk.bf16.vlgmr.msra.gmra.mrb[96].mxu0 %vm2069_vm1, %v4443_v41 }
 0xed9   : > { %7247 = vmatprep.mubr.msk.bf16.mxu0 %vm8184_vm0, %v9667_v24 }
 0xee1   : > { %7218 = vmatmul.mubr.msk.bf16.vlgmr.msra.gmra.mrb[88].mxu1 %vm2252_vm2, %v4252_v17 }
 0xee2   : > { %7228 = vmatpush3.bf16.xpose.msra.mxu1 %v4504_v34  ;;  %7229 = vmatprep.mubr.msk.bf16.mxu1 %vm8184_vm0, %v9667_v24 }
 0xee3   : > { %7239 = vmatprep.subr.bf16.mxu1 %v9667_v24 }
 0xee9   : > { %7230 = vmatmul.mubr.msk.bf16.vlgmr.msra.gmra.mrb[92].mxu1 %vm2069_vm1, %v4496_v30 }
 0xeea   : > { %7240 = vmatpush3.bf16.xpose.msra.mxu1 %v4598_v55  ;;  %7241 = vmatprep.mubr.msk.bf16.mxu1 %vm8184_vm0, %v9667_v24 }
 0xeeb   : > { %7251 = vmatprep.subr.bf16.mxu1 %v9667_v24 }
 0xef1   : > { %7242 = vmatmul.mubr.msk.bf16.vlgmr.msra.gmra.mrb[96].mxu1 %vm2069_vm1, %v4496_v30 }
 0xef2   : > { %7253 = vmatprep.mubr.msk.bf16.mxu1 %vm8184_vm0, %v9667_v24 }
 0xf84   : > { %v9204_v16 = vpop.f32.mrb[88].mxu0 }
 0xf85   : > { %v7213_v15 = vpop.f32.mrb[89].mxu0 }
 0xf86   : > { %v9206_v8 = vpop.f32.mrb[90].mxu0 }
 0xf87   : > { %v7214_v11 = vpop.f32.mrb[91].mxu0 }
 0xfa1   : > { %v4487_v26 = vpop.f32.mrb[92].mxu0 }
 0xfa2   : > { %v7225_v37 = vpop.f32.mrb[93].mxu0  ;;  %v4641_v42 = vsel %vm2252_vm2, %v4487_v26, -inf }
 0xfa3   : > { %4642 = vmax.xlane.f32.xlu0 %v4641_v42  ;;  %v4490_v56 = vpop.f32.mrb[94].mxu0 }
 0xfa4   : > { %v7226_v43 = vpop.f32.mrb[95].mxu0  ;;  %v4644_v29 = vsel %vm2252_vm2, %v4490_v56, -inf }
 0xfa5   : > { %4645 = vmax.xlane.f32.xlu1 %v4644_v29 }
 0xfab   : > { %v4587_v39 = vpop.f32.mrb[96].mxu0 }
 0xfac   : > { %v7237_v38 = vpop.f32.mrb[97].mxu0  ;;  %v4653_v2 = vsel %vm2265_vm3, %v4587_v39, -inf }
 0xfad   : > { %4654 = vmax.xlane.f32.xlu0 %v4653_v2  ;;  %v4590_v14 = vpop.f32.mrb[98].mxu0 }
 0xfae   : > { %v7238_v0 = vpop.f32.mrb[99].mxu0  ;;  %v4656_v41 = vsel %vm2265_vm3, %v4590_v14, -inf }
 0xfb1   : > { %4657 = vmax.xlane.f32.xlu0 %v4656_v41 }
 0xfb4   : > { %v9212_v5 = vpop.f32.mrb[88].mxu1 }
 0xfb5   : > { %v7219_v25 = vpop.f32.mrb[89].mxu1 }
 0xfb6   : > { %v9214_v44 = vpop.f32.mrb[90].mxu1 }
 0xfb7   : > { %v7220_v20 = vpop.f32.mrb[91].mxu1 }
 0xfbc   : > { %v4540_v63 = vpop.f32.mrb[92].mxu1 }
 0xfbd   : > { %v7231_v6 = vpop.f32.mrb[93].mxu1  ;;  %v4647_v49 = vsel %vm2252_vm2, %v4540_v63, -inf }
 0xfbe   : > { %4648 = vmax.xlane.f32.xlu0 %v4647_v49  ;;  %v9217_v7 = vpop.f32.mrb[94].mxu1 }
 0xfbf   : > { %v7232_v10 = vpop.f32.mrb[95].mxu1  ;;  %v4650_v35 = vsel %vm2252_vm2, %v9217_v7, -inf }
 0xfc0   : > { %4651 = vmax.xlane.f32.xlu1 %v4650_v35 }
 0xfc4   : > { %v4634_v51 = vpop.f32.mrb[96].mxu1 }
 0xfc5   : > { %v7243_v17 = vpop.f32.mrb[97].mxu1  ;;  %v4659_v34 = vsel %vm2265_vm3, %v4634_v51, -inf }
 0xfc6   : > { %4660 = vmax.xlane.f32.xlu0 %v4659_v34  ;;  %v4637_v46 = vpop.f32.mrb[98].mxu1 }
 0xfc7   : > { %v7244_v30 = vpop.f32.mrb[99].mxu1  ;;  %v4662_v55 = vsel %vm2265_vm3, %v4637_v46, -inf }
 0xfc8   : > { %4663 = vmax.xlane.f32.xlu1 %v4662_v55 }
0x1030   : > { %v4643_v15 = vpop.xlane.xlu0 %4642 }
0x1032   : > { %v4646_v29 = vpop.xlane.xlu1 %4645 }
0x103a   : > { %v4655_v11 = vpop.xlane.xlu0 %4654 }
0x103b   : > { %v4665_v37 = vmax.f32 %v4643_v15, %v4655_v11 }
0x103d   : > { %v4669_v42 = vsub.f32 %v4487_v26, %v4665_v37  ;;  %v4681_v43 = vsub.f32 %v4587_v39, %v4665_v37 }
0x103e   : > { %v4658_v38 = vpop.xlane.xlu0 %4657 }
0x103f   : > { %v4673_v2 = vmul.f32 1.442695, %v4669_v42  ;;  %v4685_v0 = vmul.f32 1.442695, %v4681_v43  ;;  %v4666_v41 = vmax.f32 %v4646_v29, %v4658_v38  ;;  %v6793_v38 = vpack.c.bf16 %v8698_v33, %v8698_v33 }
0x1041   : > { %7873 = vpow2.f32 %v4673_v2  ;;  %v4670_v25 = vsub.f32 %v4490_v56, %v4666_v41  ;;  %v4682_v20 = vsub.f32 %v4590_v14, %v4666_v41 }
0x1042   : > { %7875 = vpow2.f32 %v4685_v0 }
0x1043   : > { %v4675_v6 = vmul.f32 1.442695, %v4670_v25  ;;  %v4687_v49 = vmul.f32 1.442695, %v4682_v20 }
0x1045   : > { %7877 = vpow2.f32 %v4675_v6 }
0x1046   : > { %7879 = vpow2.f32 %v4687_v49 }
0x104b   : > { %v9223_v10 = vpop.eup %7873  ;;  %v4649_v17 = vpop.xlane.xlu0 %4648 }
0x104c   : > { %v4693_v35 = vsel %vm2252_vm2, %v9223_v10, 0.0  ;;  %v9227_v26 = vpop.eup %7875 }
0x104d   : > { %4694 = vadd.xlane.f32.xlu0 %v4693_v35  ;;  %v4705_v56 = vsel %vm2265_vm3, %v9227_v26, 0.0 }
0x104f   : > { %v9229_v39 = vpop.eup %7877 }
0x1050   : > { %v4696_v14 = vsel %vm2252_vm2, %v9229_v39, 0.0  ;;  %v7880_v34 = vpop.eup %7879 }
0x1051   : > { %4706 = vadd.xlane.f32.xlu0 %v4705_v56  ;;  %4697 = vadd.xlane.f32.xlu1 %v4696_v14  ;;  %v4708_v15 = vsel %vm2265_vm3, %v7880_v34, 0.0 }
0x1053   : > { %v4661_v30 = vpop.xlane.xlu0 %4660 }
0x1054   : > { %v4667_v55 = vmax.f32 %v4649_v17, %v4661_v30 }
0x1055   : > { %4709 = vadd.xlane.f32.xlu1 %v4708_v15 }
0x1056   : > { %v4671_v11 = vsub.f32 %v4540_v63, %v4667_v55  ;;  %v4683_v37 = vsub.f32 %v4634_v51, %v4667_v55  ;;  %v4652_v51 = vpop.xlane.xlu1 %4651 }
0x1058   : > { %v4677_v42 = vmul.f32 1.442695, %v4671_v11  ;;  %v4689_v43 = vmul.f32 1.442695, %v4683_v37 }
0x105a   : > { %7881 = vpow2.f32 %v4677_v42  ;;  %v4664_v41 = vpop.xlane.xlu1 %4663 }
0x105b   : > { %7883 = vpow2.f32 %v4689_v43  ;;  %v4668_v25 = vmax.f32 %v4652_v51, %v4664_v41 }
0x105d   : > { %v4672_v33 = vsub.f32 %v9217_v7, %v4668_v25  ;;  %v4684_v6 = vsub.f32 %v4637_v46, %v4668_v25  ;;  %v6794_v7 = vpack.c.bf16 %v8708_v27, %v8708_v27 }
0x105f   : > { %v4679_v20 = vmul.f32 1.442695, %v4672_v33  ;;  %v4691_v49 = vmul.f32 1.442695, %v4684_v6 }
0x1061   : > { %7885 = vpow2.f32 %v4679_v20 }
0x1062   : > { %7887 = vpow2.f32 %v4691_v49  ;;  %v5030_v49 = vsel %vm2069_vm1, %v8618_v31, 0 }
0x1064   : > { %v9236_v29 = vpop.eup %7881 }
0x1065   : > { %v4699_v2 = vsel %vm2252_vm2, %v9236_v29, 0.0  ;;  %v9242_v0 = vpop.eup %7883 }
0x1066   : > { %4700 = vadd.xlane.f32.xlu0 %v4699_v2  ;;  %4834 = vrot.lane.b32.xlu1 %v6793_v38, %s8185_s14  ;;  %v4711_v63 = vsel %vm2265_vm3, %v9242_v0, 0.0 }
0x106a   : > { %4712 = vadd.xlane.f32.xlu0 %v4711_v63  ;;  %4786 = vrot.lane.b32.xlu1 %v8638_v61, %s8185_s14 }
0x106b   : > { %v9252_v35 = vpop.eup %7885 }
0x106c   : > { %v4702_v17 = vsel %vm2252_vm2, %v9252_v35, 0.0  ;;  %v7888_v56 = vpop.eup %7887 }
0x106d   : > { %v4714_v61 = vsel %vm2265_vm3, %v7888_v56, 0.0 }
0x1080   : > { %4738 = vrot.lane.b32.xlu0 %v8630_v48, %s8185_s14 }
0x108e   : > { %4703 = vadd.xlane.f32.xlu1 %v4702_v17 }
0x1092   : > { %4715 = vadd.xlane.f32.xlu1 %v4714_v61 }
0x10a3   : > { %4884 = vrot.lane.b32.xlu1 %v6794_v7, %s8185_s14 }
0x10da   : > { %v4695_v14 = vpop.xlane.xlu0 %4694 }
0x10de   : > { %v4698_v46 = vpop.xlane.xlu1 %4697  ;;  %v4707_v55 = vpop.xlane.xlu0 %4706 }
0x10df   : > { %v4717_v11 = vadd.f32 %v4707_v55, %v4695_v14 }
0x10e2   : > { %v4710_v30 = vpop.xlane.xlu1 %4709 }
0x10e3   : > { %v4718_v15 = vadd.f32 %v4710_v30, %v4698_v46 }
0x10e5   : > { %7889 = vrcp.f32 %v4718_v15 }
0x10e6   : > { %v4835_v48 = vpop.permute.xlu1 %4834  ;;  %7891 = vrcp.f32 %v4717_v11 }
0x10e7   : > { %v4840_v25 = vsel %vm2441_vm4, %v4835_v48, 0 }
0x10ea   : > { %v4787_v37 = vpop.permute.xlu1 %4786 }
0x10eb   : > { %7252 = vmatpush3.bf16.msra.mxu1 %v4787_v37  ;;  %v4981_v37 = vrot.slane %v8662_v22, 4 }
0x10ec   : > { %7263 = vmatprep.subr.bf16.mxu1 %v9667_v24 }
0x10ef   : > { %v7890_v43 = vpop.eup %7889 }
0x10f0   : > { %v7892_v2 = vpop.eup %7891  ;;  %v4732_v27 = vmul.f32 %v7890_v43, %v7880_v34  ;;  %v4726_v33 = vmul.f32 %v7890_v43, %v9229_v39  ;;  %v4933_v34 = vrot.slane %v8652_v12, 4  ;;  %v9668_v43 = vld [vmem:[#allocation21_spill] sm:$0xff] }
0x10f1   : > { %v4731_v63 = vmul.f32 %v7892_v2, %v9227_v26  ;;  %v4725_v26 = vmul.f32 %v7892_v2, %v9223_v10  ;;  %v9669_v2 = vld [vmem:[#allocation20_spill] sm:$0xff] }
0x10f2   : > { %v4938_v6 = vsel %vm2069_vm1, %v4933_v34, 0 }
0x10f3   : > { %v4701_v42 = vpop.xlane.xlu0 %4700  ;;  %v4735_v41 = vpack.c.bf16 %v4732_v27, %v4731_v63  ;;  %v4729_v20 = vpack.c.bf16 %v4726_v33, %v4725_v26 }
0x10f7   : > { %v4713_v38 = vpop.xlane.xlu0 %4712 }
0x10f8   : > { %v4719_v39 = vadd.f32 %v4713_v38, %v4701_v42  ;;  %v5074_v38 = vsel %vm2069_vm1, %v9668_v43, 0 }
0x10fa   : > { %7893 = vrcp.f32 %v4719_v39 }
0x10fb   : > { %v4739_v51 = vpop.permute.xlu0 %4738 }
0x10fc   : > { %7246 = vmatpush3.bf16.msra.mxu0 %v4739_v51 }
0x10fd   : > { %7257 = vmatprep.subr.bf16.mxu0 %v9667_v24 }
0x10ff   : > { %7248 = vmatmul.mubr.msk.bf16.vlgmr.msra.gmra.mrb[100].mxu0 %vm2265_vm3, %v4735_v41 }
0x1100   : > { %7258 = vmatpush3.bf16.msra.mxu0 %v4840_v25  ;;  %7259 = vmatprep.mubr.msk.bf16.mxu0 %vm8184_vm0, %v9667_v24 }
0x1101   : > { %7269 = vmatprep.subr.bf16.mxu0 %v9667_v24 }
0x1104   : > { %v7894_v7 = vpop.eup %7893 }
0x1105   : > { %v4733_v14 = vmul.f32 %v7894_v7, %v9242_v0  ;;  %v4727_v42 = vmul.f32 %v7894_v7, %v9236_v29  ;;  %v9670_v29 = vld [vmem:[#allocation22_spill] sm:$0xff] }
0x110b   : > { %7260 = vmatmul.mubr.msk.bf16.vlgmr.msra.gmra.mrb[100].mxu0 %vm2252_vm2, %v4729_v20 }
0x110c   : > { %7270 = vmatpush3.bf16.xpose.msra.mxu0 %v4938_v6  ;;  %7271 = vmatprep.mubr.msk.bf16.mxu0 %vm8184_vm0, %v9667_v24 }
0x110d   : > { %7281 = vmatprep.subr.bf16.mxu0 %v9667_v24 }
0x1113   : > { %7272 = vmatmul.mubr.msk.bf16.vlgmr.msra.gmra.mrb[104].mxu0 %vm2069_vm1, %v8596_v4 }
0x1114   : > { %7282 = vmatpush3.bf16.xpose.msra.mxu0 %v5030_v49  ;;  %7283 = vmatprep.mubr.msk.bf16.mxu0 %vm8184_vm0, %v9667_v24 }
0x1115   : > { %7293 = vmatprep.subr.bf16.mxu0 %v9667_v24 }
0x111b   : > { %7284 = vmatmul.mubr.msk.bf16.vlgmr.msra.gmra.mrb[108].mxu0 %vm2069_vm1, %v8596_v4  ;;  %v4704_v10 = vpop.xlane.xlu1 %4703 }
0x111c   : > { %7294 = vmatpush3.bf16.msra.mxu0 %v8634_v52  ;;  %7295 = vmatprep.mubr.msk.bf16.mxu0 %vm8184_vm0, %v9667_v24 }
0x111d   : > { %7305 = vmatprep.subr.bf16.mxu0 %v9667_v24 }
0x111f   : > { %v4716_v17 = vpop.xlane.xlu1 %4715 }
0x1120   : > { %v4720_v61 = vadd.f32 %v4716_v17, %v4704_v10 }
0x1122   : > { %7895 = vrcp.f32 %v4720_v61 }
0x1123   : > { %v4885_v48 = vpop.permute.xlu1 %4884 }
0x1124   : > { %v4890_v15 = vsel %vm2441_vm4, %v4885_v48, 0 }
0x112c   : > { %v7896_v46 = vpop.eup %7895 }
0x112d   : > { %v4734_v30 = vmul.f32 %v7896_v46, %v7888_v56  ;;  %v4728_v11 = vmul.f32 %v7896_v46, %v9252_v35  ;;  %v4986_v56 = vsel %vm2069_vm1, %v4981_v37, 0 }
0x112f   : > { %v4736_v55 = vpack.c.bf16 %v4734_v30, %v4733_v14  ;;  %v4730_v0 = vpack.c.bf16 %v4728_v11, %v4727_v42 }
0x1131   : > { %7254 = vmatmul.mubr.msk.bf16.vlgmr.msra.gmra.mrb[100].mxu1 %vm2265_vm3, %v4736_v55 }
0x1132   : > { %7264 = vmatpush3.bf16.msra.mxu1 %v4890_v15  ;;  %7265 = vmatprep.mubr.msk.bf16.mxu1 %vm8184_vm0, %v9667_v24 }
0x1133   : > { %7275 = vmatprep.subr.bf16.mxu1 %v9667_v24 }
0x113d   : > { %7266 = vmatmul.mubr.msk.bf16.vlgmr.msra.gmra.mrb[100].mxu1 %vm2252_vm2, %v4730_v0 }
0x113e   : > { %7276 = vmatpush3.bf16.xpose.msra.mxu1 %v4986_v56  ;;  %7277 = vmatprep.mubr.msk.bf16.mxu1 %vm8184_vm0, %v9667_v24 }
0x113f   : > { %7287 = vmatprep.subr.bf16.mxu1 %v9667_v24 }
0x1145   : > { %7278 = vmatmul.mubr.msk.bf16.vlgmr.msra.gmra.mrb[104].mxu1 %vm2069_vm1, %v9669_v2 }
0x1146   : > { %7288 = vmatpush3.bf16.xpose.msra.mxu1 %v5074_v38  ;;  %7289 = vmatprep.mubr.msk.bf16.mxu1 %vm8184_vm0, %v9667_v24 }
0x1147   : > { %7299 = vmatprep.subr.bf16.mxu1 %v9667_v24 }
0x114d   : > { %7290 = vmatmul.mubr.msk.bf16.vlgmr.msra.gmra.mrb[108].mxu1 %vm2069_vm1, %v9669_v2 }
0x114e   : > { %7300 = vmatpush3.bf16.msra.mxu1 %v9670_v29  ;;  %7301 = vmatprep.mubr.msk.bf16.mxu1 %vm8184_vm0, %v9667_v24 }
0x114f   : > { %7311 = vmatprep.subr.bf16.mxu1 %v9667_v24 }
0x11de   : > { %v9316_v35 = vpop.f32.mrb[100].mxu0 }
0x11df   : > { %v7261_v27 = vpop.f32.mrb[101].mxu0 }
0x11e0   : > { %v9318_v63 = vpop.f32.mrb[102].mxu0 }
0x11e1   : > { %v7262_v41 = vpop.f32.mrb[103].mxu0 }
0x11e6   : > { %v4974_v25 = vpop.f32.mrb[104].mxu0 }
0x11e7   : > { %v7273_v33 = vpop.f32.mrb[105].mxu0  ;;  %v5117_v34 = vsel %vm2252_vm2, %v4974_v25, -inf }
0x11e8   : > { %5118 = vmax.xlane.f32.xlu0 %v5117_v34  ;;  %v4977_v26 = vpop.f32.mrb[106].mxu0 }
0x11e9   : > { %v7274_v20 = vpop.f32.mrb[107].mxu0  ;;  %v5120_v6 = vsel %vm2252_vm2, %v4977_v26, -inf }
0x11ea   : > { %5121 = vmax.xlane.f32.xlu1 %v5120_v6 }
0x11ee   : > { %v5066_v49 = vpop.f32.mrb[108].mxu0 }
0x11ef   : > { %v7285_v10 = vpop.f32.mrb[109].mxu0  ;;  %v5129_v39 = vsel %vm2265_vm3, %v5066_v49, -inf }
0x11f0   : > { %5130 = vmax.xlane.f32.xlu0 %v5129_v39  ;;  %v5069_v17 = vpop.f32.mrb[110].mxu0 }
0x11f1   : > { %v7286_v61 = vpop.f32.mrb[111].mxu0  ;;  %v5132_v7 = vsel %vm2265_vm3, %v5069_v17, -inf }
0x11f4   : > { %5133 = vmax.xlane.f32.xlu0 %v5132_v7 }
0x1210   : > { %v9326_v46 = vpop.f32.mrb[100].mxu1 }
0x1211   : > { %v7267_v14 = vpop.f32.mrb[101].mxu1 }
0x1212   : > { %v9328_v30 = vpop.f32.mrb[102].mxu1 }
0x1213   : > { %v7268_v55 = vpop.f32.mrb[103].mxu1 }
0x1218   : > { %v5022_v15 = vpop.f32.mrb[104].mxu1 }
0x1219   : > { %v7279_v11 = vpop.f32.mrb[105].mxu1  ;;  %v5123_v37 = vsel %vm2252_vm2, %v5022_v15, -inf }
0x121a   : > { %5124 = vmax.xlane.f32.xlu0 %v5123_v37  ;;  %v5025_v42 = vpop.f32.mrb[106].mxu1 }
0x121b   : > { %v7280_v0 = vpop.f32.mrb[107].mxu1  ;;  %v5126_v56 = vsel %vm2252_vm2, %v5025_v42, -inf }
0x121c   : > { %5127 = vmax.xlane.f32.xlu1 %v5126_v56 }
0x1220   : > { %v5110_v38 = vpop.f32.mrb[108].mxu1 }
0x1221   : > { %v7291_v27 = vpop.f32.mrb[109].mxu1  ;;  %v5135_v41 = vsel %vm2265_vm3, %v5110_v38, -inf }
0x1222   : > { %5136 = vmax.xlane.f32.xlu0 %v5135_v41  ;;  %v5113_v33 = vpop.f32.mrb[110].mxu1 }
0x1223   : > { %v7292_v34 = vpop.f32.mrb[111].mxu1  ;;  %v5138_v20 = vsel %vm2265_vm3, %v5113_v33, -inf }
0x1224   : > { %5139 = vmax.xlane.f32.xlu1 %v5138_v20 }
0x1275   : > { %v5119_v6 = vpop.xlane.xlu0 %5118 }
0x1277   : > { %v5122_v14 = vpop.xlane.xlu1 %5121 }
0x127d   : > { %v5131_v10 = vpop.xlane.xlu0 %5130 }
0x127e   : > { %v5141_v39 = vmax.f32 %v5119_v6, %v5131_v10 }
0x1280   : > { %v5145_v61 = vsub.f32 %v4974_v25, %v5141_v39  ;;  %v5157_v7 = vsub.f32 %v5066_v49, %v5141_v39 }
0x1281   : > { %v5134_v55 = vpop.xlane.xlu0 %5133 }
0x1282   : > { %v5149_v11 = vmul.f32 1.442695, %v5145_v61  ;;  %v5161_v37 = vmul.f32 1.442695, %v5157_v7  ;;  %v5142_v0 = vmax.f32 %v5122_v14, %v5134_v55 }
0x1284   : > { %7897 = vpow2.f32 %v5149_v11  ;;  %v5146_v56 = vsub.f32 %v4977_v26, %v5142_v0  ;;  %v5158_v27 = vsub.f32 %v5069_v17, %v5142_v0 }
0x1285   : > { %7899 = vpow2.f32 %v5161_v37 }
0x1286   : > { %v5151_v41 = vmul.f32 1.442695, %v5146_v56  ;;  %v5163_v48 = vmul.f32 1.442695, %v5158_v27 }
0x1288   : > { %7901 = vpow2.f32 %v5151_v41 }
0x1289   : > { %7903 = vpow2.f32 %v5163_v48 }
0x128e   : > { %v9336_v34 = vpop.eup %7897 }
0x128f   : > { %v5169_v20 = vsel %vm2252_vm2, %v9336_v34, 0.0  ;;  %v7900_v25 = vpop.eup %7899 }
0x1290   : > { %5170 = vadd.xlane.f32.xlu0 %v5169_v20  ;;  %v5181_v6 = vsel %vm2265_vm3, %v7900_v25, 0.0 }
0x1292   : > { %v9340_v49 = vpop.eup %7901 }
0x1293   : > { %v5172_v26 = vsel %vm2252_vm2, %v9340_v49, 0.0  ;;  %v7904_v17 = vpop.eup %7903 }
0x1294   : > { %5182 = vadd.xlane.f32.xlu0 %v5181_v6  ;;  %5173 = vadd.xlane.f32.xlu1 %v5172_v26  ;;  %v5184_v10 = vsel %vm2265_vm3, %v7904_v17, 0.0 }
0x1298   : > { %5185 = vadd.xlane.f32.xlu1 %v5184_v10 }
0x12a7   : > { %v5125_v48 = vpop.xlane.xlu0 %5124 }
0x12a9   : > { %v5128_v39 = vpop.xlane.xlu1 %5127 }
0x12af   : > { %v5137_v61 = vpop.xlane.xlu0 %5136 }
0x12b0   : > { %v5143_v7 = vmax.f32 %v5125_v48, %v5137_v61 }
0x12b1   : > { %v5140_v14 = vpop.xlane.xlu1 %5139 }
0x12b2   : > { %v5147_v55 = vsub.f32 %v5022_v15, %v5143_v7  ;;  %v5159_v11 = vsub.f32 %v5110_v38, %v5143_v7  ;;  %v5144_v37 = vmax.f32 %v5128_v39, %v5140_v14 }
0x12b4   : > { %v5153_v0 = vmul.f32 1.442695, %v5147_v55  ;;  %v5165_v56 = vmul.f32 1.442695, %v5159_v11  ;;  %v5148_v27 = vsub.f32 %v5025_v42, %v5144_v37  ;;  %v5160_v41 = vsub.f32 %v5113_v33, %v5144_v37 }
0x12b6   : > { %7905 = vpow2.f32 %v5153_v0  ;;  %v5155_v20 = vmul.f32 1.442695, %v5148_v27  ;;  %v5167_v51 = vmul.f32 1.442695, %v5160_v41 }
0x12b7   : > { %7907 = vpow2.f32 %v5165_v56 }
0x12b8   : > { %7909 = vpow2.f32 %v5155_v20 }
0x12b9   : > { %7911 = vpow2.f32 %v5167_v51 }
0x12c0   : > { %v9346_v6 = vpop.eup %7905 }
0x12c1   : > { %v7908_v26 = vpop.eup %7907  ;;  %v5175_v10 = vsel %vm2252_vm2, %v9346_v6, 0.0 }
0x12c2   : > { %v9350_v48 = vpop.eup %7909  ;;  %5176 = vadd.xlane.f32.xlu0 %v5175_v10  ;;  %v5187_v38 = vsel %vm2265_vm3, %v7908_v26, 0.0 }
0x12c3   : > { %v5178_v15 = vsel %vm2252_vm2, %v9350_v48, 0.0  ;;  %v7912_v42 = vpop.eup %7911 }
0x12c4   : > { %5179 = vadd.xlane.f32.xlu1 %v5178_v15  ;;  %v5190_v33 = vsel %vm2265_vm3, %v7912_v42, 0.0 }
0x12c6   : > { %5188 = vadd.xlane.f32.xlu0 %v5187_v38 }
0x12c8   : > { %5191 = vadd.xlane.f32.xlu1 %v5190_v33 }
0x12d9   : > { %5450 = vrot.lane.b32.xlu1 %v8662_v22, %s8185_s14 }
0x12dc   : > { %5397 = vrot.lane.b32.xlu0 %v8652_v12, %s8185_s14 }
0x12dd   : > { %5401 = vrot.lane.b32.xlu1 %v8596_v4, %s8185_s14  ;;  %v5301_v4 = vrot.slane %v8704_v23, 4 }
0x12e0   : > { %5454 = vrot.lane.b32.xlu0 %v9669_v2, %s8185_s14 }
0x12e1   : > { %5504 = vrot.lane.b32.xlu1 %v8618_v31, %s8185_s14  ;;  %v5306_v31 = vsel %vm2441_vm4, %v5301_v4, 0 }
0x12e5   : > { %5551 = vrot.lane.b32.xlu1 %v9668_v43, %s8185_s14 }
0x131d   : > { %v5171_v51 = vpop.xlane.xlu0 %5170 }
0x1321   : > { %v5183_v39 = vpop.xlane.xlu0 %5182  ;;  %v5174_v61 = vpop.xlane.xlu1 %5173 }
0x1322   : > { %v5193_v7 = vadd.f32 %v5183_v39, %v5171_v51 }
0x1324   : > { %7913 = vrcp.f32 %v5193_v7 }
0x1325   : > { %v5186_v22 = vpop.xlane.xlu1 %5185 }
0x1326   : > { %v5194_v14 = vadd.f32 %v5186_v22, %v5174_v61  ;;  %v5349_v22 = vrot.slane %v8714_v45, 4 }
0x1328   : > { %7915 = vrcp.f32 %v5194_v14  ;;  %v5354_v4 = vsel %vm2441_vm4, %v5349_v22, 0 }
0x132e   : > { %v7914_v12 = vpop.eup %7913 }
0x132f   : > { %v5207_v11 = vmul.f32 %v7914_v12, %v7900_v25  ;;  %v5201_v0 = vmul.f32 %v7914_v12, %v9336_v34 }
0x1332   : > { %v7916_v55 = vpop.eup %7915 }
0x1333   : > { %v5208_v2 = vmul.f32 %v7916_v55, %v7904_v17  ;;  %v5202_v43 = vmul.f32 %v7916_v55, %v9340_v49 }
0x1335   : > { %v5211_v37 = vpack.c.bf16 %v5208_v2, %v5207_v11  ;;  %v5205_v56 = vpack.c.bf16 %v5202_v43, %v5201_v0 }
0x1337   : > { %7296 = vmatmul.mubr.msk.bf16.vlgmr.msra.gmra.mrb[112].mxu0 %vm2265_vm3, %v5211_v37 }
0x1338   : > { %7306 = vmatpush3.bf16.msra.mxu0 %v5306_v31  ;;  %7307 = vmatprep.mubr.msk.bf16.mxu0 %vm8184_vm0, %v9667_v24 }
0x1339   : > { %7317 = vmatprep.subr.bf16.mxu0 %v9667_v24 }
0x1343   : > { %7308 = vmatmul.mubr.msk.bf16.vlgmr.msra.gmra.mrb[112].mxu0 %vm2252_vm2, %v5205_v56 }
0x1344   : > { %7319 = vmatprep.mubr.msk.bf16.mxu0 %vm8184_vm0, %v9667_v24 }
0x134f   : > { %v5177_v25 = vpop.xlane.xlu0 %5176 }
0x1351   : > { %v5180_v17 = vpop.xlane.xlu1 %5179 }
0x1353   : > { %v5189_v27 = vpop.xlane.xlu0 %5188 }
0x1354   : > { %v5195_v41 = vadd.f32 %v5189_v27, %v5177_v25 }
0x1355   : > { %v5192_v20 = vpop.xlane.xlu1 %5191 }
0x1356   : > { %7917 = vrcp.f32 %v5195_v41  ;;  %v5196_v10 = vadd.f32 %v5192_v20, %v5180_v17 }
0x1357   : > { %v5398_v15 = vpop.permute.xlu0 %5397 }
0x1358   : > { %7919 = vrcp.f32 %v5196_v10  ;;  %v5399_v38 = vrot.slane %v5398_v15, 4 }
0x1359   : > { %v5451_v33 = vpop.permute.xlu1 %5450 }
0x135a   : > { %v5407_v49 = vsel %vm2069_vm1, %v5399_v38, 0  ;;  %v5452_v11 = vrot.slane %v5451_v33, 4 }
0x135b   : > { %7318 = vmatpush3.bf16.xpose.msra.mxu0 %v5407_v49  ;;  %v5455_v43 = vpop.permute.xlu0 %5454 }
0x135c   : > { %7329 = vmatprep.subr.bf16.mxu0 %v9667_v24  ;;  %v5460_v37 = vsel %vm2069_vm1, %v5452_v11, 0 }
0x135d   : > { %v5402_v34 = vpop.permute.xlu1 %5401 }
0x1360   : > { %v7918_v51 = vpop.eup %7917 }
0x1361   : > { %v5505_v39 = vpop.permute.xlu1 %5504  ;;  %v5209_v14 = vmul.f32 %v7918_v51, %v7908_v26 }
0x1362   : > { %v7920_v61 = vpop.eup %7919  ;;  %v5507_v7 = vsel %vm2069_vm1, %v5505_v39, 0  ;;  %7320 = vmatmul.mubr.msk.bf16.vlgmr.msra.gmra.mrb[116].mxu0 %vm2069_vm1, %v5402_v34 }
0x1363   : > { %v5210_v12 = vmul.f32 %v7920_v61, %v7912_v42  ;;  %7330 = vmatpush3.bf16.xpose.msra.mxu0 %v5507_v7  ;;  %7331 = vmatprep.mubr.msk.bf16.mxu0 %vm8184_vm0, %v9667_v24  ;;  %v5204_v26 = vmul.f32 %v7920_v61, %v9350_v48  ;;  %v5203_v42 = vmul.f32 %v7918_v51, %v9346_v6 }
0x1364   : > { %7341 = vmatprep.subr.bf16.mxu0 %v9667_v24 }
0x1365   : > { %v5212_v55 = vpack.c.bf16 %v5210_v12, %v5209_v14  ;;  %v5206_v2 = vpack.c.bf16 %v5204_v26, %v5203_v42  ;;  %v5552_v31 = vpop.permute.xlu1 %5551 }
0x1366   : > { %v5554_v0 = vsel %vm2069_vm1, %v5552_v31, 0 }
0x1367   : > { %7302 = vmatmul.mubr.msk.bf16.vlgmr.msra.gmra.mrb[112].mxu1 %vm2265_vm3, %v5212_v55 }
0x1368   : > { %7312 = vmatpush3.bf16.msra.mxu1 %v5354_v4  ;;  %7313 = vmatprep.mubr.msk.bf16.mxu1 %vm8184_vm0, %v9667_v24 }
0x1369   : > { %7323 = vmatprep.subr.bf16.mxu1 %v9667_v24 }
0x136a   : > { %7332 = vmatmul.mubr.msk.bf16.vlgmr.msra.gmra.mrb[120].mxu0 %vm2069_vm1, %v5402_v34 }
0x136b   : > { %7343 = vmatprep.mubr.msk.bf16.mxu0 %vm8184_vm0, %v9667_v24 }
0x1373   : > { %7314 = vmatmul.mubr.msk.bf16.vlgmr.msra.gmra.mrb[112].mxu1 %vm2252_vm2, %v5206_v2 }
0x1374   : > { %7324 = vmatpush3.bf16.xpose.msra.mxu1 %v5460_v37  ;;  %7325 = vmatprep.mubr.msk.bf16.mxu1 %vm8184_vm0, %v9667_v24 }
0x1375   : > { %7335 = vmatprep.subr.bf16.mxu1 %v9667_v24 }
0x137b   : > { %7326 = vmatmul.mubr.msk.bf16.vlgmr.msra.gmra.mrb[116].mxu1 %vm2069_vm1, %v5455_v43 }
0x137c   : > { %7336 = vmatpush3.bf16.xpose.msra.mxu1 %v5554_v0  ;;  %7337 = vmatprep.mubr.msk.bf16.mxu1 %vm8184_vm0, %v9667_v24 }
0x137d   : > { %7347 = vmatprep.subr.bf16.mxu1 %v9667_v24 }
0x1383   : > { %7338 = vmatmul.mubr.msk.bf16.vlgmr.msra.gmra.mrb[120].mxu1 %vm2069_vm1, %v5455_v43 }
0x1384   : > { %7349 = vmatprep.mubr.msk.bf16.mxu1 %vm8184_vm0, %v9667_v24 }
0x1416   : > { %v9410_v6 = vpop.f32.mrb[112].mxu0 }
0x1417   : > { %v7309_v48 = vpop.f32.mrb[113].mxu0 }
0x1418   : > { %v9412_v56 = vpop.f32.mrb[114].mxu0 }
0x1419   : > { %v7310_v25 = vpop.f32.mrb[115].mxu0 }
0x1435   : > { %v5443_v17 = vpop.f32.mrb[116].mxu0 }
0x1436   : > { %v7321_v27 = vpop.f32.mrb[117].mxu0  ;;  %v5597_v41 = vsel %vm2252_vm2, %v5443_v17, -inf }
0x1437   : > { %5598 = vmax.xlane.f32.xlu0 %v5597_v41  ;;  %v5446_v20 = vpop.f32.mrb[118].mxu0 }
0x1438   : > { %v7322_v10 = vpop.f32.mrb[119].mxu0  ;;  %v5600_v15 = vsel %vm2252_vm2, %v5446_v20, -inf }
0x1439   : > { %5601 = vmax.xlane.f32.xlu1 %v5600_v15 }
0x143d   : > { %v5543_v38 = vpop.f32.mrb[120].mxu0 }
0x143e   : > { %v7333_v33 = vpop.f32.mrb[121].mxu0  ;;  %v5609_v49 = vsel %vm2265_vm3, %v5543_v38, -inf }
0x143f   : > { %5610 = vmax.xlane.f32.xlu0 %v5609_v49  ;;  %v5546_v34 = vpop.f32.mrb[122].mxu0 }
0x1440   : > { %v7334_v51 = vpop.f32.mrb[123].mxu0  ;;  %v5612_v39 = vsel %vm2265_vm3, %v5546_v34, -inf }
0x1443   : > { %5613 = vmax.xlane.f32.xlu0 %v5612_v39 }
0x1446   : > { %v9418_v61 = vpop.f32.mrb[112].mxu1 }
0x1447   : > { %v7315_v7 = vpop.f32.mrb[113].mxu1 }
0x1448   : > { %v9420_v22 = vpop.f32.mrb[114].mxu1 }
0x1449   : > { %v7316_v14 = vpop.f32.mrb[115].mxu1 }
0x144e   : > { %v5496_v12 = vpop.f32.mrb[116].mxu1 }
0x144f   : > { %v7327_v55 = vpop.f32.mrb[117].mxu1  ;;  %v5603_v4 = vsel %vm2252_vm2, %v5496_v12, -inf }
0x1450   : > { %5604 = vmax.xlane.f32.xlu0 %v5603_v4  ;;  %v5499_v26 = vpop.f32.mrb[118].mxu1 }
0x1451   : > { %v7328_v42 = vpop.f32.mrb[119].mxu1  ;;  %v5606_v11 = vsel %vm2252_vm2, %v5499_v26, -inf }
0x1452   : > { %5607 = vmax.xlane.f32.xlu1 %v5606_v11 }
0x1456   : > { %v5590_v2 = vpop.f32.mrb[120].mxu1 }
0x1457   : > { %v7339_v37 = vpop.f32.mrb[121].mxu1  ;;  %v5615_v31 = vsel %vm2265_vm3, %v5590_v2, -inf }
0x1458   : > { %5616 = vmax.xlane.f32.xlu0 %v5615_v31  ;;  %v5593_v43 = vpop.f32.mrb[122].mxu1 }
0x1459   : > { %v7340_v0 = vpop.f32.mrb[123].mxu1  ;;  %v5618_v48 = vsel %vm2265_vm3, %v5593_v43, -inf }
0x145a   : > { %5619 = vmax.xlane.f32.xlu1 %v5618_v48 }
0x14c4   : > { %v5599_v25 = vpop.xlane.xlu0 %5598 }
0x14c6   : > { %v5602_v33 = vpop.xlane.xlu1 %5601 }
0x14cc   : > { %v5611_v27 = vpop.xlane.xlu0 %5610 }
0x14cd   : > { %v5621_v41 = vmax.f32 %v5599_v25, %v5611_v27 }
0x14cf   : > { %v5625_v10 = vsub.f32 %v5443_v17, %v5621_v41  ;;  %v5637_v15 = vsub.f32 %v5543_v38, %v5621_v41 }
0x14d0   : > { %v5614_v49 = vpop.xlane.xlu0 %5613 }
0x14d1   : > { %v5629_v51 = vmul.f32 1.442695, %v5625_v10  ;;  %v5641_v39 = vmul.f32 1.442695, %v5637_v15  ;;  %v5622_v7 = vmax.f32 %v5602_v33, %v5614_v49 }
0x14d3   : > { %7921 = vpow2.f32 %v5629_v51  ;;  %v5626_v14 = vsub.f32 %v5446_v20, %v5622_v7  ;;  %v5638_v55 = vsub.f32 %v5546_v34, %v5622_v7 }
0x14d4   : > { %7923 = vpow2.f32 %v5641_v39 }
0x14d5   : > { %v5631_v4 = vmul.f32 1.442695, %v5626_v14  ;;  %v5643_v42 = vmul.f32 1.442695, %v5638_v55 }
0x14d7   : > { %7925 = vpow2.f32 %v5631_v4 }
0x14d8   : > { %7927 = vpow2.f32 %v5643_v42 }
0x14dd   : > { %v9426_v11 = vpop.eup %7921  ;;  %v5605_v31 = vpop.xlane.xlu0 %5604 }
0x14de   : > { %v5649_v37 = vsel %vm2252_vm2, %v9426_v11, 0.0  ;;  %v9430_v17 = vpop.eup %7923 }
0x14df   : > { %5650 = vadd.xlane.f32.xlu0 %v5649_v37  ;;  %v5661_v20 = vsel %vm2265_vm3, %v9430_v17, 0.0  ;;  %v5608_v7 = vpop.xlane.xlu1 %5607 }
0x14e1   : > { %v9432_v38 = vpop.eup %7925 }
0x14e2   : > { %v5652_v34 = vsel %vm2252_vm2, %v9432_v38, 0.0  ;;  %v7928_v0 = vpop.eup %7927 }
0x14e3   : > { %5662 = vadd.xlane.f32.xlu0 %v5661_v20  ;;  %5653 = vadd.xlane.f32.xlu1 %v5652_v34  ;;  %v5664_v27 = vsel %vm2265_vm3, %v7928_v0, 0.0 }
0x14e5   : > { %v5617_v48 = vpop.xlane.xlu0 %5616 }
0x14e6   : > { %v5623_v25 = vmax.f32 %v5605_v31, %v5617_v48 }
0x14e7   : > { %5665 = vadd.xlane.f32.xlu1 %v5664_v27 }
0x14e8   : > { %v5627_v41 = vsub.f32 %v5496_v12, %v5623_v25  ;;  %v5639_v10 = vsub.f32 %v5590_v2, %v5623_v25  ;;  %v5620_v2 = vpop.xlane.xlu1 %5619 }
0x14e9   : > { %v5624_v14 = vmax.f32 %v5608_v7, %v5620_v2 }
0x14ea   : > { %v5633_v15 = vmul.f32 1.442695, %v5627_v41  ;;  %v5645_v33 = vmul.f32 1.442695, %v5639_v10 }
0x14eb   : > { %v5628_v55 = vsub.f32 %v5499_v26, %v5624_v14  ;;  %v5640_v42 = vsub.f32 %v5593_v43, %v5624_v14 }
0x14ec   : > { %7929 = vpow2.f32 %v5633_v15 }
0x14ed   : > { %7931 = vpow2.f32 %v5645_v33  ;;  %v5635_v4 = vmul.f32 1.442695, %v5628_v55  ;;  %v5647_v37 = vmul.f32 1.442695, %v5640_v42 }
0x14ef   : > { %7933 = vpow2.f32 %v5635_v4 }
0x14f0   : > { %7935 = vpow2.f32 %v5647_v37 }
0x14f6   : > { %v9439_v49 = vpop.eup %7929 }
0x14f7   : > { %v5655_v51 = vsel %vm2252_vm2, %v9439_v49, 0.0  ;;  %v9443_v39 = vpop.eup %7931 }
0x14f8   : > { %5656 = vadd.xlane.f32.xlu0 %v5655_v51  ;;  %5742 = vrot.lane.b32.xlu1 %v9670_v29, %s8185_s14  ;;  %v5667_v12 = vsel %vm2265_vm3, %v9443_v39, 0.0 }
0x14f9   : > { %v9455_v29 = vpop.eup %7933 }
0x14fa   : > { %v5658_v26 = vsel %vm2252_vm2, %v9455_v29, 0.0  ;;  %v9463_v43 = vpop.eup %7935 }
0x14fc   : > { %5668 = vadd.xlane.f32.xlu0 %v5667_v12 }
0x1512   : > { %5694 = vrot.lane.b32.xlu0 %v8634_v52, %s8185_s14  ;;  %v5670_v52 = vsel %vm2265_vm3, %v9463_v43, 0.0 }
0x1516   : > { %7526 = vrot.lane.b32.xlu0 %v7525_v62, %s8185_s14 }
0x151a   : > { %7531 = vrot.lane.b32.xlu0 %v7530_v21, %s8185_s14 }
0x151c   : > { %5659 = vadd.xlane.f32.xlu1 %v5658_v26 }
0x151e   : > { %7546 = vrot.lane.b32.xlu0 %v7545_v3, %s8185_s14 }
0x1520   : > { %5671 = vadd.xlane.f32.xlu1 %v5670_v52 }
0x1522   : > { %7556 = vrot.lane.b32.xlu0 %v7555_v53, %s8185_s14 }
0x1531   : > { %5789 = vrot.lane.b32.xlu1 %v8704_v23, %s8185_s14 }
0x1535   : > { %5839 = vrot.lane.b32.xlu1 %v8714_v45, %s8185_s14 }
0x156c   : > { %v5651_v40 = vpop.xlane.xlu0 %5650 }
0x1570   : > { %v5654_v36 = vpop.xlane.xlu1 %5653  ;;  %v5663_v28 = vpop.xlane.xlu0 %5662 }
0x1571   : > { %v5673_v9 = vadd.f32 %v5663_v28, %v5651_v40 }
0x1574   : > { %v5666_v21 = vpop.xlane.xlu1 %5665 }
0x1575   : > { %v5674_v62 = vadd.f32 %v5666_v21, %v5654_v36 }
0x1577   : > { %7937 = vrcp.f32 %v5674_v62 }
0x1578   : > { %v5743_v57 = vpop.permute.xlu1 %5742  ;;  %7939 = vrcp.f32 %v5673_v9  ;;  %v7711_v9 = vld [vmem:[#allocation10 + $0x48] sm:$0xff]  }
0x1579   : > { %7348 = vmatpush3.bf16.msra.mxu1 %v5743_v57  ;;  %v7709_v57 = vld [vmem:[#allocation10 + $0x40] sm:$0xff]  }
0x157a   : > { %7359 = vmatprep.subr.bf16.mxu1 %v9667_v24 }
0x1581   : > { %v7938_v47 = vpop.eup %7937 }
0x1582   : > { %v7940_v1 = vpop.eup %7939  ;;  %v5688_v23 = vmul.f32 %v7938_v47, %v7928_v0  ;;  %v5682_v40 = vmul.f32 %v7938_v47, %v9432_v38  ;;  %v7713_v38 = vld [vmem:[#allocation10 + $0x50] sm:$0xff]  }
0x1583   : > { %v5687_v3 = vmul.f32 %v7940_v1, %v9430_v17 }
0x1585   : > { %v5657_v32 = vpop.xlane.xlu0 %5656  ;;  %v5691_v31 = vpack.c.bf16 %v5688_v23, %v5687_v3 }
0x1589   : > { %v5669_v53 = vpop.xlane.xlu0 %5668 }
0x158d   : > { %v5695_v45 = vpop.permute.xlu0 %5694 }
0x158e   : > { %7342 = vmatpush3.bf16.msra.mxu0 %v5695_v45 }
0x158f   : > { %7353 = vmatprep.subr.bf16.mxu0 %v9667_v24 }
0x1591   : > { %v7527_v20 = vpop.permute.xlu0 %7526  ;;  %7344 = vmatmul.mubr.msk.bf16.vlgmr.msra.gmra.mrb[124].mxu0 %vm2265_vm3, %v5691_v31  ;;  %v7714_v31 = vld [vmem:[#allocation10 + $0x10] sm:$0xff]  }
0x1592   : > { %v7529_v34 = vunpack.i.h.bf16 %v7527_v20  ;;  %v7528_v48 = vunpack.i.l.bf16 %v7527_v20  ;;  %7355 = vmatprep.mubr.msk.bf16.mxu0 %vm8184_vm0, %v9667_v24  ;;  %v7715_v20 = vld [vmem:[#allocation10 + $0x58] sm:$0xff]  }
0x1594   : > { %v5957_v25 = vsel %vm2069_vm1, %v9002_v13, %v7528_v48  ;;  %v5958_v0 = vsel %vm2069_vm1, %v9004_v60, %v7529_v34  ;;  %v7716_v48 = vld [vmem:[#allocation10 + $0x18] sm:$0xff]  }
0x1595   : > { %v7532_v17 = vpop.permute.xlu0 %7531  ;;  %v5970_v27 = vpack.c.bf16 %v5958_v0, %v5957_v25  ;;  %v7718_v25 = vld [vmem:[#allocation10 + $0x20] sm:$0xff]   ;;  %v7719_v0 = vld [vmem:[#allocation10 + $0x68] sm:$0xff]  }
0x1596   : > { %v7534_v41 = vunpack.i.h.bf16 %v7532_v17  ;;  %v7533_v10 = vunpack.i.l.bf16 %v7532_v17 }
0x1598   : > { %v9491_v15 = vsel %vm2069_vm1, %v8802_v54, %v7534_v41  ;;  %v9495_v33 = vsel %vm2069_vm1, %v8800_v59, %v7533_v10  ;;  %v7720_v41 = vld [vmem:[#allocation10 + $0x28] sm:$0xff]   ;;  %v7721_v10 = vld [vmem:[#allocation10 + $0x70] sm:$0xff]  }
0x1599   : > { %v5969_v51 = vpack.c.bf16 %v9491_v15, %v9495_v33  ;;  %v7547_v7 = vpop.permute.xlu0 %7546  ;;  %v7731_v15 = vld [vmem:[#allocation10 + $0xd8] sm:$0xff]  }
0x159a   : > { %v7549_v13 = vunpack.i.h.bf16 %v7547_v7  ;;  %v7548_v12 = vunpack.i.l.bf16 %v7547_v7  ;;  %v7723_v7 = vld [vmem:[#allocation10 + $0x78] sm:$0xff]  }
0x159b   : > { %v7732_v33 = vld [vmem:[#allocation10 + $0x98] sm:$0xff]  }
0x159c   : > { %v9501_v60 = vsel %vm2069_vm1, %v9010_v50, %v7548_v12  ;;  %v9505_v2 = vsel %vm2069_vm1, %v9012_v18, %v7549_v13  ;;  %v5675_v18 = vadd.f32 %v5669_v53, %v5657_v32  ;;  %v7712_v53 = vld [vmem:[#allocation10 + $0x8] sm:$0xff]   ;;  %v7724_v13 = vld [vmem:[#allocation10 + $0x38] sm:$0xff]  }
0x159d   : > { %v7557_v54 = vpop.permute.xlu0 %7556  ;;  %v5974_v14 = vpack.c.bf16 %v9505_v2, %v9501_v60  ;;  %v7727_v12 = vld [vmem:[#allocation10 + $0xc8] sm:$0xff]   ;;  %v7734_v60 = vld [vmem:[#allocation10 + $0xa0] sm:$0xff]  }
0x159e   : > { %v7559_v59 = vunpack.i.h.bf16 %v7557_v54  ;;  %v7558_v55 = vunpack.i.l.bf16 %v7557_v54  ;;  %7941 = vrcp.f32 %v5675_v18  ;;  %v7728_v54 = vld [vmem:[#allocation10 + $0x88] sm:$0xff]  }
0x159f   : > { %v7735_v2 = vld [vmem:[#allocation10 + $0xe8] sm:$0xff]  }
0x15a0   : > { %v9511_v4 = vsel %vm2069_vm1, %v8804_v19, %v7558_v55  ;;  %v9515_v42 = vsel %vm2069_vm1, %v8807_v58, %v7559_v59  ;;  %v5681_v19 = vmul.f32 %v7940_v1, %v9426_v11  ;;  %v7710_v58 = vld [vmem:[#allocation10] sm:$0xff]   ;;  %v7729_v59 = vld [vmem:[#allocation10 + $0xd0] sm:$0xff]  }
0x15a1   : > { %v5973_v50 = vpack.c.bf16 %v9515_v42, %v9511_v4  ;;  %v7730_v55 = vld [vmem:[#allocation10 + $0x90] sm:$0xff]  }
0x15a2   : > { %v5685_v62 = vpack.c.bf16 %v5682_v40, %v5681_v19  ;;  %v7737_v4 = vld [vmem:[#allocation10 + $0xf0] sm:$0xff]  }
0x15a3   : > { %v7738_v42 = vld [vmem:[#allocation10 + $0xb0] sm:$0xff]  }
0x15a8   : > { %v7942_v23 = vpop.eup %7941 }
0x15a9   : > { %v5660_v37 = vpop.xlane.xlu1 %5659  ;;  %v5689_v47 = vmul.f32 %v7942_v23, %v9443_v39  ;;  %v7717_v39 = vld [vmem:[#allocation10 + $0x60] sm:$0xff]   ;;  %v5683_v17 = vmul.f32 %v7942_v23, %v9439_v49 }
0x15aa   : > { %v7725_v49 = vld [vmem:[#allocation10 + $0xc0] sm:$0xff]  }
0x15ad   : > { %v5672_v26 = vpop.xlane.xlu1 %5671 }
0x15ae   : > { %v5676_v52 = vadd.f32 %v5672_v26, %v5660_v37  ;;  %v7740_v37 = vld [vmem:[#allocation10 + $0xb8] sm:$0xff]  }
0x15b0   : > { %7943 = vrcp.f32 %v5676_v52 }
0x15b1   : > { %v5790_v36 = vpop.permute.xlu1 %5789 }
0x15b2   : > { %v5791_v21 = vrot.slane %v5790_v36, 4 }
0x15b4   : > { %v5796_v28 = vsel %vm2441_vm4, %v5791_v21, 0  ;;  %v9671_v21 = vpack.i.bf16 %v9318_v63, %v9316_v35 }
0x15b5   : > { %7354 = vmatpush3.bf16.msra.mxu0 %v5796_v28  ;;  %v5840_v32 = vpop.permute.xlu1 %5839 }
0x15b6   : > { %6925 = vmatprep.subr.bf16.mxu0 %v7709_v57  ;;  %v5841_v1 = vrot.slane %v5840_v32, 4 }
0x15b8   : > { %7356 = vmatmul.mubr.msk.bf16.vlgmr.msra.gmra.mrb[124].mxu0 %vm2252_vm2, %v5685_v62  ;;  %v5846_v34 = vsel %vm2441_vm4, %v5841_v1, 0 }
0x15b9   : > { %6926 = vmatpush3.bf16.msra.mxu0 %v7710_v58  ;;  %6265 = vmatprep.mubr.bf16.mxu0 %v5970_v27 }
0x15ba   : > { %v7944_v3 = vpop.eup %7943  ;;  %6927 = vmatprep.subr.bf16.mxu0 %v7711_v9  ;;  %v9672_v9 = vpack.i.bf16 %v9328_v30, %v9326_v46 }
0x15bb   : > { %v5690_v11 = vmul.f32 %v7944_v3, %v9463_v43  ;;  %v5684_v43 = vmul.f32 %v7944_v3, %v9455_v29  ;;  %v7726_v29 = vld [vmem:[#allocation10 + $0x80] sm:$0xff]  }
0x15bd   : > { %6928 = vmatpush3.bf16.msra.mxu0 %v7712_v53  ;;  %v5692_v45 = vpack.c.bf16 %v5690_v11, %v5689_v47  ;;  %v5686_v27 = vpack.c.bf16 %v5684_v43, %v5683_v17 }
0x15be   : > { %6929 = vmatprep.subr.bf16.mxu0 %v7713_v38 }
0x15bf   : > { %7350 = vmatmul.mubr.msk.bf16.vlgmr.msra.gmra.mrb[124].mxu1 %vm2265_vm3, %v5692_v45 }
0x15c0   : > { %7360 = vmatpush3.bf16.msra.mxu1 %v5846_v34  ;;  %7361 = vmatprep.mubr.msk.bf16.mxu1 %vm8184_vm0, %v9667_v24  ;;  %v7722_v24 = vld [vmem:[#allocation10 + $0x30] sm:$0xff]  }
0x15c1   : > { %6930 = vmatpush3.bf16.msra.mxu0 %v7714_v31  ;;  %6953 = vmatprep.subr.bf16.mxu1 %v7725_v49 }
0x15c2   : > { %6931 = vmatprep.subr.bf16.mxu0 %v7715_v20 }
0x15c5   : > { %6932 = vmatpush3.bf16.msra.mxu0 %v7716_v48 }
0x15c6   : > { %6933 = vmatprep.subr.bf16.mxu0 %v7717_v39 }
0x15c9   : > { %6934 = vmatpush3.bf16.msra.mxu0 %v7718_v25 }
0x15ca   : > { %6935 = vmatprep.subr.bf16.mxu0 %v7719_v0 }
0x15cb   : > { %7362 = vmatmul.mubr.msk.bf16.vlgmr.msra.gmra.mrb[124].mxu1 %vm2252_vm2, %v5686_v27 }
0x15cc   : > { %6954 = vmatpush3.bf16.msra.mxu1 %v7726_v29 }
0x15cd   : > { %6936 = vmatpush3.bf16.msra.mxu0 %v7720_v41  ;;  %6955 = vmatprep.subr.bf16.mxu1 %v7727_v12 }
0x15ce   : > { %6937 = vmatprep.subr.bf16.mxu0 %v7721_v10 }
0x15d0   : > { %6956 = vmatpush3.bf16.msra.mxu1 %v7728_v54 }
0x15d1   : > { %6938 = vmatpush3.bf16.msra.mxu0 %v7722_v24  ;;  %6957 = vmatprep.subr.bf16.mxu1 %v7729_v59 }
0x15d2   : > { %6939 = vmatprep.subr.bf16.mxu0 %v7723_v7 }
0x15d4   : > { %6958 = vmatpush3.bf16.msra.mxu1 %v7730_v55 }
0x15d5   : > { %6940 = vmatpush3.bf16.msra.mxu0 %v7724_v13  ;;  %6959 = vmatprep.subr.bf16.mxu1 %v7731_v15 }
0x15d8   : > { %6266 = vmatmul.mubr.bf16.vlgmr.msra.gmra.mrb[128].mxu0 %v5969_v51  ;;  %v7733_v51 = vld [vmem:[#allocation10 + $0xe0] sm:$0xff]   ;;  %6960 = vmatpush3.bf16.msra.mxu1 %v7732_v33 }
0x15d9   : > { %6273 = vmatprep.mubr.bf16.mxu0 %v5974_v14  ;;  %6961 = vmatprep.subr.bf16.mxu1 %v7733_v51  ;;  %v7736_v14 = vld [vmem:[#allocation10 + $0xa8] sm:$0xff]  }
0x15dc   : > { %6962 = vmatpush3.bf16.msra.mxu1 %v7734_v60 }
0x15dd   : > { %6963 = vmatprep.subr.bf16.mxu1 %v7735_v2 }
0x15e0   : > { %6274 = vmatmul.mubr.bf16.gmra.mrb[132].mxu0 %v5973_v50  ;;  %6964 = vmatpush3.bf16.msra.mxu1 %v7736_v14  ;;  %v7739_v50 = vld [vmem:[#allocation10 + $0xf8] sm:$0xff]  }
0x15e1   : > { %6965 = vmatprep.subr.bf16.mxu1 %v7737_v4 }
0x15e4   : > { %6966 = vmatpush3.bf16.msra.mxu1 %v7738_v42 }
0x15e5   : > { %6967 = vmatprep.subr.bf16.mxu1 %v7739_v50 }
0x15e8   : > { %6968 = vmatpush3.bf16.msra.mxu1 %v7740_v37 }
0x168b   : > { %v5832_v18 = vpop.f32.mrb[124].mxu0 }
0x168c   : > { %v7357_v26 = vpop.f32.mrb[125].mxu0 }
0x168d   : > { %v5835_v52 = vpop.f32.mrb[126].mxu0 }
0x168e   : > { %v7535_v36 = vpack.i.bf16 %v5835_v52, %v5832_v18  ;;  %v7358_v40 = vpop.f32.mrb[127].mxu0 }
0x1690   : > { %7536 = vrot.lane.b32.xlu1 %v7535_v36, %s8185_s14 }
0x1694   : > { %7541 = vrot.lane.b32.xlu1 %v9671_v21, %s8185_s14 }
0x169e   : > { %v5882_v57 = vpop.f32.mrb[124].mxu1 }
0x169f   : > { %v7363_v19 = vpop.f32.mrb[125].mxu1 }
0x16a0   : > { %v5885_v28 = vpop.f32.mrb[126].mxu1 }
0x16a1   : > { %v7550_v58 = vpack.i.bf16 %v5885_v28, %v5882_v57  ;;  %v7364_v62 = vpop.f32.mrb[127].mxu1 }
0x16a3   : > { %7551 = vrot.lane.b32.xlu1 %v7550_v58, %s8185_s14 }
0x16a7   : > { %7561 = vrot.lane.b32.xlu1 %v9672_v9, %s8185_s14 }
0x16ab   : > { %v6941_v23 = vpop.f32.mrb[128].mxu0 }
0x16ac   : > { %v6942_v32 = vpop.f32.mrb[129].mxu0 }
0x16ad   : > { %v6943_v53 = vadd.f32 %v6942_v32, %v6941_v23  ;;  %v6944_v3 = vpop.f32.mrb[130].mxu0 }
0x16ae   : > { %v6945_v38 = vpop.f32.mrb[131].mxu0 }
0x16af   : > { %v6946_v47 = vadd.f32 %v6945_v38, %v6944_v3 }
0x16b3   : > { %v6947_v35 = vpop.f32.mrb[132].mxu0 }
0x16b4   : > { %v6948_v63 = vpop.f32.mrb[133].mxu0 }
0x16b5   : > { %v6949_v11 = vadd.f32 %v6948_v63, %v6947_v35  ;;  %v6950_v1 = vpop.f32.mrb[134].mxu0 }
0x16b6   : > { %v6951_v45 = vpop.f32.mrb[135].mxu0 }
0x16b7   : > { %v6952_v31 = vadd.f32 %v6951_v45, %v6950_v1 }
0x1702   : > { %v7537_v20 = vpop.permute.xlu1 %7536 }
0x1703   : > { %v7539_v34 = vunpack.i.h.bf16 %v7537_v20  ;;  %v7538_v48 = vunpack.i.l.bf16 %v7537_v20 }
0x1705   : > { %v5965_v39 = vsel %vm2069_vm1, %v9410_v6, %v7538_v48  ;;  %v5966_v46 = vsel %vm2069_vm1, %v9412_v56, %v7539_v34 }
0x1706   : > { %v7542_v30 = vpop.permute.xlu1 %7541  ;;  %v5972_v43 = vpack.c.bf16 %v5966_v46, %v5965_v39 }
0x1707   : > { %v7544_v25 = vunpack.i.h.bf16 %v7542_v30  ;;  %v7543_v0 = vunpack.i.l.bf16 %v7542_v30 }
0x1708   : > { %6314 = vmatprep.mubr.bf16.mxu1 %v5972_v43 }
0x1709   : > { %v5962_v17 = vsel %vm2069_vm1, %v9206_v8, %v7544_v25  ;;  %v5961_v27 = vsel %vm2069_vm1, %v9204_v16, %v7543_v0 }
0x170a   : > { %v5971_v41 = vpack.c.bf16 %v5962_v17, %v5961_v27 }
0x170c   : > { %6315 = vmatmul.mubr.bf16.vlgmr.msra.gmra.mrb[128].mxu1 %v5971_v41 }
0x1715   : > { %v7552_v10 = vpop.permute.xlu1 %7551 }
0x1716   : > { %v7554_v24 = vunpack.i.h.bf16 %v7552_v10  ;;  %v7553_v7 = vunpack.i.l.bf16 %v7552_v10 }
0x1718   : > { %v5967_v6 = vsel %vm2069_vm1, %v9418_v61, %v7553_v7  ;;  %v5968_v56 = vsel %vm2069_vm1, %v9420_v22, %v7554_v24 }
0x1719   : > { %v7562_v13 = vpop.permute.xlu1 %7561  ;;  %v5976_v49 = vpack.c.bf16 %v5968_v56, %v5967_v6 }
0x171a   : > { %v7564_v29 = vunpack.i.h.bf16 %v7562_v13  ;;  %v7563_v12 = vunpack.i.l.bf16 %v7562_v13 }
0x171b   : > { %6322 = vmatprep.mubr.bf16.mxu1 %v5976_v49 }
0x171c   : > { %v5963_v16 = vsel %vm2069_vm1, %v9212_v5, %v7563_v12  ;;  %v5964_v8 = vsel %vm2069_vm1, %v9214_v44, %v7564_v29 }
0x171d   : > { %v5975_v54 = vpack.c.bf16 %v5964_v8, %v5963_v16 }
0x171f   : > { %6323 = vmatmul.mubr.bf16.gmra.mrb[132].mxu1 %v5975_v54 }
0x17df   : > { %v6969_v59 = vpop.f32.mrb[128].mxu1 }
0x17e0   : > { %v6970_v61 = vpop.f32.mrb[129].mxu1 }
0x17e1   : > { %v6971_v55 = vadd.f32 %v6970_v61, %v6969_v59  ;;  %v6972_v15 = vpop.f32.mrb[130].mxu1 }
0x17e2   : > { %v6973_v22 = vpop.f32.mrb[131].mxu1 }
0x17e3   : > { %v6317_v33 = vadd.f32 %v6971_v55, %v6943_v53  ;;  %v6974_v51 = vadd.f32 %v6973_v22, %v6972_v15 }
0x17e5   : > { %6331 = vst [vmem:[%s434_s18] sm:$0xff] %v6317_v33  ;;  %v6320_v60 = vadd.f32 %v6974_v51, %v6946_v47 }
0x17e7   : > { %6332 = vst [vmem:[%s434_s18 + $0x8] sm:$0xff] %v6320_v60 }
0x17f2   : > { %v6975_v5 = vpop.f32.mrb[132].mxu1 }
0x17f3   : > { %v6976_v44 = vpop.f32.mrb[133].mxu1 }
0x17f4   : > { %v6977_v2 = vadd.f32 %v6976_v44, %v6975_v5  ;;  %v6978_v14 = vpop.f32.mrb[134].mxu1 }
0x17f5   : > { %v6979_v4 = vpop.f32.mrb[135].mxu1 }
0x17f6   : > { %v6325_v42 = vadd.f32 %v6977_v2, %v6949_v11  ;;  %v6980_v50 = vadd.f32 %v6979_v4, %v6978_v14 }
0x17f8   : > { %6333 = vst [vmem:[%s434_s18 + $0x10] sm:$0xff] %v6325_v42  ;;  %v6328_v37 = vadd.f32 %v6980_v50, %v6952_v31 }
0x17fa   : > { %6334 = vst [vmem:[%s434_s18 + $0x18] sm:$0xff] %v6328_v37 }
0x17fb   : > { %8102 = shalt.err (!%p8099_p3)
}
0x17fc   : > { %s8103_s30 = scalar_lea.hbm %s9575_s7, 512  ;;  %s8107_s0 = scalar_lea.hbm %s9628_s9, 1024 }
0x17fd   : > { %p8104_p9 = scmp.ne.s32.totalorder %s9575_s7, %s8103_s30  ;;  %p8108_p7 = scmp.lt.u32.totalorder %s9575_s7, %s9628_s9 }
0x17fe   : > { %p8109_p12 = scmp.lt.u32.totalorder %s8107_s0, %s8103_s30  ;;  %p8111_p1 = scmp.lt.u32.totalorder %s8103_s30, %s9575_s7 }
0x17ff   : > { %p8105_p13 = pnand %p8104_p9, %p8381_p5 }
0x1800   : > { %p8110_p2 = por %p8109_p12, %p8108_p7 }
0x1801   : > { %p8106_p11 = pneg %p8105_p13 }
0x1802   : > { %p8112_p4 = por %p8111_p1, %p8110_p2 }
0x1804   : > { %p8113_p0 = pnand %p8112_p4, %p8106_p11 }
0x1806   : > { %8116 = shalt.err (!%p8113_p0)
}
0x1807   : > { %s8187_s29 = smov 128   ;;  %s8188_s14 = smov 8  }
0x1808   : > { %7445 = dma.vmem_to_hbm [thread:$0]  (%p8381_p5), %s9570_s22, 512, %s9575_s7, %s6336_s8, %s8187_s29, %s8187_s29, %s8188_s14  }
0x1809 PF: > { %s9673_s18 = sld [smem:[#allocation17_spill]]  ;;  %s9674_s24 = sld [smem:[#allocation18_spill]] }
0x180a   : > { %p9676_p6 = scmp.ge.s32.totalorder %s8167_s12, 2 }
0x180f   : > { %s6365_s20 = sand.u32 1, %s9673_s18   ;;  %p9675_p8 = scmp.ne.s32.totalorder %s9674_s24, 0 }
0x1810   : > { %s6366_s19 = scalar_lea.sflag [#allocation4], %s6365_s20 }
0x1811   : > { %p7465_p10 = pnand %p9676_p6, %p9675_p8 }
0x1813   : > { %8150 = dma.done.wait (!%p7465_p10), %s6366_s19, 512  }
0x1814   : > { %8152 = vsyncadd (!%p7465_p10), %s6366_s19, 4294966784  ;;  %s9677_s17 = sld [smem:[#allocation19_spill]]  ;;  %p26_p3 = scmp.ge.s32.totalorder %s8367_s21, 4  }
0x1815   : > { %s9678_s30 = smov %s8159_s10  ;;  %s9679_s10 = smov %s8163_s11 }
0x1816   : > { %s9681_s12 = smov %s8367_s21  ;;  %28 = sbr.rel (!%p26_p3) target bundleno = 13 (0xd), region = 126 }
0x181a   : > { %s9680_s11 = smov %s9677_s17 }
0x181d   :  { %6371 = vsyncpa [#allocation3], 1 }
0x181e   :  { %6373 = vsyncpa [#allocation3 + $0x1], 1 }
0x181f   :  { %6374 = vsyncpa [#allocation6], 1 }
0x1820   :  { %6376 = vsyncpa [#allocation6 + $0x1], 1 }
0x1821   :  { %6377 = vsyncpa [#allocation9], 1 }
0x1822   :  { %6378 = vsyncpa [#allocation4], 1 }
0x1823   :  { %6380 = vsyncpa [#allocation4 + $0x1], 1 }

// kernel: tpu_custom_call.1
= control target key start
LH: loop header
LB: loop body
LE: loop exit
PB: predicated region body
PF: predicated region fallthrough
CT: control target
= control target key end

     0   :  { %s9619_s0 = inlined_call_operand.hbm [shape: f32[4,8,128], index: 0, kind: input, shape index: {}]   ;;  %s9620_s1 = inlined_call_operand.hbm [shape: f32[4,16,128], index: 1, kind: input, shape index: {}]   ;;  %s9621_s2 = inlined_call_operand.vmem [shape: f32[1,128], index: 2, kind: input, shape index: {}]   ;;  %s9622_s3 = inlined_call_operand.vmem [shape: f32[1,128], index: 3, kind: input, shape index: {}]   ;;  %s9623_s4 = inlined_call_operand.vmem [shape: f32[1,128], index: 4, kind: input, shape index: {}]   ;;  %s9624_s5 = inlined_call_operand.vmem [shape: f32[1,128], index: 5, kind: input, shape index: {}]   ;;  %s9625_s6 = inlined_call_operand.hbm [shape: bf16[128,1536], index: 6, kind: input, shape index: {}]   ;;  %s9626_s7 = inlined_call_operand.hbm [shape: bf16[128,1024], index: 7, kind: input, shape index: {}]   ;;  %s9627_s8 = inlined_call_operand.hbm [shape: bf16[512,128], index: 8, kind: input, shape index: {}]   ;;  %s9628_s9 = inlined_call_operand.hbm [shape: f32[4,16,128], index: 9, kind: output, shape index: {}]  }
   0x1   :  { %9639 = sst [smem:[#allocation23_spill]] %s9619_s0 }
   0x2   :  { %9640 = sst [smem:[#allocation24_spill]] %s9625_s6 }
   0x3   :  { %9641 = sst [smem:[#allocation25_spill]] %s9626_s7 }
   0x4   :  { %9642 = sst [smem:[#allocation26_spill]] %s9627_s8 }
   0x5   :  { %14 = vsyncpa [#allocation3], 0 }
   0x6   :  { %16 = vsyncpa [#allocation3 + $0x1], 0 }
   0x7   :  { %17 = vsyncpa [#allocation6], 0 }
   0x8   :  { %19 = vsyncpa [#allocation6 + $0x1], 0 }
   0x9   :  { %20 = vsyncpa [#allocation9], 0 }
   0xa   :  { %21 = vsyncpa [#allocation4], 0 }
   0xb   :  { %23 = vsyncpa [#allocation4 + $0x1], 0  ;;  %s8239_s30 = smov 0   ;;  %s8241_s10 = smov 0  }
   0xc   :  { %s8243_s11 = smov 0   ;;  %s8245_s12 = smov 0  }
   0xd LB: > { %9643 = sst [smem:[#allocation17_spill]] %s8155_s30  ;;  %s8260_s13 = sadd.s32 4294967295, %s8167_s12   ;;  %s8167_s12 = sphi %s8245_s12, %s9681_s12   ;;  %s8163_s11 = sphi %s8243_s11, %s9680_s11   ;;  %s8159_s10 = sphi %s8241_s10, %s9679_s10   ;;  %s8155_s30 = sphi %s8239_s30, %s9678_s30  }
   0xe   : > { %s6474_s14 = sadd.s32 4294967294, %s8167_s12   ;;  %p49_p0 = scmp.ne.s32.totalorder %s8159_s10, %s8155_s30 }
   0xf   : > { %p9629_p1 = scmp.eq.s32.totalorder %s8260_s13, 0  ;;  %p252_p3 = scmp.eq.s32.totalorder %s6474_s14, 1 }
  0x10   : > { %p6475_p5 = scmp.ge.s32.totalorder %s8167_s12, 1  ;;  %p259_p7 = scmp.lt.s32.totalorder %s8167_s12, 3 }
  0x11   : > { %p8269_p4 = por %p9629_p1, %p49_p0  ;;  %p8274_p6 = por %p252_p3, %p49_p0 }
  0x12   : > { %p8279_p8 = pnand %p6475_p5, %p259_p7  ;;  %s8169_s18 = smov [#allocation7]  }
  0x13   : > { %s9644_s15 = scalar_select %p8269_p4, 1, 0 }
  0x14   : > { %s9645_s16 = scalar_select %p8274_p6, 1, 0 }
  0x15   : > { %s9647_s17 = scalar_select %p8279_p8, 1, 0 }
  0x16   : > { %9646 = sst [smem:[#allocation18_spill]] %s9645_s16  ;;  %s283_s19 = sshll.u32 %s8169_s18, 4  ;;  %s8283_s19 = int_to_ptr.vmem [resolvable:$true] %s283_s19 }
  0x17   : > { %p7447_p9 = pneg %p8279_p8  ;;  %s8170_s21 = smov [#allocation8]  }
  0x18   : > { %s296_s22 = sshll.u32 %s8170_s21, 4  ;;  %s9649_s6 = sld [smem:[#allocation24_spill]]  ;;  %s8294_s22 = int_to_ptr.vmem [resolvable:$true] %s296_s22 }
  0x19   : > { %p8290_p11 = pnand %p7447_p9, %p9629_p1 }
  0x1b   : > { %p8304_p13 = pneg %p8290_p11 }
  0x1e   : > { %s7945_s25 = scalar_lea.hbm %s9649_s6, 12288 }
  0x1f   : > { %p7946_p12 = scmp.ne.s32.totalorder %s9649_s6, %s7945_s25  ;;  %p7952_p5 = scmp.lt.u32.totalorder %s7945_s25, %s9649_s6 }
  0x21   : > { %p7948_p0 = pnand %p8304_p13, %p7946_p12 }
  0x23   : > { %p7949_p3 = pneg %p7948_p0 }
  0x25   : > { %p7954_p7 = pnand %p7952_p5, %p7949_p3 }
  0x27   : > { %7957 = shalt.err (!%p7954_p7)
}
  0x28   : > { %s7958_s18 = scalar_lea.vmem %s8283_s19, 12288  ;;  %p7966_p2 = scmp.lt.s32.totalorder %s8283_s19, %s8283_s19 }
  0x29   : > { %p7959_p9 = scmp.ne.s32.totalorder %s8283_s19, %s7958_s18  ;;  %p7967_p6 = scmp.lt.s32.totalorder %s7958_s18, %s7958_s18 }
  0x2b   : > { %p7961_p10 = pnand %p7959_p9, %p8304_p13  ;;  %p7968_p12 = por %p7967_p6, %p7966_p2 }
  0x2d   : > { %p7962_p1 = pneg %p7961_p10 }
  0x2f   : > { %p7969_p0 = pnand %p7968_p12, %p7962_p1 }
  0x31   : > { %7972 = shalt.err (!%p7969_p0)
}
  0x32   : > { %s8171_s21 = smov 768   ;;  %s8172_s23 = smov 48  }
  0x33   : > { %7450 = dma.hbm_to_vmem [thread:$0]  (!%p8290_p11), %s9649_s6, 12288, %s8283_s19, [#allocation6], %s8171_s21, %s8171_s21, %s8172_s23  }
  0x34   : > { %s9651_s7 = sld [smem:[#allocation25_spill]] }
  0x3a   : > { %s7973_s29 = scalar_lea.hbm %s9651_s7, 8192 }
  0x3b   : > { %p7974_p2 = scmp.ne.s32.totalorder %s9651_s7, %s7973_s29  ;;  %p7980_p10 = scmp.lt.u32.totalorder %s7973_s29, %s9651_s7 }
  0x3d   : > { %p7976_p1 = pnand %p7974_p2, %p8304_p13 }
  0x3f   : > { %p7977_p6 = pneg %p7976_p1 }
  0x41   : > { %p7982_p3 = pnand %p7980_p10, %p7977_p6 }
  0x43   : > { %7985 = shalt.err (!%p7982_p3)
}
  0x44   : > { %s7986_s19 = scalar_lea.vmem %s8294_s22, 8192  ;;  %p7994_p12 = scmp.lt.s32.totalorder %s8294_s22, %s8294_s22 }
  0x45   : > { %p7987_p5 = scmp.ne.s32.totalorder %s8294_s22, %s7986_s19  ;;  %p7995_p0 = scmp.lt.s32.totalorder %s7986_s19, %s7986_s19 }
  0x47   : > { %p7989_p7 = pnand %p7987_p5, %p8304_p13  ;;  %p7996_p2 = por %p7995_p0, %p7994_p12 }
  0x49   : > { %p7990_p9 = pneg %p7989_p7 }
  0x4b   : > { %p7997_p1 = pnand %p7996_p2, %p7990_p9 }
  0x4d   : > { %8000 = shalt.err (!%p7997_p1)
}
  0x4e   : > { %s8173_s16 = smov 512   ;;  %s8174_s30 = smov 32  }
  0x4f   : > { %7453 = dma.hbm_to_vmem [thread:$0]  (!%p8290_p11), %s9651_s7, 8192, %s8294_s22, [#allocation9], %s8173_s16, %s8173_s16, %s8174_s30  }
  0x50   : > { %s8175_s24 = smov [#allocation10]   ;;  %s9652_s8 = sld [smem:[#allocation26_spill]] }
  0x51   : > { %s309_s25 = sshll.u32 %s8175_s24, 4  ;;  %s310_s25 = int_to_ptr.vmem [resolvable:$true] %s309_s25 }
  0x56   : > { %s8001_s29 = scalar_lea.hbm %s9652_s8, 4096 }
  0x57   : > { %p8002_p6 = scmp.ne.s32.totalorder %s9652_s8, %s8001_s29  ;;  %p8008_p5 = scmp.lt.u32.totalorder %s8001_s29, %s9652_s8 }
  0x59   : > { %p8004_p10 = pnand %p8002_p6, %p8304_p13 }
  0x5b   : > { %p8005_p3 = pneg %p8004_p10 }
  0x5d   : > { %p8010_p7 = pnand %p8008_p5, %p8005_p3 }
  0x5f   : > { %8013 = shalt.err (!%p8010_p7)
}
  0x60   : > { %s8014_s22 = scalar_lea.vmem %s310_s25, 4096  ;;  %p8022_p2 = scmp.lt.s32.totalorder %s310_s25, %s310_s25 }
  0x61   : > { %p8015_p9 = scmp.ne.s32.totalorder %s310_s25, %s8014_s22  ;;  %p8023_p1 = scmp.lt.s32.totalorder %s8014_s22, %s8014_s22 }
  0x63   : > { %p8017_p12 = pnand %p8015_p9, %p8304_p13  ;;  %p8024_p4 = por %p8023_p1, %p8022_p2 }
  0x65   : > { %p8018_p0 = pneg %p8017_p12 }
  0x67   : > { %p8025_p8 = pnand %p8024_p4, %p8018_p0 }
  0x69   : > { %8028 = shalt.err (!%p8025_p8)
}
  0x6a   : > { %s8176_s16 = smov 64   ;;  %s8177_s6 = smov 4  }
  0x6b   : > { %7456 = dma.hbm_to_vmem [thread:$0]  (!%p8290_p11), %s9652_s8, 4096, %s310_s25, [#allocation9], %s8176_s16, %s8176_s16, %s8177_s6  }
  0x6c   : > { %s8367_s21 = sadd.s32 1, %s8167_s12   ;;  %s36_s24 = sadd.s32 1, %s8163_s11 }
  0x6d   : > { %s33_s23 = ssub.s32 %s8167_s12, %s8367_s21  ;;  %p43_p8 = scmp.ne.s32.totalorder %s8163_s11, %s8159_s10 }
  0x6e   : > { %p34_p4 = scmp.eq.s32.totalorder %s33_s23, 0  ;;  %p44_p13 = scmp.eq.s32.totalorder %s8167_s12, 0 }
  0x6f   : > { %p7471_p6 = scmp.lt.s32.totalorder %s8167_s12, 2  ;;  %p9654_p3 = scmp.eq.s32.totalorder %s8260_s13, 1 }
  0x70   : > { %s8377_s26 = scalar_select %p34_p4, %s8163_s11, %s36_s24  }
  0x71   : > { %p45_p10 = por %p44_p13, %p43_p8  ;;  %p8381_p5 = por %p9654_p3, %p43_p8 }
  0x72   : > { %9653 = sst [smem:[#allocation19_spill]] %s8377_s26  ;;  %s8386_s20 = sand.u32 1, %s8163_s11  }
  0x73   : > { %s6776_s25 = sshll.u32 %s8167_s12, 8  ;;  %s6480_s29 = sshll.u32 %s8386_s20, 4 }
  0x74   : > { %s9656_s0 = sld [smem:[#allocation23_spill]]  ;;  %s327_s22 = scalar_lea.vmem [#allocation2], %s6480_s29 }
  0x75   : > { %s334_s16 = sshll.u32 %s327_s22, 4  ;;  %p8395_p11 = pnand %p7471_p6, %p45_p10  ;;  %s8399_s16 = int_to_ptr.vmem [resolvable:$true] %s334_s16 }
  0x76   : > { %s324_s28 = scalar_lea.sflag [#allocation3], %s8386_s20 }
  0x77   : > { %p8031_p9 = pneg %p8395_p11 }
  0x7a   : > { %s8393_s19 = scalar_lea.hbm %s9656_s0, %s6776_s25  ;;  %s8034_s25 = scalar_lea.hbm %s9656_s0, 512 }
  0x7b   : > { %s8029_s30 = scalar_lea.hbm %s8393_s19, 256  ;;  %p8035_p2 = scmp.lt.u32.totalorder %s8393_s19, %s9656_s0 }
  0x7c   : > { %p8030_p7 = scmp.ne.s32.totalorder %s8393_s19, %s8029_s30  ;;  %p8036_p1 = scmp.lt.u32.totalorder %s8034_s25, %s8029_s30 }
  0x7d   : > { %p8038_p8 = scmp.lt.u32.totalorder %s8029_s30, %s8393_s19 }
  0x7e   : > { %p8032_p12 = pnand %p8031_p9, %p8030_p7  ;;  %p8037_p4 = por %p8036_p1, %p8035_p2 }
  0x80   : > { %p8033_p0 = pneg %p8032_p12  ;;  %p8039_p13 = por %p8038_p8, %p8037_p4 }
  0x82   : > { %p8040_p6 = pnand %p8039_p13, %p8033_p0 }
  0x84   : > { %8043 = shalt.err (!%p8040_p6)
}
  0x85   : > { %s8044_s18 = scalar_lea.vmem %s8399_s16, 256  ;;  %s8178_s22 = smov [#allocation2]  }
  0x86   : > { %p8045_p10 = scmp.ne.s32.totalorder %s8399_s16, %s8044_s18  ;;  %s8049_s23 = sshll.u32 %s8178_s22, 4  ;;  %s8050_s23 = int_to_ptr.vmem [resolvable:$false] %s8049_s23 }
  0x87   : > { %s8051_s24 = scalar_lea.vmem %s8050_s23, 512  ;;  %p8052_p12 = scmp.lt.s32.totalorder %s8399_s16, %s8050_s23 }
  0x88   : > { %p8047_p3 = pnand %p8045_p10, %p8031_p9  ;;  %p8053_p2 = scmp.lt.s32.totalorder %s8051_s24, %s8044_s18 }
  0x8a   : > { %p8048_p7 = pneg %p8047_p3  ;;  %p8054_p1 = por %p8053_p2, %p8052_p12 }
  0x8c   : > { %p8055_p4 = pnand %p8054_p1, %p8048_p7 }
  0x8e   : > { %8058 = shalt.err (!%p8055_p4)
}
  0x8f   : > { %s8179_s30 = smov 128   ;;  %s8180_s25 = smov 8  }
  0x90   : > { %7460 = dma.hbm_to_vmem [thread:$0]  (!%p8395_p11), %s8393_s19, 256, %s8399_s16, %s324_s28, %s8179_s30, %s8179_s30, %s8180_s25  }
  0x91   : > { %s344_s29 = sand.u32 1, %s8167_s12   ;;  %s6483_s14 = sshll.u32 %s8386_s20, 5 }
  0x92   : > { %s6778_s18 = sshll.u32 %s8167_s12, 9  ;;  %s348_s22 = scalar_lea.vmem [#allocation5], %s6483_s14 }
  0x93   : > { %s356_s23 = sshll.u32 %s348_s22, 4  ;;  %s8438_s7 = scalar_lea.hbm %s9620_s1, %s6778_s18  ;;  %s8440_s23 = int_to_ptr.vmem [resolvable:$true] %s356_s23 }
  0x94   : > { %s8442_s8 = scalar_lea.sflag [#allocation6], %s344_s29  ;;  %s8059_s26 = scalar_lea.hbm %s8438_s7, 512 }
  0x95   : > { %p8060_p0 = scmp.ne.s32.totalorder %s8438_s7, %s8059_s26  ;;  %s8064_s0 = scalar_lea.hbm %s9620_s1, 1024 }
  0x96   : > { %p8065_p6 = scmp.lt.u32.totalorder %s8438_s7, %s9620_s1  ;;  %p8066_p10 = scmp.lt.u32.totalorder %s8064_s0, %s8059_s26 }
  0x97   : > { %p8062_p8 = pnand %p8060_p0, %p8031_p9  ;;  %p8068_p7 = scmp.lt.u32.totalorder %s8059_s26, %s8438_s7 }
  0x98   : > { %p8067_p3 = por %p8066_p10, %p8065_p6 }
  0x99   : > { %p8063_p13 = pneg %p8062_p8 }
  0x9a   : > { %p8069_p12 = por %p8068_p7, %p8067_p3 }
  0x9c   : > { %p8070_p2 = pnand %p8069_p12, %p8063_p13 }
  0x9e   : > { %8073 = shalt.err (!%p8070_p2)
}
  0x9f   : > { %s8074_s29 = scalar_lea.vmem %s8440_s23, 512  ;;  %s8181_s14 = smov [#allocation5]  }
  0xa0   : > { %p8075_p1 = scmp.ne.s32.totalorder %s8440_s23, %s8074_s29  ;;  %s8079_s18 = sshll.u32 %s8181_s14, 4  ;;  %s8080_s18 = int_to_ptr.vmem [resolvable:$false] %s8079_s18 }
  0xa1   : > { %s8081_s22 = scalar_lea.vmem %s8080_s18, 1024  ;;  %p8082_p8 = scmp.lt.s32.totalorder %s8440_s23, %s8080_s18 }
  0xa2   : > { %p8077_p4 = pnand %p8075_p1, %p8031_p9  ;;  %p8083_p6 = scmp.lt.s32.totalorder %s8081_s22, %s8074_s29 }
  0xa4   : > { %p8078_p0 = pneg %p8077_p4  ;;  %p8084_p10 = por %p8083_p6, %p8082_p8 }
  0xa6   : > { %p8085_p3 = pnand %p8084_p10, %p8078_p0 }
  0xa8   : > { %8088 = shalt.err (!%p8085_p3)
}
  0xa9   : > { %7463 = dma.hbm_to_vmem [thread:$0]  (!%p8395_p11), %s8438_s7, 512, %s8440_s23, %s8442_s8, %s8179_s30, %s8179_s30, %s8180_s25  }
  0xaa   : > { %p9658_p9 = scmp.ne.s32.totalorder %s9647_s17, 0 }
  0xac   : > { %368 = sbr.rel (%p9658_p9) target bundleno = 6153 (0x1809), region = 56 }
  0xb3   : > { %s8474_s26 = sand.u32 1, %s8159_s10   ;;  %p9659_p13 = scmp.ne.s32.totalorder %s9644_s15, 0 }
  0xb4   : > { %s6488_s24 = sshll.u32 %s8474_s26, 4  ;;  %s371_s20 = scalar_lea.sflag [#allocation3], %s8474_s26 }
  0xb5   : > { %s8478_s19 = scalar_lea.vmem [#allocation2], %s6488_s24 }
  0xb6   : > { %8134 = dma.done.wait (%p9659_p13), %s371_s20, 256  }
  0xb7   : > { %8136 = vsyncadd (%p9659_p13), %s371_s20, 4294967040  ;;  %s379_s7 = sand.u32 1, %s8260_s13   ;;  %s6489_s8 = sshll.u32 %s8474_s26, 5 }
  0xb8   : > { %s380_s17 = scalar_lea.sflag [#allocation6], %s379_s7  ;;  %s383_s6 = scalar_lea.vmem [#allocation5], %s6489_s8 }
  0xb9   : > { %8138 = dma.done.wait (%p9659_p13), %s380_s17, 512  }
  0xba   : > { %8140 = vsyncadd (%p9659_p13), %s380_s17, 4294966784  ;;  %p9660_p11 = scmp.eq.s32.totalorder %s8260_s13, 0 }
  0xbc   : > { %8142 = dma.done.wait (%p9660_p11), [#allocation6], 12288   ;;  %p9661_p7 = pmov %p9660_p11 }
  0xbe   : > { %8144 = vsyncadd (%p9661_p7), [#allocation6], 4294955008  ;;  %p9662_p12 = pmov %p9661_p7 }
  0xbf   : > { %p9663_p2 = pmov %p9661_p7 }
  0xc0   : > { %8146 = dma.done.wait (%p9662_p12), [#allocation9], 12288  }
  0xc1   : > { %8148 = vsyncadd (%p9663_p2), [#allocation9], 4294955008  ;;  %v482_v0 = vld [vmem:[%s383_s6] sm:$0xff]  ;;  %v483_v1 = vld [vmem:[%s383_s6 + $0x8] sm:$0xff]  ;;  %v8182_v56 = vmov 0   ;;  %vm8184_vm0 = vmmov 0  }
  0xc2   : > { %v484_v2 = vld [vmem:[%s383_s6 + $0x10] sm:$0xff]  ;;  %488 = vadd.xlane.f32.xlu0 %v482_v0  ;;  %v485_v3 = vld [vmem:[%s383_s6 + $0x18] sm:$0xff]  ;;  %1163 = vmatprep.mubr.bf16.mxu0 %v8182_v56  ;;  %vm2069_vm1 = vcmask 523264   ;;  %vm2252_vm2 = vcmask 64512   ;;  %vm2265_vm3 = vcmask 130048   ;;  %s8185_s14 = smov 64  }
  0xc3   : > { %492 = vadd.xlane.f32.xlu1 %v484_v2  ;;  %v7565_v4 = vld [vmem:[#allocation7 + $0x4] ss:$48 sps:$4 sm:$0xff]   ;;  %v7567_v5 = vld [vmem:[#allocation7 + $0xc] ss:$48 sps:$4 sm:$0xff]   ;;  %v7569_v6 = vld [vmem:[#allocation7] ss:$48 sps:$4 sm:$0xff]   ;;  %1216 = vmatprep.mubr.bf16.mxu1 %v8182_v56 }
  0xc4   : > { %v7570_v7 = vld [vmem:[#allocation7 + $0x8] ss:$48 sps:$4 sm:$0xff]   ;;  %v7571_v8 = vld [vmem:[#allocation7 + $0x64] ss:$48 sps:$4 sm:$0xff]   ;;  %v7573_v9 = vld [vmem:[#allocation7 + $0x6c] ss:$48 sps:$4 sm:$0xff]   ;;  %1131 = vmatprep.subr.bf16.mxu0 %v7565_v4  ;;  %1184 = vmatprep.subr.bf16.mxu1 %v7567_v5 }
  0xc5   : > { %v7575_v10 = vld [vmem:[#allocation7 + $0x60] ss:$48 sps:$4 sm:$0xff]   ;;  %1132 = vmatpush1.bf16.msra.mxu0 %v7569_v6  ;;  %1185 = vmatpush1.bf16.msra.mxu1 %v7570_v7  ;;  %v7576_v11 = vld [vmem:[#allocation7 + $0x68] ss:$48 sps:$4 sm:$0xff]   ;;  %v7577_v30 = vld [vmem:[#allocation7 + $0xc4] ss:$48 sps:$4 sm:$0xff]  }
  0xc6   : > { %490 = vadd.xlane.f32.xlu0 %v483_v1  ;;  %1133 = vmatprep.subr.bf16.mxu0 %v7571_v8  ;;  %v8509_v24 = vld [vmem:[%s8478_s19] sm:$0xff]  ;;  %v8519_v28 = vld [vmem:[%s8478_s19 + $0x8] sm:$0xff]  ;;  %vm2441_vm4 = vcmask 1043456   ;;  %s434_s18 = scalar_lea.vmem [#allocation11], %s6489_s8  ;;  %s6796_s24 = sshll.u32 %s8260_s13, 9 }
  0xc7   : > { %494 = vadd.xlane.f32.xlu1 %v485_v3  ;;  %1186 = vmatprep.subr.bf16.mxu1 %v7573_v9  ;;  %v7579_v31 = vld [vmem:[#allocation7 + $0xcc] ss:$48 sps:$4 sm:$0xff]   ;;  %v7581_v32 = vld [vmem:[#allocation7 + $0xc0] ss:$48 sps:$4 sm:$0xff]   ;;  %v7582_v33 = vld [vmem:[#allocation7 + $0xc8] ss:$48 sps:$4 sm:$0xff]   ;;  %s9575_s7 = scalar_lea.hbm %s9628_s9, %s6796_s24 }
  0xc8   : > { %v7583_v34 = vld [vmem:[#allocation7 + $0x124] ss:$48 sps:$4 sm:$0xff]   ;;  %v7585_v35 = vld [vmem:[#allocation7 + $0x12c] ss:$48 sps:$4 sm:$0xff]   ;;  %v7587_v36 = vld [vmem:[#allocation7 + $0x120] ss:$48 sps:$4 sm:$0xff]  }
  0xc9   : > { %1134 = vmatpush1.bf16.msra.mxu0 %v7575_v10  ;;  %1187 = vmatpush1.bf16.msra.mxu1 %v7576_v11  ;;  %v7588_v37 = vld [vmem:[#allocation7 + $0x128] ss:$48 sps:$4 sm:$0xff]   ;;  %v7589_v38 = vld [vmem:[#allocation7 + $0x184] ss:$48 sps:$4 sm:$0xff]   ;;  %v7591_v39 = vld [vmem:[#allocation7 + $0x18c] ss:$48 sps:$4 sm:$0xff]  }
  0xca   : > { %1135 = vmatprep.subr.bf16.mxu0 %v7577_v30  ;;  %1188 = vmatprep.subr.bf16.mxu1 %v7579_v31  ;;  %v7593_v40 = vld [vmem:[#allocation7 + $0x180] ss:$48 sps:$4 sm:$0xff]   ;;  %v7594_v41 = vld [vmem:[#allocation7 + $0x188] ss:$48 sps:$4 sm:$0xff]   ;;  %v7595_v42 = vld [vmem:[#allocation7 + $0x1e4] ss:$48 sps:$4 sm:$0xff]  }
  0xcb   : > { %v7597_v43 = vld [vmem:[#allocation7 + $0x1ec] ss:$48 sps:$4 sm:$0xff]   ;;  %v7599_v44 = vld [vmem:[#allocation7 + $0x1e0] ss:$48 sps:$4 sm:$0xff]   ;;  %v7600_v45 = vld [vmem:[#allocation7 + $0x1e8] ss:$48 sps:$4 sm:$0xff]  }
  0xcc   : > { %v7601_v46 = vld [vmem:[#allocation7 + $0x244] ss:$48 sps:$4 sm:$0xff]   ;;  %v7603_v47 = vld [vmem:[#allocation7 + $0x24c] ss:$48 sps:$4 sm:$0xff]   ;;  %v7605_v48 = vld [vmem:[#allocation7 + $0x240] ss:$48 sps:$4 sm:$0xff]  }
  0xcd   : > { %1136 = vmatpush1.bf16.msra.mxu0 %v7581_v32  ;;  %1189 = vmatpush1.bf16.msra.mxu1 %v7582_v33  ;;  %v7606_v49 = vld [vmem:[#allocation7 + $0x248] ss:$48 sps:$4 sm:$0xff]   ;;  %v7607_v50 = vld [vmem:[#allocation7 + $0x2a4] ss:$48 sps:$4 sm:$0xff]   ;;  %v7609_v51 = vld [vmem:[#allocation7 + $0x2ac] ss:$48 sps:$4 sm:$0xff]  }
  0xce   : > { %1137 = vmatprep.subr.bf16.mxu0 %v7583_v34  ;;  %1190 = vmatprep.subr.bf16.mxu1 %v7585_v35  ;;  %v7611_v52 = vld [vmem:[#allocation7 + $0x2a0] ss:$48 sps:$4 sm:$0xff]   ;;  %v7612_v53 = vld [vmem:[#allocation7 + $0x2a8] ss:$48 sps:$4 sm:$0xff]   ;;  %v7615_v54 = vld [vmem:[#allocation7 + $0x14] ss:$48 sps:$4 sm:$0xff]  }
  0xcf   : > { %v7618_v55 = vld [vmem:[#allocation7 + $0x1c] ss:$48 sps:$4 sm:$0xff]   ;;  %v7621_v31 = vld [vmem:[#allocation7 + $0x74] ss:$48 sps:$4 sm:$0xff]   ;;  %v7619_v35 = vld [vmem:[#allocation7 + $0x70] ss:$48 sps:$4 sm:$0xff]  }
  0xd0   : > { %v7624_v32 = vld [vmem:[#allocation7 + $0x7c] ss:$48 sps:$4 sm:$0xff]   ;;  %s6350_s22 = sshll.u32 %s434_s18, 4  ;;  %s6336_s8 = scalar_lea.sflag [#allocation4], %s8474_s26  ;;  %s9570_s22 = int_to_ptr.vmem [resolvable:$true] %s6350_s22 }
  0xd1   : > { %1138 = vmatpush1.bf16.msra.mxu0 %v7587_v36  ;;  %1191 = vmatpush1.bf16.msra.mxu1 %v7588_v37  ;;  %v7622_v36 = vld [vmem:[#allocation7 + $0x78] ss:$48 sps:$4 sm:$0xff]   ;;  %s8089_s17 = scalar_lea.vmem %s9570_s22, 512  ;;  %s8186_s13 = smov [#allocation11]  }
  0xd2   : > { %1139 = vmatprep.subr.bf16.mxu0 %v7589_v38  ;;  %1192 = vmatprep.subr.bf16.mxu1 %v7591_v39  ;;  %v7630_v38 = vld [vmem:[#allocation7 + $0xdc] ss:$48 sps:$4 sm:$0xff]   ;;  %p8090_p1 = scmp.ne.s32.totalorder %s9570_s22, %s8089_s17  ;;  %s8093_s6 = sshll.u32 %s8186_s13, 4  ;;  %s8094_s6 = int_to_ptr.vmem [resolvable:$false] %s8093_s6 }
  0xd3   : > { %s8095_s15 = scalar_lea.vmem %s8094_s6, 1024  ;;  %p8096_p8 = scmp.lt.s32.totalorder %s9570_s22, %s8094_s6 }
  0xd4   : > { %p8091_p4 = pnand %p8090_p1, %p8381_p5  ;;  %p8097_p6 = scmp.lt.s32.totalorder %s8095_s15, %s8089_s17 }
  0xd5   : > { %1140 = vmatpush1.bf16.msra.mxu0 %v7593_v40  ;;  %1193 = vmatpush1.bf16.msra.mxu1 %v7594_v41  ;;  %v7628_v41 = vld [vmem:[#allocation7 + $0xd8] ss:$48 sps:$4 sm:$0xff]  }
  0xd6   : > { %1141 = vmatprep.subr.bf16.mxu0 %v7595_v42  ;;  %1194 = vmatprep.subr.bf16.mxu1 %v7597_v43  ;;  %v7633_v43 = vld [vmem:[#allocation7 + $0x134] ss:$48 sps:$4 sm:$0xff]   ;;  %p8092_p0 = pneg %p8091_p4  ;;  %p8098_p10 = por %p8097_p6, %p8096_p8 }
  0xd8   : > { %p8099_p3 = pnand %p8098_p10, %p8092_p0 }
  0xd9   : > { %1142 = vmatpush1.bf16.msra.mxu0 %v7599_v44  ;;  %1195 = vmatpush1.bf16.msra.mxu1 %v7600_v45  ;;  %v7636_v44 = vld [vmem:[#allocation7 + $0x13c] ss:$48 sps:$4 sm:$0xff]   ;;  %v7631_v45 = vld [vmem:[#allocation7 + $0x130] ss:$48 sps:$4 sm:$0xff]  }
  0xda   : > { %1143 = vmatprep.subr.bf16.mxu0 %v7601_v46  ;;  %1196 = vmatprep.subr.bf16.mxu1 %v7603_v47  ;;  %v7634_v46 = vld [vmem:[#allocation7 + $0x138] ss:$48 sps:$4 sm:$0xff]   ;;  %v7639_v47 = vld [vmem:[#allocation7 + $0x194] ss:$48 sps:$4 sm:$0xff]  }
  0xdd   : > { %1144 = vmatpush1.bf16.msra.mxu0 %v7605_v48  ;;  %1197 = vmatpush1.bf16.msra.mxu1 %v7606_v49  ;;  %v7642_v48 = vld [vmem:[#allocation7 + $0x19c] ss:$48 sps:$4 sm:$0xff]   ;;  %v7637_v49 = vld [vmem:[#allocation7 + $0x190] ss:$48 sps:$4 sm:$0xff]  }
  0xde   : > { %1145 = vmatprep.subr.bf16.mxu0 %v7607_v50  ;;  %1198 = vmatprep.subr.bf16.mxu1 %v7609_v51  ;;  %v7640_v50 = vld [vmem:[#allocation7 + $0x198] ss:$48 sps:$4 sm:$0xff]   ;;  %v7645_v51 = vld [vmem:[#allocation7 + $0x1f4] ss:$48 sps:$4 sm:$0xff]  }
  0xe1   : > { %1146 = vmatpush1.bf16.msra.mxu0 %v7611_v52  ;;  %1199 = vmatpush1.bf16.msra.mxu1 %v7612_v53  ;;  %v7648_v52 = vld [vmem:[#allocation7 + $0x1fc] ss:$48 sps:$4 sm:$0xff]   ;;  %v7643_v53 = vld [vmem:[#allocation7 + $0x1f0] ss:$48 sps:$4 sm:$0xff]  }
  0xe2   : > { %1237 = vmatprep.subr.bf16.mxu0 %v7615_v54  ;;  %1290 = vmatprep.subr.bf16.mxu1 %v7618_v55  ;;  %v7646_v54 = vld [vmem:[#allocation7 + $0x1f8] ss:$48 sps:$4 sm:$0xff]   ;;  %v7651_v55 = vld [vmem:[#allocation7 + $0x254] ss:$48 sps:$4 sm:$0xff]  }
 0x14f   : > { %v489_v12 = vpop.xlane.xlu0 %488 }
 0x150   : > { %v493_v13 = vpop.xlane.xlu1 %492  ;;  %v496_v14 = vmul.f32 0.0078125, %v489_v12 }
 0x151   : > { %v498_v16 = vmul.f32 0.0078125, %v493_v13 }
 0x152   : > { %v8500_v15 = vsub.f32 %v482_v0, %v496_v14 }
 0x153   : > { %v491_v17 = vpop.xlane.xlu0 %490  ;;  %v8506_v23 = vsub.f32 %v484_v2, %v498_v16  ;;  %v6496_v16 = vld [vmem:[%s9623_s4] ss:$0 sm:$0xff] }
 0x154   : > { %v495_v18 = vpop.xlane.xlu1 %494  ;;  %v497_v19 = vmul.f32 0.0078125, %v491_v17  ;;  %v504_v20 = vmul.f32 %v8500_v15, %v8500_v15 }
 0x155   : > { %v499_v22 = vmul.f32 0.0078125, %v495_v18  ;;  %v506_v26 = vmul.f32 %v8506_v23, %v8506_v23 }
 0x156   : > { %508 = vadd.xlane.f32.xlu0 %v504_v20  ;;  %v8504_v21 = vsub.f32 %v483_v1, %v497_v19  ;;  %v6497_v20 = vld [vmem:[%s9624_s5] ss:$0 sm:$0xff] }
 0x157   : > { %v8516_v27 = vsub.f32 %v485_v3, %v499_v22 }
 0x158   : > { %v505_v25 = vmul.f32 %v8504_v21, %v8504_v21 }
 0x159   : > { %v507_v29 = vmul.f32 %v8516_v27, %v8516_v27 }
 0x15a   : > { %510 = vadd.xlane.f32.xlu1 %v505_v25  ;;  %443 = vadd.xlane.f32.xlu0 %v8509_v24 }
 0x15e   : > { %445 = vadd.xlane.f32.xlu1 %v8519_v28  ;;  %512 = vadd.xlane.f32.xlu0 %v506_v26 }
 0x162   : > { %514 = vadd.xlane.f32.xlu1 %v507_v29  ;;  %v7616_v29 = vld [vmem:[#allocation7 + $0x18] ss:$48 sps:$4 sm:$0xff]  }
 0x1e3   : > { %v509_v57 = vpop.xlane.xlu0 %508 }
 0x1e4   : > { %v516_v58 = vmul.f32 0.0078125, %v509_v57  ;;  %v7654_v57 = vld [vmem:[#allocation7 + $0x25c] ss:$48 sps:$4 sm:$0xff]  }
 0x1e6   : > { %v520_v59 = vadd.f32 1e-05, %v516_v58  ;;  %v7649_v58 = vld [vmem:[#allocation7 + $0x250] ss:$48 sps:$4 sm:$0xff]  }
 0x1e7   : > { %v511_v60 = vpop.xlane.xlu1 %510  ;;  %v444_v61 = vpop.xlane.xlu0 %443 }
 0x1e8   : > { %7741 = vrsqrt.f32 %v520_v59  ;;  %v517_v62 = vmul.f32 0.0078125, %v511_v60  ;;  %v448_v63 = vmul.f32 0.0078125, %v444_v61  ;;  %v7652_v59 = vld [vmem:[#allocation7 + $0x258] ss:$48 sps:$4 sm:$0xff]   ;;  %v7657_v60 = vld [vmem:[#allocation7 + $0x2b4] ss:$48 sps:$4 sm:$0xff]  }
 0x1e9   : > { %v7660_v61 = vld [vmem:[#allocation7 + $0x2bc] ss:$48 sps:$4 sm:$0xff]  }
 0x1ea   : > { %v521_v0 = vadd.f32 1e-05, %v517_v62  ;;  %v8527_v1 = vsub.f32 %v8509_v24, %v448_v63  ;;  %v7655_v62 = vld [vmem:[#allocation7 + $0x2b0] ss:$48 sps:$4 sm:$0xff]   ;;  %v7658_v63 = vld [vmem:[#allocation7 + $0x2b8] ss:$48 sps:$4 sm:$0xff]  }
 0x1eb   : > { %v446_v2 = vpop.xlane.xlu1 %445  ;;  %v513_v3 = vpop.xlane.xlu0 %512 }
 0x1ec   : > { %7743 = vrsqrt.f32 %v521_v0  ;;  %v449_v4 = vmul.f32 0.0078125, %v446_v2  ;;  %v518_v5 = vmul.f32 0.0078125, %v513_v3  ;;  %v452_v6 = vmul.f32 %v8527_v1, %v8527_v1  ;;  %v7663_v0 = vld [vmem:[#allocation7 + $0x24] ss:$48 sps:$4 sm:$0xff]   ;;  %v7666_v2 = vld [vmem:[#allocation7 + $0x2c] ss:$48 sps:$4 sm:$0xff]  }
 0x1ed   : > { %v7661_v3 = vld [vmem:[#allocation7 + $0x20] ss:$48 sps:$4 sm:$0xff]  }
 0x1ee   : > { %v522_v7 = vadd.f32 1e-05, %v518_v5  ;;  %454 = vadd.xlane.f32.xlu0 %v452_v6  ;;  %v8532_v8 = vsub.f32 %v8519_v28, %v449_v4  ;;  %v7664_v4 = vld [vmem:[#allocation7 + $0x28] ss:$48 sps:$4 sm:$0xff]   ;;  %v7669_v5 = vld [vmem:[#allocation7 + $0x84] ss:$48 sps:$4 sm:$0xff]  }
 0x1ef   : > { %v515_v9 = vpop.xlane.xlu1 %514  ;;  %v7672_v6 = vld [vmem:[#allocation7 + $0x8c] ss:$48 sps:$4 sm:$0xff]  }
 0x1f0   : > { %7745 = vrsqrt.f32 %v522_v7  ;;  %v519_v10 = vmul.f32 0.0078125, %v515_v9  ;;  %v453_v11 = vmul.f32 %v8532_v8, %v8532_v8  ;;  %v7667_v7 = vld [vmem:[#allocation7 + $0x80] ss:$48 sps:$4 sm:$0xff]   ;;  %v7670_v9 = vld [vmem:[#allocation7 + $0x88] ss:$48 sps:$4 sm:$0xff]  }
 0x1f2   : > { %v7742_v12 = vpop.eup %7741  ;;  %v523_v13 = vadd.f32 1e-05, %v519_v10  ;;  %456 = vadd.xlane.f32.xlu1 %v453_v11  ;;  %v7675_v10 = vld [vmem:[#allocation7 + $0xe4] ss:$48 sps:$4 sm:$0xff]   ;;  %v7678_v11 = vld [vmem:[#allocation7 + $0xec] ss:$48 sps:$4 sm:$0xff]  }
 0x1f3   : > { %v528_v14 = vmul.f32 %v7742_v12, %v8500_v15  ;;  %v7613_v15 = vld [vmem:[#allocation7 + $0x10] ss:$48 sps:$4 sm:$0xff]  }
 0x1f4   : > { %7747 = vrsqrt.f32 %v523_v13  ;;  %v7673_v12 = vld [vmem:[#allocation7 + $0xe0] ss:$48 sps:$4 sm:$0xff]   ;;  %v7676_v13 = vld [vmem:[#allocation7 + $0xe8] ss:$48 sps:$4 sm:$0xff]  }
 0x1f5   : > { %v538_v18 = vmul.f32 %v6496_v16, %v528_v14  ;;  %v7681_v14 = vld [vmem:[#allocation7 + $0x144] ss:$48 sps:$4 sm:$0xff]  }
 0x1f6   : > { %v7744_v17 = vpop.eup %7743 }
 0x1f7   : > { %v529_v19 = vmul.f32 %v7744_v17, %v8504_v21  ;;  %v548_v25 = vadd.f32 %v6497_v20, %v538_v18  ;;  %v7679_v17 = vld [vmem:[#allocation7 + $0x140] ss:$48 sps:$4 sm:$0xff]   ;;  %v7682_v18 = vld [vmem:[#allocation7 + $0x148] ss:$48 sps:$4 sm:$0xff]  }
 0x1f9   : > { %v539_v22 = vmul.f32 %v6496_v16, %v529_v19  ;;  %v7687_v19 = vld [vmem:[#allocation7 + $0x1a4] ss:$48 sps:$4 sm:$0xff]  }
 0x1fa   : > { %v7746_v24 = vpop.eup %7745 }
 0x1fb   : > { %v549_v26 = vadd.f32 %v6497_v20, %v539_v22  ;;  %v530_v28 = vmul.f32 %v7746_v24, %v8506_v23  ;;  %v7627_v23 = vld [vmem:[#allocation7 + $0xd4] ss:$48 sps:$4 sm:$0xff]   ;;  %v7685_v22 = vld [vmem:[#allocation7 + $0x1a0] ss:$48 sps:$4 sm:$0xff]   ;;  %v7688_v24 = vld [vmem:[#allocation7 + $0x1a8] ss:$48 sps:$4 sm:$0xff]  }
 0x1fd   : > { %v8545_v30 = vpack.c.bf16 %v549_v26, %v548_v25  ;;  %v540_v34 = vmul.f32 %v6496_v16, %v530_v28  ;;  %v7693_v25 = vld [vmem:[#allocation7 + $0x204] ss:$48 sps:$4 sm:$0xff]   ;;  %v7696_v26 = vld [vmem:[#allocation7 + $0x20c] ss:$48 sps:$4 sm:$0xff]   ;;  %v7691_v28 = vld [vmem:[#allocation7 + $0x200] ss:$48 sps:$4 sm:$0xff]  }
 0x1fe   : > { %v7748_v33 = vpop.eup %7747 }
 0x1ff   : > { %v531_v21 = vmul.f32 %v7748_v33, %v8516_v27  ;;  %1164 = vmatmul.mubr.bf16.vlgmr.msra.gmra.mrb[0].mxu0 %v8545_v30  ;;  %1217 = vmatmul.mubr.bf16.vlgmr.msra.gmra.mrb[0].mxu1 %v8545_v30  ;;  %v550_v39 = vadd.f32 %v6497_v20, %v540_v34  ;;  %v7625_v27 = vld [vmem:[#allocation7 + $0xd0] ss:$48 sps:$4 sm:$0xff]   ;;  %v7700_v33 = vld [vmem:[#allocation7 + $0x268] ss:$48 sps:$4 sm:$0xff]   ;;  %v7705_v34 = vld [vmem:[#allocation7 + $0x2c4] ss:$48 sps:$4 sm:$0xff]  }
 0x200   : > { %1238 = vmatpush1.bf16.msra.mxu0 %v7613_v15  ;;  %1291 = vmatpush1.bf16.msra.mxu1 %v7616_v29  ;;  %v7694_v15 = vld [vmem:[#allocation7 + $0x208] ss:$48 sps:$4 sm:$0xff]   ;;  %v7699_v29 = vld [vmem:[#allocation7 + $0x264] ss:$48 sps:$4 sm:$0xff]  }
 0x201   : > { %v541_v37 = vmul.f32 %v6496_v16, %v531_v21  ;;  %1239 = vmatprep.subr.bf16.mxu0 %v7621_v31  ;;  %1292 = vmatprep.subr.bf16.mxu1 %v7624_v32  ;;  %v7684_v16 = vld [vmem:[#allocation7 + $0x14c] ss:$48 sps:$4 sm:$0xff]   ;;  %v7697_v32 = vld [vmem:[#allocation7 + $0x260] ss:$48 sps:$4 sm:$0xff]  }
 0x202   : > { %1173 = vmatprep.mubr.bf16.mxu0 %v8182_v56  ;;  %1226 = vmatprep.mubr.bf16.mxu1 %v8182_v56  ;;  %v7702_v31 = vld [vmem:[#allocation7 + $0x26c] ss:$48 sps:$4 sm:$0xff]  }
 0x203   : > { %v551_v40 = vadd.f32 %v6497_v20, %v541_v37  ;;  %v7690_v20 = vld [vmem:[#allocation7 + $0x1ac] ss:$48 sps:$4 sm:$0xff]  }
 0x204   : > { %1240 = vmatpush1.bf16.msra.mxu0 %v7619_v35  ;;  %1293 = vmatpush1.bf16.msra.mxu1 %v7622_v36  ;;  %v7708_v21 = vld [vmem:[#allocation7 + $0x2cc] ss:$48 sps:$4 sm:$0xff]   ;;  %v1473_v35 = vld [vmem:[#allocation8] sm:$0xff] }
 0x205   : > { %1241 = vmatprep.subr.bf16.mxu0 %v7627_v23  ;;  %1294 = vmatprep.subr.bf16.mxu1 %v7630_v38  ;;  %v8552_v42 = vpack.c.bf16 %v551_v40, %v550_v39  ;;  %v1477_v36 = vld [vmem:[#allocation8 + $0x20] sm:$0xff]  ;;  %v1474_v37 = vld [vmem:[#allocation8 + $0x8] sm:$0xff] }
 0x206   : > { %v1478_v23 = vld [vmem:[#allocation8 + $0x28] sm:$0xff]  ;;  %v7703_v38 = vld [vmem:[#allocation7 + $0x2c0] ss:$48 sps:$4 sm:$0xff]   ;;  %v6595_v40 = vcombine.high %v1473_v35, %v1477_v36 }
 0x207   : > { %1174 = vmatmul.mubr.bf16.gmra.mrb[4].mxu0 %v8552_v42  ;;  %1227 = vmatmul.mubr.bf16.gmra.mrb[4].mxu1 %v8552_v42  ;;  %v7706_v39 = vld [vmem:[#allocation7 + $0x2c8] ss:$48 sps:$4 sm:$0xff]  }
 0x208   : > { %1242 = vmatpush1.bf16.msra.mxu0 %v7625_v27  ;;  %1295 = vmatpush1.bf16.msra.mxu1 %v7628_v41  ;;  %v6597_v27 = vcombine.high %v1474_v37, %v1478_v23  ;;  %v1481_v41 = vld [vmem:[#allocation8 + $0x40] sm:$0xff] }
 0x209   : > { %1243 = vmatprep.subr.bf16.mxu0 %v7633_v43  ;;  %1296 = vmatprep.subr.bf16.mxu1 %v7636_v44  ;;  %v1485_v43 = vld [vmem:[#allocation8 + $0x60] sm:$0xff]  ;;  %v1482_v44 = vld [vmem:[#allocation8 + $0x48] sm:$0xff] }
 0x20a   : > { %1269 = vmatprep.mubr.bf16.mxu0 %v8182_v56  ;;  %1322 = vmatprep.mubr.bf16.mxu1 %v8182_v56 }
 0x20c   : > { %1244 = vmatpush1.bf16.msra.mxu0 %v7631_v45  ;;  %1297 = vmatpush1.bf16.msra.mxu1 %v7634_v46  ;;  %v1486_v45 = vld [vmem:[#allocation8 + $0x68] sm:$0xff]  ;;  %v6594_v46 = vcombine.low %v1473_v35, %v1477_v36 }
 0x20d   : > { %1245 = vmatprep.subr.bf16.mxu0 %v7639_v47  ;;  %1298 = vmatprep.subr.bf16.mxu1 %v7642_v48  ;;  %v6596_v47 = vcombine.low %v1474_v37, %v1478_v23  ;;  %v6603_v48 = vcombine.high %v1481_v41, %v1485_v43  ;;  %v1475_v23 = vld [vmem:[#allocation8 + $0x10] sm:$0xff] }
 0x210   : > { %1246 = vmatpush1.bf16.msra.mxu0 %v7637_v49  ;;  %1299 = vmatpush1.bf16.msra.mxu1 %v7640_v50  ;;  %v6605_v49 = vcombine.high %v1482_v44, %v1486_v45  ;;  %v1489_v50 = vld [vmem:[#allocation8 + $0x80] sm:$0xff] }
 0x211   : > { %1247 = vmatprep.subr.bf16.mxu0 %v7645_v51  ;;  %1300 = vmatprep.subr.bf16.mxu1 %v7648_v52  ;;  %v1493_v51 = vld [vmem:[#allocation8 + $0xa0] sm:$0xff]  ;;  %v1490_v52 = vld [vmem:[#allocation8 + $0x88] sm:$0xff] }
 0x214   : > { %1248 = vmatpush1.bf16.msra.mxu0 %v7643_v53  ;;  %1301 = vmatpush1.bf16.msra.mxu1 %v7646_v54  ;;  %v1494_v53 = vld [vmem:[#allocation8 + $0xa8] sm:$0xff]  ;;  %v6602_v54 = vcombine.low %v1481_v41, %v1485_v43 }
 0x215   : > { %1249 = vmatprep.subr.bf16.mxu0 %v7651_v55  ;;  %1302 = vmatprep.subr.bf16.mxu1 %v7654_v57  ;;  %v6604_v55 = vcombine.low %v1482_v44, %v1486_v45  ;;  %v6611_v57 = vcombine.high %v1489_v50, %v1493_v51 }
 0x218   : > { %1250 = vmatpush1.bf16.msra.mxu0 %v7649_v58  ;;  %1303 = vmatpush1.bf16.msra.mxu1 %v7652_v59  ;;  %v6613_v58 = vcombine.high %v1490_v52, %v1494_v53  ;;  %v1497_v59 = vld [vmem:[#allocation8 + $0xc0] sm:$0xff] }
 0x219   : > { %1251 = vmatprep.subr.bf16.mxu0 %v7657_v60  ;;  %1304 = vmatprep.subr.bf16.mxu1 %v7660_v61  ;;  %v1501_v60 = vld [vmem:[#allocation8 + $0xe0] sm:$0xff]  ;;  %v1498_v61 = vld [vmem:[#allocation8 + $0xc8] sm:$0xff] }
 0x21c   : > { %1252 = vmatpush1.bf16.msra.mxu0 %v7655_v62  ;;  %1305 = vmatpush1.bf16.msra.mxu1 %v7658_v63  ;;  %v1502_v62 = vld [vmem:[#allocation8 + $0xe8] sm:$0xff]  ;;  %v6612_v63 = vcombine.low %v1490_v52, %v1494_v53  ;;  %v6494_v53 = vld [vmem:[%s9621_s2] ss:$0 sm:$0xff] }
 0x21d   : > { %1343 = vmatprep.subr.bf16.mxu0 %v7663_v0  ;;  %1396 = vmatprep.subr.bf16.mxu1 %v7666_v2  ;;  %v6619_v0 = vcombine.high %v1497_v59, %v1501_v60  ;;  %v6621_v2 = vcombine.high %v1498_v61, %v1502_v62 }
 0x21f   : > { %1270 = vmatmul.mubr.bf16.vlgmr.msra.gmra.mrb[8].mxu0 %v8545_v30  ;;  %1323 = vmatmul.mubr.bf16.vlgmr.msra.gmra.mrb[8].mxu1 %v8545_v30 }
 0x220   : > { %1344 = vmatpush1.bf16.msra.mxu0 %v7661_v3  ;;  %1397 = vmatpush1.bf16.msra.mxu1 %v7664_v4  ;;  %v1505_v3 = vld [vmem:[#allocation8 + $0x100] sm:$0xff] }
 0x221   : > { %1345 = vmatprep.subr.bf16.mxu0 %v7669_v5  ;;  %1398 = vmatprep.subr.bf16.mxu1 %v7672_v6  ;;  %v1509_v4 = vld [vmem:[#allocation8 + $0x120] sm:$0xff]  ;;  %v1506_v5 = vld [vmem:[#allocation8 + $0x108] sm:$0xff] }
 0x222   : > { %1279 = vmatprep.mubr.bf16.mxu0 %v8182_v56  ;;  %1332 = vmatprep.mubr.bf16.mxu1 %v8182_v56  ;;  %v1510_v6 = vld [vmem:[#allocation8 + $0x128] sm:$0xff] }
 0x224   : > { %1346 = vmatpush1.bf16.msra.mxu0 %v7667_v7  ;;  %1399 = vmatpush1.bf16.msra.mxu1 %v7670_v9  ;;  %v6618_v7 = vcombine.low %v1497_v59, %v1501_v60  ;;  %v6620_v9 = vcombine.low %v1498_v61, %v1502_v62  ;;  %v1483_v60 = vld [vmem:[#allocation8 + $0x50] sm:$0xff]  ;;  %v1484_v62 = vld [vmem:[#allocation8 + $0x58] sm:$0xff] }
 0x225   : > { %1347 = vmatprep.subr.bf16.mxu0 %v7675_v10  ;;  %1400 = vmatprep.subr.bf16.mxu1 %v7678_v11  ;;  %v6627_v10 = vcombine.high %v1505_v3, %v1509_v4  ;;  %v6629_v11 = vcombine.high %v1506_v5, %v1510_v6  ;;  %v1487_v61 = vld [vmem:[#allocation8 + $0x70] sm:$0xff] }
 0x227   : > { %1280 = vmatmul.mubr.bf16.gmra.mrb[12].mxu0 %v8552_v42  ;;  %1333 = vmatmul.mubr.bf16.gmra.mrb[12].mxu1 %v8552_v42 }
 0x228   : > { %1348 = vmatpush1.bf16.msra.mxu0 %v7673_v12  ;;  %1401 = vmatpush1.bf16.msra.mxu1 %v7676_v13  ;;  %v1513_v12 = vld [vmem:[#allocation8 + $0x140] sm:$0xff] }
 0x229   : > { %1349 = vmatprep.subr.bf16.mxu0 %v7681_v14  ;;  %1402 = vmatprep.subr.bf16.mxu1 %v7684_v16  ;;  %v1517_v13 = vld [vmem:[#allocation8 + $0x160] sm:$0xff]  ;;  %v1514_v14 = vld [vmem:[#allocation8 + $0x148] sm:$0xff] }
 0x22a   : > { %1375 = vmatprep.mubr.bf16.mxu0 %v8182_v56  ;;  %1428 = vmatprep.mubr.bf16.mxu1 %v8182_v56  ;;  %v1518_v16 = vld [vmem:[#allocation8 + $0x168] sm:$0xff] }
 0x22c   : > { %1350 = vmatpush1.bf16.msra.mxu0 %v7679_v17  ;;  %1403 = vmatpush1.bf16.msra.mxu1 %v7682_v18  ;;  %v6628_v17 = vcombine.low %v1506_v5, %v1510_v6  ;;  %v6635_v18 = vcombine.high %v1513_v12, %v1517_v13  ;;  %v1491_v6 = vld [vmem:[#allocation8 + $0x90] sm:$0xff] }
 0x22d   : > { %1351 = vmatprep.subr.bf16.mxu0 %v7687_v19  ;;  %1404 = vmatprep.subr.bf16.mxu1 %v7690_v20  ;;  %v6637_v19 = vcombine.high %v1514_v14, %v1518_v16  ;;  %v1521_v20 = vld [vmem:[#allocation8 + $0x180] sm:$0xff] }
 0x230   : > { %1352 = vmatpush1.bf16.msra.mxu0 %v7685_v22  ;;  %1405 = vmatpush1.bf16.msra.mxu1 %v7688_v24  ;;  %v1525_v22 = vld [vmem:[#allocation8 + $0x1a0] sm:$0xff]  ;;  %v1522_v24 = vld [vmem:[#allocation8 + $0x188] sm:$0xff] }
 0x231   : > { %1353 = vmatprep.subr.bf16.mxu0 %v7693_v25  ;;  %1406 = vmatprep.subr.bf16.mxu1 %v7696_v26  ;;  %v1526_v25 = vld [vmem:[#allocation8 + $0x1a8] sm:$0xff]  ;;  %v6634_v26 = vcombine.low %v1513_v12, %v1517_v13 }
 0x232   : > { %v6644_v35 = vcombine.low %v1522_v24, %v1526_v25 }
 0x234   : > { %1354 = vmatpush1.bf16.msra.mxu0 %v7691_v28  ;;  %1407 = vmatpush1.bf16.msra.mxu1 %v7694_v15  ;;  %v6636_v28 = vcombine.low %v1514_v14, %v1518_v16  ;;  %v6643_v15 = vcombine.high %v1521_v20, %v1525_v22  ;;  %v1499_v14 = vld [vmem:[#allocation8 + $0xd0] sm:$0xff] }
 0x235   : > { %1355 = vmatprep.subr.bf16.mxu0 %v7699_v29  ;;  %1408 = vmatprep.subr.bf16.mxu1 %v7702_v31  ;;  %v6645_v29 = vcombine.high %v1522_v24, %v1526_v25  ;;  %v1529_v31 = vld [vmem:[#allocation8 + $0x1c0] sm:$0xff]  ;;  %v1503_v16 = vld [vmem:[#allocation8 + $0xf0] sm:$0xff] }
 0x236   : > { %v1507_v24 = vld [vmem:[#allocation8 + $0x110] sm:$0xff] }
 0x237   : > { %v1511_v25 = vld [vmem:[#allocation8 + $0x130] sm:$0xff] }
 0x238   : > { %1356 = vmatpush1.bf16.msra.mxu0 %v7697_v32  ;;  %1409 = vmatpush1.bf16.msra.mxu1 %v7700_v33  ;;  %v1533_v32 = vld [vmem:[#allocation8 + $0x1e0] sm:$0xff]  ;;  %v1530_v33 = vld [vmem:[#allocation8 + $0x1c8] sm:$0xff] }
 0x239   : > { %1357 = vmatprep.subr.bf16.mxu0 %v7705_v34  ;;  %1410 = vmatprep.subr.bf16.mxu1 %v7708_v21  ;;  %v1534_v34 = vld [vmem:[#allocation8 + $0x1e8] sm:$0xff]  ;;  %v6642_v21 = vcombine.low %v1521_v20, %v1525_v22  ;;  %v6651_v36 = vcombine.high %v1529_v31, %v1533_v32  ;;  %v6623_v20 = vcombine.high %v1499_v14, %v1503_v16 }
 0x23a   : > { %v6653_v37 = vcombine.high %v1530_v33, %v1534_v34  ;;  %v6652_v41 = vcombine.low %v1530_v33, %v1534_v34  ;;  %v1519_v33 = vld [vmem:[#allocation8 + $0x170] sm:$0xff]  ;;  %v1516_v34 = vld [vmem:[#allocation8 + $0x158] sm:$0xff] }
 0x23c   : > { %1358 = vmatpush1.bf16.msra.mxu0 %v7703_v38  ;;  %1411 = vmatpush1.bf16.msra.mxu1 %v7706_v39  ;;  %v1479_v38 = vld [vmem:[#allocation8 + $0x30] sm:$0xff]  ;;  %v1476_v39 = vld [vmem:[#allocation8 + $0x18] sm:$0xff] }
 0x23d   : > { %1857 = vmatprep.subr.bf16.mxu0 %v6595_v40  ;;  %1900 = vmatprep.subr.bf16.mxu1 %v6597_v27  ;;  %v1480_v40 = vld [vmem:[#allocation8 + $0x38] sm:$0xff]  ;;  %v6650_v27 = vcombine.low %v1529_v31, %v1533_v32  ;;  %v6599_v43 = vcombine.high %v1475_v23, %v1479_v38  ;;  %v6631_v31 = vcombine.high %v1507_v24, %v1511_v25  ;;  %v1515_v32 = vld [vmem:[#allocation8 + $0x150] sm:$0xff] }
 0x23e   : > { %v6601_v44 = vcombine.high %v1476_v39, %v1480_v40 }
 0x23f   : > { %1376 = vmatmul.mubr.bf16.vlgmr.msra.gmra.mrb[16].mxu0 %v8545_v30  ;;  %1429 = vmatmul.mubr.bf16.vlgmr.msra.gmra.mrb[16].mxu1 %v8545_v30  ;;  %v6610_v30 = vcombine.low %v1489_v50, %v1493_v51 }
 0x240   : > { %1385 = vmatprep.mubr.bf16.mxu0 %v8182_v56  ;;  %1438 = vmatprep.mubr.bf16.mxu1 %v8182_v56 }
 0x241   : > { %1858 = vmatpush1.bf16.msra.mxu0 %v6594_v46  ;;  %1901 = vmatpush1.bf16.msra.mxu1 %v6596_v47 }
 0x242   : > { %1859 = vmatprep.subr.bf16.mxu0 %v6603_v48  ;;  %1902 = vmatprep.subr.bf16.mxu1 %v6605_v49 }
 0x245   : > { %1860 = vmatpush1.bf16.msra.mxu0 %v6602_v54  ;;  %1903 = vmatpush1.bf16.msra.mxu1 %v6604_v55 }
 0x246   : > { %1861 = vmatprep.subr.bf16.mxu0 %v6611_v57  ;;  %1904 = vmatprep.subr.bf16.mxu1 %v6613_v58  ;;  %v6495_v58 = vld [vmem:[%s9622_s3] ss:$0 sm:$0xff] }
 0x247   : > { %1386 = vmatmul.mubr.bf16.gmra.mrb[20].mxu0 %v8552_v42  ;;  %1439 = vmatmul.mubr.bf16.gmra.mrb[20].mxu1 %v8552_v42  ;;  %v6626_v42 = vcombine.low %v1505_v3, %v1509_v4  ;;  %v6607_v4 = vcombine.high %v1483_v60, %v1487_v61 }
 0x248   : > { %1889 = vmatprep.mubr.bf16.mxu0 %v8182_v56  ;;  %1932 = vmatprep.mubr.bf16.mxu1 %v8182_v56 }
 0x249   : > { %1862 = vmatpush1.bf16.msra.mxu0 %v6610_v30  ;;  %1905 = vmatpush1.bf16.msra.mxu1 %v6612_v63  ;;  %v1488_v30 = vld [vmem:[#allocation8 + $0x78] sm:$0xff] }
 0x24a   : > { %1863 = vmatprep.subr.bf16.mxu0 %v6619_v0  ;;  %1906 = vmatprep.subr.bf16.mxu1 %v6621_v2  ;;  %v6600_v2 = vcombine.low %v1476_v39, %v1480_v40  ;;  %v6609_v5 = vcombine.high %v1484_v62, %v1488_v30  ;;  %v1527_v39 = vld [vmem:[#allocation8 + $0x1b0] sm:$0xff]  ;;  %v1524_v40 = vld [vmem:[#allocation8 + $0x198] sm:$0xff] }
 0x24d   : > { %1864 = vmatpush1.bf16.msra.mxu0 %v6618_v7  ;;  %1907 = vmatpush1.bf16.msra.mxu1 %v6620_v9  ;;  %v1495_v7 = vld [vmem:[#allocation8 + $0xb0] sm:$0xff]  ;;  %v1496_v9 = vld [vmem:[#allocation8 + $0xb8] sm:$0xff] }
 0x24e   : > { %1865 = vmatprep.subr.bf16.mxu0 %v6627_v10  ;;  %1908 = vmatprep.subr.bf16.mxu1 %v6629_v11  ;;  %v6606_v10 = vcombine.low %v1483_v60, %v1487_v61  ;;  %v6608_v11 = vcombine.low %v1484_v62, %v1488_v30  ;;  %v6615_v12 = vcombine.high %v1491_v6, %v1495_v7 }
 0x251   : > { %1866 = vmatpush1.bf16.msra.mxu0 %v6626_v42  ;;  %1909 = vmatpush1.bf16.msra.mxu1 %v6628_v17  ;;  %v1500_v42 = vld [vmem:[#allocation8 + $0xd8] sm:$0xff] }
 0x252   : > { %1867 = vmatprep.subr.bf16.mxu0 %v6635_v18  ;;  %1910 = vmatprep.subr.bf16.mxu1 %v6637_v19  ;;  %v1504_v17 = vld [vmem:[#allocation8 + $0xf8] sm:$0xff]  ;;  %v6614_v18 = vcombine.low %v1491_v6, %v1495_v7 }
 0x253   : > { %v6625_v22 = vcombine.high %v1500_v42, %v1504_v17 }
 0x255   : > { %1868 = vmatpush1.bf16.msra.mxu0 %v6634_v26  ;;  %1911 = vmatpush1.bf16.msra.mxu1 %v6636_v28  ;;  %v1508_v26 = vld [vmem:[#allocation8 + $0x118] sm:$0xff] }
 0x256   : > { %1869 = vmatprep.subr.bf16.mxu0 %v6643_v15  ;;  %1912 = vmatprep.subr.bf16.mxu1 %v6645_v29  ;;  %v1512_v28 = vld [vmem:[#allocation8 + $0x138] sm:$0xff]  ;;  %v6622_v15 = vcombine.low %v1499_v14, %v1503_v16  ;;  %v6624_v29 = vcombine.low %v1500_v42, %v1504_v17  ;;  %v9634_v42 = vmov 0.0  }
 0x259   : > { %1870 = vmatpush1.bf16.msra.mxu0 %v6642_v21  ;;  %1913 = vmatpush1.bf16.msra.mxu1 %v6644_v35  ;;  %v1520_v21 = vld [vmem:[#allocation8 + $0x178] sm:$0xff]  ;;  %v6630_v35 = vcombine.low %v1507_v24, %v1511_v25 }
 0x25a   : > { %1871 = vmatprep.subr.bf16.mxu0 %v6651_v36  ;;  %1914 = vmatprep.subr.bf16.mxu1 %v6653_v37  ;;  %v6632_v36 = vcombine.low %v1508_v26, %v1512_v28  ;;  %v6639_v37 = vcombine.high %v1515_v32, %v1519_v33 }
 0x25d   : > { %1872 = vmatpush1.bf16.msra.mxu0 %v6650_v27  ;;  %1915 = vmatpush1.bf16.msra.mxu1 %v6652_v41  ;;  %v1528_v27 = vld [vmem:[#allocation8 + $0x1b8] sm:$0xff]  ;;  %v6638_v41 = vcombine.low %v1515_v32, %v1519_v33 }
 0x25e   : > { %1943 = vmatprep.subr.bf16.mxu0 %v6599_v43  ;;  %1986 = vmatprep.subr.bf16.mxu1 %v6601_v44  ;;  %v6640_v43 = vcombine.low %v1516_v34, %v1520_v21 }
 0x27b   : > { %v455_v45 = vpop.xlane.xlu0 %454 }
 0x27c   : > { %v458_v46 = vmul.f32 0.0078125, %v455_v45  ;;  %v6649_v45 = vcombine.high %v1524_v40, %v1528_v27 }
 0x27e   : > { %v460_v47 = vadd.f32 1e-05, %v458_v46  ;;  %v1531_v46 = vld [vmem:[#allocation8 + $0x1d0] sm:$0xff] }
 0x27f   : > { %v457_v48 = vpop.xlane.xlu1 %456 }
 0x280   : > { %7749 = vrsqrt.f32 %v460_v47  ;;  %v459_v49 = vmul.f32 0.0078125, %v457_v48  ;;  %v1535_v47 = vld [vmem:[#allocation8 + $0x1f0] sm:$0xff]  ;;  %v1532_v48 = vld [vmem:[#allocation8 + $0x1d8] sm:$0xff] }
 0x282   : > { %v461_v50 = vadd.f32 1e-05, %v459_v49  ;;  %v1536_v49 = vld [vmem:[#allocation8 + $0x1f8] sm:$0xff] }
 0x284   : > { %7751 = vrsqrt.f32 %v461_v50 }
 0x28a   : > { %v7750_v51 = vpop.eup %7749 }
 0x28b   : > { %v464_v52 = vmul.f32 %v7750_v51, %v8527_v1  ;;  %v6598_v1 = vcombine.low %v1475_v23, %v1479_v38  ;;  %v6641_v23 = vcombine.high %v1516_v34, %v1520_v21  ;;  %v1523_v38 = vld [vmem:[#allocation8 + $0x190] sm:$0xff]  ;;  %v6648_v51 = vcombine.low %v1524_v40, %v1528_v27 }
 0x28c   : > { %v6647_v44 = vcombine.high %v1523_v38, %v1527_v39  ;;  %v6646_v50 = vcombine.low %v1523_v38, %v1527_v39 }
 0x28d   : > { %v472_v55 = vmul.f32 %v6494_v53, %v464_v52  ;;  %v6655_v52 = vcombine.high %v1531_v46, %v1535_v47 }
 0x28e   : > { %v7752_v54 = vpop.eup %7751 }
 0x28f   : > { %v465_v57 = vmul.f32 %v7752_v54, %v8532_v8  ;;  %v480_v63 = vadd.f32 %v6495_v58, %v472_v55  ;;  %v1492_v8 = vld [vmem:[#allocation8 + $0x98] sm:$0xff]  ;;  %v6654_v54 = vcombine.low %v1531_v46, %v1535_v47  ;;  %v6656_v55 = vcombine.low %v1532_v48, %v1536_v49 }
 0x290   : > { %v6617_v13 = vcombine.high %v1492_v8, %v1496_v9  ;;  %v6616_v19 = vcombine.low %v1492_v8, %v1496_v9 }
 0x291   : > { %v473_v59 = vmul.f32 %v6494_v53, %v465_v57  ;;  %v6657_v53 = vcombine.high %v1532_v48, %v1536_v49 }
 0x293   : > { %v481_v0 = vadd.f32 %v6495_v58, %v473_v59 }
 0x295   : > { %v8582_v3 = vpack.c.bf16 %v481_v0, %v480_v63 }
 0x297   : > { %1890 = vmatmul.mubr.bf16.vlgmr.msra.gmra.mrb[24].mxu0 %v8582_v3  ;;  %1933 = vmatmul.mubr.bf16.vlgmr.msra.gmra.mrb[24].mxu1 %v8582_v3 }
 0x298   : > { %1944 = vmatpush1.bf16.msra.mxu0 %v6598_v1  ;;  %1987 = vmatpush1.bf16.msra.mxu1 %v6600_v2 }
 0x299   : > { %1945 = vmatprep.subr.bf16.mxu0 %v6607_v4  ;;  %1988 = vmatprep.subr.bf16.mxu1 %v6609_v5 }
 0x29a   : > { %1975 = vmatprep.mubr.bf16.mxu0 %v8182_v56  ;;  %2018 = vmatprep.mubr.bf16.mxu1 %v8182_v56  ;;  %v6633_v56 = vcombine.high %v1508_v26, %v1512_v28 }
 0x29c   : > { %1946 = vmatpush1.bf16.msra.mxu0 %v6606_v10  ;;  %1989 = vmatpush1.bf16.msra.mxu1 %v6608_v11 }
 0x29d   : > { %1947 = vmatprep.subr.bf16.mxu0 %v6615_v12  ;;  %1990 = vmatprep.subr.bf16.mxu1 %v6617_v13 }
 0x2a0   : > { %1948 = vmatpush1.bf16.msra.mxu0 %v6614_v18  ;;  %1991 = vmatpush1.bf16.msra.mxu1 %v6616_v19 }
 0x2a1   : > { %1949 = vmatprep.subr.bf16.mxu0 %v6623_v20  ;;  %1992 = vmatprep.subr.bf16.mxu1 %v6625_v22 }
 0x2a4   : > { %1950 = vmatpush1.bf16.msra.mxu0 %v6622_v15  ;;  %1993 = vmatpush1.bf16.msra.mxu1 %v6624_v29 }
 0x2a5   : > { %1951 = vmatprep.subr.bf16.mxu0 %v6631_v31  ;;  %1994 = vmatprep.subr.bf16.mxu1 %v6633_v56 }
 0x2a8   : > { %1952 = vmatpush1.bf16.msra.mxu0 %v6630_v35  ;;  %1995 = vmatpush1.bf16.msra.mxu1 %v6632_v36 }
 0x2a9   : > { %1953 = vmatprep.subr.bf16.mxu0 %v6639_v37  ;;  %1996 = vmatprep.subr.bf16.mxu1 %v6641_v23 }
 0x2ac   : > { %1954 = vmatpush1.bf16.msra.mxu0 %v6638_v41  ;;  %1997 = vmatpush1.bf16.msra.mxu1 %v6640_v43 }
 0x2ad   : > { %1955 = vmatprep.subr.bf16.mxu0 %v6647_v44  ;;  %1998 = vmatprep.subr.bf16.mxu1 %v6649_v45 }
 0x2b0   : > { %1956 = vmatpush1.bf16.msra.mxu0 %v6646_v50  ;;  %1999 = vmatpush1.bf16.msra.mxu1 %v6648_v51 }
 0x2b1   : > { %1957 = vmatprep.subr.bf16.mxu0 %v6655_v52  ;;  %2000 = vmatprep.subr.bf16.mxu1 %v6657_v53 }
 0x2b4   : > { %1958 = vmatpush1.bf16.msra.mxu0 %v6654_v54  ;;  %2001 = vmatpush1.bf16.msra.mxu1 %v6656_v55 }
 0x2b5   : > { %6981 = vmatprep.subr.bf16.mxu0 %v9634_v42  ;;  %6987 = vmatprep.subr.bf16.mxu1 %v9634_v42 }
 0x2b7   : > { %1976 = vmatmul.mubr.bf16.vlgmr.msra.gmra.mrb[28].mxu0 %v8582_v3  ;;  %2019 = vmatmul.mubr.bf16.vlgmr.msra.gmra.mrb[28].mxu1 %v8582_v3 }
 0x2b8   : > { %6983 = vmatprep.mubr.msk.bf16.mxu0 %vm8184_vm0, %v9634_v42  ;;  %6989 = vmatprep.mubr.msk.bf16.mxu1 %vm8184_vm0, %v9634_v42 }
 0x2d2   : > { %v1165_v57 = vpop.f32.mrb[0].mxu0  ;;  %v1218_v58 = vpop.f32.mrb[0].mxu1 }
 0x2d3   : > { %v1167_v59 = vpop.f32.mrb[1].mxu0  ;;  %v1220_v60 = vpop.f32.mrb[1].mxu1 }
 0x2d4   : > { %v1169_v61 = vpop.f32.mrb[2].mxu0  ;;  %v1222_v62 = vpop.f32.mrb[2].mxu1 }
 0x2d5   : > { %v8590_v30 = vpack.c.bf16 %v1169_v61, %v1165_v57  ;;  %v8592_v63 = vpack.c.bf16 %v1222_v62, %v1218_v58  ;;  %v1171_v0 = vpop.f32.mrb[3].mxu0  ;;  %v1224_v1 = vpop.f32.mrb[3].mxu1 }
 0x2d6   : > { %v8594_v2 = vpack.c.bf16 %v1171_v0, %v1167_v59  ;;  %v8596_v4 = vpack.c.bf16 %v1224_v1, %v1220_v60 }
 0x2da   : > { %v1175_v5 = vpop.f32.mrb[4].mxu0  ;;  %v1228_v6 = vpop.f32.mrb[4].mxu1 }
 0x2db   : > { %v1177_v7 = vpop.f32.mrb[5].mxu0  ;;  %v1230_v3 = vpop.f32.mrb[5].mxu1 }
 0x2dc   : > { %v1179_v8 = vpop.f32.mrb[6].mxu0  ;;  %v1232_v9 = vpop.f32.mrb[6].mxu1 }
 0x2dd   : > { %v8598_v10 = vpack.c.bf16 %v1179_v8, %v1175_v5  ;;  %v8600_v11 = vpack.c.bf16 %v1232_v9, %v1228_v6  ;;  %v1181_v12 = vpop.f32.mrb[7].mxu0  ;;  %v1234_v13 = vpop.f32.mrb[7].mxu1 }
 0x2de   : > { %v8602_v14 = vpack.c.bf16 %v1181_v12, %v1177_v7  ;;  %v8604_v16 = vpack.c.bf16 %v1234_v13, %v1230_v3 }
 0x2e0   : > { %9664 = vst [vmem:[#allocation20_spill] sm:$0xff] %v8604_v16 }
 0x2f2   : > { %v1271_v17 = vpop.f32.mrb[8].mxu0  ;;  %v1324_v18 = vpop.f32.mrb[8].mxu1 }
 0x2f3   : > { %v1273_v19 = vpop.f32.mrb[9].mxu0  ;;  %v1326_v20 = vpop.f32.mrb[9].mxu1 }
 0x2f4   : > { %v1275_v22 = vpop.f32.mrb[10].mxu0  ;;  %v1328_v24 = vpop.f32.mrb[10].mxu1 }
 0x2f5   : > { %v8612_v25 = vpack.c.bf16 %v1275_v22, %v1271_v17  ;;  %v8614_v26 = vpack.c.bf16 %v1328_v24, %v1324_v18  ;;  %v1277_v28 = vpop.f32.mrb[11].mxu0  ;;  %v1330_v15 = vpop.f32.mrb[11].mxu1 }
 0x2f6   : > { %v8616_v29 = vpack.c.bf16 %v1277_v28, %v1273_v19  ;;  %v8618_v31 = vpack.c.bf16 %v1330_v15, %v1326_v20 }
 0x2f7   : > { %v2165_v15 = vsel %vm2069_vm1, %v8612_v25, 0 }
 0x2fa   : > { %v1281_v56 = vpop.f32.mrb[12].mxu0  ;;  %v1334_v32 = vpop.f32.mrb[12].mxu1 }
 0x2fb   : > { %v1283_v33 = vpop.f32.mrb[13].mxu0  ;;  %v1336_v34 = vpop.f32.mrb[13].mxu1 }
 0x2fc   : > { %v1285_v21 = vpop.f32.mrb[14].mxu0  ;;  %v1338_v35 = vpop.f32.mrb[14].mxu1 }
 0x2fd   : > { %v8620_v36 = vpack.c.bf16 %v1285_v21, %v1281_v56  ;;  %v8622_v37 = vpack.c.bf16 %v1338_v35, %v1334_v32  ;;  %v1287_v23 = vpop.f32.mrb[15].mxu0  ;;  %v1340_v38 = vpop.f32.mrb[15].mxu1 }
 0x2fe   : > { %v8624_v39 = vpack.c.bf16 %v1287_v23, %v1283_v33  ;;  %v8626_v40 = vpack.c.bf16 %v1340_v38, %v1336_v34 }
 0x2ff   : > { %v2209_v56 = vsel %vm2069_vm1, %v8620_v36, 0 }
 0x300   : > { %9665 = vst [vmem:[#allocation21_spill] sm:$0xff] %v8626_v40 }
 0x312   : > { %v1377_v27 = vpop.f32.mrb[16].mxu0  ;;  %v1430_v41 = vpop.f32.mrb[16].mxu1 }
 0x313   : > { %v1379_v43 = vpop.f32.mrb[17].mxu0  ;;  %v1432_v44 = vpop.f32.mrb[17].mxu1 }
 0x314   : > { %v1381_v45 = vpop.f32.mrb[18].mxu0  ;;  %v1434_v46 = vpop.f32.mrb[18].mxu1 }
 0x315   : > { %v8628_v47 = vpack.c.bf16 %v1381_v45, %v1377_v27  ;;  %v8630_v48 = vpack.c.bf16 %v1434_v46, %v1430_v41  ;;  %v1383_v49 = vpop.f32.mrb[19].mxu0  ;;  %v1436_v50 = vpop.f32.mrb[19].mxu1 }
 0x316   : > { %v8632_v51 = vpack.c.bf16 %v1383_v49, %v1379_v43  ;;  %v8634_v52 = vpack.c.bf16 %v1436_v50, %v1432_v44 }
 0x31a   : > { %v1387_v53 = vpop.f32.mrb[20].mxu0  ;;  %v1440_v54 = vpop.f32.mrb[20].mxu1 }
 0x31b   : > { %v1389_v55 = vpop.f32.mrb[21].mxu0  ;;  %v1442_v57 = vpop.f32.mrb[21].mxu1 }
 0x31c   : > { %v1391_v58 = vpop.f32.mrb[22].mxu0  ;;  %v1444_v59 = vpop.f32.mrb[22].mxu1 }
 0x31d   : > { %v8636_v60 = vpack.c.bf16 %v1391_v58, %v1387_v53  ;;  %v8638_v61 = vpack.c.bf16 %v1444_v59, %v1440_v54  ;;  %v1393_v62 = vpop.f32.mrb[23].mxu0  ;;  %v1446_v0 = vpop.f32.mrb[23].mxu1 }
 0x31e   : > { %v8640_v1 = vpack.c.bf16 %v1393_v62, %v1389_v55  ;;  %v8642_v5 = vpack.c.bf16 %v1446_v0, %v1442_v57 }
 0x320   : > { %9666 = vst [vmem:[#allocation22_spill] sm:$0xff] %v8642_v5 }
 0x36a   : > { %v8644_v6 = vpop.f32.mrb[24].mxu0  ;;  %v8646_v7 = vpop.f32.mrb[24].mxu1 }
 0x36b   : > { %v1893_v3 = vpop.f32.mrb[25].mxu0  ;;  %v1936_v8 = vpop.f32.mrb[25].mxu1 }
 0x36c   : > { %v8649_v9 = vpack.c.bf16 %v1893_v3, %v8644_v6  ;;  %v8652_v12 = vpack.c.bf16 %v1936_v8, %v8646_v7  ;;  %v8654_v13 = vpop.f32.mrb[26].mxu0  ;;  %v8656_v17 = vpop.f32.mrb[26].mxu1 }
 0x36d   : > { %v1897_v18 = vpop.f32.mrb[27].mxu0  ;;  %v1940_v19 = vpop.f32.mrb[27].mxu1 }
 0x36e   : > { %v8659_v20 = vpack.c.bf16 %v1897_v18, %v8654_v13  ;;  %v8662_v22 = vpack.c.bf16 %v1940_v19, %v8656_v17  ;;  %v2074_v24 = vsel %vm2069_vm1, %v8649_v9, 0 }
 0x36f   : > { %6982 = vmatpush3.bf16.xpose.msra.mxu0 %v2074_v24 }
 0x370   : > { %v2121_v28 = vsel %vm2069_vm1, %v8659_v20, 0  ;;  %6993 = vmatprep.subr.bf16.mxu0 %v9634_v42 }
 0x371   : > { %6988 = vmatpush3.bf16.xpose.msra.mxu1 %v2121_v28 }
 0x372   : > { %6999 = vmatprep.subr.bf16.mxu1 %v9634_v42 }
 0x376   : > { %6984 = vmatmul.mubr.msk.bf16.vlgmr.msra.gmra.mrb[32].mxu0 %vm2069_vm1, %v8590_v30 }
 0x377   : > { %6994 = vmatpush3.bf16.xpose.msra.mxu0 %v2165_v15  ;;  %6995 = vmatprep.mubr.msk.bf16.mxu0 %vm8184_vm0, %v9634_v42 }
 0x378   : > { %6990 = vmatmul.mubr.msk.bf16.vlgmr.msra.gmra.mrb[32].mxu1 %vm2069_vm1, %v8598_v10  ;;  %7005 = vmatprep.subr.bf16.mxu0 %v9634_v42 }
 0x379   : > { %7000 = vmatpush3.bf16.xpose.msra.mxu1 %v2209_v56  ;;  %7001 = vmatprep.mubr.msk.bf16.mxu1 %vm8184_vm0, %v9634_v42 }
 0x37a   : > { %7011 = vmatprep.subr.bf16.mxu1 %v9634_v42 }
 0x37e   : > { %6996 = vmatmul.mubr.msk.bf16.vlgmr.msra.gmra.mrb[36].mxu0 %vm2069_vm1, %v8590_v30 }
 0x37f   : > { %7006 = vmatpush3.bf16.msra.mxu0 %v8628_v47  ;;  %7007 = vmatprep.mubr.msk.bf16.mxu0 %vm8184_vm0, %v9634_v42 }
 0x380   : > { %7002 = vmatmul.mubr.msk.bf16.vlgmr.msra.gmra.mrb[36].mxu1 %vm2069_vm1, %v8598_v10  ;;  %7017 = vmatprep.subr.bf16.mxu0 %v9634_v42 }
 0x381   : > { %7012 = vmatpush3.bf16.msra.mxu1 %v8636_v60  ;;  %7013 = vmatprep.mubr.msk.bf16.mxu1 %vm8184_vm0, %v9634_v42 }
 0x382   : > { %7023 = vmatprep.subr.bf16.mxu1 %v9634_v42 }
 0x38a   : > { %v8696_v32 = vpop.f32.mrb[28].mxu0  ;;  %v8698_v33 = vpop.f32.mrb[28].mxu1 }
 0x38b   : > { %v1979_v34 = vpop.f32.mrb[29].mxu0  ;;  %v2022_v21 = vpop.f32.mrb[29].mxu1 }
 0x38c   : > { %v8701_v35 = vpack.c.bf16 %v1979_v34, %v8696_v32  ;;  %v8704_v23 = vpack.c.bf16 %v2022_v21, %v8698_v33  ;;  %v8706_v38 = vpop.f32.mrb[30].mxu0  ;;  %v8708_v27 = vpop.f32.mrb[30].mxu1 }
 0x38d   : > { %v1983_v41 = vpop.f32.mrb[31].mxu0  ;;  %v2026_v43 = vpop.f32.mrb[31].mxu1 }
 0x38e   : > { %v8711_v44 = vpack.c.bf16 %v1983_v41, %v8706_v38  ;;  %v8714_v45 = vpack.c.bf16 %v2026_v43, %v8708_v27 }
 0x449   : > { %v2110_v46 = vpop.f32.mrb[32].mxu0 }
 0x44a   : > { %v6985_v49 = vpop.f32.mrb[33].mxu0  ;;  %v2253_v53 = vsel %vm2252_vm2, %v2110_v46, -inf }
 0x44b   : > { %v2157_v50 = vpop.f32.mrb[32].mxu1  ;;  %2254 = vmax.xlane.f32.xlu0 %v2253_v53  ;;  %v2113_v54 = vpop.f32.mrb[34].mxu0 }
 0x44c   : > { %v6991_v55 = vpop.f32.mrb[33].mxu1  ;;  %v6986_v57 = vpop.f32.mrb[35].mxu0  ;;  %v2256_v59 = vsel %vm2252_vm2, %v2113_v54, -inf  ;;  %v2259_v21 = vsel %vm2252_vm2, %v2157_v50, -inf }
 0x44d   : > { %v2160_v58 = vpop.f32.mrb[34].mxu1  ;;  %2257 = vmax.xlane.f32.xlu1 %v2256_v59 }
 0x44e   : > { %v6992_v62 = vpop.f32.mrb[35].mxu1  ;;  %v2262_v41 = vsel %vm2252_vm2, %v2160_v58, -inf }
 0x451   : > { %v2201_v0 = vpop.f32.mrb[36].mxu0 }
 0x452   : > { %v6997_v3 = vpop.f32.mrb[37].mxu0  ;;  %v2266_v18 = vsel %vm2265_vm3, %v2201_v0, -inf }
 0x453   : > { %v2245_v8 = vpop.f32.mrb[36].mxu1  ;;  %2267 = vmax.xlane.f32.xlu0 %v2266_v18  ;;  %v2204_v19 = vpop.f32.mrb[38].mxu0 }
 0x454   : > { %v7003_v24 = vpop.f32.mrb[37].mxu1  ;;  %v6998_v28 = vpop.f32.mrb[39].mxu0  ;;  %v2269_v56 = vsel %vm2265_vm3, %v2204_v19, -inf  ;;  %v2272_v43 = vsel %vm2265_vm3, %v2245_v8, -inf }
 0x455   : > { %v2248_v15 = vpop.f32.mrb[38].mxu1  ;;  %2270 = vmax.xlane.f32.xlu1 %v2269_v56 }
 0x456   : > { %v7004_v34 = vpop.f32.mrb[39].mxu1  ;;  %v2275_v49 = vsel %vm2265_vm3, %v2248_v15, -inf }
 0x457   : > { %2260 = vmax.xlane.f32.xlu0 %v2259_v21 }
 0x459   : > { %2263 = vmax.xlane.f32.xlu1 %v2262_v41 }
 0x45b   : > { %2273 = vmax.xlane.f32.xlu0 %v2272_v43 }
 0x45d   : > { %2276 = vmax.xlane.f32.xlu1 %v2275_v49 }
 0x4d8   : > { %v2255_v53 = vpop.xlane.xlu0 %2254 }
 0x4da   : > { %v2258_v55 = vpop.xlane.xlu1 %2257 }
 0x4e0   : > { %v2268_v57 = vpop.xlane.xlu0 %2267 }
 0x4e1   : > { %v2278_v59 = vmax.f32 %v2255_v53, %v2268_v57 }
 0x4e2   : > { %v2271_v62 = vpop.xlane.xlu1 %2270 }
 0x4e3   : > { %v2282_v3 = vsub.f32 %v2110_v46, %v2278_v59  ;;  %v2294_v18 = vsub.f32 %v2201_v0, %v2278_v59  ;;  %v2279_v24 = vmax.f32 %v2258_v55, %v2271_v62 }
 0x4e4   : > { %v2261_v28 = vpop.xlane.xlu0 %2260 }
 0x4e5   : > { %v2286_v56 = vmul.f32 1.442695, %v2282_v3  ;;  %v2298_v34 = vmul.f32 1.442695, %v2294_v18  ;;  %v2283_v21 = vsub.f32 %v2113_v54, %v2279_v24  ;;  %v2295_v42 = vsub.f32 %v2204_v19, %v2279_v24 }
 0x4e6   : > { %v2264_v41 = vpop.xlane.xlu1 %2263 }
 0x4e7   : > { %7753 = vpow2.f32 %v2286_v56  ;;  %v2288_v5 = vmul.f32 1.442695, %v2283_v21  ;;  %v2300_v43 = vmul.f32 1.442695, %v2295_v42 }
 0x4e8   : > { %7755 = vpow2.f32 %v2298_v34  ;;  %v2274_v16 = vpop.xlane.xlu0 %2273 }
 0x4e9   : > { %7757 = vpow2.f32 %v2288_v5  ;;  %v2280_v49 = vmax.f32 %v2261_v28, %v2274_v16 }
 0x4ea   : > { %v2277_v40 = vpop.xlane.xlu1 %2276  ;;  %7759 = vpow2.f32 %v2300_v43  ;;  %v6787_v43 = vpack.c.bf16 %v8644_v6, %v8644_v6 }
 0x4eb   : > { %v2284_v53 = vsub.f32 %v2157_v50, %v2280_v49  ;;  %v2296_v57 = vsub.f32 %v2245_v8, %v2280_v49  ;;  %v2281_v46 = vmax.f32 %v2264_v41, %v2277_v40  ;;  %v6788_v49 = vpack.c.bf16 %v8654_v13, %v8654_v13 }
 0x4ed   : > { %v2290_v0 = vmul.f32 1.442695, %v2284_v53  ;;  %v2302_v55 = vmul.f32 1.442695, %v2296_v57  ;;  %v2285_v59 = vsub.f32 %v2160_v58, %v2281_v46  ;;  %v2297_v62 = vsub.f32 %v2248_v15, %v2281_v46 }
 0x4ef   : > { %7761 = vpow2.f32 %v2290_v0  ;;  %v2292_v54 = vmul.f32 1.442695, %v2285_v59  ;;  %v2304_v19 = vmul.f32 1.442695, %v2297_v62 }
 0x4f0   : > { %7763 = vpow2.f32 %v2302_v55 }
 0x4f1   : > { %v8724_v3 = vpop.eup %7753  ;;  %7765 = vpow2.f32 %v2292_v54 }
 0x4f2   : > { %v7756_v42 = vpop.eup %7755  ;;  %v2306_v16 = vsel %vm2252_vm2, %v8724_v3, 0.0  ;;  %7767 = vpow2.f32 %v2304_v19 }
 0x4f3   : > { %v8728_v5 = vpop.eup %7757  ;;  %2307 = vadd.xlane.f32.xlu0 %v2306_v16  ;;  %v2318_v58 = vsel %vm2265_vm3, %v7756_v42, 0.0 }
 0x4f4   : > { %v2309_v40 = vsel %vm2252_vm2, %v8728_v5, 0.0  ;;  %v7760_v50 = vpop.eup %7759 }
 0x4f5   : > { %2310 = vadd.xlane.f32.xlu1 %v2309_v40  ;;  %v2321_v8 = vsel %vm2265_vm3, %v7760_v50, 0.0 }
 0x4f7   : > { %2319 = vadd.xlane.f32.xlu0 %v2318_v58  ;;  %v2443_v58 = vsel %vm2441_vm4, %v8701_v35, 0 }
 0x4f9   : > { %v8734_v15 = vpop.eup %7761  ;;  %2322 = vadd.xlane.f32.xlu1 %v2321_v8 }
 0x4fa   : > { %v7764_v18 = vpop.eup %7763  ;;  %v2312_v24 = vsel %vm2252_vm2, %v8734_v15, 0.0 }
 0x4fb   : > { %v8738_v28 = vpop.eup %7765  ;;  %2313 = vadd.xlane.f32.xlu0 %v2312_v24  ;;  %v2324_v21 = vsel %vm2265_vm3, %v7764_v18, 0.0  ;;  %v9667_v24 = vmov 0.0  }
 0x4fc   : > { %v2315_v56 = vsel %vm2252_vm2, %v8738_v28, 0.0  ;;  %v7768_v34 = vpop.eup %7767 }
 0x4fd   : > { %2316 = vadd.xlane.f32.xlu1 %v2315_v56  ;;  %v2327_v41 = vsel %vm2265_vm3, %v7768_v34, 0.0 }
 0x4ff   : > { %2325 = vadd.xlane.f32.xlu0 %v2324_v21 }
 0x501   : > { %2328 = vadd.xlane.f32.xlu1 %v2327_v41 }
 0x512   : > { %2534 = vrot.lane.b32.xlu1 %v8590_v30, %s8185_s14 }
 0x515   : > { %2537 = vrot.lane.b32.xlu0 %v6787_v43, %s8185_s14 }
 0x516   : > { %2590 = vrot.lane.b32.xlu1 %v6788_v49, %s8185_s14 }
 0x519   : > { %2587 = vrot.lane.b32.xlu0 %v8598_v10, %s8185_s14 }
 0x51a   : > { %2640 = vrot.lane.b32.xlu1 %v8612_v25, %s8185_s14 }
 0x51e   : > { %2687 = vrot.lane.b32.xlu1 %v8620_v36, %s8185_s14 }
 0x580   : > { %v2308_v30 = vpop.xlane.xlu0 %2307 }
 0x582   : > { %v2311_v53 = vpop.xlane.xlu1 %2310 }
 0x584   : > { %v2320_v57 = vpop.xlane.xlu0 %2319 }
 0x585   : > { %v2330_v6 = vadd.f32 %v2320_v57, %v2308_v30  ;;  %v2490_v30 = vsel %vm2441_vm4, %v8711_v44, 0 }
 0x586   : > { %v2323_v46 = vpop.xlane.xlu1 %2322 }
 0x587   : > { %7769 = vrcp.f32 %v2330_v6  ;;  %v2331_v13 = vadd.f32 %v2323_v46, %v2311_v53 }
 0x588   : > { %v2314_v0 = vpop.xlane.xlu0 %2313 }
 0x589   : > { %7771 = vrcp.f32 %v2331_v13 }
 0x58a   : > { %v2317_v55 = vpop.xlane.xlu1 %2316 }
 0x58c   : > { %v2326_v59 = vpop.xlane.xlu0 %2325 }
 0x58d   : > { %v2332_v62 = vadd.f32 %v2326_v59, %v2314_v0 }
 0x58e   : > { %v2329_v54 = vpop.xlane.xlu1 %2328 }
 0x58f   : > { %7773 = vrcp.f32 %v2332_v62  ;;  %v2333_v10 = vadd.f32 %v2329_v54, %v2317_v55 }
 0x590   : > { %v2538_v53 = vpop.permute.xlu0 %2537 }
 0x591   : > { %v7770_v19 = vpop.eup %7769  ;;  %7775 = vrcp.f32 %v2333_v10 }
 0x592   : > { %v2344_v16 = vmul.f32 %v7770_v19, %v7756_v42  ;;  %v2535_v43 = vpop.permute.xlu1 %2534  ;;  %v2338_v49 = vmul.f32 %v7770_v19, %v8724_v3 }
 0x593   : > { %v7772_v25 = vpop.eup %7771 }
 0x594   : > { %v2345_v36 = vmul.f32 %v7772_v25, %v7760_v50  ;;  %v2339_v42 = vmul.f32 %v7772_v25, %v8728_v5 }
 0x596   : > { %v2348_v40 = vpack.c.bf16 %v2345_v36, %v2344_v16  ;;  %v2342_v57 = vpack.c.bf16 %v2339_v42, %v2338_v49 }
 0x598   : > { %7008 = vmatmul.mubr.msk.bf16.vlgmr.msra.gmra.mrb[40].mxu0 %vm2265_vm3, %v2348_v40 }
 0x599   : > { %v7774_v8 = vpop.eup %7773  ;;  %7018 = vmatpush3.bf16.msra.mxu0 %v2443_v58  ;;  %7019 = vmatprep.mubr.msk.bf16.mxu0 %vm8184_vm0, %v9667_v24 }
 0x59a   : > { %7029 = vmatprep.subr.bf16.mxu0 %v9667_v24  ;;  %v2346_v21 = vmul.f32 %v7774_v8, %v7764_v18  ;;  %v2591_v18 = vpop.permute.xlu1 %2590  ;;  %v2340_v5 = vmul.f32 %v7774_v8, %v8734_v15 }
 0x59b   : > { %v7776_v56 = vpop.eup %7775  ;;  %v2596_v13 = vsel %vm2069_vm1, %v2591_v18, 0 }
 0x59c   : > { %v2347_v41 = vmul.f32 %v7776_v56, %v7768_v34  ;;  %v2543_v34 = vsel %vm2069_vm1, %v2538_v53, 0  ;;  %v2341_v3 = vmul.f32 %v7776_v56, %v8738_v28  ;;  %v2588_v28 = vpop.permute.xlu0 %2587 }
 0x59e   : > { %v2349_v50 = vpack.c.bf16 %v2347_v41, %v2346_v21  ;;  %v2641_v6 = vpop.permute.xlu1 %2640  ;;  %v2343_v46 = vpack.c.bf16 %v2341_v3, %v2340_v5 }
 0x59f   : > { %v2643_v0 = vsel %vm2069_vm1, %v2641_v6, 0 }
 0x5a0   : > { %7014 = vmatmul.mubr.msk.bf16.vlgmr.msra.gmra.mrb[40].mxu1 %vm2265_vm3, %v2349_v50 }
 0x5a1   : > { %7024 = vmatpush3.bf16.msra.mxu1 %v2490_v30  ;;  %7025 = vmatprep.mubr.msk.bf16.mxu1 %vm8184_vm0, %v9667_v24 }
 0x5a2   : > { %7035 = vmatprep.subr.bf16.mxu1 %v9667_v24  ;;  %v2688_v15 = vpop.permute.xlu1 %2687 }
 0x5a3   : > { %v2690_v55 = vsel %vm2069_vm1, %v2688_v15, 0 }
 0x5a4   : > { %7020 = vmatmul.mubr.msk.bf16.vlgmr.msra.gmra.mrb[40].mxu0 %vm2252_vm2, %v2342_v57 }
 0x5a5   : > { %7030 = vmatpush3.bf16.xpose.msra.mxu0 %v2543_v34  ;;  %7031 = vmatprep.mubr.msk.bf16.mxu0 %vm8184_vm0, %v9667_v24 }
 0x5a6   : > { %7041 = vmatprep.subr.bf16.mxu0 %v9667_v24 }
 0x5ac   : > { %7026 = vmatmul.mubr.msk.bf16.vlgmr.msra.gmra.mrb[40].mxu1 %vm2252_vm2, %v2343_v46  ;;  %7032 = vmatmul.mubr.msk.bf16.vlgmr.msra.gmra.mrb[44].mxu0 %vm2069_vm1, %v2535_v43 }
 0x5ad   : > { %7036 = vmatpush3.bf16.xpose.msra.mxu1 %v2596_v13  ;;  %7042 = vmatpush3.bf16.xpose.msra.mxu0 %v2643_v0 }
 0x5ae   : > { %7037 = vmatprep.mubr.msk.bf16.mxu1 %vm8184_vm0, %v9667_v24  ;;  %7043 = vmatprep.mubr.msk.bf16.mxu0 %vm8184_vm0, %v9667_v24 }
 0x5af   : > { %7047 = vmatprep.subr.bf16.mxu1 %v9667_v24  ;;  %7053 = vmatprep.subr.bf16.mxu0 %v9667_v24 }
 0x5b4   : > { %7038 = vmatmul.mubr.msk.bf16.vlgmr.msra.gmra.mrb[44].mxu1 %vm2069_vm1, %v2588_v28  ;;  %7044 = vmatmul.mubr.msk.bf16.vlgmr.msra.gmra.mrb[48].mxu0 %vm2069_vm1, %v2535_v43 }
 0x5b5   : > { %7048 = vmatpush3.bf16.xpose.msra.mxu1 %v2690_v55  ;;  %7049 = vmatprep.mubr.msk.bf16.mxu1 %vm8184_vm0, %v9667_v24 }
 0x5b6   : > { %7059 = vmatprep.subr.bf16.mxu1 %v9667_v24  ;;  %7055 = vmatprep.mubr.msk.bf16.mxu0 %vm8184_vm0, %v9667_v24 }
 0x5bc   : > { %7050 = vmatmul.mubr.msk.bf16.vlgmr.msra.gmra.mrb[48].mxu1 %vm2069_vm1, %v2588_v28 }
 0x5bd   : > { %7061 = vmatprep.mubr.msk.bf16.mxu1 %vm8184_vm0, %v9667_v24 }
 0x677   : > { %v8800_v59 = vpop.f32.mrb[40].mxu0 }
 0x678   : > { %v7021_v62 = vpop.f32.mrb[41].mxu0 }
 0x679   : > { %v8802_v54 = vpop.f32.mrb[42].mxu0 }
 0x67a   : > { %v7022_v10 = vpop.f32.mrb[43].mxu0 }
 0x67f   : > { %v8804_v19 = vpop.f32.mrb[40].mxu1  ;;  %v2579_v25 = vpop.f32.mrb[44].mxu0 }
 0x680   : > { %v7027_v16 = vpop.f32.mrb[41].mxu1  ;;  %v7033_v36 = vpop.f32.mrb[45].mxu0  ;;  %v2733_v40 = vsel %vm2252_vm2, %v2579_v25, -inf }
 0x681   : > { %2734 = vmax.xlane.f32.xlu0 %v2733_v40  ;;  %v8807_v58 = vpop.f32.mrb[42].mxu1  ;;  %v2582_v8 = vpop.f32.mrb[46].mxu0 }
 0x682   : > { %v7028_v56 = vpop.f32.mrb[43].mxu1  ;;  %v7034_v21 = vpop.f32.mrb[47].mxu0  ;;  %v2736_v41 = vsel %vm2252_vm2, %v2582_v8, -inf }
 0x683   : > { %2737 = vmax.xlane.f32.xlu1 %v2736_v41 }
 0x687   : > { %v2632_v43 = vpop.f32.mrb[44].mxu1  ;;  %v2679_v42 = vpop.f32.mrb[48].mxu0 }
 0x688   : > { %v7039_v50 = vpop.f32.mrb[45].mxu1  ;;  %v7045_v49 = vpop.f32.mrb[49].mxu0  ;;  %v2745_v30 = vsel %vm2265_vm3, %v2679_v42, -inf  ;;  %v2739_v13 = vsel %vm2252_vm2, %v2632_v43, -inf }
 0x689   : > { %2746 = vmax.xlane.f32.xlu0 %v2745_v30  ;;  %v8811_v53 = vpop.f32.mrb[46].mxu1  ;;  %v2682_v57 = vpop.f32.mrb[50].mxu0 }
 0x68a   : > { %v7040_v18 = vpop.f32.mrb[47].mxu1  ;;  %v7046_v34 = vpop.f32.mrb[51].mxu0  ;;  %v2742_v3 = vsel %vm2252_vm2, %v8811_v53, -inf  ;;  %v2748_v5 = vsel %vm2265_vm3, %v2682_v57, -inf }
 0x68b   : > { %2743 = vmax.xlane.f32.xlu1 %v2742_v3 }
 0x68d   : > { %2749 = vmax.xlane.f32.xlu0 %v2748_v5 }
 0x68f   : > { %v2726_v6 = vpop.f32.mrb[48].mxu1 }
 0x690   : > { %v7051_v46 = vpop.f32.mrb[49].mxu1  ;;  %v2751_v55 = vsel %vm2265_vm3, %v2726_v6, -inf }
 0x691   : > { %2740 = vmax.xlane.f32.xlu0 %v2739_v13  ;;  %v2729_v0 = vpop.f32.mrb[50].mxu1 }
 0x692   : > { %v7052_v15 = vpop.f32.mrb[51].mxu1  ;;  %v2754_v28 = vsel %vm2265_vm3, %v2729_v0, -inf }
 0x693   : > { %2755 = vmax.xlane.f32.xlu1 %v2754_v28 }
 0x695   : > { %2752 = vmax.xlane.f32.xlu0 %v2751_v55 }
 0x70e   : > { %v2735_v62 = vpop.xlane.xlu0 %2734 }
 0x710   : > { %v2738_v56 = vpop.xlane.xlu1 %2737 }
 0x716   : > { %v2747_v10 = vpop.xlane.xlu0 %2746 }
 0x717   : > { %v2757_v16 = vmax.f32 %v2735_v62, %v2747_v10 }
 0x719   : > { %v2761_v36 = vsub.f32 %v2579_v25, %v2757_v16  ;;  %v2773_v40 = vsub.f32 %v2679_v42, %v2757_v16 }
 0x71a   : > { %v2750_v21 = vpop.xlane.xlu0 %2749 }
 0x71b   : > { %v2765_v41 = vmul.f32 1.442695, %v2761_v36  ;;  %v2777_v50 = vmul.f32 1.442695, %v2773_v40  ;;  %v2758_v49 = vmax.f32 %v2738_v56, %v2750_v21 }
 0x71d   : > { %7777 = vpow2.f32 %v2765_v41  ;;  %v2762_v30 = vsub.f32 %v2582_v8, %v2758_v49  ;;  %v2774_v18 = vsub.f32 %v2682_v57, %v2758_v49  ;;  %v6789_v41 = vpack.c.bf16 %v8696_v32, %v8696_v32 }
 0x71e   : > { %v2741_v34 = vpop.xlane.xlu0 %2740  ;;  %7779 = vpow2.f32 %v2777_v50  ;;  %v2744_v50 = vpop.xlane.xlu1 %2743 }
 0x71f   : > { %v2767_v3 = vmul.f32 1.442695, %v2762_v30  ;;  %v2779_v5 = vmul.f32 1.442695, %v2774_v18 }
 0x721   : > { %7781 = vpow2.f32 %v2767_v3 }
 0x722   : > { %v2753_v46 = vpop.xlane.xlu0 %2752  ;;  %7783 = vpow2.f32 %v2779_v5  ;;  %v2756_v49 = vpop.xlane.xlu1 %2755 }
 0x723   : > { %v2759_v13 = vmax.f32 %v2741_v34, %v2753_v46  ;;  %v2760_v30 = vmax.f32 %v2744_v50, %v2756_v49 }
 0x725   : > { %v2763_v15 = vsub.f32 %v2632_v43, %v2759_v13  ;;  %v2775_v28 = vsub.f32 %v2726_v6, %v2759_v13  ;;  %v2764_v18 = vsub.f32 %v8811_v53, %v2760_v30  ;;  %v2776_v3 = vsub.f32 %v2729_v0, %v2760_v30 }
 0x727   : > { %v8819_v25 = vpop.eup %7777  ;;  %v2769_v42 = vmul.f32 1.442695, %v2763_v15  ;;  %v2781_v55 = vmul.f32 1.442695, %v2775_v28  ;;  %v2771_v34 = vmul.f32 1.442695, %v2764_v18 }
 0x728   : > { %v2785_v62 = vsel %vm2252_vm2, %v8819_v25, 0.0  ;;  %v7780_v10 = vpop.eup %7779  ;;  %v2783_v5 = vmul.f32 1.442695, %v2776_v3 }
 0x729   : > { %7785 = vpow2.f32 %v2769_v42  ;;  %2786 = vadd.xlane.f32.xlu0 %v2785_v62  ;;  %v2797_v57 = vsel %vm2265_vm3, %v7780_v10, 0.0 }
 0x72a   : > { %7787 = vpow2.f32 %v2781_v55 }
 0x72b   : > { %v8823_v8 = vpop.eup %7781  ;;  %7789 = vpow2.f32 %v2771_v34  ;;  %v3025_v34 = vrot.slane %v8649_v9, 4 }
 0x72c   : > { %v2788_v16 = vsel %vm2252_vm2, %v8823_v8, 0.0  ;;  %v7784_v43 = vpop.eup %7783  ;;  %7791 = vpow2.f32 %v2783_v5  ;;  %v3122_v5 = vsel %vm2069_vm1, %v8616_v29, 0 }
 0x72d   : > { %2798 = vadd.xlane.f32.xlu0 %v2797_v57  ;;  %2789 = vadd.xlane.f32.xlu1 %v2788_v16  ;;  %v2800_v6 = vsel %vm2265_vm3, %v7784_v43, 0.0  ;;  %v3030_v3 = vsel %vm2069_vm1, %v3025_v34, 0 }
 0x731   : > { %2801 = vadd.xlane.f32.xlu1 %v2800_v6 }
 0x733   : > { %v8829_v36 = vpop.eup %7785 }
 0x734   : > { %v2791_v40 = vsel %vm2252_vm2, %v8829_v36, 0.0  ;;  %v8833_v56 = vpop.eup %7787 }
 0x735   : > { %2792 = vadd.xlane.f32.xlu0 %v2791_v40  ;;  %v2803_v21 = vsel %vm2265_vm3, %v8833_v56, 0.0  ;;  %v8845_v46 = vpop.eup %7789 }
 0x736   : > { %v2794_v32 = vsel %vm2252_vm2, %v8845_v46, 0.0  ;;  %v7792_v13 = vpop.eup %7791 }
 0x739   : > { %2804 = vadd.xlane.f32.xlu0 %v2803_v21 }
 0x742   : > { %2926 = vrot.lane.b32.xlu1 %v6789_v41, %s8185_s14 }
 0x746   : > { %2878 = vrot.lane.b32.xlu1 %v8636_v60, %s8185_s14  ;;  %v2806_v60 = vsel %vm2265_vm3, %v7792_v13, 0.0 }
 0x74f   : > { %2830 = vrot.lane.b32.xlu0 %v8628_v47, %s8185_s14  ;;  %v6790_v47 = vpack.c.bf16 %v8706_v38, %v8706_v38 }
 0x76a   : > { %2795 = vadd.xlane.f32.xlu1 %v2794_v32 }
 0x76e   : > { %2807 = vadd.xlane.f32.xlu1 %v2806_v60 }
 0x77f   : > { %2976 = vrot.lane.b32.xlu1 %v6790_v47, %s8185_s14 }
 0x7b6   : > { %v2787_v53 = vpop.xlane.xlu0 %2786 }
 0x7ba   : > { %v2799_v0 = vpop.xlane.xlu0 %2798  ;;  %v2790_v15 = vpop.xlane.xlu1 %2789 }
 0x7bb   : > { %v2809_v28 = vadd.f32 %v2799_v0, %v2787_v53 }
 0x7bd   : > { %7793 = vrcp.f32 %v2809_v28 }
 0x7be   : > { %v2802_v42 = vpop.xlane.xlu1 %2801 }
 0x7bf   : > { %v2810_v55 = vadd.f32 %v2802_v42, %v2790_v15 }
 0x7c1   : > { %7795 = vrcp.f32 %v2810_v55 }
 0x7c2   : > { %v2793_v62 = vpop.xlane.xlu0 %2792  ;;  %v2927_v57 = vpop.permute.xlu1 %2926 }
 0x7c3   : > { %v2932_v30 = vsel %vm2441_vm4, %v2927_v57, 0  ;;  %v3073_v57 = vrot.slane %v8659_v20, 4 }
 0x7c6   : > { %v2805_v16 = vpop.xlane.xlu0 %2804  ;;  %v2879_v6 = vpop.permute.xlu1 %2878 }
 0x7c7   : > { %7060 = vmatpush3.bf16.msra.mxu1 %v2879_v6  ;;  %v7794_v40 = vpop.eup %7793  ;;  %v3166_v6 = vsel %vm2069_vm1, %v8624_v39, 0 }
 0x7c8   : > { %7071 = vmatprep.subr.bf16.mxu1 %v9667_v24  ;;  %v2823_v41 = vmul.f32 %v7794_v40, %v7780_v10  ;;  %v2817_v10 = vmul.f32 %v7794_v40, %v8819_v25 }
 0x7ca   : > { %v2831_v21 = vpop.permute.xlu0 %2830 }
 0x7cb   : > { %v7796_v38 = vpop.eup %7795  ;;  %7054 = vmatpush3.bf16.msra.mxu0 %v2831_v21 }
 0x7cc   : > { %v2824_v50 = vmul.f32 %v7796_v38, %v7784_v43  ;;  %7065 = vmatprep.subr.bf16.mxu0 %v9667_v24  ;;  %v2818_v18 = vmul.f32 %v7796_v38, %v8823_v8  ;;  %v2811_v8 = vadd.f32 %v2805_v16, %v2793_v62 }
 0x7ce   : > { %v2827_v49 = vpack.c.bf16 %v2824_v50, %v2823_v41  ;;  %v2821_v43 = vpack.c.bf16 %v2818_v18, %v2817_v10  ;;  %7797 = vrcp.f32 %v2811_v8 }
 0x7d0   : > { %7056 = vmatmul.mubr.msk.bf16.vlgmr.msra.gmra.mrb[52].mxu0 %vm2265_vm3, %v2827_v49 }
 0x7d1   : > { %7066 = vmatpush3.bf16.msra.mxu0 %v2932_v30  ;;  %7067 = vmatprep.mubr.msk.bf16.mxu0 %vm8184_vm0, %v9667_v24 }
 0x7d2   : > { %7077 = vmatprep.subr.bf16.mxu0 %v9667_v24 }
 0x7d8   : > { %v7798_v47 = vpop.eup %7797 }
 0x7d9   : > { %v2825_v0 = vmul.f32 %v7798_v47, %v8833_v56  ;;  %v2819_v16 = vmul.f32 %v7798_v47, %v8829_v36 }
 0x7dc   : > { %7068 = vmatmul.mubr.msk.bf16.vlgmr.msra.gmra.mrb[52].mxu0 %vm2252_vm2, %v2821_v43 }
 0x7dd   : > { %7078 = vmatpush3.bf16.xpose.msra.mxu0 %v3030_v3  ;;  %7079 = vmatprep.mubr.msk.bf16.mxu0 %vm8184_vm0, %v9667_v24 }
 0x7de   : > { %7089 = vmatprep.subr.bf16.mxu0 %v9667_v24 }
 0x7e4   : > { %7080 = vmatmul.mubr.msk.bf16.vlgmr.msra.gmra.mrb[56].mxu0 %vm2069_vm1, %v8594_v2 }
 0x7e5   : > { %7090 = vmatpush3.bf16.xpose.msra.mxu0 %v3122_v5  ;;  %7091 = vmatprep.mubr.msk.bf16.mxu0 %vm8184_vm0, %v9667_v24 }
 0x7e6   : > { %7101 = vmatprep.subr.bf16.mxu0 %v9667_v24 }
 0x7ec   : > { %7092 = vmatmul.mubr.msk.bf16.vlgmr.msra.gmra.mrb[60].mxu0 %vm2069_vm1, %v8594_v2 }
 0x7ed   : > { %7102 = vmatpush3.bf16.msra.mxu0 %v8632_v51  ;;  %7103 = vmatprep.mubr.msk.bf16.mxu0 %vm8184_vm0, %v9667_v24 }
 0x7ee   : > { %7113 = vmatprep.subr.bf16.mxu0 %v9667_v24 }
 0x7f7   : > { %v2796_v25 = vpop.xlane.xlu1 %2795 }
 0x7fb   : > { %v2808_v32 = vpop.xlane.xlu1 %2807 }
 0x7fc   : > { %v2812_v60 = vadd.f32 %v2808_v32, %v2796_v25 }
 0x7fe   : > { %7799 = vrcp.f32 %v2812_v60 }
 0x7ff   : > { %v2977_v28 = vpop.permute.xlu1 %2976 }
 0x800   : > { %v2982_v55 = vsel %vm2441_vm4, %v2977_v28, 0 }
 0x808   : > { %v7800_v53 = vpop.eup %7799 }
 0x809   : > { %v2826_v15 = vmul.f32 %v7800_v53, %v7792_v13  ;;  %v2820_v62 = vmul.f32 %v7800_v53, %v8845_v46  ;;  %v3078_v13 = vsel %vm2069_vm1, %v3073_v57, 0 }
 0x80b   : > { %v2828_v42 = vpack.c.bf16 %v2826_v15, %v2825_v0  ;;  %v2822_v56 = vpack.c.bf16 %v2820_v62, %v2819_v16 }
 0x80d   : > { %7062 = vmatmul.mubr.msk.bf16.vlgmr.msra.gmra.mrb[52].mxu1 %vm2265_vm3, %v2828_v42 }
 0x80e   : > { %7072 = vmatpush3.bf16.msra.mxu1 %v2982_v55  ;;  %7073 = vmatprep.mubr.msk.bf16.mxu1 %vm8184_vm0, %v9667_v24 }
 0x80f   : > { %7083 = vmatprep.subr.bf16.mxu1 %v9667_v24 }
 0x819   : > { %7074 = vmatmul.mubr.msk.bf16.vlgmr.msra.gmra.mrb[52].mxu1 %vm2252_vm2, %v2822_v56 }
 0x81a   : > { %7084 = vmatpush3.bf16.xpose.msra.mxu1 %v3078_v13  ;;  %7085 = vmatprep.mubr.msk.bf16.mxu1 %vm8184_vm0, %v9667_v24 }
 0x81b   : > { %7095 = vmatprep.subr.bf16.mxu1 %v9667_v24 }
 0x821   : > { %7086 = vmatmul.mubr.msk.bf16.vlgmr.msra.gmra.mrb[56].mxu1 %vm2069_vm1, %v8602_v14 }
 0x822   : > { %7096 = vmatpush3.bf16.xpose.msra.mxu1 %v3166_v6  ;;  %7097 = vmatprep.mubr.msk.bf16.mxu1 %vm8184_vm0, %v9667_v24 }
 0x823   : > { %7107 = vmatprep.subr.bf16.mxu1 %v9667_v24 }
 0x829   : > { %7098 = vmatmul.mubr.msk.bf16.vlgmr.msra.gmra.mrb[60].mxu1 %vm2069_vm1, %v8602_v14 }
 0x82a   : > { %7108 = vmatpush3.bf16.msra.mxu1 %v8640_v1  ;;  %7109 = vmatprep.mubr.msk.bf16.mxu1 %vm8184_vm0, %v9667_v24 }
 0x82b   : > { %7119 = vmatprep.subr.bf16.mxu1 %v9667_v24 }
 0x8af   : > { %v8908_v36 = vpop.f32.mrb[52].mxu0 }
 0x8b0   : > { %v7069_v46 = vpop.f32.mrb[53].mxu0 }
 0x8b1   : > { %v8910_v40 = vpop.f32.mrb[54].mxu0 }
 0x8b2   : > { %v7530_v21 = vpack.i.bf16 %v8910_v40, %v8908_v36  ;;  %v7070_v38 = vpop.f32.mrb[55].mxu0 }
 0x8b7   : > { %v3066_v41 = vpop.f32.mrb[56].mxu0 }
 0x8b8   : > { %v7081_v50 = vpop.f32.mrb[57].mxu0  ;;  %v3209_v49 = vsel %vm2252_vm2, %v3066_v41, -inf }
 0x8b9   : > { %3210 = vmax.xlane.f32.xlu0 %v3209_v49  ;;  %v3069_v30 = vpop.f32.mrb[58].mxu0 }
 0x8ba   : > { %v7082_v18 = vpop.f32.mrb[59].mxu0  ;;  %v3212_v34 = vsel %vm2252_vm2, %v3069_v30, -inf }
 0x8bb   : > { %3213 = vmax.xlane.f32.xlu1 %v3212_v34 }
 0x8bf   : > { %v3158_v10 = vpop.f32.mrb[60].mxu0 }
 0x8c0   : > { %v7093_v43 = vpop.f32.mrb[61].mxu0  ;;  %v3221_v3 = vsel %vm2265_vm3, %v3158_v10, -inf }
 0x8c1   : > { %3222 = vmax.xlane.f32.xlu0 %v3221_v3  ;;  %v3161_v5 = vpop.f32.mrb[62].mxu0 }
 0x8c2   : > { %v7094_v25 = vpop.f32.mrb[63].mxu0  ;;  %v3224_v8 = vsel %vm2265_vm3, %v3161_v5, -inf }
 0x8c5   : > { %3225 = vmax.xlane.f32.xlu0 %v3224_v8 }
 0x8ec   : > { %v8918_v32 = vpop.f32.mrb[52].mxu1 }
 0x8ed   : > { %v7075_v60 = vpop.f32.mrb[53].mxu1 }
 0x8ee   : > { %v8920_v47 = vpop.f32.mrb[54].mxu1 }
 0x8ef   : > { %v7555_v53 = vpack.i.bf16 %v8920_v47, %v8918_v32  ;;  %v7076_v0 = vpop.f32.mrb[55].mxu1 }
 0x8f4   : > { %v3114_v15 = vpop.f32.mrb[56].mxu1 }
 0x8f5   : > { %v7087_v28 = vpop.f32.mrb[57].mxu1  ;;  %v3215_v42 = vsel %vm2252_vm2, %v3114_v15, -inf }
 0x8f6   : > { %3216 = vmax.xlane.f32.xlu0 %v3215_v42  ;;  %v3117_v55 = vpop.f32.mrb[58].mxu1 }
 0x8f7   : > { %v7088_v62 = vpop.f32.mrb[59].mxu1  ;;  %v3218_v57 = vsel %vm2252_vm2, %v3117_v55, -inf }
 0x8f8   : > { %3219 = vmax.xlane.f32.xlu1 %v3218_v57 }
 0x8fc   : > { %v3202_v16 = vpop.f32.mrb[60].mxu1 }
 0x8fd   : > { %v7099_v56 = vpop.f32.mrb[61].mxu1  ;;  %v3227_v13 = vsel %vm2265_vm3, %v3202_v16, -inf }
 0x8fe   : > { %3228 = vmax.xlane.f32.xlu0 %v3227_v13  ;;  %v3205_v6 = vpop.f32.mrb[62].mxu1 }
 0x8ff   : > { %v7100_v46 = vpop.f32.mrb[63].mxu1  ;;  %v3230_v38 = vsel %vm2265_vm3, %v3205_v6, -inf }
 0x900   : > { %3231 = vmax.xlane.f32.xlu1 %v3230_v38 }
 0x946   : > { %v3211_v50 = vpop.xlane.xlu0 %3210 }
 0x948   : > { %v3214_v3 = vpop.xlane.xlu1 %3213 }
 0x94e   : > { %v3223_v49 = vpop.xlane.xlu0 %3222 }
 0x94f   : > { %v3233_v18 = vmax.f32 %v3211_v50, %v3223_v49 }
 0x951   : > { %v3237_v34 = vsub.f32 %v3066_v41, %v3233_v18  ;;  %v3249_v43 = vsub.f32 %v3158_v10, %v3233_v18 }
 0x952   : > { %v3226_v25 = vpop.xlane.xlu0 %3225 }
 0x953   : > { %v3241_v8 = vmul.f32 1.442695, %v3237_v34  ;;  %v3253_v60 = vmul.f32 1.442695, %v3249_v43  ;;  %v3234_v0 = vmax.f32 %v3214_v3, %v3226_v25 }
 0x955   : > { %7801 = vpow2.f32 %v3241_v8  ;;  %v3238_v28 = vsub.f32 %v3069_v30, %v3234_v0  ;;  %v3250_v42 = vsub.f32 %v3161_v5, %v3234_v0 }
 0x956   : > { %7803 = vpow2.f32 %v3253_v60 }
 0x957   : > { %v3243_v62 = vmul.f32 1.442695, %v3238_v28  ;;  %v3255_v57 = vmul.f32 1.442695, %v3250_v42 }
 0x959   : > { %7805 = vpow2.f32 %v3243_v62 }
 0x95a   : > { %7807 = vpow2.f32 %v3255_v57 }
 0x95f   : > { %v8928_v56 = vpop.eup %7801 }
 0x960   : > { %v3261_v13 = vsel %vm2252_vm2, %v8928_v56, 0.0  ;;  %v7804_v41 = vpop.eup %7803 }
 0x961   : > { %3262 = vadd.xlane.f32.xlu0 %v3261_v13  ;;  %v3273_v46 = vsel %vm2265_vm3, %v7804_v41, 0.0 }
 0x963   : > { %v8932_v10 = vpop.eup %7805 }
 0x964   : > { %v3264_v30 = vsel %vm2252_vm2, %v8932_v10, 0.0  ;;  %v7808_v5 = vpop.eup %7807 }
 0x965   : > { %3274 = vadd.xlane.f32.xlu0 %v3273_v46  ;;  %3265 = vadd.xlane.f32.xlu1 %v3264_v30  ;;  %v3276_v38 = vsel %vm2265_vm3, %v7808_v5, 0.0 }
 0x969   : > { %3277 = vadd.xlane.f32.xlu1 %v3276_v38 }
 0x983   : > { %v3217_v50 = vpop.xlane.xlu0 %3216 }
 0x985   : > { %v3220_v49 = vpop.xlane.xlu1 %3219 }
 0x98b   : > { %v3229_v18 = vpop.xlane.xlu0 %3228 }
 0x98c   : > { %v3235_v34 = vmax.f32 %v3217_v50, %v3229_v18 }
 0x98d   : > { %v3232_v43 = vpop.xlane.xlu1 %3231 }
 0x98e   : > { %v3239_v3 = vsub.f32 %v3114_v15, %v3235_v34  ;;  %v3251_v25 = vsub.f32 %v3202_v16, %v3235_v34  ;;  %v3236_v8 = vmax.f32 %v3220_v49, %v3232_v43 }
 0x990   : > { %v3245_v60 = vmul.f32 1.442695, %v3239_v3  ;;  %v3257_v0 = vmul.f32 1.442695, %v3251_v25  ;;  %v3240_v28 = vsub.f32 %v3117_v55, %v3236_v8  ;;  %v3252_v42 = vsub.f32 %v3205_v6, %v3236_v8 }
 0x992   : > { %7809 = vpow2.f32 %v3245_v60  ;;  %v3247_v62 = vmul.f32 1.442695, %v3240_v28  ;;  %v3259_v57 = vmul.f32 1.442695, %v3252_v42 }
 0x993   : > { %7811 = vpow2.f32 %v3257_v0 }
 0x994   : > { %7813 = vpow2.f32 %v3247_v62 }
 0x995   : > { %7815 = vpow2.f32 %v3259_v57 }
 0x99c   : > { %v8938_v13 = vpop.eup %7809 }
 0x99d   : > { %v7812_v46 = vpop.eup %7811  ;;  %v3267_v30 = vsel %vm2252_vm2, %v8938_v13, 0.0 }
 0x99e   : > { %v8942_v38 = vpop.eup %7813  ;;  %3268 = vadd.xlane.f32.xlu0 %v3267_v30  ;;  %v3279_v16 = vsel %vm2265_vm3, %v7812_v46, 0.0 }
 0x99f   : > { %v3270_v15 = vsel %vm2252_vm2, %v8942_v38, 0.0  ;;  %v7816_v55 = vpop.eup %7815 }
 0x9a0   : > { %3271 = vadd.xlane.f32.xlu1 %v3270_v15  ;;  %v3282_v6 = vsel %vm2265_vm3, %v7816_v55, 0.0 }
 0x9a2   : > { %3280 = vadd.xlane.f32.xlu0 %v3279_v16 }
 0x9a4   : > { %3283 = vadd.xlane.f32.xlu1 %v3282_v6 }
 0x9b5   : > { %3542 = vrot.lane.b32.xlu1 %v8659_v20, %s8185_s14 }
 0x9b8   : > { %3489 = vrot.lane.b32.xlu0 %v8649_v9, %s8185_s14 }
 0x9b9   : > { %3493 = vrot.lane.b32.xlu1 %v8594_v2, %s8185_s14  ;;  %v3393_v2 = vrot.slane %v8701_v35, 4 }
 0x9bc   : > { %3546 = vrot.lane.b32.xlu0 %v8602_v14, %s8185_s14 }
 0x9bd   : > { %3596 = vrot.lane.b32.xlu1 %v8616_v29, %s8185_s14  ;;  %v3398_v29 = vsel %vm2441_vm4, %v3393_v2, 0 }
 0x9c1   : > { %3643 = vrot.lane.b32.xlu1 %v8624_v39, %s8185_s14 }
 0x9ee   : > { %v3263_v50 = vpop.xlane.xlu0 %3262 }
 0x9f2   : > { %v3275_v49 = vpop.xlane.xlu0 %3274  ;;  %v3266_v18 = vpop.xlane.xlu1 %3265 }
 0x9f3   : > { %v3285_v34 = vadd.f32 %v3275_v49, %v3263_v50 }
 0x9f5   : > { %7817 = vrcp.f32 %v3285_v34  ;;  %v3441_v34 = vrot.slane %v8711_v44, 4 }
 0x9f6   : > { %v3278_v20 = vpop.xlane.xlu1 %3277 }
 0x9f7   : > { %v3286_v43 = vadd.f32 %v3278_v20, %v3266_v18 }
 0x9f9   : > { %7819 = vrcp.f32 %v3286_v43 }
 0x9ff   : > { %v7818_v9 = vpop.eup %7817 }
 0xa00   : > { %v3299_v25 = vmul.f32 %v7818_v9, %v7804_v41  ;;  %v3293_v60 = vmul.f32 %v7818_v9, %v8928_v56 }
 0xa03   : > { %v7820_v3 = vpop.eup %7819 }
 0xa04   : > { %v3300_v14 = vmul.f32 %v7820_v3, %v7808_v5  ;;  %v3294_v39 = vmul.f32 %v7820_v3, %v8932_v10  ;;  %v3446_v3 = vsel %vm2441_vm4, %v3441_v34, 0 }
 0xa06   : > { %v3303_v8 = vpack.c.bf16 %v3300_v14, %v3299_v25  ;;  %v3297_v0 = vpack.c.bf16 %v3294_v39, %v3293_v60 }
 0xa08   : > { %7104 = vmatmul.mubr.msk.bf16.vlgmr.msra.gmra.mrb[64].mxu0 %vm2265_vm3, %v3303_v8 }
 0xa09   : > { %7114 = vmatpush3.bf16.msra.mxu0 %v3398_v29  ;;  %7115 = vmatprep.mubr.msk.bf16.mxu0 %vm8184_vm0, %v9667_v24 }
 0xa0a   : > { %7125 = vmatprep.subr.bf16.mxu0 %v9667_v24 }
 0xa14   : > { %7116 = vmatmul.mubr.msk.bf16.vlgmr.msra.gmra.mrb[64].mxu0 %vm2252_vm2, %v3297_v0 }
 0xa15   : > { %7127 = vmatprep.mubr.msk.bf16.mxu0 %vm8184_vm0, %v9667_v24 }
 0xa2b   : > { %v3269_v41 = vpop.xlane.xlu0 %3268 }
 0xa2d   : > { %v3272_v5 = vpop.xlane.xlu1 %3271 }
 0xa2f   : > { %v3281_v28 = vpop.xlane.xlu0 %3280 }
 0xa30   : > { %v3287_v42 = vadd.f32 %v3281_v28, %v3269_v41 }
 0xa31   : > { %v3284_v62 = vpop.xlane.xlu1 %3283 }
 0xa32   : > { %7821 = vrcp.f32 %v3287_v42  ;;  %v3288_v57 = vadd.f32 %v3284_v62, %v3272_v5 }
 0xa33   : > { %v3490_v30 = vpop.permute.xlu0 %3489 }
 0xa34   : > { %7823 = vrcp.f32 %v3288_v57  ;;  %v3491_v15 = vrot.slane %v3490_v30, 4 }
 0xa35   : > { %v3543_v16 = vpop.permute.xlu1 %3542 }
 0xa36   : > { %v3499_v10 = vsel %vm2069_vm1, %v3491_v15, 0  ;;  %v3544_v2 = vrot.slane %v3543_v16, 4 }
 0xa37   : > { %7126 = vmatpush3.bf16.xpose.msra.mxu0 %v3499_v10  ;;  %v3547_v29 = vpop.permute.xlu0 %3546 }
 0xa38   : > { %7137 = vmatprep.subr.bf16.mxu0 %v9667_v24  ;;  %v3552_v14 = vsel %vm2069_vm1, %v3544_v2, 0 }
 0xa39   : > { %v3494_v56 = vpop.permute.xlu1 %3493 }
 0xa3c   : > { %v7822_v6 = vpop.eup %7821 }
 0xa3d   : > { %v3597_v50 = vpop.permute.xlu1 %3596  ;;  %v3301_v20 = vmul.f32 %v7822_v6, %v7812_v46 }
 0xa3e   : > { %v7824_v49 = vpop.eup %7823  ;;  %v3599_v18 = vsel %vm2069_vm1, %v3597_v50, 0  ;;  %7128 = vmatmul.mubr.msk.bf16.vlgmr.msra.gmra.mrb[68].mxu0 %vm2069_vm1, %v3494_v56 }
 0xa3f   : > { %v3302_v43 = vmul.f32 %v7824_v49, %v7816_v55  ;;  %7138 = vmatpush3.bf16.xpose.msra.mxu0 %v3599_v18  ;;  %7139 = vmatprep.mubr.msk.bf16.mxu0 %vm8184_vm0, %v9667_v24  ;;  %v3296_v46 = vmul.f32 %v7824_v49, %v8942_v38  ;;  %v3295_v55 = vmul.f32 %v7822_v6, %v8938_v13 }
 0xa40   : > { %7149 = vmatprep.subr.bf16.mxu0 %v9667_v24 }
 0xa41   : > { %v3304_v9 = vpack.c.bf16 %v3302_v43, %v3301_v20  ;;  %v3298_v25 = vpack.c.bf16 %v3296_v46, %v3295_v55  ;;  %v3644_v8 = vpop.permute.xlu1 %3643 }
 0xa42   : > { %v3646_v39 = vsel %vm2069_vm1, %v3644_v8, 0 }
 0xa43   : > { %7110 = vmatmul.mubr.msk.bf16.vlgmr.msra.gmra.mrb[64].mxu1 %vm2265_vm3, %v3304_v9 }
 0xa44   : > { %7120 = vmatpush3.bf16.msra.mxu1 %v3446_v3  ;;  %7121 = vmatprep.mubr.msk.bf16.mxu1 %vm8184_vm0, %v9667_v24 }
 0xa45   : > { %7131 = vmatprep.subr.bf16.mxu1 %v9667_v24 }
 0xa46   : > { %7140 = vmatmul.mubr.msk.bf16.vlgmr.msra.gmra.mrb[72].mxu0 %vm2069_vm1, %v3494_v56 }
 0xa47   : > { %7151 = vmatprep.mubr.msk.bf16.mxu0 %vm8184_vm0, %v9667_v24 }
 0xa4f   : > { %7122 = vmatmul.mubr.msk.bf16.vlgmr.msra.gmra.mrb[64].mxu1 %vm2252_vm2, %v3298_v25 }
 0xa50   : > { %7132 = vmatpush3.bf16.xpose.msra.mxu1 %v3552_v14  ;;  %7133 = vmatprep.mubr.msk.bf16.mxu1 %vm8184_vm0, %v9667_v24 }
 0xa51   : > { %7143 = vmatprep.subr.bf16.mxu1 %v9667_v24 }
 0xa57   : > { %7134 = vmatmul.mubr.msk.bf16.vlgmr.msra.gmra.mrb[68].mxu1 %vm2069_vm1, %v3547_v29 }
 0xa58   : > { %7144 = vmatpush3.bf16.xpose.msra.mxu1 %v3646_v39  ;;  %7145 = vmatprep.mubr.msk.bf16.mxu1 %vm8184_vm0, %v9667_v24 }
 0xa59   : > { %7155 = vmatprep.subr.bf16.mxu1 %v9667_v24 }
 0xa5f   : > { %7146 = vmatmul.mubr.msk.bf16.vlgmr.msra.gmra.mrb[72].mxu1 %vm2069_vm1, %v3547_v29 }
 0xa60   : > { %7157 = vmatprep.mubr.msk.bf16.mxu1 %vm8184_vm0, %v9667_v24 }
 0xae7   : > { %v9002_v13 = vpop.f32.mrb[64].mxu0 }
 0xae8   : > { %v7117_v38 = vpop.f32.mrb[65].mxu0 }
 0xae9   : > { %v9004_v60 = vpop.f32.mrb[66].mxu0 }
 0xaea   : > { %v7118_v0 = vpop.f32.mrb[67].mxu0 }
 0xb11   : > { %v3535_v41 = vpop.f32.mrb[68].mxu0 }
 0xb12   : > { %v7129_v5 = vpop.f32.mrb[69].mxu0  ;;  %v3689_v28 = vsel %vm2252_vm2, %v3535_v41, -inf }
 0xb13   : > { %3690 = vmax.xlane.f32.xlu0 %v3689_v28  ;;  %v3538_v42 = vpop.f32.mrb[70].mxu0 }
 0xb14   : > { %v7130_v62 = vpop.f32.mrb[71].mxu0  ;;  %v3692_v57 = vsel %vm2252_vm2, %v3538_v42, -inf }
 0xb15   : > { %3693 = vmax.xlane.f32.xlu1 %v3692_v57 }
 0xb19   : > { %v3635_v30 = vpop.f32.mrb[72].mxu0 }
 0xb1a   : > { %v7141_v15 = vpop.f32.mrb[73].mxu0  ;;  %v3701_v16 = vsel %vm2265_vm3, %v3635_v30, -inf }
 0xb1b   : > { %3702 = vmax.xlane.f32.xlu0 %v3701_v16  ;;  %v3638_v10 = vpop.f32.mrb[74].mxu0 }
 0xb1c   : > { %v7142_v56 = vpop.f32.mrb[75].mxu0  ;;  %v3704_v6 = vsel %vm2265_vm3, %v3638_v10, -inf }
 0xb1f   : > { %3705 = vmax.xlane.f32.xlu0 %v3704_v6 }
 0xb22   : > { %v9010_v50 = vpop.f32.mrb[64].mxu1 }
 0xb23   : > { %v7123_v49 = vpop.f32.mrb[65].mxu1 }
 0xb24   : > { %v9012_v18 = vpop.f32.mrb[66].mxu1 }
 0xb25   : > { %v7124_v34 = vpop.f32.mrb[67].mxu1 }
 0xb2a   : > { %v3588_v20 = vpop.f32.mrb[68].mxu1 }
 0xb2b   : > { %v7135_v43 = vpop.f32.mrb[69].mxu1  ;;  %v3695_v9 = vsel %vm2252_vm2, %v3588_v20, -inf }
 0xb2c   : > { %3696 = vmax.xlane.f32.xlu0 %v3695_v9  ;;  %v9015_v3 = vpop.f32.mrb[70].mxu1 }
 0xb2d   : > { %v7136_v46 = vpop.f32.mrb[71].mxu1  ;;  %v3698_v55 = vsel %vm2252_vm2, %v9015_v3, -inf }
 0xb2e   : > { %3699 = vmax.xlane.f32.xlu1 %v3698_v55 }
 0xb32   : > { %v3682_v2 = vpop.f32.mrb[72].mxu1 }
 0xb33   : > { %v7147_v25 = vpop.f32.mrb[73].mxu1  ;;  %v3707_v14 = vsel %vm2265_vm3, %v3682_v2, -inf }
 0xb34   : > { %3708 = vmax.xlane.f32.xlu0 %v3707_v14  ;;  %v3685_v8 = vpop.f32.mrb[74].mxu1 }
 0xb35   : > { %v7148_v29 = vpop.f32.mrb[75].mxu1  ;;  %v3710_v39 = vsel %vm2265_vm3, %v3685_v8, -inf }
 0xb36   : > { %3711 = vmax.xlane.f32.xlu1 %v3710_v39 }
 0xba0   : > { %v3691_v38 = vpop.xlane.xlu0 %3690 }
 0xba2   : > { %v3694_v57 = vpop.xlane.xlu1 %3693 }
 0xba8   : > { %v3703_v0 = vpop.xlane.xlu0 %3702 }
 0xba9   : > { %v3713_v5 = vmax.f32 %v3691_v38, %v3703_v0 }
 0xbab   : > { %v3717_v28 = vsub.f32 %v3535_v41, %v3713_v5  ;;  %v3729_v62 = vsub.f32 %v3635_v30, %v3713_v5 }
 0xbac   : > { %v3706_v15 = vpop.xlane.xlu0 %3705 }
 0xbad   : > { %v3721_v16 = vmul.f32 1.442695, %v3717_v28  ;;  %v3733_v56 = vmul.f32 1.442695, %v3729_v62  ;;  %v3714_v6 = vmax.f32 %v3694_v57, %v3706_v15 }
 0xbaf   : > { %7825 = vpow2.f32 %v3721_v16  ;;  %v3718_v49 = vsub.f32 %v3538_v42, %v3714_v6  ;;  %v3730_v34 = vsub.f32 %v3638_v10, %v3714_v6 }
 0xbb0   : > { %7827 = vpow2.f32 %v3733_v56 }
 0xbb1   : > { %v3723_v43 = vmul.f32 1.442695, %v3718_v49  ;;  %v3735_v9 = vmul.f32 1.442695, %v3730_v34 }
 0xbb3   : > { %7829 = vpow2.f32 %v3723_v43 }
 0xbb4   : > { %7831 = vpow2.f32 %v3735_v9 }
 0xbb9   : > { %v9021_v46 = vpop.eup %7825  ;;  %v3697_v25 = vpop.xlane.xlu0 %3696 }
 0xbba   : > { %v3741_v55 = vsel %vm2252_vm2, %v9021_v46, 0.0  ;;  %v7828_v41 = vpop.eup %7827 }
 0xbbb   : > { %3742 = vadd.xlane.f32.xlu0 %v3741_v55  ;;  %v3753_v14 = vsel %vm2265_vm3, %v7828_v41, 0.0 }
 0xbbd   : > { %v9025_v30 = vpop.eup %7829 }
 0xbbe   : > { %v3744_v42 = vsel %vm2252_vm2, %v9025_v30, 0.0  ;;  %v7832_v10 = vpop.eup %7831 }
 0xbbf   : > { %3754 = vadd.xlane.f32.xlu0 %v3753_v14  ;;  %3745 = vadd.xlane.f32.xlu1 %v3744_v42  ;;  %v3756_v38 = vsel %vm2265_vm3, %v7832_v10, 0.0 }
 0xbc1   : > { %v3709_v29 = vpop.xlane.xlu0 %3708 }
 0xbc2   : > { %v3715_v39 = vmax.f32 %v3697_v25, %v3709_v29 }
 0xbc3   : > { %3757 = vadd.xlane.f32.xlu1 %v3756_v38 }
 0xbc4   : > { %v3719_v0 = vsub.f32 %v3588_v20, %v3715_v39  ;;  %v3731_v5 = vsub.f32 %v3682_v2, %v3715_v39  ;;  %v3700_v20 = vpop.xlane.xlu1 %3699 }
 0xbc6   : > { %v3725_v28 = vmul.f32 1.442695, %v3719_v0  ;;  %v3737_v62 = vmul.f32 1.442695, %v3731_v5 }
 0xbc8   : > { %7833 = vpow2.f32 %v3725_v28  ;;  %v3712_v2 = vpop.xlane.xlu1 %3711 }
 0xbc9   : > { %7835 = vpow2.f32 %v3737_v62  ;;  %v3716_v6 = vmax.f32 %v3700_v20, %v3712_v2 }
 0xbcb   : > { %v3720_v49 = vsub.f32 %v9015_v3, %v3716_v6  ;;  %v3732_v43 = vsub.f32 %v3685_v8, %v3716_v6 }
 0xbcd   : > { %v3727_v34 = vmul.f32 1.442695, %v3720_v49  ;;  %v3739_v9 = vmul.f32 1.442695, %v3732_v43  ;;  %v4076_v43 = vsel %vm2069_vm1, %v8614_v26, 0 }
 0xbcf   : > { %7837 = vpow2.f32 %v3727_v34  ;;  %v3985_v34 = vsel %vm2069_vm1, %v8652_v12, 0 }
 0xbd0   : > { %7839 = vpow2.f32 %v3739_v9 }
 0xbd2   : > { %v9031_v57 = vpop.eup %7833 }
 0xbd3   : > { %v3747_v15 = vsel %vm2252_vm2, %v9031_v57, 0.0  ;;  %v9035_v16 = vpop.eup %7835 }
 0xbd4   : > { %3748 = vadd.xlane.f32.xlu0 %v3747_v15  ;;  %3881 = vrot.lane.b32.xlu1 %v8701_v35, %s8185_s14  ;;  %v3759_v56 = vsel %vm2265_vm3, %v9035_v16, 0.0 }
 0xbd8   : > { %3760 = vadd.xlane.f32.xlu0 %v3759_v56  ;;  %3834 = vrot.lane.b32.xlu1 %v8640_v1, %s8185_s14 }
 0xbd9   : > { %v9046_v35 = vpop.eup %7837 }
 0xbda   : > { %v3750_v55 = vsel %vm2252_vm2, %v9046_v35, 0.0  ;;  %v7840_v25 = vpop.eup %7839 }
 0xbdb   : > { %v3762_v1 = vsel %vm2265_vm3, %v7840_v25, 0.0 }
 0xbee   : > { %3786 = vrot.lane.b32.xlu0 %v8632_v51, %s8185_s14 }
 0xbfc   : > { %3751 = vadd.xlane.f32.xlu1 %v3750_v55 }
 0xc00   : > { %3763 = vadd.xlane.f32.xlu1 %v3762_v1 }
 0xc11   : > { %3931 = vrot.lane.b32.xlu1 %v8711_v44, %s8185_s14 }
 0xc48   : > { %v3743_v8 = vpop.xlane.xlu0 %3742 }
 0xc4c   : > { %v3746_v3 = vpop.xlane.xlu1 %3745  ;;  %v3755_v29 = vpop.xlane.xlu0 %3754 }
 0xc4d   : > { %v3765_v39 = vadd.f32 %v3755_v29, %v3743_v8 }
 0xc50   : > { %v3758_v14 = vpop.xlane.xlu1 %3757 }
 0xc51   : > { %v3766_v51 = vadd.f32 %v3758_v14, %v3746_v3 }
 0xc53   : > { %7841 = vrcp.f32 %v3766_v51 }
 0xc54   : > { %v3882_v42 = vpop.permute.xlu1 %3881  ;;  %7843 = vrcp.f32 %v3765_v39 }
 0xc55   : > { %v3883_v44 = vrot.slane %v3882_v42, 4 }
 0xc57   : > { %v3888_v6 = vsel %vm2441_vm4, %v3883_v44, 0 }
 0xc58   : > { %v3835_v38 = vpop.permute.xlu1 %3834 }
 0xc59   : > { %7156 = vmatpush3.bf16.msra.mxu1 %v3835_v38 }
 0xc5a   : > { %7167 = vmatprep.subr.bf16.mxu1 %v9667_v24 }
 0xc5d   : > { %v7842_v5 = vpop.eup %7841 }
 0xc5e   : > { %v7844_v62 = vpop.eup %7843  ;;  %v3780_v15 = vmul.f32 %v7842_v5, %v7832_v10  ;;  %v3774_v49 = vmul.f32 %v7842_v5, %v9025_v30 }
 0xc5f   : > { %v3779_v56 = vmul.f32 %v7844_v62, %v7828_v41  ;;  %v3773_v41 = vmul.f32 %v7844_v62, %v9021_v46 }
 0xc61   : > { %v3749_v0 = vpop.xlane.xlu0 %3748  ;;  %v3783_v2 = vpack.c.bf16 %v3780_v15, %v3779_v56  ;;  %v3777_v10 = vpack.c.bf16 %v3774_v49, %v3773_v41 }
 0xc65   : > { %v3761_v28 = vpop.xlane.xlu0 %3760 }
 0xc66   : > { %v3767_v30 = vadd.f32 %v3761_v28, %v3749_v0 }
 0xc68   : > { %7845 = vrcp.f32 %v3767_v30 }
 0xc69   : > { %v3787_v20 = vpop.permute.xlu0 %3786 }
 0xc6a   : > { %7150 = vmatpush3.bf16.msra.mxu0 %v3787_v20 }
 0xc6b   : > { %7161 = vmatprep.subr.bf16.mxu0 %v9667_v24 }
 0xc6d   : > { %7152 = vmatmul.mubr.msk.bf16.vlgmr.msra.gmra.mrb[76].mxu0 %vm2265_vm3, %v3783_v2 }
 0xc6e   : > { %7162 = vmatpush3.bf16.msra.mxu0 %v3888_v6  ;;  %7163 = vmatprep.mubr.msk.bf16.mxu0 %vm8184_vm0, %v9667_v24 }
 0xc6f   : > { %7173 = vmatprep.subr.bf16.mxu0 %v9667_v24 }
 0xc72   : > { %v7846_v1 = vpop.eup %7845 }
 0xc73   : > { %v3781_v14 = vmul.f32 %v7846_v1, %v9035_v16  ;;  %v3775_v0 = vmul.f32 %v7846_v1, %v9031_v57  ;;  %v4032_v16 = vsel %vm2069_vm1, %v8662_v22, 0 }
 0xc79   : > { %7164 = vmatmul.mubr.msk.bf16.vlgmr.msra.gmra.mrb[76].mxu0 %vm2252_vm2, %v3777_v10 }
 0xc7a   : > { %7174 = vmatpush3.bf16.xpose.msra.mxu0 %v3985_v34  ;;  %7175 = vmatprep.mubr.msk.bf16.mxu0 %vm8184_vm0, %v9667_v24 }
 0xc7b   : > { %7185 = vmatprep.subr.bf16.mxu0 %v9667_v24 }
 0xc81   : > { %7176 = vmatmul.mubr.msk.bf16.vlgmr.msra.gmra.mrb[80].mxu0 %vm2069_vm1, %v8592_v63 }
 0xc82   : > { %7186 = vmatpush3.bf16.xpose.msra.mxu0 %v4076_v43  ;;  %7187 = vmatprep.mubr.msk.bf16.mxu0 %vm8184_vm0, %v9667_v24 }
 0xc83   : > { %7197 = vmatprep.subr.bf16.mxu0 %v9667_v24 }
 0xc89   : > { %7188 = vmatmul.mubr.msk.bf16.vlgmr.msra.gmra.mrb[84].mxu0 %vm2069_vm1, %v8592_v63  ;;  %v3752_v46 = vpop.xlane.xlu1 %3751 }
 0xc8a   : > { %7198 = vmatpush3.bf16.msra.mxu0 %v8630_v48  ;;  %7199 = vmatprep.mubr.msk.bf16.mxu0 %vm8184_vm0, %v9667_v24 }
 0xc8b   : > { %7209 = vmatprep.subr.bf16.mxu0 %v9667_v24 }
 0xc8d   : > { %v3764_v9 = vpop.xlane.xlu1 %3763 }
 0xc8e   : > { %v3768_v55 = vadd.f32 %v3764_v9, %v3752_v46 }
 0xc90   : > { %7847 = vrcp.f32 %v3768_v55 }
 0xc91   : > { %v3932_v3 = vpop.permute.xlu1 %3931 }
 0xc92   : > { %v3933_v29 = vrot.slane %v3932_v3, 4 }
 0xc94   : > { %v3938_v39 = vsel %vm2441_vm4, %v3933_v29, 0 }
 0xc9a   : > { %v7848_v8 = vpop.eup %7847 }
 0xc9b   : > { %v3782_v42 = vmul.f32 %v7848_v8, %v7840_v25  ;;  %v3776_v38 = vmul.f32 %v7848_v8, %v9046_v35  ;;  %v4120_v25 = vsel %vm2069_vm1, %v8622_v37, 0 }
 0xc9d   : > { %v3784_v51 = vpack.c.bf16 %v3782_v42, %v3781_v14  ;;  %v3778_v5 = vpack.c.bf16 %v3776_v38, %v3775_v0 }
 0xc9f   : > { %7158 = vmatmul.mubr.msk.bf16.vlgmr.msra.gmra.mrb[76].mxu1 %vm2265_vm3, %v3784_v51 }
 0xca0   : > { %7168 = vmatpush3.bf16.msra.mxu1 %v3938_v39  ;;  %7169 = vmatprep.mubr.msk.bf16.mxu1 %vm8184_vm0, %v9667_v24 }
 0xca1   : > { %7179 = vmatprep.subr.bf16.mxu1 %v9667_v24 }
 0xcab   : > { %7170 = vmatmul.mubr.msk.bf16.vlgmr.msra.gmra.mrb[76].mxu1 %vm2252_vm2, %v3778_v5 }
 0xcac   : > { %7180 = vmatpush3.bf16.xpose.msra.mxu1 %v4032_v16  ;;  %7181 = vmatprep.mubr.msk.bf16.mxu1 %vm8184_vm0, %v9667_v24 }
 0xcad   : > { %7191 = vmatprep.subr.bf16.mxu1 %v9667_v24 }
 0xcb3   : > { %7182 = vmatmul.mubr.msk.bf16.vlgmr.msra.gmra.mrb[80].mxu1 %vm2069_vm1, %v8600_v11 }
 0xcb4   : > { %7192 = vmatpush3.bf16.xpose.msra.mxu1 %v4120_v25  ;;  %7193 = vmatprep.mubr.msk.bf16.mxu1 %vm8184_vm0, %v9667_v24 }
 0xcb5   : > { %7203 = vmatprep.subr.bf16.mxu1 %v9667_v24 }
 0xcbb   : > { %7194 = vmatmul.mubr.msk.bf16.vlgmr.msra.gmra.mrb[84].mxu1 %vm2069_vm1, %v8600_v11 }
 0xcbc   : > { %7204 = vmatpush3.bf16.msra.mxu1 %v8638_v61  ;;  %7205 = vmatprep.mubr.msk.bf16.mxu1 %vm8184_vm0, %v9667_v24 }
 0xcbd   : > { %7215 = vmatprep.subr.bf16.mxu1 %v9667_v24 }
 0xd4c   : > { %v9108_v57 = vpop.f32.mrb[76].mxu0 }
 0xd4d   : > { %v7165_v35 = vpop.f32.mrb[77].mxu0 }
 0xd4e   : > { %v9110_v28 = vpop.f32.mrb[78].mxu0 }
 0xd4f   : > { %v7525_v62 = vpack.i.bf16 %v9110_v28, %v9108_v57  ;;  %v7166_v15 = vpop.f32.mrb[79].mxu0 }
 0xd54   : > { %v4021_v56 = vpop.f32.mrb[80].mxu0 }
 0xd55   : > { %v7177_v44 = vpop.f32.mrb[81].mxu0  ;;  %v4163_v20 = vsel %vm2252_vm2, %v4021_v56, -inf }
 0xd56   : > { %4164 = vmax.xlane.f32.xlu0 %v4163_v20  ;;  %v4024_v2 = vpop.f32.mrb[82].mxu0 }
 0xd57   : > { %v7178_v6 = vpop.f32.mrb[83].mxu0  ;;  %v4166_v49 = vsel %vm2252_vm2, %v4024_v2, -inf }
 0xd58   : > { %4167 = vmax.xlane.f32.xlu1 %v4166_v49 }
 0xd5c   : > { %v4112_v41 = vpop.f32.mrb[84].mxu0 }
 0xd5d   : > { %v7189_v10 = vpop.f32.mrb[85].mxu0  ;;  %v4175_v34 = vsel %vm2265_vm3, %v4112_v41, -inf }
 0xd5e   : > { %4176 = vmax.xlane.f32.xlu0 %v4175_v34  ;;  %v4115_v43 = vpop.f32.mrb[86].mxu0 }
 0xd5f   : > { %v7190_v46 = vpop.f32.mrb[87].mxu0  ;;  %v4178_v30 = vsel %vm2265_vm3, %v4115_v43, -inf }
 0xd62   : > { %4179 = vmax.xlane.f32.xlu0 %v4178_v30 }
 0xd7e   : > { %v9118_v9 = vpop.f32.mrb[76].mxu1 }
 0xd7f   : > { %v7171_v55 = vpop.f32.mrb[77].mxu1 }
 0xd80   : > { %v9120_v1 = vpop.f32.mrb[78].mxu1 }
 0xd81   : > { %v7545_v3 = vpack.i.bf16 %v9120_v1, %v9118_v9  ;;  %v7172_v8 = vpop.f32.mrb[79].mxu1 }
 0xd86   : > { %v4068_v14 = vpop.f32.mrb[80].mxu1 }
 0xd87   : > { %v7183_v42 = vpop.f32.mrb[81].mxu1  ;;  %v4169_v29 = vsel %vm2252_vm2, %v4068_v14, -inf }
 0xd88   : > { %4170 = vmax.xlane.f32.xlu0 %v4169_v29  ;;  %v4071_v51 = vpop.f32.mrb[82].mxu1 }
 0xd89   : > { %v7184_v39 = vpop.f32.mrb[83].mxu1  ;;  %v4172_v38 = vsel %vm2252_vm2, %v4071_v51, -inf }
 0xd8a   : > { %4173 = vmax.xlane.f32.xlu1 %v4172_v38 }
 0xd8e   : > { %v4156_v0 = vpop.f32.mrb[84].mxu1 }
 0xd8f   : > { %v7195_v5 = vpop.f32.mrb[85].mxu1  ;;  %v4181_v16 = vsel %vm2265_vm3, %v4156_v0, -inf }
 0xd90   : > { %4182 = vmax.xlane.f32.xlu0 %v4181_v16  ;;  %v4159_v25 = vpop.f32.mrb[86].mxu1 }
 0xd91   : > { %v7196_v35 = vpop.f32.mrb[87].mxu1  ;;  %v4184_v15 = vsel %vm2265_vm3, %v4159_v25, -inf }
 0xd92   : > { %4185 = vmax.xlane.f32.xlu1 %v4184_v15 }
 0xde3   : > { %v4165_v44 = vpop.xlane.xlu0 %4164 }
 0xde5   : > { %v4168_v34 = vpop.xlane.xlu1 %4167 }
 0xdeb   : > { %v4177_v20 = vpop.xlane.xlu0 %4176 }
 0xdec   : > { %v4187_v6 = vmax.f32 %v4165_v44, %v4177_v20 }
 0xdee   : > { %v4191_v49 = vsub.f32 %v4021_v56, %v4187_v6  ;;  %v4203_v10 = vsub.f32 %v4112_v41, %v4187_v6 }
 0xdef   : > { %v4180_v46 = vpop.xlane.xlu0 %4179 }
 0xdf0   : > { %v4195_v30 = vmul.f32 1.442695, %v4191_v49  ;;  %v4207_v55 = vmul.f32 1.442695, %v4203_v10  ;;  %v4188_v8 = vmax.f32 %v4168_v34, %v4180_v46 }
 0xdf2   : > { %7849 = vpow2.f32 %v4195_v30  ;;  %v4192_v42 = vsub.f32 %v4024_v2, %v4188_v8  ;;  %v4204_v29 = vsub.f32 %v4115_v43, %v4188_v8 }
 0xdf3   : > { %7851 = vpow2.f32 %v4207_v55 }
 0xdf4   : > { %v4197_v39 = vmul.f32 1.442695, %v4192_v42  ;;  %v4209_v38 = vmul.f32 1.442695, %v4204_v29 }
 0xdf6   : > { %7853 = vpow2.f32 %v4197_v39 }
 0xdf7   : > { %7855 = vpow2.f32 %v4209_v38 }
 0xdfc   : > { %v9128_v5 = vpop.eup %7849 }
 0xdfd   : > { %v4215_v16 = vsel %vm2252_vm2, %v9128_v5, 0.0  ;;  %v7852_v56 = vpop.eup %7851 }
 0xdfe   : > { %4216 = vadd.xlane.f32.xlu0 %v4215_v16  ;;  %v4227_v35 = vsel %vm2265_vm3, %v7852_v56, 0.0 }
 0xe00   : > { %v9132_v41 = vpop.eup %7853 }
 0xe01   : > { %v4218_v2 = vsel %vm2252_vm2, %v9132_v41, 0.0  ;;  %v7856_v43 = vpop.eup %7855 }
 0xe02   : > { %4228 = vadd.xlane.f32.xlu0 %v4227_v35  ;;  %4219 = vadd.xlane.f32.xlu1 %v4218_v2  ;;  %v4230_v15 = vsel %vm2265_vm3, %v7856_v43, 0.0 }
 0xe06   : > { %4231 = vadd.xlane.f32.xlu1 %v4230_v15 }
 0xe15   : > { %v4171_v44 = vpop.xlane.xlu0 %4170 }
 0xe17   : > { %v4174_v20 = vpop.xlane.xlu1 %4173 }
 0xe1d   : > { %v4183_v6 = vpop.xlane.xlu0 %4182 }
 0xe1e   : > { %v4189_v49 = vmax.f32 %v4171_v44, %v4183_v6  ;;  %v6791_v44 = vpack.c.bf16 %v8646_v7, %v8646_v7 }
 0xe1f   : > { %v4186_v10 = vpop.xlane.xlu1 %4185 }
 0xe20   : > { %v4193_v34 = vsub.f32 %v4068_v14, %v4189_v49  ;;  %v4205_v46 = vsub.f32 %v4156_v0, %v4189_v49  ;;  %v4190_v30 = vmax.f32 %v4174_v20, %v4186_v10  ;;  %v6792_v20 = vpack.c.bf16 %v8656_v17, %v8656_v17 }
 0xe22   : > { %v4199_v55 = vmul.f32 1.442695, %v4193_v34  ;;  %v4211_v8 = vmul.f32 1.442695, %v4205_v46  ;;  %v4194_v42 = vsub.f32 %v4071_v51, %v4190_v30  ;;  %v4206_v29 = vsub.f32 %v4159_v25, %v4190_v30 }
 0xe24   : > { %7857 = vpow2.f32 %v4199_v55  ;;  %v4201_v39 = vmul.f32 1.442695, %v4194_v42  ;;  %v4213_v38 = vmul.f32 1.442695, %v4206_v29 }
 0xe25   : > { %7859 = vpow2.f32 %v4211_v8 }
 0xe26   : > { %7861 = vpow2.f32 %v4201_v39 }
 0xe27   : > { %7863 = vpow2.f32 %v4213_v38 }
 0xe2e   : > { %v9138_v16 = vpop.eup %7857 }
 0xe2f   : > { %v7860_v35 = vpop.eup %7859  ;;  %v4221_v2 = vsel %vm2252_vm2, %v9138_v16, 0.0 }
 0xe30   : > { %v9142_v15 = vpop.eup %7861  ;;  %4222 = vadd.xlane.f32.xlu0 %v4221_v2  ;;  %v4233_v0 = vsel %vm2265_vm3, %v7860_v35, 0.0 }
 0xe31   : > { %v4224_v14 = vsel %vm2252_vm2, %v9142_v15, 0.0  ;;  %v7864_v51 = vpop.eup %7863 }
 0xe32   : > { %4225 = vadd.xlane.f32.xlu1 %v4224_v14  ;;  %v4236_v25 = vsel %vm2265_vm3, %v7864_v51, 0.0 }
 0xe34   : > { %4234 = vadd.xlane.f32.xlu0 %v4233_v0 }
 0xe36   : > { %4237 = vadd.xlane.f32.xlu1 %v4236_v25 }
 0xe47   : > { %4442 = vrot.lane.b32.xlu1 %v8592_v63, %s8185_s14 }
 0xe4a   : > { %4445 = vrot.lane.b32.xlu0 %v6791_v44, %s8185_s14 }
 0xe4b   : > { %4498 = vrot.lane.b32.xlu1 %v6792_v20, %s8185_s14 }
 0xe4e   : > { %4495 = vrot.lane.b32.xlu0 %v8600_v11, %s8185_s14  ;;  %v4351_v11 = vsel %vm2441_vm4, %v8704_v23, 0 }
 0xe4f   : > { %4548 = vrot.lane.b32.xlu1 %v8614_v26, %s8185_s14 }
 0xe53   : > { %4595 = vrot.lane.b32.xlu1 %v8622_v37, %s8185_s14 }
 0xe8b   : > { %v4217_v63 = vpop.xlane.xlu0 %4216 }
 0xe8f   : > { %v4229_v6 = vpop.xlane.xlu0 %4228  ;;  %v4220_v49 = vpop.xlane.xlu1 %4219 }
 0xe90   : > { %v4239_v7 = vadd.f32 %v4229_v6, %v4217_v63 }
 0xe92   : > { %7865 = vrcp.f32 %v4239_v7 }
 0xe93   : > { %v4232_v10 = vpop.xlane.xlu1 %4231 }
 0xe94   : > { %v4240_v17 = vadd.f32 %v4232_v10, %v4220_v49  ;;  %v4398_v10 = vsel %vm2441_vm4, %v8714_v45, 0 }
 0xe96   : > { %7867 = vrcp.f32 %v4240_v17 }
 0xe9c   : > { %v7866_v34 = vpop.eup %7865 }
 0xe9d   : > { %v4253_v30 = vmul.f32 %v7866_v34, %v7852_v56  ;;  %v4247_v37 = vmul.f32 %v7866_v34, %v9128_v5 }
 0xea0   : > { %v7868_v46 = vpop.eup %7867 }
 0xea1   : > { %v4254_v55 = vmul.f32 %v7868_v46, %v7856_v43  ;;  %v4248_v26 = vmul.f32 %v7868_v46, %v9132_v41 }
 0xea3   : > { %v4257_v8 = vpack.c.bf16 %v4254_v55, %v4253_v30  ;;  %v4251_v42 = vpack.c.bf16 %v4248_v26, %v4247_v37 }
 0xea5   : > { %7200 = vmatmul.mubr.msk.bf16.vlgmr.msra.gmra.mrb[88].mxu0 %vm2265_vm3, %v4257_v8 }
 0xea6   : > { %7210 = vmatpush3.bf16.msra.mxu0 %v4351_v11  ;;  %7211 = vmatprep.mubr.msk.bf16.mxu0 %vm8184_vm0, %v9667_v24 }
 0xea7   : > { %7221 = vmatprep.subr.bf16.mxu0 %v9667_v24 }
 0xeb1   : > { %7212 = vmatmul.mubr.msk.bf16.vlgmr.msra.gmra.mrb[88].mxu0 %vm2252_vm2, %v4251_v42 }
 0xeb2   : > { %7223 = vmatprep.mubr.msk.bf16.mxu0 %vm8184_vm0, %v9667_v24 }
 0xebd   : > { %v4223_v56 = vpop.xlane.xlu0 %4222 }
 0xebf   : > { %v4226_v43 = vpop.xlane.xlu1 %4225 }
 0xec1   : > { %v4235_v29 = vpop.xlane.xlu0 %4234 }
 0xec2   : > { %v4241_v39 = vadd.f32 %v4235_v29, %v4223_v56 }
 0xec3   : > { %v4238_v38 = vpop.xlane.xlu1 %4237 }
 0xec4   : > { %7869 = vrcp.f32 %v4241_v39  ;;  %v4242_v2 = vadd.f32 %v4238_v38, %v4226_v43 }
 0xec5   : > { %v4446_v14 = vpop.permute.xlu0 %4445 }
 0xec6   : > { %7871 = vrcp.f32 %v4242_v2  ;;  %v4451_v0 = vsel %vm2069_vm1, %v4446_v14, 0 }
 0xec7   : > { %7222 = vmatpush3.bf16.xpose.msra.mxu0 %v4451_v0  ;;  %v4443_v41 = vpop.permute.xlu1 %4442 }
 0xec8   : > { %7233 = vmatprep.subr.bf16.mxu0 %v9667_v24 }
 0xec9   : > { %v4496_v30 = vpop.permute.xlu0 %4495 }
 0xecb   : > { %v4499_v5 = vpop.permute.xlu1 %4498 }
 0xecc   : > { %v4504_v34 = vsel %vm2069_vm1, %v4499_v5, 0 }
 0xece   : > { %v7870_v25 = vpop.eup %7869  ;;  %7224 = vmatmul.mubr.msk.bf16.vlgmr.msra.gmra.mrb[92].mxu0 %vm2069_vm1, %v4443_v41 }
 0xecf   : > { %v4549_v44 = vpop.permute.xlu1 %4548  ;;  %7235 = vmatprep.mubr.msk.bf16.mxu0 %vm8184_vm0, %v9667_v24  ;;  %v4255_v6 = vmul.f32 %v7870_v25, %v7860_v35 }
 0xed0   : > { %v7872_v20 = vpop.eup %7871  ;;  %v4551_v63 = vsel %vm2069_vm1, %v4549_v44, 0 }
 0xed1   : > { %v4256_v49 = vmul.f32 %v7872_v20, %v7864_v51  ;;  %7234 = vmatpush3.bf16.xpose.msra.mxu0 %v4551_v63  ;;  %v4250_v35 = vmul.f32 %v7872_v20, %v9142_v15  ;;  %v4249_v51 = vmul.f32 %v7870_v25, %v9138_v16 }
 0xed2   : > { %7245 = vmatprep.subr.bf16.mxu0 %v9667_v24 }
 0xed3   : > { %v4258_v7 = vpack.c.bf16 %v4256_v49, %v4255_v6  ;;  %v4252_v17 = vpack.c.bf16 %v4250_v35, %v4249_v51  ;;  %v4596_v46 = vpop.permute.xlu1 %4595 }
 0xed4   : > { %v4598_v55 = vsel %vm2069_vm1, %v4596_v46, 0 }
 0xed5   : > { %7206 = vmatmul.mubr.msk.bf16.vlgmr.msra.gmra.mrb[88].mxu1 %vm2265_vm3, %v4258_v7 }
 0xed6   : > { %7216 = vmatpush3.bf16.msra.mxu1 %v4398_v10  ;;  %7217 = vmatprep.mubr.msk.bf16.mxu1 %vm8184_vm0, %v9667_v24 }
 0xed7   : > { %7227 = vmatprep.subr.bf16.mxu1 %v9667_v24 }
 0xed8   : > { %7236 = vmatmul.mubr.msk.bf16.vlgmr.msra.gmra.mrb[96].mxu0 %vm2069_vm1, %v4443_v41 }
 0xed9   : > { %7247 = vmatprep.mubr.msk.bf16.mxu0 %vm8184_vm0, %v9667_v24 }
 0xee1   : > { %7218 = vmatmul.mubr.msk.bf16.vlgmr.msra.gmra.mrb[88].mxu1 %vm2252_vm2, %v4252_v17 }
 0xee2   : > { %7228 = vmatpush3.bf16.xpose.msra.mxu1 %v4504_v34  ;;  %7229 = vmatprep.mubr.msk.bf16.mxu1 %vm8184_vm0, %v9667_v24 }
 0xee3   : > { %7239 = vmatprep.subr.bf16.mxu1 %v9667_v24 }
 0xee9   : > { %7230 = vmatmul.mubr.msk.bf16.vlgmr.msra.gmra.mrb[92].mxu1 %vm2069_vm1, %v4496_v30 }
 0xeea   : > { %7240 = vmatpush3.bf16.xpose.msra.mxu1 %v4598_v55  ;;  %7241 = vmatprep.mubr.msk.bf16.mxu1 %vm8184_vm0, %v9667_v24 }
 0xeeb   : > { %7251 = vmatprep.subr.bf16.mxu1 %v9667_v24 }
 0xef1   : > { %7242 = vmatmul.mubr.msk.bf16.vlgmr.msra.gmra.mrb[96].mxu1 %vm2069_vm1, %v4496_v30 }
 0xef2   : > { %7253 = vmatprep.mubr.msk.bf16.mxu1 %vm8184_vm0, %v9667_v24 }
 0xf84   : > { %v9204_v16 = vpop.f32.mrb[88].mxu0 }
 0xf85   : > { %v7213_v15 = vpop.f32.mrb[89].mxu0 }
 0xf86   : > { %v9206_v8 = vpop.f32.mrb[90].mxu0 }
 0xf87   : > { %v7214_v11 = vpop.f32.mrb[91].mxu0 }
 0xfa1   : > { %v4487_v26 = vpop.f32.mrb[92].mxu0 }
 0xfa2   : > { %v7225_v37 = vpop.f32.mrb[93].mxu0  ;;  %v4641_v42 = vsel %vm2252_vm2, %v4487_v26, -inf }
 0xfa3   : > { %4642 = vmax.xlane.f32.xlu0 %v4641_v42  ;;  %v4490_v56 = vpop.f32.mrb[94].mxu0 }
 0xfa4   : > { %v7226_v43 = vpop.f32.mrb[95].mxu0  ;;  %v4644_v29 = vsel %vm2252_vm2, %v4490_v56, -inf }
 0xfa5   : > { %4645 = vmax.xlane.f32.xlu1 %v4644_v29 }
 0xfab   : > { %v4587_v39 = vpop.f32.mrb[96].mxu0 }
 0xfac   : > { %v7237_v38 = vpop.f32.mrb[97].mxu0  ;;  %v4653_v2 = vsel %vm2265_vm3, %v4587_v39, -inf }
 0xfad   : > { %4654 = vmax.xlane.f32.xlu0 %v4653_v2  ;;  %v4590_v14 = vpop.f32.mrb[98].mxu0 }
 0xfae   : > { %v7238_v0 = vpop.f32.mrb[99].mxu0  ;;  %v4656_v41 = vsel %vm2265_vm3, %v4590_v14, -inf }
 0xfb1   : > { %4657 = vmax.xlane.f32.xlu0 %v4656_v41 }
 0xfb4   : > { %v9212_v5 = vpop.f32.mrb[88].mxu1 }
 0xfb5   : > { %v7219_v25 = vpop.f32.mrb[89].mxu1 }
 0xfb6   : > { %v9214_v44 = vpop.f32.mrb[90].mxu1 }
 0xfb7   : > { %v7220_v20 = vpop.f32.mrb[91].mxu1 }
 0xfbc   : > { %v4540_v63 = vpop.f32.mrb[92].mxu1 }
 0xfbd   : > { %v7231_v6 = vpop.f32.mrb[93].mxu1  ;;  %v4647_v49 = vsel %vm2252_vm2, %v4540_v63, -inf }
 0xfbe   : > { %4648 = vmax.xlane.f32.xlu0 %v4647_v49  ;;  %v9217_v7 = vpop.f32.mrb[94].mxu1 }
 0xfbf   : > { %v7232_v10 = vpop.f32.mrb[95].mxu1  ;;  %v4650_v35 = vsel %vm2252_vm2, %v9217_v7, -inf }
 0xfc0   : > { %4651 = vmax.xlane.f32.xlu1 %v4650_v35 }
 0xfc4   : > { %v4634_v51 = vpop.f32.mrb[96].mxu1 }
 0xfc5   : > { %v7243_v17 = vpop.f32.mrb[97].mxu1  ;;  %v4659_v34 = vsel %vm2265_vm3, %v4634_v51, -inf }
 0xfc6   : > { %4660 = vmax.xlane.f32.xlu0 %v4659_v34  ;;  %v4637_v46 = vpop.f32.mrb[98].mxu1 }
 0xfc7   : > { %v7244_v30 = vpop.f32.mrb[99].mxu1  ;;  %v4662_v55 = vsel %vm2265_vm3, %v4637_v46, -inf }
 0xfc8   : > { %4663 = vmax.xlane.f32.xlu1 %v4662_v55 }
0x1030   : > { %v4643_v15 = vpop.xlane.xlu0 %4642 }
0x1032   : > { %v4646_v29 = vpop.xlane.xlu1 %4645 }
0x103a   : > { %v4655_v11 = vpop.xlane.xlu0 %4654 }
0x103b   : > { %v4665_v37 = vmax.f32 %v4643_v15, %v4655_v11 }
0x103d   : > { %v4669_v42 = vsub.f32 %v4487_v26, %v4665_v37  ;;  %v4681_v43 = vsub.f32 %v4587_v39, %v4665_v37 }
0x103e   : > { %v4658_v38 = vpop.xlane.xlu0 %4657 }
0x103f   : > { %v4673_v2 = vmul.f32 1.442695, %v4669_v42  ;;  %v4685_v0 = vmul.f32 1.442695, %v4681_v43  ;;  %v4666_v41 = vmax.f32 %v4646_v29, %v4658_v38  ;;  %v6793_v38 = vpack.c.bf16 %v8698_v33, %v8698_v33 }
0x1041   : > { %7873 = vpow2.f32 %v4673_v2  ;;  %v4670_v25 = vsub.f32 %v4490_v56, %v4666_v41  ;;  %v4682_v20 = vsub.f32 %v4590_v14, %v4666_v41 }
0x1042   : > { %7875 = vpow2.f32 %v4685_v0 }
0x1043   : > { %v4675_v6 = vmul.f32 1.442695, %v4670_v25  ;;  %v4687_v49 = vmul.f32 1.442695, %v4682_v20 }
0x1045   : > { %7877 = vpow2.f32 %v4675_v6 }
0x1046   : > { %7879 = vpow2.f32 %v4687_v49 }
0x104b   : > { %v9223_v10 = vpop.eup %7873  ;;  %v4649_v17 = vpop.xlane.xlu0 %4648 }
0x104c   : > { %v4693_v35 = vsel %vm2252_vm2, %v9223_v10, 0.0  ;;  %v9227_v26 = vpop.eup %7875 }
0x104d   : > { %4694 = vadd.xlane.f32.xlu0 %v4693_v35  ;;  %v4705_v56 = vsel %vm2265_vm3, %v9227_v26, 0.0 }
0x104f   : > { %v9229_v39 = vpop.eup %7877 }
0x1050   : > { %v4696_v14 = vsel %vm2252_vm2, %v9229_v39, 0.0  ;;  %v7880_v34 = vpop.eup %7879 }
0x1051   : > { %4706 = vadd.xlane.f32.xlu0 %v4705_v56  ;;  %4697 = vadd.xlane.f32.xlu1 %v4696_v14  ;;  %v4708_v15 = vsel %vm2265_vm3, %v7880_v34, 0.0 }
0x1053   : > { %v4661_v30 = vpop.xlane.xlu0 %4660 }
0x1054   : > { %v4667_v55 = vmax.f32 %v4649_v17, %v4661_v30 }
0x1055   : > { %4709 = vadd.xlane.f32.xlu1 %v4708_v15 }
0x1056   : > { %v4671_v11 = vsub.f32 %v4540_v63, %v4667_v55  ;;  %v4683_v37 = vsub.f32 %v4634_v51, %v4667_v55  ;;  %v4652_v51 = vpop.xlane.xlu1 %4651 }
0x1058   : > { %v4677_v42 = vmul.f32 1.442695, %v4671_v11  ;;  %v4689_v43 = vmul.f32 1.442695, %v4683_v37 }
0x105a   : > { %7881 = vpow2.f32 %v4677_v42  ;;  %v4664_v41 = vpop.xlane.xlu1 %4663 }
0x105b   : > { %7883 = vpow2.f32 %v4689_v43  ;;  %v4668_v25 = vmax.f32 %v4652_v51, %v4664_v41 }
0x105d   : > { %v4672_v33 = vsub.f32 %v9217_v7, %v4668_v25  ;;  %v4684_v6 = vsub.f32 %v4637_v46, %v4668_v25  ;;  %v6794_v7 = vpack.c.bf16 %v8708_v27, %v8708_v27 }
0x105f   : > { %v4679_v20 = vmul.f32 1.442695, %v4672_v33  ;;  %v4691_v49 = vmul.f32 1.442695, %v4684_v6 }
0x1061   : > { %7885 = vpow2.f32 %v4679_v20 }
0x1062   : > { %7887 = vpow2.f32 %v4691_v49  ;;  %v5030_v49 = vsel %vm2069_vm1, %v8618_v31, 0 }
0x1064   : > { %v9236_v29 = vpop.eup %7881 }
0x1065   : > { %v4699_v2 = vsel %vm2252_vm2, %v9236_v29, 0.0  ;;  %v9242_v0 = vpop.eup %7883 }
0x1066   : > { %4700 = vadd.xlane.f32.xlu0 %v4699_v2  ;;  %4834 = vrot.lane.b32.xlu1 %v6793_v38, %s8185_s14  ;;  %v4711_v63 = vsel %vm2265_vm3, %v9242_v0, 0.0 }
0x106a   : > { %4712 = vadd.xlane.f32.xlu0 %v4711_v63  ;;  %4786 = vrot.lane.b32.xlu1 %v8638_v61, %s8185_s14 }
0x106b   : > { %v9252_v35 = vpop.eup %7885 }
0x106c   : > { %v4702_v17 = vsel %vm2252_vm2, %v9252_v35, 0.0  ;;  %v7888_v56 = vpop.eup %7887 }
0x106d   : > { %v4714_v61 = vsel %vm2265_vm3, %v7888_v56, 0.0 }
0x1080   : > { %4738 = vrot.lane.b32.xlu0 %v8630_v48, %s8185_s14 }
0x108e   : > { %4703 = vadd.xlane.f32.xlu1 %v4702_v17 }
0x1092   : > { %4715 = vadd.xlane.f32.xlu1 %v4714_v61 }
0x10a3   : > { %4884 = vrot.lane.b32.xlu1 %v6794_v7, %s8185_s14 }
0x10da   : > { %v4695_v14 = vpop.xlane.xlu0 %4694 }
0x10de   : > { %v4698_v46 = vpop.xlane.xlu1 %4697  ;;  %v4707_v55 = vpop.xlane.xlu0 %4706 }
0x10df   : > { %v4717_v11 = vadd.f32 %v4707_v55, %v4695_v14 }
0x10e2   : > { %v4710_v30 = vpop.xlane.xlu1 %4709 }
0x10e3   : > { %v4718_v15 = vadd.f32 %v4710_v30, %v4698_v46 }
0x10e5   : > { %7889 = vrcp.f32 %v4718_v15 }
0x10e6   : > { %v4835_v48 = vpop.permute.xlu1 %4834  ;;  %7891 = vrcp.f32 %v4717_v11 }
0x10e7   : > { %v4840_v25 = vsel %vm2441_vm4, %v4835_v48, 0 }
0x10ea   : > { %v4787_v37 = vpop.permute.xlu1 %4786 }
0x10eb   : > { %7252 = vmatpush3.bf16.msra.mxu1 %v4787_v37  ;;  %v4981_v37 = vrot.slane %v8662_v22, 4 }
0x10ec   : > { %7263 = vmatprep.subr.bf16.mxu1 %v9667_v24 }
0x10ef   : > { %v7890_v43 = vpop.eup %7889 }
0x10f0   : > { %v7892_v2 = vpop.eup %7891  ;;  %v4732_v27 = vmul.f32 %v7890_v43, %v7880_v34  ;;  %v4726_v33 = vmul.f32 %v7890_v43, %v9229_v39  ;;  %v4933_v34 = vrot.slane %v8652_v12, 4  ;;  %v9668_v43 = vld [vmem:[#allocation21_spill] sm:$0xff] }
0x10f1   : > { %v4731_v63 = vmul.f32 %v7892_v2, %v9227_v26  ;;  %v4725_v26 = vmul.f32 %v7892_v2, %v9223_v10  ;;  %v9669_v2 = vld [vmem:[#allocation20_spill] sm:$0xff] }
0x10f2   : > { %v4938_v6 = vsel %vm2069_vm1, %v4933_v34, 0 }
0x10f3   : > { %v4701_v42 = vpop.xlane.xlu0 %4700  ;;  %v4735_v41 = vpack.c.bf16 %v4732_v27, %v4731_v63  ;;  %v4729_v20 = vpack.c.bf16 %v4726_v33, %v4725_v26 }
0x10f7   : > { %v4713_v38 = vpop.xlane.xlu0 %4712 }
0x10f8   : > { %v4719_v39 = vadd.f32 %v4713_v38, %v4701_v42  ;;  %v5074_v38 = vsel %vm2069_vm1, %v9668_v43, 0 }
0x10fa   : > { %7893 = vrcp.f32 %v4719_v39 }
0x10fb   : > { %v4739_v51 = vpop.permute.xlu0 %4738 }
0x10fc   : > { %7246 = vmatpush3.bf16.msra.mxu0 %v4739_v51 }
0x10fd   : > { %7257 = vmatprep.subr.bf16.mxu0 %v9667_v24 }
0x10ff   : > { %7248 = vmatmul.mubr.msk.bf16.vlgmr.msra.gmra.mrb[100].mxu0 %vm2265_vm3, %v4735_v41 }
0x1100   : > { %7258 = vmatpush3.bf16.msra.mxu0 %v4840_v25  ;;  %7259 = vmatprep.mubr.msk.bf16.mxu0 %vm8184_vm0, %v9667_v24 }
0x1101   : > { %7269 = vmatprep.subr.bf16.mxu0 %v9667_v24 }
0x1104   : > { %v7894_v7 = vpop.eup %7893 }
0x1105   : > { %v4733_v14 = vmul.f32 %v7894_v7, %v9242_v0  ;;  %v4727_v42 = vmul.f32 %v7894_v7, %v9236_v29  ;;  %v9670_v29 = vld [vmem:[#allocation22_spill] sm:$0xff] }
0x110b   : > { %7260 = vmatmul.mubr.msk.bf16.vlgmr.msra.gmra.mrb[100].mxu0 %vm2252_vm2, %v4729_v20 }
0x110c   : > { %7270 = vmatpush3.bf16.xpose.msra.mxu0 %v4938_v6  ;;  %7271 = vmatprep.mubr.msk.bf16.mxu0 %vm8184_vm0, %v9667_v24 }
0x110d   : > { %7281 = vmatprep.subr.bf16.mxu0 %v9667_v24 }
0x1113   : > { %7272 = vmatmul.mubr.msk.bf16.vlgmr.msra.gmra.mrb[104].mxu0 %vm2069_vm1, %v8596_v4 }
0x1114   : > { %7282 = vmatpush3.bf16.xpose.msra.mxu0 %v5030_v49  ;;  %7283 = vmatprep.mubr.msk.bf16.mxu0 %vm8184_vm0, %v9667_v24 }
0x1115   : > { %7293 = vmatprep.subr.bf16.mxu0 %v9667_v24 }
0x111b   : > { %7284 = vmatmul.mubr.msk.bf16.vlgmr.msra.gmra.mrb[108].mxu0 %vm2069_vm1, %v8596_v4  ;;  %v4704_v10 = vpop.xlane.xlu1 %4703 }
0x111c   : > { %7294 = vmatpush3.bf16.msra.mxu0 %v8634_v52  ;;  %7295 = vmatprep.mubr.msk.bf16.mxu0 %vm8184_vm0, %v9667_v24 }
0x111d   : > { %7305 = vmatprep.subr.bf16.mxu0 %v9667_v24 }
0x111f   : > { %v4716_v17 = vpop.xlane.xlu1 %4715 }
0x1120   : > { %v4720_v61 = vadd.f32 %v4716_v17, %v4704_v10 }
0x1122   : > { %7895 = vrcp.f32 %v4720_v61 }
0x1123   : > { %v4885_v48 = vpop.permute.xlu1 %4884 }
0x1124   : > { %v4890_v15 = vsel %vm2441_vm4, %v4885_v48, 0 }
0x112c   : > { %v7896_v46 = vpop.eup %7895 }
0x112d   : > { %v4734_v30 = vmul.f32 %v7896_v46, %v7888_v56  ;;  %v4728_v11 = vmul.f32 %v7896_v46, %v9252_v35  ;;  %v4986_v56 = vsel %vm2069_vm1, %v4981_v37, 0 }
0x112f   : > { %v4736_v55 = vpack.c.bf16 %v4734_v30, %v4733_v14  ;;  %v4730_v0 = vpack.c.bf16 %v4728_v11, %v4727_v42 }
0x1131   : > { %7254 = vmatmul.mubr.msk.bf16.vlgmr.msra.gmra.mrb[100].mxu1 %vm2265_vm3, %v4736_v55 }
0x1132   : > { %7264 = vmatpush3.bf16.msra.mxu1 %v4890_v15  ;;  %7265 = vmatprep.mubr.msk.bf16.mxu1 %vm8184_vm0, %v9667_v24 }
0x1133   : > { %7275 = vmatprep.subr.bf16.mxu1 %v9667_v24 }
0x113d   : > { %7266 = vmatmul.mubr.msk.bf16.vlgmr.msra.gmra.mrb[100].mxu1 %vm2252_vm2, %v4730_v0 }
0x113e   : > { %7276 = vmatpush3.bf16.xpose.msra.mxu1 %v4986_v56  ;;  %7277 = vmatprep.mubr.msk.bf16.mxu1 %vm8184_vm0, %v9667_v24 }
0x113f   : > { %7287 = vmatprep.subr.bf16.mxu1 %v9667_v24 }
0x1145   : > { %7278 = vmatmul.mubr.msk.bf16.vlgmr.msra.gmra.mrb[104].mxu1 %vm2069_vm1, %v9669_v2 }
0x1146   : > { %7288 = vmatpush3.bf16.xpose.msra.mxu1 %v5074_v38  ;;  %7289 = vmatprep.mubr.msk.bf16.mxu1 %vm8184_vm0, %v9667_v24 }
0x1147   : > { %7299 = vmatprep.subr.bf16.mxu1 %v9667_v24 }
0x114d   : > { %7290 = vmatmul.mubr.msk.bf16.vlgmr.msra.gmra.mrb[108].mxu1 %vm2069_vm1, %v9669_v2 }
0x114e   : > { %7300 = vmatpush3.bf16.msra.mxu1 %v9670_v29  ;;  %7301 = vmatprep.mubr.msk.bf16.mxu1 %vm8184_vm0, %v9667_v24 }
0x114f   : > { %7311 = vmatprep.subr.bf16.mxu1 %v9667_v24 }
0x11de   : > { %v9316_v35 = vpop.f32.mrb[100].mxu0 }
0x11df   : > { %v7261_v27 = vpop.f32.mrb[101].mxu0 }
0x11e0   : > { %v9318_v63 = vpop.f32.mrb[102].mxu0 }
0x11e1   : > { %v7262_v41 = vpop.f32.mrb[103].mxu0 }
0x11e6   : > { %v4974_v25 = vpop.f32.mrb[104].mxu0 }
0x11e7   : > { %v7273_v33 = vpop.f32.mrb[105].mxu0  ;;  %v5117_v34 = vsel %vm2252_vm2, %v4974_v25, -inf }
0x11e8   : > { %5118 = vmax.xlane.f32.xlu0 %v5117_v34  ;;  %v4977_v26 = vpop.f32.mrb[106].mxu0 }
0x11e9   : > { %v7274_v20 = vpop.f32.mrb[107].mxu0  ;;  %v5120_v6 = vsel %vm2252_vm2, %v4977_v26, -inf }
0x11ea   : > { %5121 = vmax.xlane.f32.xlu1 %v5120_v6 }
0x11ee   : > { %v5066_v49 = vpop.f32.mrb[108].mxu0 }
0x11ef   : > { %v7285_v10 = vpop.f32.mrb[109].mxu0  ;;  %v5129_v39 = vsel %vm2265_vm3, %v5066_v49, -inf }
0x11f0   : > { %5130 = vmax.xlane.f32.xlu0 %v5129_v39  ;;  %v5069_v17 = vpop.f32.mrb[110].mxu0 }
0x11f1   : > { %v7286_v61 = vpop.f32.mrb[111].mxu0  ;;  %v5132_v7 = vsel %vm2265_vm3, %v5069_v17, -inf }
0x11f4   : > { %5133 = vmax.xlane.f32.xlu0 %v5132_v7 }
0x1210   : > { %v9326_v46 = vpop.f32.mrb[100].mxu1 }
0x1211   : > { %v7267_v14 = vpop.f32.mrb[101].mxu1 }
0x1212   : > { %v9328_v30 = vpop.f32.mrb[102].mxu1 }
0x1213   : > { %v7268_v55 = vpop.f32.mrb[103].mxu1 }
0x1218   : > { %v5022_v15 = vpop.f32.mrb[104].mxu1 }
0x1219   : > { %v7279_v11 = vpop.f32.mrb[105].mxu1  ;;  %v5123_v37 = vsel %vm2252_vm2, %v5022_v15, -inf }
0x121a   : > { %5124 = vmax.xlane.f32.xlu0 %v5123_v37  ;;  %v5025_v42 = vpop.f32.mrb[106].mxu1 }
0x121b   : > { %v7280_v0 = vpop.f32.mrb[107].mxu1  ;;  %v5126_v56 = vsel %vm2252_vm2, %v5025_v42, -inf }
0x121c   : > { %5127 = vmax.xlane.f32.xlu1 %v5126_v56 }
0x1220   : > { %v5110_v38 = vpop.f32.mrb[108].mxu1 }
0x1221   : > { %v7291_v27 = vpop.f32.mrb[109].mxu1  ;;  %v5135_v41 = vsel %vm2265_vm3, %v5110_v38, -inf }
0x1222   : > { %5136 = vmax.xlane.f32.xlu0 %v5135_v41  ;;  %v5113_v33 = vpop.f32.mrb[110].mxu1 }
0x1223   : > { %v7292_v34 = vpop.f32.mrb[111].mxu1  ;;  %v5138_v20 = vsel %vm2265_vm3, %v5113_v33, -inf }
0x1224   : > { %5139 = vmax.xlane.f32.xlu1 %v5138_v20 }
0x1275   : > { %v5119_v6 = vpop.xlane.xlu0 %5118 }
0x1277   : > { %v5122_v14 = vpop.xlane.xlu1 %5121 }
0x127d   : > { %v5131_v10 = vpop.xlane.xlu0 %5130 }
0x127e   : > { %v5141_v39 = vmax.f32 %v5119_v6, %v5131_v10 }
0x1280   : > { %v5145_v61 = vsub.f32 %v4974_v25, %v5141_v39  ;;  %v5157_v7 = vsub.f32 %v5066_v49, %v5141_v39 }
0x1281   : > { %v5134_v55 = vpop.xlane.xlu0 %5133 }
0x1282   : > { %v5149_v11 = vmul.f32 1.442695, %v5145_v61  ;;  %v5161_v37 = vmul.f32 1.442695, %v5157_v7  ;;  %v5142_v0 = vmax.f32 %v5122_v14, %v5134_v55 }
0x1284   : > { %7897 = vpow2.f32 %v5149_v11  ;;  %v5146_v56 = vsub.f32 %v4977_v26, %v5142_v0  ;;  %v5158_v27 = vsub.f32 %v5069_v17, %v5142_v0 }
0x1285   : > { %7899 = vpow2.f32 %v5161_v37 }
0x1286   : > { %v5151_v41 = vmul.f32 1.442695, %v5146_v56  ;;  %v5163_v48 = vmul.f32 1.442695, %v5158_v27 }
0x1288   : > { %7901 = vpow2.f32 %v5151_v41 }
0x1289   : > { %7903 = vpow2.f32 %v5163_v48 }
0x128e   : > { %v9336_v34 = vpop.eup %7897 }
0x128f   : > { %v5169_v20 = vsel %vm2252_vm2, %v9336_v34, 0.0  ;;  %v7900_v25 = vpop.eup %7899 }
0x1290   : > { %5170 = vadd.xlane.f32.xlu0 %v5169_v20  ;;  %v5181_v6 = vsel %vm2265_vm3, %v7900_v25, 0.0 }
0x1292   : > { %v9340_v49 = vpop.eup %7901 }
0x1293   : > { %v5172_v26 = vsel %vm2252_vm2, %v9340_v49, 0.0  ;;  %v7904_v17 = vpop.eup %7903 }
0x1294   : > { %5182 = vadd.xlane.f32.xlu0 %v5181_v6  ;;  %5173 = vadd.xlane.f32.xlu1 %v5172_v26  ;;  %v5184_v10 = vsel %vm2265_vm3, %v7904_v17, 0.0 }
0x1298   : > { %5185 = vadd.xlane.f32.xlu1 %v5184_v10 }
0x12a7   : > { %v5125_v48 = vpop.xlane.xlu0 %5124 }
0x12a9   : > { %v5128_v39 = vpop.xlane.xlu1 %5127 }
0x12af   : > { %v5137_v61 = vpop.xlane.xlu0 %5136 }
0x12b0   : > { %v5143_v7 = vmax.f32 %v5125_v48, %v5137_v61 }
0x12b1   : > { %v5140_v14 = vpop.xlane.xlu1 %5139 }
0x12b2   : > { %v5147_v55 = vsub.f32 %v5022_v15, %v5143_v7  ;;  %v5159_v11 = vsub.f32 %v5110_v38, %v5143_v7  ;;  %v5144_v37 = vmax.f32 %v5128_v39, %v5140_v14 }
0x12b4   : > { %v5153_v0 = vmul.f32 1.442695, %v5147_v55  ;;  %v5165_v56 = vmul.f32 1.442695, %v5159_v11  ;;  %v5148_v27 = vsub.f32 %v5025_v42, %v5144_v37  ;;  %v5160_v41 = vsub.f32 %v5113_v33, %v5144_v37 }
0x12b6   : > { %7905 = vpow2.f32 %v5153_v0  ;;  %v5155_v20 = vmul.f32 1.442695, %v5148_v27  ;;  %v5167_v51 = vmul.f32 1.442695, %v5160_v41 }
0x12b7   : > { %7907 = vpow2.f32 %v5165_v56 }
0x12b8   : > { %7909 = vpow2.f32 %v5155_v20 }
0x12b9   : > { %7911 = vpow2.f32 %v5167_v51 }
0x12c0   : > { %v9346_v6 = vpop.eup %7905 }
0x12c1   : > { %v7908_v26 = vpop.eup %7907  ;;  %v5175_v10 = vsel %vm2252_vm2, %v9346_v6, 0.0 }
0x12c2   : > { %v9350_v48 = vpop.eup %7909  ;;  %5176 = vadd.xlane.f32.xlu0 %v5175_v10  ;;  %v5187_v38 = vsel %vm2265_vm3, %v7908_v26, 0.0 }
0x12c3   : > { %v5178_v15 = vsel %vm2252_vm2, %v9350_v48, 0.0  ;;  %v7912_v42 = vpop.eup %7911 }
0x12c4   : > { %5179 = vadd.xlane.f32.xlu1 %v5178_v15  ;;  %v5190_v33 = vsel %vm2265_vm3, %v7912_v42, 0.0 }
0x12c6   : > { %5188 = vadd.xlane.f32.xlu0 %v5187_v38 }
0x12c8   : > { %5191 = vadd.xlane.f32.xlu1 %v5190_v33 }
0x12d9   : > { %5450 = vrot.lane.b32.xlu1 %v8662_v22, %s8185_s14 }
0x12dc   : > { %5397 = vrot.lane.b32.xlu0 %v8652_v12, %s8185_s14 }
0x12dd   : > { %5401 = vrot.lane.b32.xlu1 %v8596_v4, %s8185_s14  ;;  %v5301_v4 = vrot.slane %v8704_v23, 4 }
0x12e0   : > { %5454 = vrot.lane.b32.xlu0 %v9669_v2, %s8185_s14 }
0x12e1   : > { %5504 = vrot.lane.b32.xlu1 %v8618_v31, %s8185_s14  ;;  %v5306_v31 = vsel %vm2441_vm4, %v5301_v4, 0 }
0x12e5   : > { %5551 = vrot.lane.b32.xlu1 %v9668_v43, %s8185_s14 }
0x131d   : > { %v5171_v51 = vpop.xlane.xlu0 %5170 }
0x1321   : > { %v5183_v39 = vpop.xlane.xlu0 %5182  ;;  %v5174_v61 = vpop.xlane.xlu1 %5173 }
0x1322   : > { %v5193_v7 = vadd.f32 %v5183_v39, %v5171_v51 }
0x1324   : > { %7913 = vrcp.f32 %v5193_v7 }
0x1325   : > { %v5186_v22 = vpop.xlane.xlu1 %5185 }
0x1326   : > { %v5194_v14 = vadd.f32 %v5186_v22, %v5174_v61  ;;  %v5349_v22 = vrot.slane %v8714_v45, 4 }
0x1328   : > { %7915 = vrcp.f32 %v5194_v14  ;;  %v5354_v4 = vsel %vm2441_vm4, %v5349_v22, 0 }
0x132e   : > { %v7914_v12 = vpop.eup %7913 }
0x132f   : > { %v5207_v11 = vmul.f32 %v7914_v12, %v7900_v25  ;;  %v5201_v0 = vmul.f32 %v7914_v12, %v9336_v34 }
0x1332   : > { %v7916_v55 = vpop.eup %7915 }
0x1333   : > { %v5208_v2 = vmul.f32 %v7916_v55, %v7904_v17  ;;  %v5202_v43 = vmul.f32 %v7916_v55, %v9340_v49 }
0x1335   : > { %v5211_v37 = vpack.c.bf16 %v5208_v2, %v5207_v11  ;;  %v5205_v56 = vpack.c.bf16 %v5202_v43, %v5201_v0 }
0x1337   : > { %7296 = vmatmul.mubr.msk.bf16.vlgmr.msra.gmra.mrb[112].mxu0 %vm2265_vm3, %v5211_v37 }
0x1338   : > { %7306 = vmatpush3.bf16.msra.mxu0 %v5306_v31  ;;  %7307 = vmatprep.mubr.msk.bf16.mxu0 %vm8184_vm0, %v9667_v24 }
0x1339   : > { %7317 = vmatprep.subr.bf16.mxu0 %v9667_v24 }
0x1343   : > { %7308 = vmatmul.mubr.msk.bf16.vlgmr.msra.gmra.mrb[112].mxu0 %vm2252_vm2, %v5205_v56 }
0x1344   : > { %7319 = vmatprep.mubr.msk.bf16.mxu0 %vm8184_vm0, %v9667_v24 }
0x134f   : > { %v5177_v25 = vpop.xlane.xlu0 %5176 }
0x1351   : > { %v5180_v17 = vpop.xlane.xlu1 %5179 }
0x1353   : > { %v5189_v27 = vpop.xlane.xlu0 %5188 }
0x1354   : > { %v5195_v41 = vadd.f32 %v5189_v27, %v5177_v25 }
0x1355   : > { %v5192_v20 = vpop.xlane.xlu1 %5191 }
0x1356   : > { %7917 = vrcp.f32 %v5195_v41  ;;  %v5196_v10 = vadd.f32 %v5192_v20, %v5180_v17 }
0x1357   : > { %v5398_v15 = vpop.permute.xlu0 %5397 }
0x1358   : > { %7919 = vrcp.f32 %v5196_v10  ;;  %v5399_v38 = vrot.slane %v5398_v15, 4 }
0x1359   : > { %v5451_v33 = vpop.permute.xlu1 %5450 }
0x135a   : > { %v5407_v49 = vsel %vm2069_vm1, %v5399_v38, 0  ;;  %v5452_v11 = vrot.slane %v5451_v33, 4 }
0x135b   : > { %7318 = vmatpush3.bf16.xpose.msra.mxu0 %v5407_v49  ;;  %v5455_v43 = vpop.permute.xlu0 %5454 }
0x135c   : > { %7329 = vmatprep.subr.bf16.mxu0 %v9667_v24  ;;  %v5460_v37 = vsel %vm2069_vm1, %v5452_v11, 0 }
0x135d   : > { %v5402_v34 = vpop.permute.xlu1 %5401 }
0x1360   : > { %v7918_v51 = vpop.eup %7917 }
0x1361   : > { %v5505_v39 = vpop.permute.xlu1 %5504  ;;  %v5209_v14 = vmul.f32 %v7918_v51, %v7908_v26 }
0x1362   : > { %v7920_v61 = vpop.eup %7919  ;;  %v5507_v7 = vsel %vm2069_vm1, %v5505_v39, 0  ;;  %7320 = vmatmul.mubr.msk.bf16.vlgmr.msra.gmra.mrb[116].mxu0 %vm2069_vm1, %v5402_v34 }
0x1363   : > { %v5210_v12 = vmul.f32 %v7920_v61, %v7912_v42  ;;  %7330 = vmatpush3.bf16.xpose.msra.mxu0 %v5507_v7  ;;  %7331 = vmatprep.mubr.msk.bf16.mxu0 %vm8184_vm0, %v9667_v24  ;;  %v5204_v26 = vmul.f32 %v7920_v61, %v9350_v48  ;;  %v5203_v42 = vmul.f32 %v7918_v51, %v9346_v6 }
0x1364   : > { %7341 = vmatprep.subr.bf16.mxu0 %v9667_v24 }
0x1365   : > { %v5212_v55 = vpack.c.bf16 %v5210_v12, %v5209_v14  ;;  %v5206_v2 = vpack.c.bf16 %v5204_v26, %v5203_v42  ;;  %v5552_v31 = vpop.permute.xlu1 %5551 }
0x1366   : > { %v5554_v0 = vsel %vm2069_vm1, %v5552_v31, 0 }
0x1367   : > { %7302 = vmatmul.mubr.msk.bf16.vlgmr.msra.gmra.mrb[112].mxu1 %vm2265_vm3, %v5212_v55 }
0x1368   : > { %7312 = vmatpush3.bf16.msra.mxu1 %v5354_v4  ;;  %7313 = vmatprep.mubr.msk.bf16.mxu1 %vm8184_vm0, %v9667_v24 }
0x1369   : > { %7323 = vmatprep.subr.bf16.mxu1 %v9667_v24 }
0x136a   : > { %7332 = vmatmul.mubr.msk.bf16.vlgmr.msra.gmra.mrb[120].mxu0 %vm2069_vm1, %v5402_v34 }
0x136b   : > { %7343 = vmatprep.mubr.msk.bf16.mxu0 %vm8184_vm0, %v9667_v24 }
0x1373   : > { %7314 = vmatmul.mubr.msk.bf16.vlgmr.msra.gmra.mrb[112].mxu1 %vm2252_vm2, %v5206_v2 }
0x1374   : > { %7324 = vmatpush3.bf16.xpose.msra.mxu1 %v5460_v37  ;;  %7325 = vmatprep.mubr.msk.bf16.mxu1 %vm8184_vm0, %v9667_v24 }
0x1375   : > { %7335 = vmatprep.subr.bf16.mxu1 %v9667_v24 }
0x137b   : > { %7326 = vmatmul.mubr.msk.bf16.vlgmr.msra.gmra.mrb[116].mxu1 %vm2069_vm1, %v5455_v43 }
0x137c   : > { %7336 = vmatpush3.bf16.xpose.msra.mxu1 %v5554_v0  ;;  %7337 = vmatprep.mubr.msk.bf16.mxu1 %vm8184_vm0, %v9667_v24 }
0x137d   : > { %7347 = vmatprep.subr.bf16.mxu1 %v9667_v24 }
0x1383   : > { %7338 = vmatmul.mubr.msk.bf16.vlgmr.msra.gmra.mrb[120].mxu1 %vm2069_vm1, %v5455_v43 }
0x1384   : > { %7349 = vmatprep.mubr.msk.bf16.mxu1 %vm8184_vm0, %v9667_v24 }
0x1416   : > { %v9410_v6 = vpop.f32.mrb[112].mxu0 }
0x1417   : > { %v7309_v48 = vpop.f32.mrb[113].mxu0 }
0x1418   : > { %v9412_v56 = vpop.f32.mrb[114].mxu0 }
0x1419   : > { %v7310_v25 = vpop.f32.mrb[115].mxu0 }
0x1435   : > { %v5443_v17 = vpop.f32.mrb[116].mxu0 }
0x1436   : > { %v7321_v27 = vpop.f32.mrb[117].mxu0  ;;  %v5597_v41 = vsel %vm2252_vm2, %v5443_v17, -inf }
0x1437   : > { %5598 = vmax.xlane.f32.xlu0 %v5597_v41  ;;  %v5446_v20 = vpop.f32.mrb[118].mxu0 }
0x1438   : > { %v7322_v10 = vpop.f32.mrb[119].mxu0  ;;  %v5600_v15 = vsel %vm2252_vm2, %v5446_v20, -inf }
0x1439   : > { %5601 = vmax.xlane.f32.xlu1 %v5600_v15 }
0x143d   : > { %v5543_v38 = vpop.f32.mrb[120].mxu0 }
0x143e   : > { %v7333_v33 = vpop.f32.mrb[121].mxu0  ;;  %v5609_v49 = vsel %vm2265_vm3, %v5543_v38, -inf }
0x143f   : > { %5610 = vmax.xlane.f32.xlu0 %v5609_v49  ;;  %v5546_v34 = vpop.f32.mrb[122].mxu0 }
0x1440   : > { %v7334_v51 = vpop.f32.mrb[123].mxu0  ;;  %v5612_v39 = vsel %vm2265_vm3, %v5546_v34, -inf }
0x1443   : > { %5613 = vmax.xlane.f32.xlu0 %v5612_v39 }
0x1446   : > { %v9418_v61 = vpop.f32.mrb[112].mxu1 }
0x1447   : > { %v7315_v7 = vpop.f32.mrb[113].mxu1 }
0x1448   : > { %v9420_v22 = vpop.f32.mrb[114].mxu1 }
0x1449   : > { %v7316_v14 = vpop.f32.mrb[115].mxu1 }
0x144e   : > { %v5496_v12 = vpop.f32.mrb[116].mxu1 }
0x144f   : > { %v7327_v55 = vpop.f32.mrb[117].mxu1  ;;  %v5603_v4 = vsel %vm2252_vm2, %v5496_v12, -inf }
0x1450   : > { %5604 = vmax.xlane.f32.xlu0 %v5603_v4  ;;  %v5499_v26 = vpop.f32.mrb[118].mxu1 }
0x1451   : > { %v7328_v42 = vpop.f32.mrb[119].mxu1  ;;  %v5606_v11 = vsel %vm2252_vm2, %v5499_v26, -inf }
0x1452   : > { %5607 = vmax.xlane.f32.xlu1 %v5606_v11 }
0x1456   : > { %v5590_v2 = vpop.f32.mrb[120].mxu1 }
0x1457   : > { %v7339_v37 = vpop.f32.mrb[121].mxu1  ;;  %v5615_v31 = vsel %vm2265_vm3, %v5590_v2, -inf }
0x1458   : > { %5616 = vmax.xlane.f32.xlu0 %v5615_v31  ;;  %v5593_v43 = vpop.f32.mrb[122].mxu1 }
0x1459   : > { %v7340_v0 = vpop.f32.mrb[123].mxu1  ;;  %v5618_v48 = vsel %vm2265_vm3, %v5593_v43, -inf }
0x145a   : > { %5619 = vmax.xlane.f32.xlu1 %v5618_v48 }
0x14c4   : > { %v5599_v25 = vpop.xlane.xlu0 %5598 }
0x14c6   : > { %v5602_v33 = vpop.xlane.xlu1 %5601 }
0x14cc   : > { %v5611_v27 = vpop.xlane.xlu0 %5610 }
0x14cd   : > { %v5621_v41 = vmax.f32 %v5599_v25, %v5611_v27 }
0x14cf   : > { %v5625_v10 = vsub.f32 %v5443_v17, %v5621_v41  ;;  %v5637_v15 = vsub.f32 %v5543_v38, %v5621_v41 }
0x14d0   : > { %v5614_v49 = vpop.xlane.xlu0 %5613 }
0x14d1   : > { %v5629_v51 = vmul.f32 1.442695, %v5625_v10  ;;  %v5641_v39 = vmul.f32 1.442695, %v5637_v15  ;;  %v5622_v7 = vmax.f32 %v5602_v33, %v5614_v49 }
0x14d3   : > { %7921 = vpow2.f32 %v5629_v51  ;;  %v5626_v14 = vsub.f32 %v5446_v20, %v5622_v7  ;;  %v5638_v55 = vsub.f32 %v5546_v34, %v5622_v7 }
0x14d4   : > { %7923 = vpow2.f32 %v5641_v39 }
0x14d5   : > { %v5631_v4 = vmul.f32 1.442695, %v5626_v14  ;;  %v5643_v42 = vmul.f32 1.442695, %v5638_v55 }
0x14d7   : > { %7925 = vpow2.f32 %v5631_v4 }
0x14d8   : > { %7927 = vpow2.f32 %v5643_v42 }
0x14dd   : > { %v9426_v11 = vpop.eup %7921  ;;  %v5605_v31 = vpop.xlane.xlu0 %5604 }
0x14de   : > { %v5649_v37 = vsel %vm2252_vm2, %v9426_v11, 0.0  ;;  %v9430_v17 = vpop.eup %7923 }
0x14df   : > { %5650 = vadd.xlane.f32.xlu0 %v5649_v37  ;;  %v5661_v20 = vsel %vm2265_vm3, %v9430_v17, 0.0  ;;  %v5608_v7 = vpop.xlane.xlu1 %5607 }
0x14e1   : > { %v9432_v38 = vpop.eup %7925 }
0x14e2   : > { %v5652_v34 = vsel %vm2252_vm2, %v9432_v38, 0.0  ;;  %v7928_v0 = vpop.eup %7927 }
0x14e3   : > { %5662 = vadd.xlane.f32.xlu0 %v5661_v20  ;;  %5653 = vadd.xlane.f32.xlu1 %v5652_v34  ;;  %v5664_v27 = vsel %vm2265_vm3, %v7928_v0, 0.0 }
0x14e5   : > { %v5617_v48 = vpop.xlane.xlu0 %5616 }
0x14e6   : > { %v5623_v25 = vmax.f32 %v5605_v31, %v5617_v48 }
0x14e7   : > { %5665 = vadd.xlane.f32.xlu1 %v5664_v27 }
0x14e8   : > { %v5627_v41 = vsub.f32 %v5496_v12, %v5623_v25  ;;  %v5639_v10 = vsub.f32 %v5590_v2, %v5623_v25  ;;  %v5620_v2 = vpop.xlane.xlu1 %5619 }
0x14e9   : > { %v5624_v14 = vmax.f32 %v5608_v7, %v5620_v2 }
0x14ea   : > { %v5633_v15 = vmul.f32 1.442695, %v5627_v41  ;;  %v5645_v33 = vmul.f32 1.442695, %v5639_v10 }
0x14eb   : > { %v5628_v55 = vsub.f32 %v5499_v26, %v5624_v14  ;;  %v5640_v42 = vsub.f32 %v5593_v43, %v5624_v14 }
0x14ec   : > { %7929 = vpow2.f32 %v5633_v15 }
0x14ed   : > { %7931 = vpow2.f32 %v5645_v33  ;;  %v5635_v4 = vmul.f32 1.442695, %v5628_v55  ;;  %v5647_v37 = vmul.f32 1.442695, %v5640_v42 }
0x14ef   : > { %7933 = vpow2.f32 %v5635_v4 }
0x14f0   : > { %7935 = vpow2.f32 %v5647_v37 }
0x14f6   : > { %v9439_v49 = vpop.eup %7929 }
0x14f7   : > { %v5655_v51 = vsel %vm2252_vm2, %v9439_v49, 0.0  ;;  %v9443_v39 = vpop.eup %7931 }
0x14f8   : > { %5656 = vadd.xlane.f32.xlu0 %v5655_v51  ;;  %5742 = vrot.lane.b32.xlu1 %v9670_v29, %s8185_s14  ;;  %v5667_v12 = vsel %vm2265_vm3, %v9443_v39, 0.0 }
0x14f9   : > { %v9455_v29 = vpop.eup %7933 }
0x14fa   : > { %v5658_v26 = vsel %vm2252_vm2, %v9455_v29, 0.0  ;;  %v9463_v43 = vpop.eup %7935 }
0x14fc   : > { %5668 = vadd.xlane.f32.xlu0 %v5667_v12 }
0x1512   : > { %5694 = vrot.lane.b32.xlu0 %v8634_v52, %s8185_s14  ;;  %v5670_v52 = vsel %vm2265_vm3, %v9463_v43, 0.0 }
0x1516   : > { %7526 = vrot.lane.b32.xlu0 %v7525_v62, %s8185_s14 }
0x151a   : > { %7531 = vrot.lane.b32.xlu0 %v7530_v21, %s8185_s14 }
0x151c   : > { %5659 = vadd.xlane.f32.xlu1 %v5658_v26 }
0x151e   : > { %7546 = vrot.lane.b32.xlu0 %v7545_v3, %s8185_s14 }
0x1520   : > { %5671 = vadd.xlane.f32.xlu1 %v5670_v52 }
0x1522   : > { %7556 = vrot.lane.b32.xlu0 %v7555_v53, %s8185_s14 }
0x1531   : > { %5789 = vrot.lane.b32.xlu1 %v8704_v23, %s8185_s14 }
0x1535   : > { %5839 = vrot.lane.b32.xlu1 %v8714_v45, %s8185_s14 }
0x156c   : > { %v5651_v40 = vpop.xlane.xlu0 %5650 }
0x1570   : > { %v5654_v36 = vpop.xlane.xlu1 %5653  ;;  %v5663_v28 = vpop.xlane.xlu0 %5662 }
0x1571   : > { %v5673_v9 = vadd.f32 %v5663_v28, %v5651_v40 }
0x1574   : > { %v5666_v21 = vpop.xlane.xlu1 %5665 }
0x1575   : > { %v5674_v62 = vadd.f32 %v5666_v21, %v5654_v36 }
0x1577   : > { %7937 = vrcp.f32 %v5674_v62 }
0x1578   : > { %v5743_v57 = vpop.permute.xlu1 %5742  ;;  %7939 = vrcp.f32 %v5673_v9  ;;  %v7711_v9 = vld [vmem:[#allocation10 + $0x48] sm:$0xff]  }
0x1579   : > { %7348 = vmatpush3.bf16.msra.mxu1 %v5743_v57  ;;  %v7709_v57 = vld [vmem:[#allocation10 + $0x40] sm:$0xff]  }
0x157a   : > { %7359 = vmatprep.subr.bf16.mxu1 %v9667_v24 }
0x1581   : > { %v7938_v47 = vpop.eup %7937 }
0x1582   : > { %v7940_v1 = vpop.eup %7939  ;;  %v5688_v23 = vmul.f32 %v7938_v47, %v7928_v0  ;;  %v5682_v40 = vmul.f32 %v7938_v47, %v9432_v38  ;;  %v7713_v38 = vld [vmem:[#allocation10 + $0x50] sm:$0xff]  }
0x1583   : > { %v5687_v3 = vmul.f32 %v7940_v1, %v9430_v17 }
0x1585   : > { %v5657_v32 = vpop.xlane.xlu0 %5656  ;;  %v5691_v31 = vpack.c.bf16 %v5688_v23, %v5687_v3 }
0x1589   : > { %v5669_v53 = vpop.xlane.xlu0 %5668 }
0x158d   : > { %v5695_v45 = vpop.permute.xlu0 %5694 }
0x158e   : > { %7342 = vmatpush3.bf16.msra.mxu0 %v5695_v45 }
0x158f   : > { %7353 = vmatprep.subr.bf16.mxu0 %v9667_v24 }
0x1591   : > { %v7527_v20 = vpop.permute.xlu0 %7526  ;;  %7344 = vmatmul.mubr.msk.bf16.vlgmr.msra.gmra.mrb[124].mxu0 %vm2265_vm3, %v5691_v31  ;;  %v7714_v31 = vld [vmem:[#allocation10 + $0x10] sm:$0xff]  }
0x1592   : > { %v7529_v34 = vunpack.i.h.bf16 %v7527_v20  ;;  %v7528_v48 = vunpack.i.l.bf16 %v7527_v20  ;;  %7355 = vmatprep.mubr.msk.bf16.mxu0 %vm8184_vm0, %v9667_v24  ;;  %v7715_v20 = vld [vmem:[#allocation10 + $0x58] sm:$0xff]  }
0x1594   : > { %v5957_v25 = vsel %vm2069_vm1, %v9002_v13, %v7528_v48  ;;  %v5958_v0 = vsel %vm2069_vm1, %v9004_v60, %v7529_v34  ;;  %v7716_v48 = vld [vmem:[#allocation10 + $0x18] sm:$0xff]  }
0x1595   : > { %v7532_v17 = vpop.permute.xlu0 %7531  ;;  %v5970_v27 = vpack.c.bf16 %v5958_v0, %v5957_v25  ;;  %v7718_v25 = vld [vmem:[#allocation10 + $0x20] sm:$0xff]   ;;  %v7719_v0 = vld [vmem:[#allocation10 + $0x68] sm:$0xff]  }
0x1596   : > { %v7534_v41 = vunpack.i.h.bf16 %v7532_v17  ;;  %v7533_v10 = vunpack.i.l.bf16 %v7532_v17 }
0x1598   : > { %v9491_v15 = vsel %vm2069_vm1, %v8802_v54, %v7534_v41  ;;  %v9495_v33 = vsel %vm2069_vm1, %v8800_v59, %v7533_v10  ;;  %v7720_v41 = vld [vmem:[#allocation10 + $0x28] sm:$0xff]   ;;  %v7721_v10 = vld [vmem:[#allocation10 + $0x70] sm:$0xff]  }
0x1599   : > { %v5969_v51 = vpack.c.bf16 %v9491_v15, %v9495_v33  ;;  %v7547_v7 = vpop.permute.xlu0 %7546  ;;  %v7731_v15 = vld [vmem:[#allocation10 + $0xd8] sm:$0xff]  }
0x159a   : > { %v7549_v13 = vunpack.i.h.bf16 %v7547_v7  ;;  %v7548_v12 = vunpack.i.l.bf16 %v7547_v7  ;;  %v7723_v7 = vld [vmem:[#allocation10 + $0x78] sm:$0xff]  }
0x159b   : > { %v7732_v33 = vld [vmem:[#allocation10 + $0x98] sm:$0xff]  }
0x159c   : > { %v9501_v60 = vsel %vm2069_vm1, %v9010_v50, %v7548_v12  ;;  %v9505_v2 = vsel %vm2069_vm1, %v9012_v18, %v7549_v13  ;;  %v5675_v18 = vadd.f32 %v5669_v53, %v5657_v32  ;;  %v7712_v53 = vld [vmem:[#allocation10 + $0x8] sm:$0xff]   ;;  %v7724_v13 = vld [vmem:[#allocation10 + $0x38] sm:$0xff]  }
0x159d   : > { %v7557_v54 = vpop.permute.xlu0 %7556  ;;  %v5974_v14 = vpack.c.bf16 %v9505_v2, %v9501_v60  ;;  %v7727_v12 = vld [vmem:[#allocation10 + $0xc8] sm:$0xff]   ;;  %v7734_v60 = vld [vmem:[#allocation10 + $0xa0] sm:$0xff]  }
0x159e   : > { %v7559_v59 = vunpack.i.h.bf16 %v7557_v54  ;;  %v7558_v55 = vunpack.i.l.bf16 %v7557_v54  ;;  %7941 = vrcp.f32 %v5675_v18  ;;  %v7728_v54 = vld [vmem:[#allocation10 + $0x88] sm:$0xff]  }
0x159f   : > { %v7735_v2 = vld [vmem:[#allocation10 + $0xe8] sm:$0xff]  }
0x15a0   : > { %v9511_v4 = vsel %vm2069_vm1, %v8804_v19, %v7558_v55  ;;  %v9515_v42 = vsel %vm2069_vm1, %v8807_v58, %v7559_v59  ;;  %v5681_v19 = vmul.f32 %v7940_v1, %v9426_v11  ;;  %v7710_v58 = vld [vmem:[#allocation10] sm:$0xff]   ;;  %v7729_v59 = vld [vmem:[#allocation10 + $0xd0] sm:$0xff]  }
0x15a1   : > { %v5973_v50 = vpack.c.bf16 %v9515_v42, %v9511_v4  ;;  %v7730_v55 = vld [vmem:[#allocation10 + $0x90] sm:$0xff]  }
0x15a2   : > { %v5685_v62 = vpack.c.bf16 %v5682_v40, %v5681_v19  ;;  %v7737_v4 = vld [vmem:[#allocation10 + $0xf0] sm:$0xff]  }
0x15a3   : > { %v7738_v42 = vld [vmem:[#allocation10 + $0xb0] sm:$0xff]  }
0x15a8   : > { %v7942_v23 = vpop.eup %7941 }
0x15a9   : > { %v5660_v37 = vpop.xlane.xlu1 %5659  ;;  %v5689_v47 = vmul.f32 %v7942_v23, %v9443_v39  ;;  %v7717_v39 = vld [vmem:[#allocation10 + $0x60] sm:$0xff]   ;;  %v5683_v17 = vmul.f32 %v7942_v23, %v9439_v49 }
0x15aa   : > { %v7725_v49 = vld [vmem:[#allocation10 + $0xc0] sm:$0xff]  }
0x15ad   : > { %v5672_v26 = vpop.xlane.xlu1 %5671 }
0x15ae   : > { %v5676_v52 = vadd.f32 %v5672_v26, %v5660_v37  ;;  %v7740_v37 = vld [vmem:[#allocation10 + $0xb8] sm:$0xff]  }
0x15b0   : > { %7943 = vrcp.f32 %v5676_v52 }
0x15b1   : > { %v5790_v36 = vpop.permute.xlu1 %5789 }
0x15b2   : > { %v5791_v21 = vrot.slane %v5790_v36, 4 }
0x15b4   : > { %v5796_v28 = vsel %vm2441_vm4, %v5791_v21, 0  ;;  %v9671_v21 = vpack.i.bf16 %v9318_v63, %v9316_v35 }
0x15b5   : > { %7354 = vmatpush3.bf16.msra.mxu0 %v5796_v28  ;;  %v5840_v32 = vpop.permute.xlu1 %5839 }
0x15b6   : > { %6925 = vmatprep.subr.bf16.mxu0 %v7709_v57  ;;  %v5841_v1 = vrot.slane %v5840_v32, 4 }
0x15b8   : > { %7356 = vmatmul.mubr.msk.bf16.vlgmr.msra.gmra.mrb[124].mxu0 %vm2252_vm2, %v5685_v62  ;;  %v5846_v34 = vsel %vm2441_vm4, %v5841_v1, 0 }
0x15b9   : > { %6926 = vmatpush3.bf16.msra.mxu0 %v7710_v58  ;;  %6265 = vmatprep.mubr.bf16.mxu0 %v5970_v27 }
0x15ba   : > { %v7944_v3 = vpop.eup %7943  ;;  %6927 = vmatprep.subr.bf16.mxu0 %v7711_v9  ;;  %v9672_v9 = vpack.i.bf16 %v9328_v30, %v9326_v46 }
0x15bb   : > { %v5690_v11 = vmul.f32 %v7944_v3, %v9463_v43  ;;  %v5684_v43 = vmul.f32 %v7944_v3, %v9455_v29  ;;  %v7726_v29 = vld [vmem:[#allocation10 + $0x80] sm:$0xff]  }
0x15bd   : > { %6928 = vmatpush3.bf16.msra.mxu0 %v7712_v53  ;;  %v5692_v45 = vpack.c.bf16 %v5690_v11, %v5689_v47  ;;  %v5686_v27 = vpack.c.bf16 %v5684_v43, %v5683_v17 }
0x15be   : > { %6929 = vmatprep.subr.bf16.mxu0 %v7713_v38 }
0x15bf   : > { %7350 = vmatmul.mubr.msk.bf16.vlgmr.msra.gmra.mrb[124].mxu1 %vm2265_vm3, %v5692_v45 }
0x15c0   : > { %7360 = vmatpush3.bf16.msra.mxu1 %v5846_v34  ;;  %7361 = vmatprep.mubr.msk.bf16.mxu1 %vm8184_vm0, %v9667_v24  ;;  %v7722_v24 = vld [vmem:[#allocation10 + $0x30] sm:$0xff]  }
0x15c1   : > { %6930 = vmatpush3.bf16.msra.mxu0 %v7714_v31  ;;  %6953 = vmatprep.subr.bf16.mxu1 %v7725_v49 }
0x15c2   : > { %6931 = vmatprep.subr.bf16.mxu0 %v7715_v20 }
0x15c5   : > { %6932 = vmatpush3.bf16.msra.mxu0 %v7716_v48 }
0x15c6   : > { %6933 = vmatprep.subr.bf16.mxu0 %v7717_v39 }
0x15c9   : > { %6934 = vmatpush3.bf16.msra.mxu0 %v7718_v25 }
0x15ca   : > { %6935 = vmatprep.subr.bf16.mxu0 %v7719_v0 }
0x15cb   : > { %7362 = vmatmul.mubr.msk.bf16.vlgmr.msra.gmra.mrb[124].mxu1 %vm2252_vm2, %v5686_v27 }
0x15cc   : > { %6954 = vmatpush3.bf16.msra.mxu1 %v7726_v29 }
0x15cd   : > { %6936 = vmatpush3.bf16.msra.mxu0 %v7720_v41  ;;  %6955 = vmatprep.subr.bf16.mxu1 %v7727_v12 }
0x15ce   : > { %6937 = vmatprep.subr.bf16.mxu0 %v7721_v10 }
0x15d0   : > { %6956 = vmatpush3.bf16.msra.mxu1 %v7728_v54 }
0x15d1   : > { %6938 = vmatpush3.bf16.msra.mxu0 %v7722_v24  ;;  %6957 = vmatprep.subr.bf16.mxu1 %v7729_v59 }
0x15d2   : > { %6939 = vmatprep.subr.bf16.mxu0 %v7723_v7 }
0x15d4   : > { %6958 = vmatpush3.bf16.msra.mxu1 %v7730_v55 }
0x15d5   : > { %6940 = vmatpush3.bf16.msra.mxu0 %v7724_v13  ;;  %6959 = vmatprep.subr.bf16.mxu1 %v7731_v15 }
0x15d8   : > { %6266 = vmatmul.mubr.bf16.vlgmr.msra.gmra.mrb[128].mxu0 %v5969_v51  ;;  %v7733_v51 = vld [vmem:[#allocation10 + $0xe0] sm:$0xff]   ;;  %6960 = vmatpush3.bf16.msra.mxu1 %v7732_v33 }
0x15d9   : > { %6273 = vmatprep.mubr.bf16.mxu0 %v5974_v14  ;;  %6961 = vmatprep.subr.bf16.mxu1 %v7733_v51  ;;  %v7736_v14 = vld [vmem:[#allocation10 + $0xa8] sm:$0xff]  }
0x15dc   : > { %6962 = vmatpush3.bf16.msra.mxu1 %v7734_v60 }
0x15dd   : > { %6963 = vmatprep.subr.bf16.mxu1 %v7735_v2 }
0x15e0   : > { %6274 = vmatmul.mubr.bf16.gmra.mrb[132].mxu0 %v5973_v50  ;;  %6964 = vmatpush3.bf16.msra.mxu1 %v7736_v14  ;;  %v7739_v50 = vld [vmem:[#allocation10 + $0xf8] sm:$0xff]  }
0x15e1   : > { %6965 = vmatprep.subr.bf16.mxu1 %v7737_v4 }
0x15e4   : > { %6966 = vmatpush3.bf16.msra.mxu1 %v7738_v42 }
0x15e5   : > { %6967 = vmatprep.subr.bf16.mxu1 %v7739_v50 }
0x15e8   : > { %6968 = vmatpush3.bf16.msra.mxu1 %v7740_v37 }
0x168b   : > { %v5832_v18 = vpop.f32.mrb[124].mxu0 }
0x168c   : > { %v7357_v26 = vpop.f32.mrb[125].mxu0 }
0x168d   : > { %v5835_v52 = vpop.f32.mrb[126].mxu0 }
0x168e   : > { %v7535_v36 = vpack.i.bf16 %v5835_v52, %v5832_v18  ;;  %v7358_v40 = vpop.f32.mrb[127].mxu0 }
0x1690   : > { %7536 = vrot.lane.b32.xlu1 %v7535_v36, %s8185_s14 }
0x1694   : > { %7541 = vrot.lane.b32.xlu1 %v9671_v21, %s8185_s14 }
0x169e   : > { %v5882_v57 = vpop.f32.mrb[124].mxu1 }
0x169f   : > { %v7363_v19 = vpop.f32.mrb[125].mxu1 }
0x16a0   : > { %v5885_v28 = vpop.f32.mrb[126].mxu1 }
0x16a1   : > { %v7550_v58 = vpack.i.bf16 %v5885_v28, %v5882_v57  ;;  %v7364_v62 = vpop.f32.mrb[127].mxu1 }
0x16a3   : > { %7551 = vrot.lane.b32.xlu1 %v7550_v58, %s8185_s14 }
0x16a7   : > { %7561 = vrot.lane.b32.xlu1 %v9672_v9, %s8185_s14 }
0x16ab   : > { %v6941_v23 = vpop.f32.mrb[128].mxu0 }
0x16ac   : > { %v6942_v32 = vpop.f32.mrb[129].mxu0 }
0x16ad   : > { %v6943_v53 = vadd.f32 %v6942_v32, %v6941_v23  ;;  %v6944_v3 = vpop.f32.mrb[130].mxu0 }
0x16ae   : > { %v6945_v38 = vpop.f32.mrb[131].mxu0 }
0x16af   : > { %v6946_v47 = vadd.f32 %v6945_v38, %v6944_v3 }
0x16b3   : > { %v6947_v35 = vpop.f32.mrb[132].mxu0 }
0x16b4   : > { %v6948_v63 = vpop.f32.mrb[133].mxu0 }
0x16b5   : > { %v6949_v11 = vadd.f32 %v6948_v63, %v6947_v35  ;;  %v6950_v1 = vpop.f32.mrb[134].mxu0 }
0x16b6   : > { %v6951_v45 = vpop.f32.mrb[135].mxu0 }
0x16b7   : > { %v6952_v31 = vadd.f32 %v6951_v45, %v6950_v1 }
0x1702   : > { %v7537_v20 = vpop.permute.xlu1 %7536 }
0x1703   : > { %v7539_v34 = vunpack.i.h.bf16 %v7537_v20  ;;  %v7538_v48 = vunpack.i.l.bf16 %v7537_v20 }
0x1705   : > { %v5965_v39 = vsel %vm2069_vm1, %v9410_v6, %v7538_v48  ;;  %v5966_v46 = vsel %vm2069_vm1, %v9412_v56, %v7539_v34 }
0x1706   : > { %v7542_v30 = vpop.permute.xlu1 %7541  ;;  %v5972_v43 = vpack.c.bf16 %v5966_v46, %v5965_v39 }
0x1707   : > { %v7544_v25 = vunpack.i.h.bf16 %v7542_v30  ;;  %v7543_v0 = vunpack.i.l.bf16 %v7542_v30 }
0x1708   : > { %6314 = vmatprep.mubr.bf16.mxu1 %v5972_v43 }
0x1709   : > { %v5962_v17 = vsel %vm2069_vm1, %v9206_v8, %v7544_v25  ;;  %v5961_v27 = vsel %vm2069_vm1, %v9204_v16, %v7543_v0 }
0x170a   : > { %v5971_v41 = vpack.c.bf16 %v5962_v17, %v5961_v27 }
0x170c   : > { %6315 = vmatmul.mubr.bf16.vlgmr.msra.gmra.mrb[128].mxu1 %v5971_v41 }
0x1715   : > { %v7552_v10 = vpop.permute.xlu1 %7551 }
0x1716   : > { %v7554_v24 = vunpack.i.h.bf16 %v7552_v10  ;;  %v7553_v7 = vunpack.i.l.bf16 %v7552_v10 }
0x1718   : > { %v5967_v6 = vsel %vm2069_vm1, %v9418_v61, %v7553_v7  ;;  %v5968_v56 = vsel %vm2069_vm1, %v9420_v22, %v7554_v24 }
0x1719   : > { %v7562_v13 = vpop.permute.xlu1 %7561  ;;  %v5976_v49 = vpack.c.bf16 %v5968_v56, %v5967_v6 }
0x171a   : > { %v7564_v29 = vunpack.i.h.bf16 %v7562_v13  ;;  %v7563_v12 = vunpack.i.l.bf16 %v7562_v13 }
0x171b   : > { %6322 = vmatprep.mubr.bf16.mxu1 %v5976_v49 }
0x171c   : > { %v5963_v16 = vsel %vm2069_vm1, %v9212_v5, %v7563_v12  ;;  %v5964_v8 = vsel %vm2069_vm1, %v9214_v44, %v7564_v29 }
0x171d   : > { %v5975_v54 = vpack.c.bf16 %v5964_v8, %v5963_v16 }
0x171f   : > { %6323 = vmatmul.mubr.bf16.gmra.mrb[132].mxu1 %v5975_v54 }
0x17df   : > { %v6969_v59 = vpop.f32.mrb[128].mxu1 }
0x17e0   : > { %v6970_v61 = vpop.f32.mrb[129].mxu1 }
0x17e1   : > { %v6971_v55 = vadd.f32 %v6970_v61, %v6969_v59  ;;  %v6972_v15 = vpop.f32.mrb[130].mxu1 }
0x17e2   : > { %v6973_v22 = vpop.f32.mrb[131].mxu1 }
0x17e3   : > { %v6317_v33 = vadd.f32 %v6971_v55, %v6943_v53  ;;  %v6974_v51 = vadd.f32 %v6973_v22, %v6972_v15 }
0x17e5   : > { %6331 = vst [vmem:[%s434_s18] sm:$0xff] %v6317_v33  ;;  %v6320_v60 = vadd.f32 %v6974_v51, %v6946_v47 }
0x17e7   : > { %6332 = vst [vmem:[%s434_s18 + $0x8] sm:$0xff] %v6320_v60 }
0x17f2   : > { %v6975_v5 = vpop.f32.mrb[132].mxu1 }
0x17f3   : > { %v6976_v44 = vpop.f32.mrb[133].mxu1 }
0x17f4   : > { %v6977_v2 = vadd.f32 %v6976_v44, %v6975_v5  ;;  %v6978_v14 = vpop.f32.mrb[134].mxu1 }
0x17f5   : > { %v6979_v4 = vpop.f32.mrb[135].mxu1 }
0x17f6   : > { %v6325_v42 = vadd.f32 %v6977_v2, %v6949_v11  ;;  %v6980_v50 = vadd.f32 %v6979_v4, %v6978_v14 }
0x17f8   : > { %6333 = vst [vmem:[%s434_s18 + $0x10] sm:$0xff] %v6325_v42  ;;  %v6328_v37 = vadd.f32 %v6980_v50, %v6952_v31 }
0x17fa   : > { %6334 = vst [vmem:[%s434_s18 + $0x18] sm:$0xff] %v6328_v37 }
0x17fb   : > { %8102 = shalt.err (!%p8099_p3)
}
0x17fc   : > { %s8103_s30 = scalar_lea.hbm %s9575_s7, 512  ;;  %s8107_s0 = scalar_lea.hbm %s9628_s9, 1024 }
0x17fd   : > { %p8104_p9 = scmp.ne.s32.totalorder %s9575_s7, %s8103_s30  ;;  %p8108_p7 = scmp.lt.u32.totalorder %s9575_s7, %s9628_s9 }
0x17fe   : > { %p8109_p12 = scmp.lt.u32.totalorder %s8107_s0, %s8103_s30  ;;  %p8111_p1 = scmp.lt.u32.totalorder %s8103_s30, %s9575_s7 }
0x17ff   : > { %p8105_p13 = pnand %p8104_p9, %p8381_p5 }
0x1800   : > { %p8110_p2 = por %p8109_p12, %p8108_p7 }
0x1801   : > { %p8106_p11 = pneg %p8105_p13 }
0x1802   : > { %p8112_p4 = por %p8111_p1, %p8110_p2 }
0x1804   : > { %p8113_p0 = pnand %p8112_p4, %p8106_p11 }
0x1806   : > { %8116 = shalt.err (!%p8113_p0)
}
0x1807   : > { %s8187_s29 = smov 128   ;;  %s8188_s14 = smov 8  }
0x1808   : > { %7445 = dma.vmem_to_hbm [thread:$0]  (%p8381_p5), %s9570_s22, 512, %s9575_s7, %s6336_s8, %s8187_s29, %s8187_s29, %s8188_s14  }
0x1809 PF: > { %s9673_s18 = sld [smem:[#allocation17_spill]]  ;;  %s9674_s24 = sld [smem:[#allocation18_spill]] }
0x180a   : > { %p9676_p6 = scmp.ge.s32.totalorder %s8167_s12, 2 }
0x180f   : > { %s6365_s20 = sand.u32 1, %s9673_s18   ;;  %p9675_p8 = scmp.ne.s32.totalorder %s9674_s24, 0 }
0x1810   : > { %s6366_s19 = scalar_lea.sflag [#allocation4], %s6365_s20 }
0x1811   : > { %p7465_p10 = pnand %p9676_p6, %p9675_p8 }
0x1813   : > { %8150 = dma.done.wait (!%p7465_p10), %s6366_s19, 512  }
0x1814   : > { %8152 = vsyncadd (!%p7465_p10), %s6366_s19, 4294966784  ;;  %s9677_s17 = sld [smem:[#allocation19_spill]]  ;;  %p26_p3 = scmp.ge.s32.totalorder %s8367_s21, 4  }
0x1815   : > { %s9678_s30 = smov %s8159_s10  ;;  %s9679_s10 = smov %s8163_s11 }
0x1816   : > { %s9681_s12 = smov %s8367_s21  ;;  %28 = sbr.rel (!%p26_p3) target bundleno = 13 (0xd), region = 126 }
0x181a   : > { %s9680_s11 = smov %s9677_s17 }
0x181d   :  { %6371 = vsyncpa [#allocation3], 1 }
0x181e   :  { %6373 = vsyncpa [#allocation3 + $0x1], 1 }
0x181f   :  { %6374 = vsyncpa [#allocation6], 1 }
0x1820   :  { %6376 = vsyncpa [#allocation6 + $0x1], 1 }
0x1821   :  { %6377 = vsyncpa [#allocation9], 1 }
0x1822   :  { %6378 = vsyncpa [#allocation4], 1 }
0x1823   :  { %6380 = vsyncpa [#allocation4 + $0x1], 1 }

</bundles_post_ra>
